<compile_context>
chip_gen: v7x
topology: tpu7x:2x2x1
jax: 0.10.0
libtpu: 0.0.40
codegen_flags: <defaults>
</compile_context>

<pallas_src>
import functools
import math

import jax
import jax.numpy as jnp
from jax.experimental import pallas as pl
from jax.experimental.pallas import tpu as pltpu


def _layernorm(x, gamma, beta, eps=1e-5):
    mean = jnp.mean(x, axis=-1, keepdims=True)
    var = jnp.mean((x - mean) ** 2, axis=-1, keepdims=True)
    return (x - mean) * jax.lax.rsqrt(var + eps) * gamma + beta


# ---------------------------------------------------------------------------
# Kernel: one EncoderBlock over a (Bt, S, D) slab of sequences
# ---------------------------------------------------------------------------
def encoder_block_kernel(
    x_ref,                       # (Bt, S, D)  f32
    wqkv_ref, bqkv_ref,          # (D, 3D) bf16, (1, 3D) f32  [Q|K|V head-major, scale in Q]
    wfc_ref, bfc_ref,            # (D, D)  bf16, (1, D)  f32
    ln1g_ref, ln1b_ref,          # (1, D) f32
    w1_ref, b1_ref,              # (D, Dh) bf16, (1, Dh) f32
    w2_ref, b2_ref,              # (Dh, D) bf16, (1, D)  f32
    ln2g_ref, ln2b_ref,          # (1, D) f32
    o_ref,                       # (Bt, S, D)
    *, n_heads, approx_recip,
):
    Bt, S, D = x_ref.shape
    dh = D // n_heads
    N = Bt * S

    x = x_ref[...].astype(jnp.float32).reshape(N, D)           # (N, D) f32
    x16 = x.astype(jnp.bfloat16)

    # ---- fused QKV projection: one big-M bf16 MXU matmul over Bt*S rows ----
    qkv = jnp.dot(x16, wqkv_ref[...],
                  preferred_element_type=jnp.float32) + bqkv_ref[...]   # (N, 3D) f32
    # bf16 for all downstream MXU ops; halves the largest live intermediate.
    qkv = qkv.astype(jnp.bfloat16)

    # ---- multi-head attention ---------------------------------------------
    # Heads are statically unrolled; each head uses single-batch-dim einsums
    # (the known-good Mosaic lowering pattern).  1/sqrt(d_model) is already
    # folded into the Q columns of wqkv.
    # TODO(synk): fold the head loop into one batched einsum once multi-batch
    #             dot_general lowering is guaranteed on all target chips.
    ctx_heads = []
    for h in range(n_heads):
        lo = h * dh
        q = qkv[:, lo:lo + dh].reshape(Bt, S, dh)               # bf16
        k = qkv[:, D + lo:D + lo + dh].reshape(Bt, S, dh)       # bf16
        v = qkv[:, 2 * D + lo:2 * D + lo + dh].reshape(Bt, S, dh)

        s = jnp.einsum("bqd,bkd->bqk", q, k,
                       preferred_element_type=jnp.float32)      # (Bt, S, S) f32
        s = s - jnp.max(s, axis=-1, keepdims=True)
        p = jnp.exp(s)
        denom = jnp.sum(p, axis=-1, keepdims=True)
        if approx_recip:
            p = p * pl.reciprocal(denom, approx=True)
        else:
            p = p / denom
        ctx = jnp.einsum("bqk,bkd->bqd", p.astype(jnp.bfloat16), v,
                         preferred_element_type=jnp.float32)    # (Bt, S, dh) f32
        ctx_heads.append(ctx.astype(jnp.bfloat16))

    # Head-major concatenation matches wfc's row order -> ONE output
    # projection matmul at full K = D contraction depth.
    ctx_all = jnp.concatenate(ctx_heads, axis=-1).reshape(N, D)  # (N, D) bf16
    attn_out = jnp.dot(ctx_all, wfc_ref[...],
                       preferred_element_type=jnp.float32) + bfc_ref[...]

    x1 = x + attn_out                                            # residual 1 (dropout p=0)

    # ---- MLP: LayerNorm -> Linear -> ReLU -> Linear ------------------------
    h1 = _layernorm(x1, ln1g_ref[...], ln1b_ref[...]).astype(jnp.bfloat16)
    h1 = jnp.dot(h1, w1_ref[...], preferred_element_type=jnp.float32) + b1_ref[...]
    h1 = jnp.maximum(h1, 0.0).astype(jnp.bfloat16)
    mlp = jnp.dot(h1, w2_ref[...], preferred_element_type=jnp.float32) + b2_ref[...]
    x2 = x1 + mlp                                                # residual 2

    y = _layernorm(x2, ln2g_ref[...], ln2b_ref[...])             # final LayerNorm
    o_ref[...] = y.reshape(Bt, S, D).astype(o_ref.dtype)


# ---------------------------------------------------------------------------
# Generation-gated tuning knobs
# ---------------------------------------------------------------------------
def _tpu_vmem_capacity_bytes():
    try:
        return int(pltpu.get_tpu_info().vmem_capacity_bytes)
    except Exception:
        return 64 * 1024 * 1024          # conservative (v7x-sized) fallback


def _generation_params():
    cap = _tpu_vmem_capacity_bytes()
    if cap >= 100 * 1024 * 1024:         # v5e / v6e: 128 MiB physical VMEM
        return {"vmem_limit": 100 * 1024 * 1024, "max_rows": 2048}
    # v7x: 64 MiB physical VMEM -> keep headroom
    return {"vmem_limit": 48 * 1024 * 1024, "max_rows": 1024}


def _choose_batch_tile(B, S, max_rows, min_steps=4):
    """Largest batch-tile divisor of B such that Bt*S <= max_rows, preferring
    >= min_steps grid steps with an even step count (>= 2 steps per TC on
    v7x's two TensorCores), degrading gracefully for tiny batches."""
    divs = [d for d in range(1, B + 1) if B % d == 0]
    fit = [d for d in divs if d * S <= max_rows] or [1]
    for steps_req, need_even in ((min_steps, True), (min_steps, False),
                                 (2, True), (2, False), (1, False)):
        cands = [d for d in fit
                 if B // d >= steps_req and (not need_even or (B // d) % 2 == 0)]
        if cands:
            return cands[-1]
    return fit[-1]


def _const_spec(shape, single_buffer):
    nd = len(shape)
    idx = lambda b, _nd=nd: (0,) * _nd   # constant block: DMA'd once, stays resident
    if single_buffer and hasattr(pl, "Buffered"):
        try:
            return pl.BlockSpec(shape, idx, pipeline_mode=pl.Buffered(1))
        except TypeError:
            pass                          # pipeline_mode kwarg unavailable
    return pl.BlockSpec(shape, idx)


# ---------------------------------------------------------------------------
# Wrapper
# ---------------------------------------------------------------------------
def encoder_block_apply(x, params, *, n_heads, batch_tile=None,
                        single_buffer_weights=True, approx_recip=True):
    B, S, D = x.shape
    gen = _generation_params()
    Bt = batch_tile if batch_tile is not None else _choose_batch_tile(
        B, S, max_rows=gen["max_rows"])
    assert B % Bt == 0

    kernel = functools.partial(encoder_block_kernel,
                               n_heads=n_heads, approx_recip=approx_recip)

    in_specs = [
        pl.BlockSpec((Bt, S, D), lambda b: (b, 0, 0)),                    # x slab
        _const_spec(params["wqkv"].shape, single_buffer_weights),
        _const_spec(params["bqkv"].shape, single_buffer_weights),
        _const_spec(params["wfc"].shape, single_buffer_weights),
        _const_spec(params["bfc"].shape, single_buffer_weights),
        _const_spec(params["ln1g"].shape, single_buffer_weights),
        _const_spec(params["ln1b"].shape, single_buffer_weights),
        _const_spec(params["w1"].shape, single_buffer_weights),
        _const_spec(params["b1"].shape, single_buffer_weights),
        _const_spec(params["w2"].shape, single_buffer_weights),
        _const_spec(params["b2"].shape, single_buffer_weights),
        _const_spec(params["ln2g"].shape, single_buffer_weights),
        _const_spec(params["ln2b"].shape, single_buffer_weights),
    ]
    out_specs = pl.BlockSpec((Bt, S, D), lambda b: (b, 0, 0))

    return pl.pallas_call(
        kernel,
        out_shape=jax.ShapeDtypeStruct((B, S, D), x.dtype),
        grid=(B // Bt,),
        in_specs=in_specs,
        out_specs=out_specs,
        compiler_params=pltpu.CompilerParams(
            dimension_semantics=("parallel",),
            vmem_limit_bytes=gen["vmem_limit"],
        ),
    )(
        x,
        params["wqkv"], params["bqkv"],
        params["wfc"], params["bfc"],
        params["ln1g"], params["ln1b"],
        params["w1"], params["b1"],
        params["w2"], params["b2"],
        params["ln2g"], params["ln2b"],
    )


def encoder_apply(x, all_params, *, n_heads, single_buffer_weights=True,
                  approx_recip=True):
    # TODO(synk): P10 cross-pallas_call weight prefetch so layer i+1's weight
    # DMA overlaps layer i's compute; layers currently run as independent calls.
    for params in all_params:
        x = encoder_block_apply(x, params, n_heads=n_heads,
                                single_buffer_weights=single_buffer_weights,
                                approx_recip=approx_recip)
    return x


# ---------------------------------------------------------------------------
# Parameter handling: PyTorch-layout params -> kernel layout
# ---------------------------------------------------------------------------
def init_torch_style_params(key, d_model, d_hidden):
    """Parameters in PyTorch nn.Linear layout: weight (out, in), bias (out,)."""
    ks = jax.random.split(key, 8)
    std = 0.05
    lin = lambda k, o, i: jax.random.normal(k, (o, i), jnp.float32) * std
    vec = lambda k, o: jax.random.normal(k, (o,), jnp.float32) * std
    return {
        "qkv_w": lin(ks[0], 3 * d_model, d_model), "qkv_b": vec(ks[1], 3 * d_model),
        "fc_w":  lin(ks[2], d_model, d_model),     "fc_b":  vec(ks[3], d_model),
        "ln1_w": jnp.ones((d_model,), jnp.float32), "ln1_b": jnp.zeros((d_model,), jnp.float32),
        "fc1_w": lin(ks[4], d_hidden, d_model),    "fc1_b": vec(ks[5], d_hidden),
        "fc2_w": lin(ks[6], d_model, d_hidden),    "fc2_b": vec(ks[7], d_model),
        "ln2_w": jnp.ones((d_model,), jnp.float32), "ln2_b": jnp.zeros((d_model,), jnp.float32),
    }


def prepare_block_params(p, d_model, n_heads, wdtype=jnp.bfloat16):
    """Transpose to (in, out), reorder QKV columns into contiguous [Q|K|V]
    (head-major) blocks, fold the 1/sqrt(d_model) scale into Q, cast weights
    to bf16 (biases / LN params stay f32)."""
    D, H = d_model, n_heads
    assert D % H == 0, "model dimension is not compatible with number of heads"
    dh = D // H
    scale = 1.0 / math.sqrt(D)            # PyTorch module uses 1/sqrt(d_model)

    wqkv = p["qkv_w"].T                   # (D, 3D), PyTorch column order
    bqkv = p["qkv_b"]
    # PyTorch: col = h*3*dh + which*dh + j   ->   new col = which*D + h*dh + j
    perm = jnp.arange(3 * D).reshape(H, 3, dh).transpose(1, 0, 2).reshape(3 * D)
    wqkv = wqkv[:, perm]
    bqkv = bqkv[perm]
    scale_vec = jnp.concatenate(
        [jnp.full((D,), scale, jnp.float32), jnp.ones((2 * D,), jnp.float32)])
    wqkv = wqkv * scale_vec[None, :]
    bqkv = bqkv * scale_vec

    return {
        "wqkv": wqkv.astype(wdtype), "bqkv": bqkv.reshape(1, 3 * D).astype(jnp.float32),
        "wfc":  p["fc_w"].T.astype(wdtype), "bfc": p["fc_b"].reshape(1, D).astype(jnp.float32),
        "ln1g": p["ln1_w"].reshape(1, D).astype(jnp.float32),
        "ln1b": p["ln1_b"].reshape(1, D).astype(jnp.float32),
        "w1":   p["fc1_w"].T.astype(wdtype), "b1": p["fc1_b"].reshape(1, -1).astype(jnp.float32),
        "w2":   p["fc2_w"].T.astype(wdtype), "b2": p["fc2_b"].reshape(1, D).astype(jnp.float32),
        "ln2g": p["ln2_w"].reshape(1, D).astype(jnp.float32),
        "ln2b": p["ln2_b"].reshape(1, D).astype(jnp.float32),
    }


# ---------------------------------------------------------------------------
# Pure-JAX reference (PyTorch semantics, f32) for a sanity check
# ---------------------------------------------------------------------------
def _encoder_block_ref(x, p, n_heads):
    B, S, D = x.shape
    dh = D // n_heads
    scale = 1.0 / math.sqrt(D)
    qkv = x @ p["qkv_w"].T + p["qkv_b"]                              # (B,S,3D)
    ctx = qkv.reshape(B, S, n_heads, 3 * dh).transpose(0, 2, 1, 3)   # (B,H,S,3dh)
    q, k, v = jnp.split(ctx, 3, axis=-1)
    attn = jnp.einsum("bhqd,bhkd->bhqk", q, k) * scale
    att = jnp.einsum("bhqk,bhkd->bhqd", jax.nn.softmax(attn, axis=-1), v)
    att = att.transpose(0, 2, 1, 3).reshape(B, S, D)
    x = x + (att @ p["fc_w"].T + p["fc_b"])
    h = _layernorm(x, p["ln1_w"], p["ln1_b"])
    h = jnp.maximum(h @ p["fc1_w"].T + p["fc1_b"], 0.0)
    x = x + (h @ p["fc2_w"].T + p["fc2_b"])
    return _layernorm(x, p["ln2_w"], p["ln2_b"])


def _encoder_ref(x, torch_params, n_heads):
    for p in torch_params:
        x = _encoder_block_ref(x, p, n_heads)
    return x


if __name__ == "__main__":
    # Small, forward-consistent shapes (D multiple of 128 -> lane-dense stores).
    batch, seq_len = 8, 8
    d_model, n_heads, d_hidden, n_blocks = 128, 4, 256, 2

    key = jax.random.PRNGKey(0)
    key, xk = jax.random.split(key)
    x = jax.random.normal(xk, (batch, seq_len, d_model), jnp.float32)

    block_keys = jax.random.split(key, n_blocks)
    torch_params = [init_torch_style_params(k, d_model, d_hidden) for k in block_keys]
    kernel_params = [prepare_block_params(p, d_model, n_heads) for p in torch_params]

    def build_runner(single_buffer_weights):
        return jax.jit(lambda xx, ps: encoder_apply(
            xx, ps, n_heads=n_heads, single_buffer_weights=single_buffer_weights))

    try:
        out = jax.block_until_ready(build_runner(True)(x, kernel_params))
    except Exception:
        # Fallback: current Pallas build rejected single-buffered weight specs.
        out = jax.block_until_ready(build_runner(False)(x, kernel_params))

    assert out.shape == (batch, seq_len, d_model)
    assert bool(jnp.all(jnp.isfinite(out)))

    # numerical sanity vs f32 reference (kernel uses bf16 matmul inputs)
    ref = _encoder_ref(x, torch_params, n_heads)
    max_err = float(jnp.max(jnp.abs(out - ref)))
    assert max_err < 0.2, f"max abs err {max_err}"

    print("KERNEL_OK")
</pallas_src>

<mosaic_0001>
module attributes {stable_mosaic.version = 11 : i64} {
  func.func @encoder_block_kernel(%arg0: i32, %arg1: memref<2x8x128xf32, #tpu.memory_space<vmem>>, %arg2: memref<128x384xbf16, #tpu.memory_space<vmem>>, %arg3: memref<1x384xf32, #tpu.memory_space<vmem>>, %arg4: memref<128x128xbf16, #tpu.memory_space<vmem>>, %arg5: memref<1x128xf32, #tpu.memory_space<vmem>>, %arg6: memref<1x128xf32, #tpu.memory_space<vmem>>, %arg7: memref<1x128xf32, #tpu.memory_space<vmem>>, %arg8: memref<128x256xbf16, #tpu.memory_space<vmem>>, %arg9: memref<1x256xf32, #tpu.memory_space<vmem>>, %arg10: memref<256x128xbf16, #tpu.memory_space<vmem>>, %arg11: memref<1x128xf32, #tpu.memory_space<vmem>>, %arg12: memref<1x128xf32, #tpu.memory_space<vmem>>, %arg13: memref<1x128xf32, #tpu.memory_space<vmem>>, %arg14: memref<2x8x128xf32, #tpu.memory_space<vmem>>) attributes {dimension_semantics = [#tpu.dimension_semantics<parallel>], iteration_bounds = array<i64: 4>, scalar_prefetch = 0 : i64, scratch_operands = 0 : i64, tpu.core_type = #tpu.core_type<tc>, window_params = [{transform_indices = @transform_0, window_bounds = array<i64: 2, 8, 128>}, {pipeline_mode = #tpu.pipeline_mode<synchronous>, transform_indices = @transform_1, window_bounds = array<i64: 128, 384>}, {pipeline_mode = #tpu.pipeline_mode<synchronous>, transform_indices = @transform_2, window_bounds = array<i64: 1, 384>}, {pipeline_mode = #tpu.pipeline_mode<synchronous>, transform_indices = @transform_3, window_bounds = array<i64: 128, 128>}, {pipeline_mode = #tpu.pipeline_mode<synchronous>, transform_indices = @transform_4, window_bounds = array<i64: 1, 128>}, {pipeline_mode = #tpu.pipeline_mode<synchronous>, transform_indices = @transform_5, window_bounds = array<i64: 1, 128>}, {pipeline_mode = #tpu.pipeline_mode<synchronous>, transform_indices = @transform_6, window_bounds = array<i64: 1, 128>}, {pipeline_mode = #tpu.pipeline_mode<synchronous>, transform_indices = @transform_7, window_bounds = array<i64: 128, 256>}, {pipeline_mode = #tpu.pipeline_mode<synchronous>, transform_indices = @transform_8, window_bounds = array<i64: 1, 256>}, {pipeline_mode = #tpu.pipeline_mode<synchronous>, transform_indices = @transform_9, window_bounds = array<i64: 256, 128>}, {pipeline_mode = #tpu.pipeline_mode<synchronous>, transform_indices = @transform_10, window_bounds = array<i64: 1, 128>}, {pipeline_mode = #tpu.pipeline_mode<synchronous>, transform_indices = @transform_11, window_bounds = array<i64: 1, 128>}, {pipeline_mode = #tpu.pipeline_mode<synchronous>, transform_indices = @transform_12, window_bounds = array<i64: 1, 128>}, {transform_indices = @transform_13, window_bounds = array<i64: 2, 8, 128>}]} {
    %c0 = arith.constant 0 : index
    %c0_0 = arith.constant 0 : index
    %c0_1 = arith.constant 0 : index
    %0 = vector.load %arg1[%c0, %c0_0, %c0_1] : memref<2x8x128xf32, #tpu.memory_space<vmem>>, vector<2x8x128xf32>
    %1 = vector.shape_cast %0 : vector<2x8x128xf32> to vector<16x128xf32>
    %2 = arith.truncf %1 : vector<16x128xf32> to vector<16x128xbf16>
    %c0_2 = arith.constant 0 : index
    %c0_3 = arith.constant 0 : index
    %3 = vector.load %arg2[%c0_2, %c0_3] : memref<128x384xbf16, #tpu.memory_space<vmem>>, vector<128x384xbf16>
    %cst = arith.constant dense<0.000000e+00> : vector<16x384xf32>
    %4 = tpu.matmul %2, %3, %cst {dimension_numbers = #tpu.dot_dimension_numbers<[1], [0], [0], [1], [0, 0, 1, 1], [], []>} : vector<16x128xbf16>, vector<128x384xbf16>, vector<16x384xf32> -> vector<16x384xf32>
    %c0_4 = arith.constant 0 : index
    %c0_5 = arith.constant 0 : index
    %5 = vector.load %arg3[%c0_4, %c0_5] : memref<1x384xf32, #tpu.memory_space<vmem>>, vector<1x384xf32>
    %6 = vector.broadcast %5 : vector<1x384xf32> to vector<16x384xf32>
    %7 = arith.addf %4, %6 : vector<16x384xf32>
    %8 = arith.truncf %7 : vector<16x384xf32> to vector<16x384xbf16>
    %9 = vector.extract_strided_slice %8 {offsets = [0, 0], sizes = [16, 32], strides = [1, 1]} : vector<16x384xbf16> to vector<16x32xbf16>
    %10 = vector.shape_cast %9 : vector<16x32xbf16> to vector<2x8x32xbf16>
    %11 = vector.extract_strided_slice %8 {offsets = [0, 128], sizes = [16, 32], strides = [1, 1]} : vector<16x384xbf16> to vector<16x32xbf16>
    %12 = vector.shape_cast %11 : vector<16x32xbf16> to vector<2x8x32xbf16>
    %13 = vector.extract_strided_slice %8 {offsets = [0, 256], sizes = [16, 32], strides = [1, 1]} : vector<16x384xbf16> to vector<16x32xbf16>
    %14 = vector.shape_cast %13 : vector<16x32xbf16> to vector<2x8x32xbf16>
    "tpu.trace_start"() <{level = 10 : i32, message = "bqd,bkd->bqk"}> : () -> ()
    %cst_6 = arith.constant dense<0.000000e+00> : vector<2x8x8xf32>
    %15 = tpu.matmul %10, %12, %cst_6 {dimension_numbers = #tpu.dot_dimension_numbers<[2], [2], [1], [1], [0, 0, 0, 1, 1, 1], [0], [0]>} : vector<2x8x32xbf16>, vector<2x8x32xbf16>, vector<2x8x8xf32> -> vector<2x8x8xf32>
    "tpu.trace_stop"() : () -> ()
    %cst_7 = arith.constant dense<0xFF800000> : vector<2x8xf32>
    %16 = vector.multi_reduction <maximumf>, %15, %cst_7 [2] : vector<2x8x8xf32> to vector<2x8xf32>
    %17 = vector.shape_cast %16 : vector<2x8xf32> to vector<2x8x1xf32>
    %18 = vector.broadcast %17 : vector<2x8x1xf32> to vector<2x8x8xf32>
    %19 = arith.subf %15, %18 : vector<2x8x8xf32>
    %20 = math.exp %19 : vector<2x8x8xf32>
    %cst_8 = arith.constant dense<0.000000e+00> : vector<2x8xf32>
    %21 = vector.multi_reduction <add>, %20, %cst_8 [2] : vector<2x8x8xf32> to vector<2x8xf32>
    %22 = vector.shape_cast %21 : vector<2x8xf32> to vector<2x8x1xf32>
    %23 = tpu.reciprocal %22 {approx = true} : vector<2x8x1xf32> -> vector<2x8x1xf32>
    %24 = vector.broadcast %23 : vector<2x8x1xf32> to vector<2x8x8xf32>
    %25 = arith.mulf %20, %24 : vector<2x8x8xf32>
    %26 = arith.truncf %25 : vector<2x8x8xf32> to vector<2x8x8xbf16>
    "tpu.trace_start"() <{level = 10 : i32, message = "bqk,bkd->bqd"}> : () -> ()
    %cst_9 = arith.constant dense<0.000000e+00> : vector<2x8x32xf32>
    %27 = tpu.matmul %26, %14, %cst_9 {dimension_numbers = #tpu.dot_dimension_numbers<[2], [1], [1], [2], [0, 0, 0, 1, 1, 2], [0], [0]>} : vector<2x8x8xbf16>, vector<2x8x32xbf16>, vector<2x8x32xf32> -> vector<2x8x32xf32>
    "tpu.trace_stop"() : () -> ()
    %28 = arith.truncf %27 : vector<2x8x32xf32> to vector<2x8x32xbf16>
    %29 = vector.extract_strided_slice %8 {offsets = [0, 32], sizes = [16, 32], strides = [1, 1]} : vector<16x384xbf16> to vector<16x32xbf16>
    %30 = vector.shape_cast %29 : vector<16x32xbf16> to vector<2x8x32xbf16>
    %31 = vector.extract_strided_slice %8 {offsets = [0, 160], sizes = [16, 32], strides = [1, 1]} : vector<16x384xbf16> to vector<16x32xbf16>
    %32 = vector.shape_cast %31 : vector<16x32xbf16> to vector<2x8x32xbf16>
    %33 = vector.extract_strided_slice %8 {offsets = [0, 288], sizes = [16, 32], strides = [1, 1]} : vector<16x384xbf16> to vector<16x32xbf16>
    %34 = vector.shape_cast %33 : vector<16x32xbf16> to vector<2x8x32xbf16>
    "tpu.trace_start"() <{level = 10 : i32, message = "bqd,bkd->bqk"}> : () -> ()
    %cst_10 = arith.constant dense<0.000000e+00> : vector<2x8x8xf32>
    %35 = tpu.matmul %30, %32, %cst_10 {dimension_numbers = #tpu.dot_dimension_numbers<[2], [2], [1], [1], [0, 0, 0, 1, 1, 1], [0], [0]>} : vector<2x8x32xbf16>, vector<2x8x32xbf16>, vector<2x8x8xf32> -> vector<2x8x8xf32>
    "tpu.trace_stop"() : () -> ()
    %cst_11 = arith.constant dense<0xFF800000> : vector<2x8xf32>
    %36 = vector.multi_reduction <maximumf>, %35, %cst_11 [2] : vector<2x8x8xf32> to vector<2x8xf32>
    %37 = vector.shape_cast %36 : vector<2x8xf32> to vector<2x8x1xf32>
    %38 = vector.broadcast %37 : vector<2x8x1xf32> to vector<2x8x8xf32>
    %39 = arith.subf %35, %38 : vector<2x8x8xf32>
    %40 = math.exp %39 : vector<2x8x8xf32>
    %cst_12 = arith.constant dense<0.000000e+00> : vector<2x8xf32>
    %41 = vector.multi_reduction <add>, %40, %cst_12 [2] : vector<2x8x8xf32> to vector<2x8xf32>
    %42 = vector.shape_cast %41 : vector<2x8xf32> to vector<2x8x1xf32>
    %43 = tpu.reciprocal %42 {approx = true} : vector<2x8x1xf32> -> vector<2x8x1xf32>
    %44 = vector.broadcast %43 : vector<2x8x1xf32> to vector<2x8x8xf32>
    %45 = arith.mulf %40, %44 : vector<2x8x8xf32>
    %46 = arith.truncf %45 : vector<2x8x8xf32> to vector<2x8x8xbf16>
    "tpu.trace_start"() <{level = 10 : i32, message = "bqk,bkd->bqd"}> : () -> ()
    %cst_13 = arith.constant dense<0.000000e+00> : vector<2x8x32xf32>
    %47 = tpu.matmul %46, %34, %cst_13 {dimension_numbers = #tpu.dot_dimension_numbers<[2], [1], [1], [2], [0, 0, 0, 1, 1, 2], [0], [0]>} : vector<2x8x8xbf16>, vector<2x8x32xbf16>, vector<2x8x32xf32> -> vector<2x8x32xf32>
    "tpu.trace_stop"() : () -> ()
    %48 = arith.truncf %47 : vector<2x8x32xf32> to vector<2x8x32xbf16>
    %49 = vector.extract_strided_slice %8 {offsets = [0, 64], sizes = [16, 32], strides = [1, 1]} : vector<16x384xbf16> to vector<16x32xbf16>
    %50 = vector.shape_cast %49 : vector<16x32xbf16> to vector<2x8x32xbf16>
    %51 = vector.extract_strided_slice %8 {offsets = [0, 192], sizes = [16, 32], strides = [1, 1]} : vector<16x384xbf16> to vector<16x32xbf16>
    %52 = vector.shape_cast %51 : vector<16x32xbf16> to vector<2x8x32xbf16>
    %53 = vector.extract_strided_slice %8 {offsets = [0, 320], sizes = [16, 32], strides = [1, 1]} : vector<16x384xbf16> to vector<16x32xbf16>
    %54 = vector.shape_cast %53 : vector<16x32xbf16> to vector<2x8x32xbf16>
    "tpu.trace_start"() <{level = 10 : i32, message = "bqd,bkd->bqk"}> : () -> ()
    %cst_14 = arith.constant dense<0.000000e+00> : vector<2x8x8xf32>
    %55 = tpu.matmul %50, %52, %cst_14 {dimension_numbers = #tpu.dot_dimension_numbers<[2], [2], [1], [1], [0, 0, 0, 1, 1, 1], [0], [0]>} : vector<2x8x32xbf16>, vector<2x8x32xbf16>, vector<2x8x8xf32> -> vector<2x8x8xf32>
    "tpu.trace_stop"() : () -> ()
    %cst_15 = arith.constant dense<0xFF800000> : vector<2x8xf32>
    %56 = vector.multi_reduction <maximumf>, %55, %cst_15 [2] : vector<2x8x8xf32> to vector<2x8xf32>
    %57 = vector.shape_cast %56 : vector<2x8xf32> to vector<2x8x1xf32>
    %58 = vector.broadcast %57 : vector<2x8x1xf32> to vector<2x8x8xf32>
    %59 = arith.subf %55, %58 : vector<2x8x8xf32>
    %60 = math.exp %59 : vector<2x8x8xf32>
    %cst_16 = arith.constant dense<0.000000e+00> : vector<2x8xf32>
    %61 = vector.multi_reduction <add>, %60, %cst_16 [2] : vector<2x8x8xf32> to vector<2x8xf32>
    %62 = vector.shape_cast %61 : vector<2x8xf32> to vector<2x8x1xf32>
    %63 = tpu.reciprocal %62 {approx = true} : vector<2x8x1xf32> -> vector<2x8x1xf32>
    %64 = vector.broadcast %63 : vector<2x8x1xf32> to vector<2x8x8xf32>
    %65 = arith.mulf %60, %64 : vector<2x8x8xf32>
    %66 = arith.truncf %65 : vector<2x8x8xf32> to vector<2x8x8xbf16>
    "tpu.trace_start"() <{level = 10 : i32, message = "bqk,bkd->bqd"}> : () -> ()
    %cst_17 = arith.constant dense<0.000000e+00> : vector<2x8x32xf32>
    %67 = tpu.matmul %66, %54, %cst_17 {dimension_numbers = #tpu.dot_dimension_numbers<[2], [1], [1], [2], [0, 0, 0, 1, 1, 2], [0], [0]>} : vector<2x8x8xbf16>, vector<2x8x32xbf16>, vector<2x8x32xf32> -> vector<2x8x32xf32>
    "tpu.trace_stop"() : () -> ()
    %68 = arith.truncf %67 : vector<2x8x32xf32> to vector<2x8x32xbf16>
    %69 = vector.extract_strided_slice %8 {offsets = [0, 96], sizes = [16, 32], strides = [1, 1]} : vector<16x384xbf16> to vector<16x32xbf16>
    %70 = vector.shape_cast %69 : vector<16x32xbf16> to vector<2x8x32xbf16>
    %71 = vector.extract_strided_slice %8 {offsets = [0, 224], sizes = [16, 32], strides = [1, 1]} : vector<16x384xbf16> to vector<16x32xbf16>
    %72 = vector.shape_cast %71 : vector<16x32xbf16> to vector<2x8x32xbf16>
    %73 = vector.extract_strided_slice %8 {offsets = [0, 352], sizes = [16, 32], strides = [1, 1]} : vector<16x384xbf16> to vector<16x32xbf16>
    %74 = vector.shape_cast %73 : vector<16x32xbf16> to vector<2x8x32xbf16>
    "tpu.trace_start"() <{level = 10 : i32, message = "bqd,bkd->bqk"}> : () -> ()
    %cst_18 = arith.constant dense<0.000000e+00> : vector<2x8x8xf32>
    %75 = tpu.matmul %70, %72, %cst_18 {dimension_numbers = #tpu.dot_dimension_numbers<[2], [2], [1], [1], [0, 0, 0, 1, 1, 1], [0], [0]>} : vector<2x8x32xbf16>, vector<2x8x32xbf16>, vector<2x8x8xf32> -> vector<2x8x8xf32>
    "tpu.trace_stop"() : () -> ()
    %cst_19 = arith.constant dense<0xFF800000> : vector<2x8xf32>
    %76 = vector.multi_reduction <maximumf>, %75, %cst_19 [2] : vector<2x8x8xf32> to vector<2x8xf32>
    %77 = vector.shape_cast %76 : vector<2x8xf32> to vector<2x8x1xf32>
    %78 = vector.broadcast %77 : vector<2x8x1xf32> to vector<2x8x8xf32>
    %79 = arith.subf %75, %78 : vector<2x8x8xf32>
    %80 = math.exp %79 : vector<2x8x8xf32>
    %cst_20 = arith.constant dense<0.000000e+00> : vector<2x8xf32>
    %81 = vector.multi_reduction <add>, %80, %cst_20 [2] : vector<2x8x8xf32> to vector<2x8xf32>
    %82 = vector.shape_cast %81 : vector<2x8xf32> to vector<2x8x1xf32>
    %83 = tpu.reciprocal %82 {approx = true} : vector<2x8x1xf32> -> vector<2x8x1xf32>
    %84 = vector.broadcast %83 : vector<2x8x1xf32> to vector<2x8x8xf32>
    %85 = arith.mulf %80, %84 : vector<2x8x8xf32>
    %86 = arith.truncf %85 : vector<2x8x8xf32> to vector<2x8x8xbf16>
    "tpu.trace_start"() <{level = 10 : i32, message = "bqk,bkd->bqd"}> : () -> ()
    %cst_21 = arith.constant dense<0.000000e+00> : vector<2x8x32xf32>
    %87 = tpu.matmul %86, %74, %cst_21 {dimension_numbers = #tpu.dot_dimension_numbers<[2], [1], [1], [2], [0, 0, 0, 1, 1, 2], [0], [0]>} : vector<2x8x8xbf16>, vector<2x8x32xbf16>, vector<2x8x32xf32> -> vector<2x8x32xf32>
    "tpu.trace_stop"() : () -> ()
    %88 = arith.truncf %87 : vector<2x8x32xf32> to vector<2x8x32xbf16>
    %89 = tpu.concatenate %28, %48, %68, %88 in 2 : vector<2x8x32xbf16>, vector<2x8x32xbf16>, vector<2x8x32xbf16>, vector<2x8x32xbf16> -> vector<2x8x128xbf16>
    %90 = vector.shape_cast %89 : vector<2x8x128xbf16> to vector<16x128xbf16>
    %c0_22 = arith.constant 0 : index
    %c0_23 = arith.constant 0 : index
    %91 = vector.load %arg4[%c0_22, %c0_23] : memref<128x128xbf16, #tpu.memory_space<vmem>>, vector<128x128xbf16>
    %cst_24 = arith.constant dense<0.000000e+00> : vector<16x128xf32>
    %92 = tpu.matmul %90, %91, %cst_24 {dimension_numbers = #tpu.dot_dimension_numbers<[1], [0], [0], [1], [0, 0, 1, 1], [], []>} : vector<16x128xbf16>, vector<128x128xbf16>, vector<16x128xf32> -> vector<16x128xf32>
    %c0_25 = arith.constant 0 : index
    %c0_26 = arith.constant 0 : index
    %93 = vector.load %arg5[%c0_25, %c0_26] : memref<1x128xf32, #tpu.memory_space<vmem>>, vector<1x128xf32>
    %94 = vector.broadcast %93 : vector<1x128xf32> to vector<16x128xf32>
    %95 = arith.addf %92, %94 : vector<16x128xf32>
    %96 = arith.addf %1, %95 : vector<16x128xf32>
    %c0_27 = arith.constant 0 : index
    %c0_28 = arith.constant 0 : index
    %97 = vector.load %arg6[%c0_27, %c0_28] : memref<1x128xf32, #tpu.memory_space<vmem>>, vector<1x128xf32>
    %c0_29 = arith.constant 0 : index
    %c0_30 = arith.constant 0 : index
    %98 = vector.load %arg7[%c0_29, %c0_30] : memref<1x128xf32, #tpu.memory_space<vmem>>, vector<1x128xf32>
    %cst_31 = arith.constant dense<0.000000e+00> : vector<16xf32>
    %99 = vector.multi_reduction <add>, %96, %cst_31 [1] : vector<16x128xf32> to vector<16xf32>
    %100 = vector.shape_cast %99 : vector<16xf32> to vector<16x1xf32>
    %cst_32 = arith.constant 1.280000e+02 : f32
    %101 = vector.broadcast %cst_32 : f32 to vector<16x1xf32>
    %102 = arith.divf %100, %101 : vector<16x1xf32>
    %103 = vector.broadcast %102 : vector<16x1xf32> to vector<16x128xf32>
    %104 = arith.subf %96, %103 : vector<16x128xf32>
    %105 = arith.mulf %104, %104 : vector<16x128xf32>
    %cst_33 = arith.constant dense<0.000000e+00> : vector<16xf32>
    %106 = vector.multi_reduction <add>, %105, %cst_33 [1] : vector<16x128xf32> to vector<16xf32>
    %107 = vector.shape_cast %106 : vector<16xf32> to vector<16x1xf32>
    %cst_34 = arith.constant 1.280000e+02 : f32
    %108 = vector.broadcast %cst_34 : f32 to vector<16x1xf32>
    %109 = arith.divf %107, %108 : vector<16x1xf32>
    %110 = vector.broadcast %102 : vector<16x1xf32> to vector<16x128xf32>
    %111 = arith.subf %96, %110 : vector<16x128xf32>
    %cst_35 = arith.constant 9.99999974E-6 : f32
    %112 = vector.broadcast %cst_35 : f32 to vector<16x1xf32>
    %113 = arith.addf %109, %112 : vector<16x1xf32>
    %114 = math.rsqrt %113 : vector<16x1xf32>
    %115 = vector.broadcast %114 : vector<16x1xf32> to vector<16x128xf32>
    %116 = arith.mulf %111, %115 : vector<16x128xf32>
    %117 = vector.broadcast %97 : vector<1x128xf32> to vector<16x128xf32>
    %118 = arith.mulf %116, %117 : vector<16x128xf32>
    %119 = vector.broadcast %98 : vector<1x128xf32> to vector<16x128xf32>
    %120 = arith.addf %118, %119 : vector<16x128xf32>
    %121 = arith.truncf %120 : vector<16x128xf32> to vector<16x128xbf16>
    %c0_36 = arith.constant 0 : index
    %c0_37 = arith.constant 0 : index
    %122 = vector.load %arg8[%c0_36, %c0_37] : memref<128x256xbf16, #tpu.memory_space<vmem>>, vector<128x256xbf16>
    %cst_38 = arith.constant dense<0.000000e+00> : vector<16x256xf32>
    %123 = tpu.matmul %121, %122, %cst_38 {dimension_numbers = #tpu.dot_dimension_numbers<[1], [0], [0], [1], [0, 0, 1, 1], [], []>} : vector<16x128xbf16>, vector<128x256xbf16>, vector<16x256xf32> -> vector<16x256xf32>
    %c0_39 = arith.constant 0 : index
    %c0_40 = arith.constant 0 : index
    %124 = vector.load %arg9[%c0_39, %c0_40] : memref<1x256xf32, #tpu.memory_space<vmem>>, vector<1x256xf32>
    %125 = vector.broadcast %124 : vector<1x256xf32> to vector<16x256xf32>
    %126 = arith.addf %123, %125 : vector<16x256xf32>
    %cst_41 = arith.constant 0.000000e+00 : f32
    %127 = vector.broadcast %cst_41 : f32 to vector<16x256xf32>
    %128 = arith.maximumf %126, %127 : vector<16x256xf32>
    %129 = arith.truncf %128 : vector<16x256xf32> to vector<16x256xbf16>
    %c0_42 = arith.constant 0 : index
    %c0_43 = arith.constant 0 : index
    %130 = vector.load %arg10[%c0_42, %c0_43] : memref<256x128xbf16, #tpu.memory_space<vmem>>, vector<256x128xbf16>
    %cst_44 = arith.constant dense<0.000000e+00> : vector<16x128xf32>
    %131 = tpu.matmul %129, %130, %cst_44 {dimension_numbers = #tpu.dot_dimension_numbers<[1], [0], [0], [1], [0, 0, 1, 1], [], []>} : vector<16x256xbf16>, vector<256x128xbf16>, vector<16x128xf32> -> vector<16x128xf32>
    %c0_45 = arith.constant 0 : index
    %c0_46 = arith.constant 0 : index
    %132 = vector.load %arg11[%c0_45, %c0_46] : memref<1x128xf32, #tpu.memory_space<vmem>>, vector<1x128xf32>
    %133 = vector.broadcast %132 : vector<1x128xf32> to vector<16x128xf32>
    %134 = arith.addf %131, %133 : vector<16x128xf32>
    %135 = arith.addf %96, %134 : vector<16x128xf32>
    %c0_47 = arith.constant 0 : index
    %c0_48 = arith.constant 0 : index
    %136 = vector.load %arg12[%c0_47, %c0_48] : memref<1x128xf32, #tpu.memory_space<vmem>>, vector<1x128xf32>
    %c0_49 = arith.constant 0 : index
    %c0_50 = arith.constant 0 : index
    %137 = vector.load %arg13[%c0_49, %c0_50] : memref<1x128xf32, #tpu.memory_space<vmem>>, vector<1x128xf32>
    %cst_51 = arith.constant dense<0.000000e+00> : vector<16xf32>
    %138 = vector.multi_reduction <add>, %135, %cst_51 [1] : vector<16x128xf32> to vector<16xf32>
    %139 = vector.shape_cast %138 : vector<16xf32> to vector<16x1xf32>
    %cst_52 = arith.constant 1.280000e+02 : f32
    %140 = vector.broadcast %cst_52 : f32 to vector<16x1xf32>
    %141 = arith.divf %139, %140 : vector<16x1xf32>
    %142 = vector.broadcast %141 : vector<16x1xf32> to vector<16x128xf32>
    %143 = arith.subf %135, %142 : vector<16x128xf32>
    %144 = arith.mulf %143, %143 : vector<16x128xf32>
    %cst_53 = arith.constant dense<0.000000e+00> : vector<16xf32>
    %145 = vector.multi_reduction <add>, %144, %cst_53 [1] : vector<16x128xf32> to vector<16xf32>
    %146 = vector.shape_cast %145 : vector<16xf32> to vector<16x1xf32>
    %cst_54 = arith.constant 1.280000e+02 : f32
    %147 = vector.broadcast %cst_54 : f32 to vector<16x1xf32>
    %148 = arith.divf %146, %147 : vector<16x1xf32>
    %149 = vector.broadcast %141 : vector<16x1xf32> to vector<16x128xf32>
    %150 = arith.subf %135, %149 : vector<16x128xf32>
    %cst_55 = arith.constant 9.99999974E-6 : f32
    %151 = vector.broadcast %cst_55 : f32 to vector<16x1xf32>
    %152 = arith.addf %148, %151 : vector<16x1xf32>
    %153 = math.rsqrt %152 : vector<16x1xf32>
    %154 = vector.broadcast %153 : vector<16x1xf32> to vector<16x128xf32>
    %155 = arith.mulf %150, %154 : vector<16x128xf32>
    %156 = vector.broadcast %136 : vector<1x128xf32> to vector<16x128xf32>
    %157 = arith.mulf %155, %156 : vector<16x128xf32>
    %158 = vector.broadcast %137 : vector<1x128xf32> to vector<16x128xf32>
    %159 = arith.addf %157, %158 : vector<16x128xf32>
    %160 = vector.shape_cast %159 : vector<16x128xf32> to vector<2x8x128xf32>
    %c0_56 = arith.constant 0 : index
    %c0_57 = arith.constant 0 : index
    %c0_58 = arith.constant 0 : index
    %161 = vector.load %arg14[%c0_56, %c0_57, %c0_58] : memref<2x8x128xf32, #tpu.memory_space<vmem>>, vector<2x8x128xf32>
    tpu.vector_store %arg14[%c0_56, %c0_57, %c0_58], %160 {strides = array<i32>} : memref<2x8x128xf32, #tpu.memory_space<vmem>>, vector<2x8x128xf32>,
    return
  }
  func.func @transform_0(%arg0: i32) -> (i32, i32, i32) {
    %c0_i32 = arith.constant 0 : i32
    %c0_i32_0 = arith.constant 0 : i32
    %c0_i32_1 = arith.constant 0 : i32
    return %arg0, %c0_i32, %c0_i32_0 : i32, i32, i32
  }
  func.func @transform_1(%arg0: i32) -> (i32, i32) {
    %c0_i32 = arith.constant 0 : i32
    %c0_i32_0 = arith.constant 0 : i32
    %c0_i32_1 = arith.constant 0 : i32
    return %c0_i32, %c0_i32_0 : i32, i32
  }
  func.func @transform_2(%arg0: i32) -> (i32, i32) {
    %c0_i32 = arith.constant 0 : i32
    %c0_i32_0 = arith.constant 0 : i32
    %c0_i32_1 = arith.constant 0 : i32
    return %c0_i32, %c0_i32_0 : i32, i32
  }
  func.func @transform_3(%arg0: i32) -> (i32, i32) {
    %c0_i32 = arith.constant 0 : i32
    %c0_i32_0 = arith.constant 0 : i32
    %c0_i32_1 = arith.constant 0 : i32
    return %c0_i32, %c0_i32_0 : i32, i32
  }
  func.func @transform_4(%arg0: i32) -> (i32, i32) {
    %c0_i32 = arith.constant 0 : i32
    %c0_i32_0 = arith.constant 0 : i32
    %c0_i32_1 = arith.constant 0 : i32
    return %c0_i32, %c0_i32_0 : i32, i32
  }
  func.func @transform_5(%arg0: i32) -> (i32, i32) {
    %c0_i32 = arith.constant 0 : i32
    %c0_i32_0 = arith.constant 0 : i32
    %c0_i32_1 = arith.constant 0 : i32
    return %c0_i32, %c0_i32_0 : i32, i32
  }
  func.func @transform_6(%arg0: i32) -> (i32, i32) {
    %c0_i32 = arith.constant 0 : i32
    %c0_i32_0 = arith.constant 0 : i32
    %c0_i32_1 = arith.constant 0 : i32
    return %c0_i32, %c0_i32_0 : i32, i32
  }
  func.func @transform_7(%arg0: i32) -> (i32, i32) {
    %c0_i32 = arith.constant 0 : i32
    %c0_i32_0 = arith.constant 0 : i32
    %c0_i32_1 = arith.constant 0 : i32
    return %c0_i32, %c0_i32_0 : i32, i32
  }
  func.func @transform_8(%arg0: i32) -> (i32, i32) {
    %c0_i32 = arith.constant 0 : i32
    %c0_i32_0 = arith.constant 0 : i32
    %c0_i32_1 = arith.constant 0 : i32
    return %c0_i32, %c0_i32_0 : i32, i32
  }
  func.func @transform_9(%arg0: i32) -> (i32, i32) {
    %c0_i32 = arith.constant 0 : i32
    %c0_i32_0 = arith.constant 0 : i32
    %c0_i32_1 = arith.constant 0 : i32
    return %c0_i32, %c0_i32_0 : i32, i32
  }
  func.func @transform_10(%arg0: i32) -> (i32, i32) {
    %c0_i32 = arith.constant 0 : i32
    %c0_i32_0 = arith.constant 0 : i32
    %c0_i32_1 = arith.constant 0 : i32
    return %c0_i32, %c0_i32_0 : i32, i32
  }
  func.func @transform_11(%arg0: i32) -> (i32, i32) {
    %c0_i32 = arith.constant 0 : i32
    %c0_i32_0 = arith.constant 0 : i32
    %c0_i32_1 = arith.constant 0 : i32
    return %c0_i32, %c0_i32_0 : i32, i32
  }
  func.func @transform_12(%arg0: i32) -> (i32, i32) {
    %c0_i32 = arith.constant 0 : i32
    %c0_i32_0 = arith.constant 0 : i32
    %c0_i32_1 = arith.constant 0 : i32
    return %c0_i32, %c0_i32_0 : i32, i32
  }
  func.func @transform_13(%arg0: i32) -> (i32, i32, i32) {
    %c0_i32 = arith.constant 0 : i32
    %c0_i32_0 = arith.constant 0 : i32
    %c0_i32_1 = arith.constant 0 : i32
    return %arg0, %c0_i32, %c0_i32_0 : i32, i32, i32
  }
}

module attributes {stable_mosaic.version = 11 : i64} {
  func.func @encoder_block_kernel(%arg0: i32, %arg1: memref<2x8x128xf32, #tpu.memory_space<vmem>>, %arg2: memref<128x384xbf16, #tpu.memory_space<vmem>>, %arg3: memref<1x384xf32, #tpu.memory_space<vmem>>, %arg4: memref<128x128xbf16, #tpu.memory_space<vmem>>, %arg5: memref<1x128xf32, #tpu.memory_space<vmem>>, %arg6: memref<1x128xf32, #tpu.memory_space<vmem>>, %arg7: memref<1x128xf32, #tpu.memory_space<vmem>>, %arg8: memref<128x256xbf16, #tpu.memory_space<vmem>>, %arg9: memref<1x256xf32, #tpu.memory_space<vmem>>, %arg10: memref<256x128xbf16, #tpu.memory_space<vmem>>, %arg11: memref<1x128xf32, #tpu.memory_space<vmem>>, %arg12: memref<1x128xf32, #tpu.memory_space<vmem>>, %arg13: memref<1x128xf32, #tpu.memory_space<vmem>>, %arg14: memref<2x8x128xf32, #tpu.memory_space<vmem>>) attributes {dimension_semantics = [#tpu.dimension_semantics<parallel>], iteration_bounds = array<i64: 4>, scalar_prefetch = 0 : i64, scratch_operands = 0 : i64, tpu.core_type = #tpu.core_type<tc>, window_params = [{transform_indices = @transform_0, window_bounds = array<i64: 2, 8, 128>}, {pipeline_mode = #tpu.pipeline_mode<synchronous>, transform_indices = @transform_1, window_bounds = array<i64: 128, 384>}, {pipeline_mode = #tpu.pipeline_mode<synchronous>, transform_indices = @transform_2, window_bounds = array<i64: 1, 384>}, {pipeline_mode = #tpu.pipeline_mode<synchronous>, transform_indices = @transform_3, window_bounds = array<i64: 128, 128>}, {pipeline_mode = #tpu.pipeline_mode<synchronous>, transform_indices = @transform_4, window_bounds = array<i64: 1, 128>}, {pipeline_mode = #tpu.pipeline_mode<synchronous>, transform_indices = @transform_5, window_bounds = array<i64: 1, 128>}, {pipeline_mode = #tpu.pipeline_mode<synchronous>, transform_indices = @transform_6, window_bounds = array<i64: 1, 128>}, {pipeline_mode = #tpu.pipeline_mode<synchronous>, transform_indices = @transform_7, window_bounds = array<i64: 128, 256>}, {pipeline_mode = #tpu.pipeline_mode<synchronous>, transform_indices = @transform_8, window_bounds = array<i64: 1, 256>}, {pipeline_mode = #tpu.pipeline_mode<synchronous>, transform_indices = @transform_9, window_bounds = array<i64: 256, 128>}, {pipeline_mode = #tpu.pipeline_mode<synchronous>, transform_indices = @transform_10, window_bounds = array<i64: 1, 128>}, {pipeline_mode = #tpu.pipeline_mode<synchronous>, transform_indices = @transform_11, window_bounds = array<i64: 1, 128>}, {pipeline_mode = #tpu.pipeline_mode<synchronous>, transform_indices = @transform_12, window_bounds = array<i64: 1, 128>}, {transform_indices = @transform_13, window_bounds = array<i64: 2, 8, 128>}]} {
    %c0 = arith.constant 0 : index
    %c0_0 = arith.constant 0 : index
    %c0_1 = arith.constant 0 : index
    %0 = vector.load %arg1[%c0, %c0_0, %c0_1] : memref<2x8x128xf32, #tpu.memory_space<vmem>>, vector<2x8x128xf32>
    %1 = vector.shape_cast %0 : vector<2x8x128xf32> to vector<16x128xf32>
    %2 = arith.truncf %1 : vector<16x128xf32> to vector<16x128xbf16>
    %c0_2 = arith.constant 0 : index
    %c0_3 = arith.constant 0 : index
    %3 = vector.load %arg2[%c0_2, %c0_3] : memref<128x384xbf16, #tpu.memory_space<vmem>>, vector<128x384xbf16>
    %cst = arith.constant dense<0.000000e+00> : vector<16x384xf32>
    %4 = tpu.matmul %2, %3, %cst {dimension_numbers = #tpu.dot_dimension_numbers<[1], [0], [0], [1], [0, 0, 1, 1], [], []>} : vector<16x128xbf16>, vector<128x384xbf16>, vector<16x384xf32> -> vector<16x384xf32>
    %c0_4 = arith.constant 0 : index
    %c0_5 = arith.constant 0 : index
    %5 = vector.load %arg3[%c0_4, %c0_5] : memref<1x384xf32, #tpu.memory_space<vmem>>, vector<1x384xf32>
    %6 = vector.broadcast %5 : vector<1x384xf32> to vector<16x384xf32>
    %7 = arith.addf %4, %6 : vector<16x384xf32>
    %8 = arith.truncf %7 : vector<16x384xf32> to vector<16x384xbf16>
    %9 = vector.extract_strided_slice %8 {offsets = [0, 0], sizes = [16, 32], strides = [1, 1]} : vector<16x384xbf16> to vector<16x32xbf16>
    %10 = vector.shape_cast %9 : vector<16x32xbf16> to vector<2x8x32xbf16>
    %11 = vector.extract_strided_slice %8 {offsets = [0, 128], sizes = [16, 32], strides = [1, 1]} : vector<16x384xbf16> to vector<16x32xbf16>
    %12 = vector.shape_cast %11 : vector<16x32xbf16> to vector<2x8x32xbf16>
    %13 = vector.extract_strided_slice %8 {offsets = [0, 256], sizes = [16, 32], strides = [1, 1]} : vector<16x384xbf16> to vector<16x32xbf16>
    %14 = vector.shape_cast %13 : vector<16x32xbf16> to vector<2x8x32xbf16>
    "tpu.trace_start"() <{level = 10 : i32, message = "bqd,bkd->bqk"}> : () -> ()
    %cst_6 = arith.constant dense<0.000000e+00> : vector<2x8x8xf32>
    %15 = tpu.matmul %10, %12, %cst_6 {dimension_numbers = #tpu.dot_dimension_numbers<[2], [2], [1], [1], [0, 0, 0, 1, 1, 1], [0], [0]>} : vector<2x8x32xbf16>, vector<2x8x32xbf16>, vector<2x8x8xf32> -> vector<2x8x8xf32>
    "tpu.trace_stop"() : () -> ()
    %cst_7 = arith.constant dense<0xFF800000> : vector<2x8xf32>
    %16 = vector.multi_reduction <maximumf>, %15, %cst_7 [2] : vector<2x8x8xf32> to vector<2x8xf32>
    %17 = vector.shape_cast %16 : vector<2x8xf32> to vector<2x8x1xf32>
    %18 = vector.broadcast %17 : vector<2x8x1xf32> to vector<2x8x8xf32>
    %19 = arith.subf %15, %18 : vector<2x8x8xf32>
    %20 = math.exp %19 : vector<2x8x8xf32>
    %cst_8 = arith.constant dense<0.000000e+00> : vector<2x8xf32>
    %21 = vector.multi_reduction <add>, %20, %cst_8 [2] : vector<2x8x8xf32> to vector<2x8xf32>
    %22 = vector.shape_cast %21 : vector<2x8xf32> to vector<2x8x1xf32>
    %23 = tpu.reciprocal %22 {approx = true} : vector<2x8x1xf32> -> vector<2x8x1xf32>
    %24 = vector.broadcast %23 : vector<2x8x1xf32> to vector<2x8x8xf32>
    %25 = arith.mulf %20, %24 : vector<2x8x8xf32>
    %26 = arith.truncf %25 : vector<2x8x8xf32> to vector<2x8x8xbf16>
    "tpu.trace_start"() <{level = 10 : i32, message = "bqk,bkd->bqd"}> : () -> ()
    %cst_9 = arith.constant dense<0.000000e+00> : vector<2x8x32xf32>
    %27 = tpu.matmul %26, %14, %cst_9 {dimension_numbers = #tpu.dot_dimension_numbers<[2], [1], [1], [2], [0, 0, 0, 1, 1, 2], [0], [0]>} : vector<2x8x8xbf16>, vector<2x8x32xbf16>, vector<2x8x32xf32> -> vector<2x8x32xf32>
    "tpu.trace_stop"() : () -> ()
    %28 = arith.truncf %27 : vector<2x8x32xf32> to vector<2x8x32xbf16>
    %29 = vector.extract_strided_slice %8 {offsets = [0, 32], sizes = [16, 32], strides = [1, 1]} : vector<16x384xbf16> to vector<16x32xbf16>
    %30 = vector.shape_cast %29 : vector<16x32xbf16> to vector<2x8x32xbf16>
    %31 = vector.extract_strided_slice %8 {offsets = [0, 160], sizes = [16, 32], strides = [1, 1]} : vector<16x384xbf16> to vector<16x32xbf16>
    %32 = vector.shape_cast %31 : vector<16x32xbf16> to vector<2x8x32xbf16>
    %33 = vector.extract_strided_slice %8 {offsets = [0, 288], sizes = [16, 32], strides = [1, 1]} : vector<16x384xbf16> to vector<16x32xbf16>
    %34 = vector.shape_cast %33 : vector<16x32xbf16> to vector<2x8x32xbf16>
    "tpu.trace_start"() <{level = 10 : i32, message = "bqd,bkd->bqk"}> : () -> ()
    %cst_10 = arith.constant dense<0.000000e+00> : vector<2x8x8xf32>
    %35 = tpu.matmul %30, %32, %cst_10 {dimension_numbers = #tpu.dot_dimension_numbers<[2], [2], [1], [1], [0, 0, 0, 1, 1, 1], [0], [0]>} : vector<2x8x32xbf16>, vector<2x8x32xbf16>, vector<2x8x8xf32> -> vector<2x8x8xf32>
    "tpu.trace_stop"() : () -> ()
    %cst_11 = arith.constant dense<0xFF800000> : vector<2x8xf32>
    %36 = vector.multi_reduction <maximumf>, %35, %cst_11 [2] : vector<2x8x8xf32> to vector<2x8xf32>
    %37 = vector.shape_cast %36 : vector<2x8xf32> to vector<2x8x1xf32>
    %38 = vector.broadcast %37 : vector<2x8x1xf32> to vector<2x8x8xf32>
    %39 = arith.subf %35, %38 : vector<2x8x8xf32>
    %40 = math.exp %39 : vector<2x8x8xf32>
    %cst_12 = arith.constant dense<0.000000e+00> : vector<2x8xf32>
    %41 = vector.multi_reduction <add>, %40, %cst_12 [2] : vector<2x8x8xf32> to vector<2x8xf32>
    %42 = vector.shape_cast %41 : vector<2x8xf32> to vector<2x8x1xf32>
    %43 = tpu.reciprocal %42 {approx = true} : vector<2x8x1xf32> -> vector<2x8x1xf32>
    %44 = vector.broadcast %43 : vector<2x8x1xf32> to vector<2x8x8xf32>
    %45 = arith.mulf %40, %44 : vector<2x8x8xf32>
    %46 = arith.truncf %45 : vector<2x8x8xf32> to vector<2x8x8xbf16>
    "tpu.trace_start"() <{level = 10 : i32, message = "bqk,bkd->bqd"}> : () -> ()
    %cst_13 = arith.constant dense<0.000000e+00> : vector<2x8x32xf32>
    %47 = tpu.matmul %46, %34, %cst_13 {dimension_numbers = #tpu.dot_dimension_numbers<[2], [1], [1], [2], [0, 0, 0, 1, 1, 2], [0], [0]>} : vector<2x8x8xbf16>, vector<2x8x32xbf16>, vector<2x8x32xf32> -> vector<2x8x32xf32>
    "tpu.trace_stop"() : () -> ()
    %48 = arith.truncf %47 : vector<2x8x32xf32> to vector<2x8x32xbf16>
    %49 = vector.extract_strided_slice %8 {offsets = [0, 64], sizes = [16, 32], strides = [1, 1]} : vector<16x384xbf16> to vector<16x32xbf16>
    %50 = vector.shape_cast %49 : vector<16x32xbf16> to vector<2x8x32xbf16>
    %51 = vector.extract_strided_slice %8 {offsets = [0, 192], sizes = [16, 32], strides = [1, 1]} : vector<16x384xbf16> to vector<16x32xbf16>
    %52 = vector.shape_cast %51 : vector<16x32xbf16> to vector<2x8x32xbf16>
    %53 = vector.extract_strided_slice %8 {offsets = [0, 320], sizes = [16, 32], strides = [1, 1]} : vector<16x384xbf16> to vector<16x32xbf16>
    %54 = vector.shape_cast %53 : vector<16x32xbf16> to vector<2x8x32xbf16>
    "tpu.trace_start"() <{level = 10 : i32, message = "bqd,bkd->bqk"}> : () -> ()
    %cst_14 = arith.constant dense<0.000000e+00> : vector<2x8x8xf32>
    %55 = tpu.matmul %50, %52, %cst_14 {dimension_numbers = #tpu.dot_dimension_numbers<[2], [2], [1], [1], [0, 0, 0, 1, 1, 1], [0], [0]>} : vector<2x8x32xbf16>, vector<2x8x32xbf16>, vector<2x8x8xf32> -> vector<2x8x8xf32>
    "tpu.trace_stop"() : () -> ()
    %cst_15 = arith.constant dense<0xFF800000> : vector<2x8xf32>
    %56 = vector.multi_reduction <maximumf>, %55, %cst_15 [2] : vector<2x8x8xf32> to vector<2x8xf32>
    %57 = vector.shape_cast %56 : vector<2x8xf32> to vector<2x8x1xf32>
    %58 = vector.broadcast %57 : vector<2x8x1xf32> to vector<2x8x8xf32>
    %59 = arith.subf %55, %58 : vector<2x8x8xf32>
    %60 = math.exp %59 : vector<2x8x8xf32>
    %cst_16 = arith.constant dense<0.000000e+00> : vector<2x8xf32>
    %61 = vector.multi_reduction <add>, %60, %cst_16 [2] : vector<2x8x8xf32> to vector<2x8xf32>
    %62 = vector.shape_cast %61 : vector<2x8xf32> to vector<2x8x1xf32>
    %63 = tpu.reciprocal %62 {approx = true} : vector<2x8x1xf32> -> vector<2x8x1xf32>
    %64 = vector.broadcast %63 : vector<2x8x1xf32> to vector<2x8x8xf32>
    %65 = arith.mulf %60, %64 : vector<2x8x8xf32>
    %66 = arith.truncf %65 : vector<2x8x8xf32> to vector<2x8x8xbf16>
    "tpu.trace_start"() <{level = 10 : i32, message = "bqk,bkd->bqd"}> : () -> ()
    %cst_17 = arith.constant dense<0.000000e+00> : vector<2x8x32xf32>
    %67 = tpu.matmul %66, %54, %cst_17 {dimension_numbers = #tpu.dot_dimension_numbers<[2], [1], [1], [2], [0, 0, 0, 1, 1, 2], [0], [0]>} : vector<2x8x8xbf16>, vector<2x8x32xbf16>, vector<2x8x32xf32> -> vector<2x8x32xf32>
    "tpu.trace_stop"() : () -> ()
    %68 = arith.truncf %67 : vector<2x8x32xf32> to vector<2x8x32xbf16>
    %69 = vector.extract_strided_slice %8 {offsets = [0, 96], sizes = [16, 32], strides = [1, 1]} : vector<16x384xbf16> to vector<16x32xbf16>
    %70 = vector.shape_cast %69 : vector<16x32xbf16> to vector<2x8x32xbf16>
    %71 = vector.extract_strided_slice %8 {offsets = [0, 224], sizes = [16, 32], strides = [1, 1]} : vector<16x384xbf16> to vector<16x32xbf16>
    %72 = vector.shape_cast %71 : vector<16x32xbf16> to vector<2x8x32xbf16>
    %73 = vector.extract_strided_slice %8 {offsets = [0, 352], sizes = [16, 32], strides = [1, 1]} : vector<16x384xbf16> to vector<16x32xbf16>
    %74 = vector.shape_cast %73 : vector<16x32xbf16> to vector<2x8x32xbf16>
    "tpu.trace_start"() <{level = 10 : i32, message = "bqd,bkd->bqk"}> : () -> ()
    %cst_18 = arith.constant dense<0.000000e+00> : vector<2x8x8xf32>
    %75 = tpu.matmul %70, %72, %cst_18 {dimension_numbers = #tpu.dot_dimension_numbers<[2], [2], [1], [1], [0, 0, 0, 1, 1, 1], [0], [0]>} : vector<2x8x32xbf16>, vector<2x8x32xbf16>, vector<2x8x8xf32> -> vector<2x8x8xf32>
    "tpu.trace_stop"() : () -> ()
    %cst_19 = arith.constant dense<0xFF800000> : vector<2x8xf32>
    %76 = vector.multi_reduction <maximumf>, %75, %cst_19 [2] : vector<2x8x8xf32> to vector<2x8xf32>
    %77 = vector.shape_cast %76 : vector<2x8xf32> to vector<2x8x1xf32>
    %78 = vector.broadcast %77 : vector<2x8x1xf32> to vector<2x8x8xf32>
    %79 = arith.subf %75, %78 : vector<2x8x8xf32>
    %80 = math.exp %79 : vector<2x8x8xf32>
    %cst_20 = arith.constant dense<0.000000e+00> : vector<2x8xf32>
    %81 = vector.multi_reduction <add>, %80, %cst_20 [2] : vector<2x8x8xf32> to vector<2x8xf32>
    %82 = vector.shape_cast %81 : vector<2x8xf32> to vector<2x8x1xf32>
    %83 = tpu.reciprocal %82 {approx = true} : vector<2x8x1xf32> -> vector<2x8x1xf32>
    %84 = vector.broadcast %83 : vector<2x8x1xf32> to vector<2x8x8xf32>
    %85 = arith.mulf %80, %84 : vector<2x8x8xf32>
    %86 = arith.truncf %85 : vector<2x8x8xf32> to vector<2x8x8xbf16>
    "tpu.trace_start"() <{level = 10 : i32, message = "bqk,bkd->bqd"}> : () -> ()
    %cst_21 = arith.constant dense<0.000000e+00> : vector<2x8x32xf32>
    %87 = tpu.matmul %86, %74, %cst_21 {dimension_numbers = #tpu.dot_dimension_numbers<[2], [1], [1], [2], [0, 0, 0, 1, 1, 2], [0], [0]>} : vector<2x8x8xbf16>, vector<2x8x32xbf16>, vector<2x8x32xf32> -> vector<2x8x32xf32>
    "tpu.trace_stop"() : () -> ()
    %88 = arith.truncf %87 : vector<2x8x32xf32> to vector<2x8x32xbf16>
    %89 = tpu.concatenate %28, %48, %68, %88 in 2 : vector<2x8x32xbf16>, vector<2x8x32xbf16>, vector<2x8x32xbf16>, vector<2x8x32xbf16> -> vector<2x8x128xbf16>
    %90 = vector.shape_cast %89 : vector<2x8x128xbf16> to vector<16x128xbf16>
    %c0_22 = arith.constant 0 : index
    %c0_23 = arith.constant 0 : index
    %91 = vector.load %arg4[%c0_22, %c0_23] : memref<128x128xbf16, #tpu.memory_space<vmem>>, vector<128x128xbf16>
    %cst_24 = arith.constant dense<0.000000e+00> : vector<16x128xf32>
    %92 = tpu.matmul %90, %91, %cst_24 {dimension_numbers = #tpu.dot_dimension_numbers<[1], [0], [0], [1], [0, 0, 1, 1], [], []>} : vector<16x128xbf16>, vector<128x128xbf16>, vector<16x128xf32> -> vector<16x128xf32>
    %c0_25 = arith.constant 0 : index
    %c0_26 = arith.constant 0 : index
    %93 = vector.load %arg5[%c0_25, %c0_26] : memref<1x128xf32, #tpu.memory_space<vmem>>, vector<1x128xf32>
    %94 = vector.broadcast %93 : vector<1x128xf32> to vector<16x128xf32>
    %95 = arith.addf %92, %94 : vector<16x128xf32>
    %96 = arith.addf %1, %95 : vector<16x128xf32>
    %c0_27 = arith.constant 0 : index
    %c0_28 = arith.constant 0 : index
    %97 = vector.load %arg6[%c0_27, %c0_28] : memref<1x128xf32, #tpu.memory_space<vmem>>, vector<1x128xf32>
    %c0_29 = arith.constant 0 : index
    %c0_30 = arith.constant 0 : index
    %98 = vector.load %arg7[%c0_29, %c0_30] : memref<1x128xf32, #tpu.memory_space<vmem>>, vector<1x128xf32>
    %cst_31 = arith.constant dense<0.000000e+00> : vector<16xf32>
    %99 = vector.multi_reduction <add>, %96, %cst_31 [1] : vector<16x128xf32> to vector<16xf32>
    %100 = vector.shape_cast %99 : vector<16xf32> to vector<16x1xf32>
    %cst_32 = arith.constant 1.280000e+02 : f32
    %101 = vector.broadcast %cst_32 : f32 to vector<16x1xf32>
    %102 = arith.divf %100, %101 : vector<16x1xf32>
    %103 = vector.broadcast %102 : vector<16x1xf32> to vector<16x128xf32>
    %104 = arith.subf %96, %103 : vector<16x128xf32>
    %105 = arith.mulf %104, %104 : vector<16x128xf32>
    %cst_33 = arith.constant dense<0.000000e+00> : vector<16xf32>
    %106 = vector.multi_reduction <add>, %105, %cst_33 [1] : vector<16x128xf32> to vector<16xf32>
    %107 = vector.shape_cast %106 : vector<16xf32> to vector<16x1xf32>
    %cst_34 = arith.constant 1.280000e+02 : f32
    %108 = vector.broadcast %cst_34 : f32 to vector<16x1xf32>
    %109 = arith.divf %107, %108 : vector<16x1xf32>
    %110 = vector.broadcast %102 : vector<16x1xf32> to vector<16x128xf32>
    %111 = arith.subf %96, %110 : vector<16x128xf32>
    %cst_35 = arith.constant 9.99999974E-6 : f32
    %112 = vector.broadcast %cst_35 : f32 to vector<16x1xf32>
    %113 = arith.addf %109, %112 : vector<16x1xf32>
    %114 = math.rsqrt %113 : vector<16x1xf32>
    %115 = vector.broadcast %114 : vector<16x1xf32> to vector<16x128xf32>
    %116 = arith.mulf %111, %115 : vector<16x128xf32>
    %117 = vector.broadcast %97 : vector<1x128xf32> to vector<16x128xf32>
    %118 = arith.mulf %116, %117 : vector<16x128xf32>
    %119 = vector.broadcast %98 : vector<1x128xf32> to vector<16x128xf32>
    %120 = arith.addf %118, %119 : vector<16x128xf32>
    %121 = arith.truncf %120 : vector<16x128xf32> to vector<16x128xbf16>
    %c0_36 = arith.constant 0 : index
    %c0_37 = arith.constant 0 : index
    %122 = vector.load %arg8[%c0_36, %c0_37] : memref<128x256xbf16, #tpu.memory_space<vmem>>, vector<128x256xbf16>
    %cst_38 = arith.constant dense<0.000000e+00> : vector<16x256xf32>
    %123 = tpu.matmul %121, %122, %cst_38 {dimension_numbers = #tpu.dot_dimension_numbers<[1], [0], [0], [1], [0, 0, 1, 1], [], []>} : vector<16x128xbf16>, vector<128x256xbf16>, vector<16x256xf32> -> vector<16x256xf32>
    %c0_39 = arith.constant 0 : index
    %c0_40 = arith.constant 0 : index
    %124 = vector.load %arg9[%c0_39, %c0_40] : memref<1x256xf32, #tpu.memory_space<vmem>>, vector<1x256xf32>
    %125 = vector.broadcast %124 : vector<1x256xf32> to vector<16x256xf32>
    %126 = arith.addf %123, %125 : vector<16x256xf32>
    %cst_41 = arith.constant 0.000000e+00 : f32
    %127 = vector.broadcast %cst_41 : f32 to vector<16x256xf32>
    %128 = arith.maximumf %126, %127 : vector<16x256xf32>
    %129 = arith.truncf %128 : vector<16x256xf32> to vector<16x256xbf16>
    %c0_42 = arith.constant 0 : index
    %c0_43 = arith.constant 0 : index
    %130 = vector.load %arg10[%c0_42, %c0_43] : memref<256x128xbf16, #tpu.memory_space<vmem>>, vector<256x128xbf16>
    %cst_44 = arith.constant dense<0.000000e+00> : vector<16x128xf32>
    %131 = tpu.matmul %129, %130, %cst_44 {dimension_numbers = #tpu.dot_dimension_numbers<[1], [0], [0], [1], [0, 0, 1, 1], [], []>} : vector<16x256xbf16>, vector<256x128xbf16>, vector<16x128xf32> -> vector<16x128xf32>
    %c0_45 = arith.constant 0 : index
    %c0_46 = arith.constant 0 : index
    %132 = vector.load %arg11[%c0_45, %c0_46] : memref<1x128xf32, #tpu.memory_space<vmem>>, vector<1x128xf32>
    %133 = vector.broadcast %132 : vector<1x128xf32> to vector<16x128xf32>
    %134 = arith.addf %131, %133 : vector<16x128xf32>
    %135 = arith.addf %96, %134 : vector<16x128xf32>
    %c0_47 = arith.constant 0 : index
    %c0_48 = arith.constant 0 : index
    %136 = vector.load %arg12[%c0_47, %c0_48] : memref<1x128xf32, #tpu.memory_space<vmem>>, vector<1x128xf32>
    %c0_49 = arith.constant 0 : index
    %c0_50 = arith.constant 0 : index
    %137 = vector.load %arg13[%c0_49, %c0_50] : memref<1x128xf32, #tpu.memory_space<vmem>>, vector<1x128xf32>
    %cst_51 = arith.constant dense<0.000000e+00> : vector<16xf32>
    %138 = vector.multi_reduction <add>, %135, %cst_51 [1] : vector<16x128xf32> to vector<16xf32>
    %139 = vector.shape_cast %138 : vector<16xf32> to vector<16x1xf32>
    %cst_52 = arith.constant 1.280000e+02 : f32
    %140 = vector.broadcast %cst_52 : f32 to vector<16x1xf32>
    %141 = arith.divf %139, %140 : vector<16x1xf32>
    %142 = vector.broadcast %141 : vector<16x1xf32> to vector<16x128xf32>
    %143 = arith.subf %135, %142 : vector<16x128xf32>
    %144 = arith.mulf %143, %143 : vector<16x128xf32>
    %cst_53 = arith.constant dense<0.000000e+00> : vector<16xf32>
    %145 = vector.multi_reduction <add>, %144, %cst_53 [1] : vector<16x128xf32> to vector<16xf32>
    %146 = vector.shape_cast %145 : vector<16xf32> to vector<16x1xf32>
    %cst_54 = arith.constant 1.280000e+02 : f32
    %147 = vector.broadcast %cst_54 : f32 to vector<16x1xf32>
    %148 = arith.divf %146, %147 : vector<16x1xf32>
    %149 = vector.broadcast %141 : vector<16x1xf32> to vector<16x128xf32>
    %150 = arith.subf %135, %149 : vector<16x128xf32>
    %cst_55 = arith.constant 9.99999974E-6 : f32
    %151 = vector.broadcast %cst_55 : f32 to vector<16x1xf32>
    %152 = arith.addf %148, %151 : vector<16x1xf32>
    %153 = math.rsqrt %152 : vector<16x1xf32>
    %154 = vector.broadcast %153 : vector<16x1xf32> to vector<16x128xf32>
    %155 = arith.mulf %150, %154 : vector<16x128xf32>
    %156 = vector.broadcast %136 : vector<1x128xf32> to vector<16x128xf32>
    %157 = arith.mulf %155, %156 : vector<16x128xf32>
    %158 = vector.broadcast %137 : vector<1x128xf32> to vector<16x128xf32>
    %159 = arith.addf %157, %158 : vector<16x128xf32>
    %160 = vector.shape_cast %159 : vector<16x128xf32> to vector<2x8x128xf32>
    %c0_56 = arith.constant 0 : index
    %c0_57 = arith.constant 0 : index
    %c0_58 = arith.constant 0 : index
    %161 = vector.load %arg14[%c0_56, %c0_57, %c0_58] : memref<2x8x128xf32, #tpu.memory_space<vmem>>, vector<2x8x128xf32>
    tpu.vector_store %arg14[%c0_56, %c0_57, %c0_58], %160 {strides = array<i32>} : memref<2x8x128xf32, #tpu.memory_space<vmem>>, vector<2x8x128xf32>,
    return
  }
  func.func @transform_0(%arg0: i32) -> (i32, i32, i32) {
    %c0_i32 = arith.constant 0 : i32
    %c0_i32_0 = arith.constant 0 : i32
    %c0_i32_1 = arith.constant 0 : i32
    return %arg0, %c0_i32, %c0_i32_0 : i32, i32, i32
  }
  func.func @transform_1(%arg0: i32) -> (i32, i32) {
    %c0_i32 = arith.constant 0 : i32
    %c0_i32_0 = arith.constant 0 : i32
    %c0_i32_1 = arith.constant 0 : i32
    return %c0_i32, %c0_i32_0 : i32, i32
  }
  func.func @transform_2(%arg0: i32) -> (i32, i32) {
    %c0_i32 = arith.constant 0 : i32
    %c0_i32_0 = arith.constant 0 : i32
    %c0_i32_1 = arith.constant 0 : i32
    return %c0_i32, %c0_i32_0 : i32, i32
  }
  func.func @transform_3(%arg0: i32) -> (i32, i32) {
    %c0_i32 = arith.constant 0 : i32
    %c0_i32_0 = arith.constant 0 : i32
    %c0_i32_1 = arith.constant 0 : i32
    return %c0_i32, %c0_i32_0 : i32, i32
  }
  func.func @transform_4(%arg0: i32) -> (i32, i32) {
    %c0_i32 = arith.constant 0 : i32
    %c0_i32_0 = arith.constant 0 : i32
    %c0_i32_1 = arith.constant 0 : i32
    return %c0_i32, %c0_i32_0 : i32, i32
  }
  func.func @transform_5(%arg0: i32) -> (i32, i32) {
    %c0_i32 = arith.constant 0 : i32
    %c0_i32_0 = arith.constant 0 : i32
    %c0_i32_1 = arith.constant 0 : i32
    return %c0_i32, %c0_i32_0 : i32, i32
  }
  func.func @transform_6(%arg0: i32) -> (i32, i32) {
    %c0_i32 = arith.constant 0 : i32
    %c0_i32_0 = arith.constant 0 : i32
    %c0_i32_1 = arith.constant 0 : i32
    return %c0_i32, %c0_i32_0 : i32, i32
  }
  func.func @transform_7(%arg0: i32) -> (i32, i32) {
    %c0_i32 = arith.constant 0 : i32
    %c0_i32_0 = arith.constant 0 : i32
    %c0_i32_1 = arith.constant 0 : i32
    return %c0_i32, %c0_i32_0 : i32, i32
  }
  func.func @transform_8(%arg0: i32) -> (i32, i32) {
    %c0_i32 = arith.constant 0 : i32
    %c0_i32_0 = arith.constant 0 : i32
    %c0_i32_1 = arith.constant 0 : i32
    return %c0_i32, %c0_i32_0 : i32, i32
  }
  func.func @transform_9(%arg0: i32) -> (i32, i32) {
    %c0_i32 = arith.constant 0 : i32
    %c0_i32_0 = arith.constant 0 : i32
    %c0_i32_1 = arith.constant 0 : i32
    return %c0_i32, %c0_i32_0 : i32, i32
  }
  func.func @transform_10(%arg0: i32) -> (i32, i32) {
    %c0_i32 = arith.constant 0 : i32
    %c0_i32_0 = arith.constant 0 : i32
    %c0_i32_1 = arith.constant 0 : i32
    return %c0_i32, %c0_i32_0 : i32, i32
  }
  func.func @transform_11(%arg0: i32) -> (i32, i32) {
    %c0_i32 = arith.constant 0 : i32
    %c0_i32_0 = arith.constant 0 : i32
    %c0_i32_1 = arith.constant 0 : i32
    return %c0_i32, %c0_i32_0 : i32, i32
  }
  func.func @transform_12(%arg0: i32) -> (i32, i32) {
    %c0_i32 = arith.constant 0 : i32
    %c0_i32_0 = arith.constant 0 : i32
    %c0_i32_1 = arith.constant 0 : i32
    return %c0_i32, %c0_i32_0 : i32, i32
  }
  func.func @transform_13(%arg0: i32) -> (i32, i32, i32) {
    %c0_i32 = arith.constant 0 : i32
    %c0_i32_0 = arith.constant 0 : i32
    %c0_i32_1 = arith.constant 0 : i32
    return %arg0, %c0_i32, %c0_i32_0 : i32, i32, i32
  }
}

module attributes {stable_mosaic.version = 11 : i64} {
  func.func @encoder_block_kernel(%arg0: i32, %arg1: memref<2x8x128xf32, #tpu.memory_space<vmem>>, %arg2: memref<128x384xbf16, #tpu.memory_space<vmem>>, %arg3: memref<1x384xf32, #tpu.memory_space<vmem>>, %arg4: memref<128x128xbf16, #tpu.memory_space<vmem>>, %arg5: memref<1x128xf32, #tpu.memory_space<vmem>>, %arg6: memref<1x128xf32, #tpu.memory_space<vmem>>, %arg7: memref<1x128xf32, #tpu.memory_space<vmem>>, %arg8: memref<128x256xbf16, #tpu.memory_space<vmem>>, %arg9: memref<1x256xf32, #tpu.memory_space<vmem>>, %arg10: memref<256x128xbf16, #tpu.memory_space<vmem>>, %arg11: memref<1x128xf32, #tpu.memory_space<vmem>>, %arg12: memref<1x128xf32, #tpu.memory_space<vmem>>, %arg13: memref<1x128xf32, #tpu.memory_space<vmem>>, %arg14: memref<2x8x128xf32, #tpu.memory_space<vmem>>) attributes {dimension_semantics = [#tpu.dimension_semantics<parallel>], iteration_bounds = array<i64: 4>, scalar_prefetch = 0 : i64, scratch_operands = 0 : i64, tpu.core_type = #tpu.core_type<tc>, window_params = [{transform_indices = @transform_0, window_bounds = array<i64: 2, 8, 128>}, {pipeline_mode = #tpu.pipeline_mode<synchronous>, transform_indices = @transform_1, window_bounds = array<i64: 128, 384>}, {pipeline_mode = #tpu.pipeline_mode<synchronous>, transform_indices = @transform_2, window_bounds = array<i64: 1, 384>}, {pipeline_mode = #tpu.pipeline_mode<synchronous>, transform_indices = @transform_3, window_bounds = array<i64: 128, 128>}, {pipeline_mode = #tpu.pipeline_mode<synchronous>, transform_indices = @transform_4, window_bounds = array<i64: 1, 128>}, {pipeline_mode = #tpu.pipeline_mode<synchronous>, transform_indices = @transform_5, window_bounds = array<i64: 1, 128>}, {pipeline_mode = #tpu.pipeline_mode<synchronous>, transform_indices = @transform_6, window_bounds = array<i64: 1, 128>}, {pipeline_mode = #tpu.pipeline_mode<synchronous>, transform_indices = @transform_7, window_bounds = array<i64: 128, 256>}, {pipeline_mode = #tpu.pipeline_mode<synchronous>, transform_indices = @transform_8, window_bounds = array<i64: 1, 256>}, {pipeline_mode = #tpu.pipeline_mode<synchronous>, transform_indices = @transform_9, window_bounds = array<i64: 256, 128>}, {pipeline_mode = #tpu.pipeline_mode<synchronous>, transform_indices = @transform_10, window_bounds = array<i64: 1, 128>}, {pipeline_mode = #tpu.pipeline_mode<synchronous>, transform_indices = @transform_11, window_bounds = array<i64: 1, 128>}, {pipeline_mode = #tpu.pipeline_mode<synchronous>, transform_indices = @transform_12, window_bounds = array<i64: 1, 128>}, {transform_indices = @transform_13, window_bounds = array<i64: 2, 8, 128>}]} {
    %c0 = arith.constant 0 : index
    %c0_0 = arith.constant 0 : index
    %c0_1 = arith.constant 0 : index
    %0 = vector.load %arg1[%c0, %c0_0, %c0_1] : memref<2x8x128xf32, #tpu.memory_space<vmem>>, vector<2x8x128xf32>
    %1 = vector.shape_cast %0 : vector<2x8x128xf32> to vector<16x128xf32>
    %2 = arith.truncf %1 : vector<16x128xf32> to vector<16x128xbf16>
    %c0_2 = arith.constant 0 : index
    %c0_3 = arith.constant 0 : index
    %3 = vector.load %arg2[%c0_2, %c0_3] : memref<128x384xbf16, #tpu.memory_space<vmem>>, vector<128x384xbf16>
    %cst = arith.constant dense<0.000000e+00> : vector<16x384xf32>
    %4 = tpu.matmul %2, %3, %cst {dimension_numbers = #tpu.dot_dimension_numbers<[1], [0], [0], [1], [0, 0, 1, 1], [], []>} : vector<16x128xbf16>, vector<128x384xbf16>, vector<16x384xf32> -> vector<16x384xf32>
    %c0_4 = arith.constant 0 : index
    %c0_5 = arith.constant 0 : index
    %5 = vector.load %arg3[%c0_4, %c0_5] : memref<1x384xf32, #tpu.memory_space<vmem>>, vector<1x384xf32>
    %6 = vector.broadcast %5 : vector<1x384xf32> to vector<16x384xf32>
    %7 = arith.addf %4, %6 : vector<16x384xf32>
    %8 = arith.truncf %7 : vector<16x384xf32> to vector<16x384xbf16>
    %9 = vector.extract_strided_slice %8 {offsets = [0, 0], sizes = [16, 32], strides = [1, 1]} : vector<16x384xbf16> to vector<16x32xbf16>
    %10 = vector.shape_cast %9 : vector<16x32xbf16> to vector<2x8x32xbf16>
    %11 = vector.extract_strided_slice %8 {offsets = [0, 128], sizes = [16, 32], strides = [1, 1]} : vector<16x384xbf16> to vector<16x32xbf16>
    %12 = vector.shape_cast %11 : vector<16x32xbf16> to vector<2x8x32xbf16>
    %13 = vector.extract_strided_slice %8 {offsets = [0, 256], sizes = [16, 32], strides = [1, 1]} : vector<16x384xbf16> to vector<16x32xbf16>
    %14 = vector.shape_cast %13 : vector<16x32xbf16> to vector<2x8x32xbf16>
    "tpu.trace_start"() <{level = 10 : i32, message = "bqd,bkd->bqk"}> : () -> ()
    %cst_6 = arith.constant dense<0.000000e+00> : vector<2x8x8xf32>
    %15 = tpu.matmul %10, %12, %cst_6 {dimension_numbers = #tpu.dot_dimension_numbers<[2], [2], [1], [1], [0, 0, 0, 1, 1, 1], [0], [0]>} : vector<2x8x32xbf16>, vector<2x8x32xbf16>, vector<2x8x8xf32> -> vector<2x8x8xf32>
    "tpu.trace_stop"() : () -> ()
    %cst_7 = arith.constant dense<0xFF800000> : vector<2x8xf32>
    %16 = vector.multi_reduction <maximumf>, %15, %cst_7 [2] : vector<2x8x8xf32> to vector<2x8xf32>
    %17 = vector.shape_cast %16 : vector<2x8xf32> to vector<2x8x1xf32>
    %18 = vector.broadcast %17 : vector<2x8x1xf32> to vector<2x8x8xf32>
    %19 = arith.subf %15, %18 : vector<2x8x8xf32>
    %20 = math.exp %19 : vector<2x8x8xf32>
    %cst_8 = arith.constant dense<0.000000e+00> : vector<2x8xf32>
    %21 = vector.multi_reduction <add>, %20, %cst_8 [2] : vector<2x8x8xf32> to vector<2x8xf32>
    %22 = vector.shape_cast %21 : vector<2x8xf32> to vector<2x8x1xf32>
    %23 = tpu.reciprocal %22 {approx = true} : vector<2x8x1xf32> -> vector<2x8x1xf32>
    %24 = vector.broadcast %23 : vector<2x8x1xf32> to vector<2x8x8xf32>
    %25 = arith.mulf %20, %24 : vector<2x8x8xf32>
    %26 = arith.truncf %25 : vector<2x8x8xf32> to vector<2x8x8xbf16>
    "tpu.trace_start"() <{level = 10 : i32, message = "bqk,bkd->bqd"}> : () -> ()
    %cst_9 = arith.constant dense<0.000000e+00> : vector<2x8x32xf32>
    %27 = tpu.matmul %26, %14, %cst_9 {dimension_numbers = #tpu.dot_dimension_numbers<[2], [1], [1], [2], [0, 0, 0, 1, 1, 2], [0], [0]>} : vector<2x8x8xbf16>, vector<2x8x32xbf16>, vector<2x8x32xf32> -> vector<2x8x32xf32>
    "tpu.trace_stop"() : () -> ()
    %28 = arith.truncf %27 : vector<2x8x32xf32> to vector<2x8x32xbf16>
    %29 = vector.extract_strided_slice %8 {offsets = [0, 32], sizes = [16, 32], strides = [1, 1]} : vector<16x384xbf16> to vector<16x32xbf16>
    %30 = vector.shape_cast %29 : vector<16x32xbf16> to vector<2x8x32xbf16>
    %31 = vector.extract_strided_slice %8 {offsets = [0, 160], sizes = [16, 32], strides = [1, 1]} : vector<16x384xbf16> to vector<16x32xbf16>
    %32 = vector.shape_cast %31 : vector<16x32xbf16> to vector<2x8x32xbf16>
    %33 = vector.extract_strided_slice %8 {offsets = [0, 288], sizes = [16, 32], strides = [1, 1]} : vector<16x384xbf16> to vector<16x32xbf16>
    %34 = vector.shape_cast %33 : vector<16x32xbf16> to vector<2x8x32xbf16>
    "tpu.trace_start"() <{level = 10 : i32, message = "bqd,bkd->bqk"}> : () -> ()
    %cst_10 = arith.constant dense<0.000000e+00> : vector<2x8x8xf32>
    %35 = tpu.matmul %30, %32, %cst_10 {dimension_numbers = #tpu.dot_dimension_numbers<[2], [2], [1], [1], [0, 0, 0, 1, 1, 1], [0], [0]>} : vector<2x8x32xbf16>, vector<2x8x32xbf16>, vector<2x8x8xf32> -> vector<2x8x8xf32>
    "tpu.trace_stop"() : () -> ()
    %cst_11 = arith.constant dense<0xFF800000> : vector<2x8xf32>
    %36 = vector.multi_reduction <maximumf>, %35, %cst_11 [2] : vector<2x8x8xf32> to vector<2x8xf32>
    %37 = vector.shape_cast %36 : vector<2x8xf32> to vector<2x8x1xf32>
    %38 = vector.broadcast %37 : vector<2x8x1xf32> to vector<2x8x8xf32>
    %39 = arith.subf %35, %38 : vector<2x8x8xf32>
    %40 = math.exp %39 : vector<2x8x8xf32>
    %cst_12 = arith.constant dense<0.000000e+00> : vector<2x8xf32>
    %41 = vector.multi_reduction <add>, %40, %cst_12 [2] : vector<2x8x8xf32> to vector<2x8xf32>
    %42 = vector.shape_cast %41 : vector<2x8xf32> to vector<2x8x1xf32>
    %43 = tpu.reciprocal %42 {approx = true} : vector<2x8x1xf32> -> vector<2x8x1xf32>
    %44 = vector.broadcast %43 : vector<2x8x1xf32> to vector<2x8x8xf32>
    %45 = arith.mulf %40, %44 : vector<2x8x8xf32>
    %46 = arith.truncf %45 : vector<2x8x8xf32> to vector<2x8x8xbf16>
    "tpu.trace_start"() <{level = 10 : i32, message = "bqk,bkd->bqd"}> : () -> ()
    %cst_13 = arith.constant dense<0.000000e+00> : vector<2x8x32xf32>
    %47 = tpu.matmul %46, %34, %cst_13 {dimension_numbers = #tpu.dot_dimension_numbers<[2], [1], [1], [2], [0, 0, 0, 1, 1, 2], [0], [0]>} : vector<2x8x8xbf16>, vector<2x8x32xbf16>, vector<2x8x32xf32> -> vector<2x8x32xf32>
    "tpu.trace_stop"() : () -> ()
    %48 = arith.truncf %47 : vector<2x8x32xf32> to vector<2x8x32xbf16>
    %49 = vector.extract_strided_slice %8 {offsets = [0, 64], sizes = [16, 32], strides = [1, 1]} : vector<16x384xbf16> to vector<16x32xbf16>
    %50 = vector.shape_cast %49 : vector<16x32xbf16> to vector<2x8x32xbf16>
    %51 = vector.extract_strided_slice %8 {offsets = [0, 192], sizes = [16, 32], strides = [1, 1]} : vector<16x384xbf16> to vector<16x32xbf16>
    %52 = vector.shape_cast %51 : vector<16x32xbf16> to vector<2x8x32xbf16>
    %53 = vector.extract_strided_slice %8 {offsets = [0, 320], sizes = [16, 32], strides = [1, 1]} : vector<16x384xbf16> to vector<16x32xbf16>
    %54 = vector.shape_cast %53 : vector<16x32xbf16> to vector<2x8x32xbf16>
    "tpu.trace_start"() <{level = 10 : i32, message = "bqd,bkd->bqk"}> : () -> ()
    %cst_14 = arith.constant dense<0.000000e+00> : vector<2x8x8xf32>
    %55 = tpu.matmul %50, %52, %cst_14 {dimension_numbers = #tpu.dot_dimension_numbers<[2], [2], [1], [1], [0, 0, 0, 1, 1, 1], [0], [0]>} : vector<2x8x32xbf16>, vector<2x8x32xbf16>, vector<2x8x8xf32> -> vector<2x8x8xf32>
    "tpu.trace_stop"() : () -> ()
    %cst_15 = arith.constant dense<0xFF800000> : vector<2x8xf32>
    %56 = vector.multi_reduction <maximumf>, %55, %cst_15 [2] : vector<2x8x8xf32> to vector<2x8xf32>
    %57 = vector.shape_cast %56 : vector<2x8xf32> to vector<2x8x1xf32>
    %58 = vector.broadcast %57 : vector<2x8x1xf32> to vector<2x8x8xf32>
    %59 = arith.subf %55, %58 : vector<2x8x8xf32>
    %60 = math.exp %59 : vector<2x8x8xf32>
    %cst_16 = arith.constant dense<0.000000e+00> : vector<2x8xf32>
    %61 = vector.multi_reduction <add>, %60, %cst_16 [2] : vector<2x8x8xf32> to vector<2x8xf32>
    %62 = vector.shape_cast %61 : vector<2x8xf32> to vector<2x8x1xf32>
    %63 = tpu.reciprocal %62 {approx = true} : vector<2x8x1xf32> -> vector<2x8x1xf32>
    %64 = vector.broadcast %63 : vector<2x8x1xf32> to vector<2x8x8xf32>
    %65 = arith.mulf %60, %64 : vector<2x8x8xf32>
    %66 = arith.truncf %65 : vector<2x8x8xf32> to vector<2x8x8xbf16>
    "tpu.trace_start"() <{level = 10 : i32, message = "bqk,bkd->bqd"}> : () -> ()
    %cst_17 = arith.constant dense<0.000000e+00> : vector<2x8x32xf32>
    %67 = tpu.matmul %66, %54, %cst_17 {dimension_numbers = #tpu.dot_dimension_numbers<[2], [1], [1], [2], [0, 0, 0, 1, 1, 2], [0], [0]>} : vector<2x8x8xbf16>, vector<2x8x32xbf16>, vector<2x8x32xf32> -> vector<2x8x32xf32>
    "tpu.trace_stop"() : () -> ()
    %68 = arith.truncf %67 : vector<2x8x32xf32> to vector<2x8x32xbf16>
    %69 = vector.extract_strided_slice %8 {offsets = [0, 96], sizes = [16, 32], strides = [1, 1]} : vector<16x384xbf16> to vector<16x32xbf16>
    %70 = vector.shape_cast %69 : vector<16x32xbf16> to vector<2x8x32xbf16>
    %71 = vector.extract_strided_slice %8 {offsets = [0, 224], sizes = [16, 32], strides = [1, 1]} : vector<16x384xbf16> to vector<16x32xbf16>
    %72 = vector.shape_cast %71 : vector<16x32xbf16> to vector<2x8x32xbf16>
    %73 = vector.extract_strided_slice %8 {offsets = [0, 352], sizes = [16, 32], strides = [1, 1]} : vector<16x384xbf16> to vector<16x32xbf16>
    %74 = vector.shape_cast %73 : vector<16x32xbf16> to vector<2x8x32xbf16>
    "tpu.trace_start"() <{level = 10 : i32, message = "bqd,bkd->bqk"}> : () -> ()
    %cst_18 = arith.constant dense<0.000000e+00> : vector<2x8x8xf32>
    %75 = tpu.matmul %70, %72, %cst_18 {dimension_numbers = #tpu.dot_dimension_numbers<[2], [2], [1], [1], [0, 0, 0, 1, 1, 1], [0], [0]>} : vector<2x8x32xbf16>, vector<2x8x32xbf16>, vector<2x8x8xf32> -> vector<2x8x8xf32>
    "tpu.trace_stop"() : () -> ()
    %cst_19 = arith.constant dense<0xFF800000> : vector<2x8xf32>
    %76 = vector.multi_reduction <maximumf>, %75, %cst_19 [2] : vector<2x8x8xf32> to vector<2x8xf32>
    %77 = vector.shape_cast %76 : vector<2x8xf32> to vector<2x8x1xf32>
    %78 = vector.broadcast %77 : vector<2x8x1xf32> to vector<2x8x8xf32>
    %79 = arith.subf %75, %78 : vector<2x8x8xf32>
    %80 = math.exp %79 : vector<2x8x8xf32>
    %cst_20 = arith.constant dense<0.000000e+00> : vector<2x8xf32>
    %81 = vector.multi_reduction <add>, %80, %cst_20 [2] : vector<2x8x8xf32> to vector<2x8xf32>
    %82 = vector.shape_cast %81 : vector<2x8xf32> to vector<2x8x1xf32>
    %83 = tpu.reciprocal %82 {approx = true} : vector<2x8x1xf32> -> vector<2x8x1xf32>
    %84 = vector.broadcast %83 : vector<2x8x1xf32> to vector<2x8x8xf32>
    %85 = arith.mulf %80, %84 : vector<2x8x8xf32>
    %86 = arith.truncf %85 : vector<2x8x8xf32> to vector<2x8x8xbf16>
    "tpu.trace_start"() <{level = 10 : i32, message = "bqk,bkd->bqd"}> : () -> ()
    %cst_21 = arith.constant dense<0.000000e+00> : vector<2x8x32xf32>
    %87 = tpu.matmul %86, %74, %cst_21 {dimension_numbers = #tpu.dot_dimension_numbers<[2], [1], [1], [2], [0, 0, 0, 1, 1, 2], [0], [0]>} : vector<2x8x8xbf16>, vector<2x8x32xbf16>, vector<2x8x32xf32> -> vector<2x8x32xf32>
    "tpu.trace_stop"() : () -> ()
    %88 = arith.truncf %87 : vector<2x8x32xf32> to vector<2x8x32xbf16>
    %89 = tpu.concatenate %28, %48, %68, %88 in 2 : vector<2x8x32xbf16>, vector<2x8x32xbf16>, vector<2x8x32xbf16>, vector<2x8x32xbf16> -> vector<2x8x128xbf16>
    %90 = vector.shape_cast %89 : vector<2x8x128xbf16> to vector<16x128xbf16>
    %c0_22 = arith.constant 0 : index
    %c0_23 = arith.constant 0 : index
    %91 = vector.load %arg4[%c0_22, %c0_23] : memref<128x128xbf16, #tpu.memory_space<vmem>>, vector<128x128xbf16>
    %cst_24 = arith.constant dense<0.000000e+00> : vector<16x128xf32>
    %92 = tpu.matmul %90, %91, %cst_24 {dimension_numbers = #tpu.dot_dimension_numbers<[1], [0], [0], [1], [0, 0, 1, 1], [], []>} : vector<16x128xbf16>, vector<128x128xbf16>, vector<16x128xf32> -> vector<16x128xf32>
    %c0_25 = arith.constant 0 : index
    %c0_26 = arith.constant 0 : index
    %93 = vector.load %arg5[%c0_25, %c0_26] : memref<1x128xf32, #tpu.memory_space<vmem>>, vector<1x128xf32>
    %94 = vector.broadcast %93 : vector<1x128xf32> to vector<16x128xf32>
    %95 = arith.addf %92, %94 : vector<16x128xf32>
    %96 = arith.addf %1, %95 : vector<16x128xf32>
    %c0_27 = arith.constant 0 : index
    %c0_28 = arith.constant 0 : index
    %97 = vector.load %arg6[%c0_27, %c0_28] : memref<1x128xf32, #tpu.memory_space<vmem>>, vector<1x128xf32>
    %c0_29 = arith.constant 0 : index
    %c0_30 = arith.constant 0 : index
    %98 = vector.load %arg7[%c0_29, %c0_30] : memref<1x128xf32, #tpu.memory_space<vmem>>, vector<1x128xf32>
    %cst_31 = arith.constant dense<0.000000e+00> : vector<16xf32>
    %99 = vector.multi_reduction <add>, %96, %cst_31 [1] : vector<16x128xf32> to vector<16xf32>
    %100 = vector.shape_cast %99 : vector<16xf32> to vector<16x1xf32>
    %cst_32 = arith.constant 1.280000e+02 : f32
    %101 = vector.broadcast %cst_32 : f32 to vector<16x1xf32>
    %102 = arith.divf %100, %101 : vector<16x1xf32>
    %103 = vector.broadcast %102 : vector<16x1xf32> to vector<16x128xf32>
    %104 = arith.subf %96, %103 : vector<16x128xf32>
    %105 = arith.mulf %104, %104 : vector<16x128xf32>
    %cst_33 = arith.constant dense<0.000000e+00> : vector<16xf32>
    %106 = vector.multi_reduction <add>, %105, %cst_33 [1] : vector<16x128xf32> to vector<16xf32>
    %107 = vector.shape_cast %106 : vector<16xf32> to vector<16x1xf32>
    %cst_34 = arith.constant 1.280000e+02 : f32
    %108 = vector.broadcast %cst_34 : f32 to vector<16x1xf32>
    %109 = arith.divf %107, %108 : vector<16x1xf32>
    %110 = vector.broadcast %102 : vector<16x1xf32> to vector<16x128xf32>
    %111 = arith.subf %96, %110 : vector<16x128xf32>
    %cst_35 = arith.constant 9.99999974E-6 : f32
    %112 = vector.broadcast %cst_35 : f32 to vector<16x1xf32>
    %113 = arith.addf %109, %112 : vector<16x1xf32>
    %114 = math.rsqrt %113 : vector<16x1xf32>
    %115 = vector.broadcast %114 : vector<16x1xf32> to vector<16x128xf32>
    %116 = arith.mulf %111, %115 : vector<16x128xf32>
    %117 = vector.broadcast %97 : vector<1x128xf32> to vector<16x128xf32>
    %118 = arith.mulf %116, %117 : vector<16x128xf32>
    %119 = vector.broadcast %98 : vector<1x128xf32> to vector<16x128xf32>
    %120 = arith.addf %118, %119 : vector<16x128xf32>
    %121 = arith.truncf %120 : vector<16x128xf32> to vector<16x128xbf16>
    %c0_36 = arith.constant 0 : index
    %c0_37 = arith.constant 0 : index
    %122 = vector.load %arg8[%c0_36, %c0_37] : memref<128x256xbf16, #tpu.memory_space<vmem>>, vector<128x256xbf16>
    %cst_38 = arith.constant dense<0.000000e+00> : vector<16x256xf32>
    %123 = tpu.matmul %121, %122, %cst_38 {dimension_numbers = #tpu.dot_dimension_numbers<[1], [0], [0], [1], [0, 0, 1, 1], [], []>} : vector<16x128xbf16>, vector<128x256xbf16>, vector<16x256xf32> -> vector<16x256xf32>
    %c0_39 = arith.constant 0 : index
    %c0_40 = arith.constant 0 : index
    %124 = vector.load %arg9[%c0_39, %c0_40] : memref<1x256xf32, #tpu.memory_space<vmem>>, vector<1x256xf32>
    %125 = vector.broadcast %124 : vector<1x256xf32> to vector<16x256xf32>
    %126 = arith.addf %123, %125 : vector<16x256xf32>
    %cst_41 = arith.constant 0.000000e+00 : f32
    %127 = vector.broadcast %cst_41 : f32 to vector<16x256xf32>
    %128 = arith.maximumf %126, %127 : vector<16x256xf32>
    %129 = arith.truncf %128 : vector<16x256xf32> to vector<16x256xbf16>
    %c0_42 = arith.constant 0 : index
    %c0_43 = arith.constant 0 : index
    %130 = vector.load %arg10[%c0_42, %c0_43] : memref<256x128xbf16, #tpu.memory_space<vmem>>, vector<256x128xbf16>
    %cst_44 = arith.constant dense<0.000000e+00> : vector<16x128xf32>
    %131 = tpu.matmul %129, %130, %cst_44 {dimension_numbers = #tpu.dot_dimension_numbers<[1], [0], [0], [1], [0, 0, 1, 1], [], []>} : vector<16x256xbf16>, vector<256x128xbf16>, vector<16x128xf32> -> vector<16x128xf32>
    %c0_45 = arith.constant 0 : index
    %c0_46 = arith.constant 0 : index
    %132 = vector.load %arg11[%c0_45, %c0_46] : memref<1x128xf32, #tpu.memory_space<vmem>>, vector<1x128xf32>
    %133 = vector.broadcast %132 : vector<1x128xf32> to vector<16x128xf32>
    %134 = arith.addf %131, %133 : vector<16x128xf32>
    %135 = arith.addf %96, %134 : vector<16x128xf32>
    %c0_47 = arith.constant 0 : index
    %c0_48 = arith.constant 0 : index
    %136 = vector.load %arg12[%c0_47, %c0_48] : memref<1x128xf32, #tpu.memory_space<vmem>>, vector<1x128xf32>
    %c0_49 = arith.constant 0 : index
    %c0_50 = arith.constant 0 : index
    %137 = vector.load %arg13[%c0_49, %c0_50] : memref<1x128xf32, #tpu.memory_space<vmem>>, vector<1x128xf32>
    %cst_51 = arith.constant dense<0.000000e+00> : vector<16xf32>
    %138 = vector.multi_reduction <add>, %135, %cst_51 [1] : vector<16x128xf32> to vector<16xf32>
    %139 = vector.shape_cast %138 : vector<16xf32> to vector<16x1xf32>
    %cst_52 = arith.constant 1.280000e+02 : f32
    %140 = vector.broadcast %cst_52 : f32 to vector<16x1xf32>
    %141 = arith.divf %139, %140 : vector<16x1xf32>
    %142 = vector.broadcast %141 : vector<16x1xf32> to vector<16x128xf32>
    %143 = arith.subf %135, %142 : vector<16x128xf32>
    %144 = arith.mulf %143, %143 : vector<16x128xf32>
    %cst_53 = arith.constant dense<0.000000e+00> : vector<16xf32>
    %145 = vector.multi_reduction <add>, %144, %cst_53 [1] : vector<16x128xf32> to vector<16xf32>
    %146 = vector.shape_cast %145 : vector<16xf32> to vector<16x1xf32>
    %cst_54 = arith.constant 1.280000e+02 : f32
    %147 = vector.broadcast %cst_54 : f32 to vector<16x1xf32>
    %148 = arith.divf %146, %147 : vector<16x1xf32>
    %149 = vector.broadcast %141 : vector<16x1xf32> to vector<16x128xf32>
    %150 = arith.subf %135, %149 : vector<16x128xf32>
    %cst_55 = arith.constant 9.99999974E-6 : f32
    %151 = vector.broadcast %cst_55 : f32 to vector<16x1xf32>
    %152 = arith.addf %148, %151 : vector<16x1xf32>
    %153 = math.rsqrt %152 : vector<16x1xf32>
    %154 = vector.broadcast %153 : vector<16x1xf32> to vector<16x128xf32>
    %155 = arith.mulf %150, %154 : vector<16x128xf32>
    %156 = vector.broadcast %136 : vector<1x128xf32> to vector<16x128xf32>
    %157 = arith.mulf %155, %156 : vector<16x128xf32>
    %158 = vector.broadcast %137 : vector<1x128xf32> to vector<16x128xf32>
    %159 = arith.addf %157, %158 : vector<16x128xf32>
    %160 = vector.shape_cast %159 : vector<16x128xf32> to vector<2x8x128xf32>
    %c0_56 = arith.constant 0 : index
    %c0_57 = arith.constant 0 : index
    %c0_58 = arith.constant 0 : index
    %161 = vector.load %arg14[%c0_56, %c0_57, %c0_58] : memref<2x8x128xf32, #tpu.memory_space<vmem>>, vector<2x8x128xf32>
    tpu.vector_store %arg14[%c0_56, %c0_57, %c0_58], %160 {strides = array<i32>} : memref<2x8x128xf32, #tpu.memory_space<vmem>>, vector<2x8x128xf32>,
    return
  }
  func.func @transform_0(%arg0: i32) -> (i32, i32, i32) {
    %c0_i32 = arith.constant 0 : i32
    %c0_i32_0 = arith.constant 0 : i32
    %c0_i32_1 = arith.constant 0 : i32
    return %arg0, %c0_i32, %c0_i32_0 : i32, i32, i32
  }
  func.func @transform_1(%arg0: i32) -> (i32, i32) {
    %c0_i32 = arith.constant 0 : i32
    %c0_i32_0 = arith.constant 0 : i32
    %c0_i32_1 = arith.constant 0 : i32
    return %c0_i32, %c0_i32_0 : i32, i32
  }
  func.func @transform_2(%arg0: i32) -> (i32, i32) {
    %c0_i32 = arith.constant 0 : i32
    %c0_i32_0 = arith.constant 0 : i32
    %c0_i32_1 = arith.constant 0 : i32
    return %c0_i32, %c0_i32_0 : i32, i32
  }
  func.func @transform_3(%arg0: i32) -> (i32, i32) {
    %c0_i32 = arith.constant 0 : i32
    %c0_i32_0 = arith.constant 0 : i32
    %c0_i32_1 = arith.constant 0 : i32
    return %c0_i32, %c0_i32_0 : i32, i32
  }
  func.func @transform_4(%arg0: i32) -> (i32, i32) {
    %c0_i32 = arith.constant 0 : i32
    %c0_i32_0 = arith.constant 0 : i32
    %c0_i32_1 = arith.constant 0 : i32
    return %c0_i32, %c0_i32_0 : i32, i32
  }
  func.func @transform_5(%arg0: i32) -> (i32, i32) {
    %c0_i32 = arith.constant 0 : i32
    %c0_i32_0 = arith.constant 0 : i32
    %c0_i32_1 = arith.constant 0 : i32
    return %c0_i32, %c0_i32_0 : i32, i32
  }
  func.func @transform_6(%arg0: i32) -> (i32, i32) {
    %c0_i32 = arith.constant 0 : i32
    %c0_i32_0 = arith.constant 0 : i32
    %c0_i32_1 = arith.constant 0 : i32
    return %c0_i32, %c0_i32_0 : i32, i32
  }
  func.func @transform_7(%arg0: i32) -> (i32, i32) {
    %c0_i32 = arith.constant 0 : i32
    %c0_i32_0 = arith.constant 0 : i32
    %c0_i32_1 = arith.constant 0 : i32
    return %c0_i32, %c0_i32_0 : i32, i32
  }
  func.func @transform_8(%arg0: i32) -> (i32, i32) {
    %c0_i32 = arith.constant 0 : i32
    %c0_i32_0 = arith.constant 0 : i32
    %c0_i32_1 = arith.constant 0 : i32
    return %c0_i32, %c0_i32_0 : i32, i32
  }
  func.func @transform_9(%arg0: i32) -> (i32, i32) {
    %c0_i32 = arith.constant 0 : i32
    %c0_i32_0 = arith.constant 0 : i32
    %c0_i32_1 = arith.constant 0 : i32
    return %c0_i32, %c0_i32_0 : i32, i32
  }
  func.func @transform_10(%arg0: i32) -> (i32, i32) {
    %c0_i32 = arith.constant 0 : i32
    %c0_i32_0 = arith.constant 0 : i32
    %c0_i32_1 = arith.constant 0 : i32
    return %c0_i32, %c0_i32_0 : i32, i32
  }
  func.func @transform_11(%arg0: i32) -> (i32, i32) {
    %c0_i32 = arith.constant 0 : i32
    %c0_i32_0 = arith.constant 0 : i32
    %c0_i32_1 = arith.constant 0 : i32
    return %c0_i32, %c0_i32_0 : i32, i32
  }
  func.func @transform_12(%arg0: i32) -> (i32, i32) {
    %c0_i32 = arith.constant 0 : i32
    %c0_i32_0 = arith.constant 0 : i32
    %c0_i32_1 = arith.constant 0 : i32
    return %c0_i32, %c0_i32_0 : i32, i32
  }
  func.func @transform_13(%arg0: i32) -> (i32, i32, i32) {
    %c0_i32 = arith.constant 0 : i32
    %c0_i32_0 = arith.constant 0 : i32
    %c0_i32_1 = arith.constant 0 : i32
    return %arg0, %c0_i32, %c0_i32_0 : i32, i32, i32
  }
}

module attributes {stable_mosaic.version = 11 : i64} {
  func.func @encoder_block_kernel(%arg0: i32, %arg1: memref<2x8x128xf32, #tpu.memory_space<vmem>>, %arg2: memref<128x384xbf16, #tpu.memory_space<vmem>>, %arg3: memref<1x384xf32, #tpu.memory_space<vmem>>, %arg4: memref<128x128xbf16, #tpu.memory_space<vmem>>, %arg5: memref<1x128xf32, #tpu.memory_space<vmem>>, %arg6: memref<1x128xf32, #tpu.memory_space<vmem>>, %arg7: memref<1x128xf32, #tpu.memory_space<vmem>>, %arg8: memref<128x256xbf16, #tpu.memory_space<vmem>>, %arg9: memref<1x256xf32, #tpu.memory_space<vmem>>, %arg10: memref<256x128xbf16, #tpu.memory_space<vmem>>, %arg11: memref<1x128xf32, #tpu.memory_space<vmem>>, %arg12: memref<1x128xf32, #tpu.memory_space<vmem>>, %arg13: memref<1x128xf32, #tpu.memory_space<vmem>>, %arg14: memref<2x8x128xf32, #tpu.memory_space<vmem>>) attributes {dimension_semantics = [#tpu.dimension_semantics<parallel>], iteration_bounds = array<i64: 4>, scalar_prefetch = 0 : i64, scratch_operands = 0 : i64, tpu.core_type = #tpu.core_type<tc>, window_params = [{transform_indices = @transform_0, window_bounds = array<i64: 2, 8, 128>}, {pipeline_mode = #tpu.pipeline_mode<synchronous>, transform_indices = @transform_1, window_bounds = array<i64: 128, 384>}, {pipeline_mode = #tpu.pipeline_mode<synchronous>, transform_indices = @transform_2, window_bounds = array<i64: 1, 384>}, {pipeline_mode = #tpu.pipeline_mode<synchronous>, transform_indices = @transform_3, window_bounds = array<i64: 128, 128>}, {pipeline_mode = #tpu.pipeline_mode<synchronous>, transform_indices = @transform_4, window_bounds = array<i64: 1, 128>}, {pipeline_mode = #tpu.pipeline_mode<synchronous>, transform_indices = @transform_5, window_bounds = array<i64: 1, 128>}, {pipeline_mode = #tpu.pipeline_mode<synchronous>, transform_indices = @transform_6, window_bounds = array<i64: 1, 128>}, {pipeline_mode = #tpu.pipeline_mode<synchronous>, transform_indices = @transform_7, window_bounds = array<i64: 128, 256>}, {pipeline_mode = #tpu.pipeline_mode<synchronous>, transform_indices = @transform_8, window_bounds = array<i64: 1, 256>}, {pipeline_mode = #tpu.pipeline_mode<synchronous>, transform_indices = @transform_9, window_bounds = array<i64: 256, 128>}, {pipeline_mode = #tpu.pipeline_mode<synchronous>, transform_indices = @transform_10, window_bounds = array<i64: 1, 128>}, {pipeline_mode = #tpu.pipeline_mode<synchronous>, transform_indices = @transform_11, window_bounds = array<i64: 1, 128>}, {pipeline_mode = #tpu.pipeline_mode<synchronous>, transform_indices = @transform_12, window_bounds = array<i64: 1, 128>}, {transform_indices = @transform_13, window_bounds = array<i64: 2, 8, 128>}]} {
    %c0 = arith.constant 0 : index
    %c0_0 = arith.constant 0 : index
    %c0_1 = arith.constant 0 : index
    %0 = vector.load %arg1[%c0, %c0_0, %c0_1] : memref<2x8x128xf32, #tpu.memory_space<vmem>>, vector<2x8x128xf32>
    %1 = vector.shape_cast %0 : vector<2x8x128xf32> to vector<16x128xf32>
    %2 = arith.truncf %1 : vector<16x128xf32> to vector<16x128xbf16>
    %c0_2 = arith.constant 0 : index
    %c0_3 = arith.constant 0 : index
    %3 = vector.load %arg2[%c0_2, %c0_3] : memref<128x384xbf16, #tpu.memory_space<vmem>>, vector<128x384xbf16>
    %cst = arith.constant dense<0.000000e+00> : vector<16x384xf32>
    %4 = tpu.matmul %2, %3, %cst {dimension_numbers = #tpu.dot_dimension_numbers<[1], [0], [0], [1], [0, 0, 1, 1], [], []>} : vector<16x128xbf16>, vector<128x384xbf16>, vector<16x384xf32> -> vector<16x384xf32>
    %c0_4 = arith.constant 0 : index
    %c0_5 = arith.constant 0 : index
    %5 = vector.load %arg3[%c0_4, %c0_5] : memref<1x384xf32, #tpu.memory_space<vmem>>, vector<1x384xf32>
    %6 = vector.broadcast %5 : vector<1x384xf32> to vector<16x384xf32>
    %7 = arith.addf %4, %6 : vector<16x384xf32>
    %8 = arith.truncf %7 : vector<16x384xf32> to vector<16x384xbf16>
    %9 = vector.extract_strided_slice %8 {offsets = [0, 0], sizes = [16, 32], strides = [1, 1]} : vector<16x384xbf16> to vector<16x32xbf16>
    %10 = vector.shape_cast %9 : vector<16x32xbf16> to vector<2x8x32xbf16>
    %11 = vector.extract_strided_slice %8 {offsets = [0, 128], sizes = [16, 32], strides = [1, 1]} : vector<16x384xbf16> to vector<16x32xbf16>
    %12 = vector.shape_cast %11 : vector<16x32xbf16> to vector<2x8x32xbf16>
    %13 = vector.extract_strided_slice %8 {offsets = [0, 256], sizes = [16, 32], strides = [1, 1]} : vector<16x384xbf16> to vector<16x32xbf16>
    %14 = vector.shape_cast %13 : vector<16x32xbf16> to vector<2x8x32xbf16>
    "tpu.trace_start"() <{level = 10 : i32, message = "bqd,bkd->bqk"}> : () -> ()
    %cst_6 = arith.constant dense<0.000000e+00> : vector<2x8x8xf32>
    %15 = tpu.matmul %10, %12, %cst_6 {dimension_numbers = #tpu.dot_dimension_numbers<[2], [2], [1], [1], [0, 0, 0, 1, 1, 1], [0], [0]>} : vector<2x8x32xbf16>, vector<2x8x32xbf16>, vector<2x8x8xf32> -> vector<2x8x8xf32>
    "tpu.trace_stop"() : () -> ()
    %cst_7 = arith.constant dense<0xFF800000> : vector<2x8xf32>
    %16 = vector.multi_reduction <maximumf>, %15, %cst_7 [2] : vector<2x8x8xf32> to vector<2x8xf32>
    %17 = vector.shape_cast %16 : vector<2x8xf32> to vector<2x8x1xf32>
    %18 = vector.broadcast %17 : vector<2x8x1xf32> to vector<2x8x8xf32>
    %19 = arith.subf %15, %18 : vector<2x8x8xf32>
    %20 = math.exp %19 : vector<2x8x8xf32>
    %cst_8 = arith.constant dense<0.000000e+00> : vector<2x8xf32>
    %21 = vector.multi_reduction <add>, %20, %cst_8 [2] : vector<2x8x8xf32> to vector<2x8xf32>
    %22 = vector.shape_cast %21 : vector<2x8xf32> to vector<2x8x1xf32>
    %23 = tpu.reciprocal %22 {approx = true} : vector<2x8x1xf32> -> vector<2x8x1xf32>
    %24 = vector.broadcast %23 : vector<2x8x1xf32> to vector<2x8x8xf32>
    %25 = arith.mulf %20, %24 : vector<2x8x8xf32>
    %26 = arith.truncf %25 : vector<2x8x8xf32> to vector<2x8x8xbf16>
    "tpu.trace_start"() <{level = 10 : i32, message = "bqk,bkd->bqd"}> : () -> ()
    %cst_9 = arith.constant dense<0.000000e+00> : vector<2x8x32xf32>
    %27 = tpu.matmul %26, %14, %cst_9 {dimension_numbers = #tpu.dot_dimension_numbers<[2], [1], [1], [2], [0, 0, 0, 1, 1, 2], [0], [0]>} : vector<2x8x8xbf16>, vector<2x8x32xbf16>, vector<2x8x32xf32> -> vector<2x8x32xf32>
    "tpu.trace_stop"() : () -> ()
    %28 = arith.truncf %27 : vector<2x8x32xf32> to vector<2x8x32xbf16>
    %29 = vector.extract_strided_slice %8 {offsets = [0, 32], sizes = [16, 32], strides = [1, 1]} : vector<16x384xbf16> to vector<16x32xbf16>
    %30 = vector.shape_cast %29 : vector<16x32xbf16> to vector<2x8x32xbf16>
    %31 = vector.extract_strided_slice %8 {offsets = [0, 160], sizes = [16, 32], strides = [1, 1]} : vector<16x384xbf16> to vector<16x32xbf16>
    %32 = vector.shape_cast %31 : vector<16x32xbf16> to vector<2x8x32xbf16>
    %33 = vector.extract_strided_slice %8 {offsets = [0, 288], sizes = [16, 32], strides = [1, 1]} : vector<16x384xbf16> to vector<16x32xbf16>
    %34 = vector.shape_cast %33 : vector<16x32xbf16> to vector<2x8x32xbf16>
    "tpu.trace_start"() <{level = 10 : i32, message = "bqd,bkd->bqk"}> : () -> ()
    %cst_10 = arith.constant dense<0.000000e+00> : vector<2x8x8xf32>
    %35 = tpu.matmul %30, %32, %cst_10 {dimension_numbers = #tpu.dot_dimension_numbers<[2], [2], [1], [1], [0, 0, 0, 1, 1, 1], [0], [0]>} : vector<2x8x32xbf16>, vector<2x8x32xbf16>, vector<2x8x8xf32> -> vector<2x8x8xf32>
    "tpu.trace_stop"() : () -> ()
    %cst_11 = arith.constant dense<0xFF800000> : vector<2x8xf32>
    %36 = vector.multi_reduction <maximumf>, %35, %cst_11 [2] : vector<2x8x8xf32> to vector<2x8xf32>
    %37 = vector.shape_cast %36 : vector<2x8xf32> to vector<2x8x1xf32>
    %38 = vector.broadcast %37 : vector<2x8x1xf32> to vector<2x8x8xf32>
    %39 = arith.subf %35, %38 : vector<2x8x8xf32>
    %40 = math.exp %39 : vector<2x8x8xf32>
    %cst_12 = arith.constant dense<0.000000e+00> : vector<2x8xf32>
    %41 = vector.multi_reduction <add>, %40, %cst_12 [2] : vector<2x8x8xf32> to vector<2x8xf32>
    %42 = vector.shape_cast %41 : vector<2x8xf32> to vector<2x8x1xf32>
    %43 = tpu.reciprocal %42 {approx = true} : vector<2x8x1xf32> -> vector<2x8x1xf32>
    %44 = vector.broadcast %43 : vector<2x8x1xf32> to vector<2x8x8xf32>
    %45 = arith.mulf %40, %44 : vector<2x8x8xf32>
    %46 = arith.truncf %45 : vector<2x8x8xf32> to vector<2x8x8xbf16>
    "tpu.trace_start"() <{level = 10 : i32, message = "bqk,bkd->bqd"}> : () -> ()
    %cst_13 = arith.constant dense<0.000000e+00> : vector<2x8x32xf32>
    %47 = tpu.matmul %46, %34, %cst_13 {dimension_numbers = #tpu.dot_dimension_numbers<[2], [1], [1], [2], [0, 0, 0, 1, 1, 2], [0], [0]>} : vector<2x8x8xbf16>, vector<2x8x32xbf16>, vector<2x8x32xf32> -> vector<2x8x32xf32>
    "tpu.trace_stop"() : () -> ()
    %48 = arith.truncf %47 : vector<2x8x32xf32> to vector<2x8x32xbf16>
    %49 = vector.extract_strided_slice %8 {offsets = [0, 64], sizes = [16, 32], strides = [1, 1]} : vector<16x384xbf16> to vector<16x32xbf16>
    %50 = vector.shape_cast %49 : vector<16x32xbf16> to vector<2x8x32xbf16>
    %51 = vector.extract_strided_slice %8 {offsets = [0, 192], sizes = [16, 32], strides = [1, 1]} : vector<16x384xbf16> to vector<16x32xbf16>
    %52 = vector.shape_cast %51 : vector<16x32xbf16> to vector<2x8x32xbf16>
    %53 = vector.extract_strided_slice %8 {offsets = [0, 320], sizes = [16, 32], strides = [1, 1]} : vector<16x384xbf16> to vector<16x32xbf16>
    %54 = vector.shape_cast %53 : vector<16x32xbf16> to vector<2x8x32xbf16>
    "tpu.trace_start"() <{level = 10 : i32, message = "bqd,bkd->bqk"}> : () -> ()
    %cst_14 = arith.constant dense<0.000000e+00> : vector<2x8x8xf32>
    %55 = tpu.matmul %50, %52, %cst_14 {dimension_numbers = #tpu.dot_dimension_numbers<[2], [2], [1], [1], [0, 0, 0, 1, 1, 1], [0], [0]>} : vector<2x8x32xbf16>, vector<2x8x32xbf16>, vector<2x8x8xf32> -> vector<2x8x8xf32>
    "tpu.trace_stop"() : () -> ()
    %cst_15 = arith.constant dense<0xFF800000> : vector<2x8xf32>
    %56 = vector.multi_reduction <maximumf>, %55, %cst_15 [2] : vector<2x8x8xf32> to vector<2x8xf32>
    %57 = vector.shape_cast %56 : vector<2x8xf32> to vector<2x8x1xf32>
    %58 = vector.broadcast %57 : vector<2x8x1xf32> to vector<2x8x8xf32>
    %59 = arith.subf %55, %58 : vector<2x8x8xf32>
    %60 = math.exp %59 : vector<2x8x8xf32>
    %cst_16 = arith.constant dense<0.000000e+00> : vector<2x8xf32>
    %61 = vector.multi_reduction <add>, %60, %cst_16 [2] : vector<2x8x8xf32> to vector<2x8xf32>
    %62 = vector.shape_cast %61 : vector<2x8xf32> to vector<2x8x1xf32>
    %63 = tpu.reciprocal %62 {approx = true} : vector<2x8x1xf32> -> vector<2x8x1xf32>
    %64 = vector.broadcast %63 : vector<2x8x1xf32> to vector<2x8x8xf32>
    %65 = arith.mulf %60, %64 : vector<2x8x8xf32>
    %66 = arith.truncf %65 : vector<2x8x8xf32> to vector<2x8x8xbf16>
    "tpu.trace_start"() <{level = 10 : i32, message = "bqk,bkd->bqd"}> : () -> ()
    %cst_17 = arith.constant dense<0.000000e+00> : vector<2x8x32xf32>
    %67 = tpu.matmul %66, %54, %cst_17 {dimension_numbers = #tpu.dot_dimension_numbers<[2], [1], [1], [2], [0, 0, 0, 1, 1, 2], [0], [0]>} : vector<2x8x8xbf16>, vector<2x8x32xbf16>, vector<2x8x32xf32> -> vector<2x8x32xf32>
    "tpu.trace_stop"() : () -> ()
    %68 = arith.truncf %67 : vector<2x8x32xf32> to vector<2x8x32xbf16>
    %69 = vector.extract_strided_slice %8 {offsets = [0, 96], sizes = [16, 32], strides = [1, 1]} : vector<16x384xbf16> to vector<16x32xbf16>
    %70 = vector.shape_cast %69 : vector<16x32xbf16> to vector<2x8x32xbf16>
    %71 = vector.extract_strided_slice %8 {offsets = [0, 224], sizes = [16, 32], strides = [1, 1]} : vector<16x384xbf16> to vector<16x32xbf16>
    %72 = vector.shape_cast %71 : vector<16x32xbf16> to vector<2x8x32xbf16>
    %73 = vector.extract_strided_slice %8 {offsets = [0, 352], sizes = [16, 32], strides = [1, 1]} : vector<16x384xbf16> to vector<16x32xbf16>
    %74 = vector.shape_cast %73 : vector<16x32xbf16> to vector<2x8x32xbf16>
    "tpu.trace_start"() <{level = 10 : i32, message = "bqd,bkd->bqk"}> : () -> ()
    %cst_18 = arith.constant dense<0.000000e+00> : vector<2x8x8xf32>
    %75 = tpu.matmul %70, %72, %cst_18 {dimension_numbers = #tpu.dot_dimension_numbers<[2], [2], [1], [1], [0, 0, 0, 1, 1, 1], [0], [0]>} : vector<2x8x32xbf16>, vector<2x8x32xbf16>, vector<2x8x8xf32> -> vector<2x8x8xf32>
    "tpu.trace_stop"() : () -> ()
    %cst_19 = arith.constant dense<0xFF800000> : vector<2x8xf32>
    %76 = vector.multi_reduction <maximumf>, %75, %cst_19 [2] : vector<2x8x8xf32> to vector<2x8xf32>
    %77 = vector.shape_cast %76 : vector<2x8xf32> to vector<2x8x1xf32>
    %78 = vector.broadcast %77 : vector<2x8x1xf32> to vector<2x8x8xf32>
    %79 = arith.subf %75, %78 : vector<2x8x8xf32>
    %80 = math.exp %79 : vector<2x8x8xf32>
    %cst_20 = arith.constant dense<0.000000e+00> : vector<2x8xf32>
    %81 = vector.multi_reduction <add>, %80, %cst_20 [2] : vector<2x8x8xf32> to vector<2x8xf32>
    %82 = vector.shape_cast %81 : vector<2x8xf32> to vector<2x8x1xf32>
    %83 = tpu.reciprocal %82 {approx = true} : vector<2x8x1xf32> -> vector<2x8x1xf32>
    %84 = vector.broadcast %83 : vector<2x8x1xf32> to vector<2x8x8xf32>
    %85 = arith.mulf %80, %84 : vector<2x8x8xf32>
    %86 = arith.truncf %85 : vector<2x8x8xf32> to vector<2x8x8xbf16>
    "tpu.trace_start"() <{level = 10 : i32, message = "bqk,bkd->bqd"}> : () -> ()
    %cst_21 = arith.constant dense<0.000000e+00> : vector<2x8x32xf32>
    %87 = tpu.matmul %86, %74, %cst_21 {dimension_numbers = #tpu.dot_dimension_numbers<[2], [1], [1], [2], [0, 0, 0, 1, 1, 2], [0], [0]>} : vector<2x8x8xbf16>, vector<2x8x32xbf16>, vector<2x8x32xf32> -> vector<2x8x32xf32>
    "tpu.trace_stop"() : () -> ()
    %88 = arith.truncf %87 : vector<2x8x32xf32> to vector<2x8x32xbf16>
    %89 = tpu.concatenate %28, %48, %68, %88 in 2 : vector<2x8x32xbf16>, vector<2x8x32xbf16>, vector<2x8x32xbf16>, vector<2x8x32xbf16> -> vector<2x8x128xbf16>
    %90 = vector.shape_cast %89 : vector<2x8x128xbf16> to vector<16x128xbf16>
    %c0_22 = arith.constant 0 : index
    %c0_23 = arith.constant 0 : index
    %91 = vector.load %arg4[%c0_22, %c0_23] : memref<128x128xbf16, #tpu.memory_space<vmem>>, vector<128x128xbf16>
    %cst_24 = arith.constant dense<0.000000e+00> : vector<16x128xf32>
    %92 = tpu.matmul %90, %91, %cst_24 {dimension_numbers = #tpu.dot_dimension_numbers<[1], [0], [0], [1], [0, 0, 1, 1], [], []>} : vector<16x128xbf16>, vector<128x128xbf16>, vector<16x128xf32> -> vector<16x128xf32>
    %c0_25 = arith.constant 0 : index
    %c0_26 = arith.constant 0 : index
    %93 = vector.load %arg5[%c0_25, %c0_26] : memref<1x128xf32, #tpu.memory_space<vmem>>, vector<1x128xf32>
    %94 = vector.broadcast %93 : vector<1x128xf32> to vector<16x128xf32>
    %95 = arith.addf %92, %94 : vector<16x128xf32>
    %96 = arith.addf %1, %95 : vector<16x128xf32>
    %c0_27 = arith.constant 0 : index
    %c0_28 = arith.constant 0 : index
    %97 = vector.load %arg6[%c0_27, %c0_28] : memref<1x128xf32, #tpu.memory_space<vmem>>, vector<1x128xf32>
    %c0_29 = arith.constant 0 : index
    %c0_30 = arith.constant 0 : index
    %98 = vector.load %arg7[%c0_29, %c0_30] : memref<1x128xf32, #tpu.memory_space<vmem>>, vector<1x128xf32>
    %cst_31 = arith.constant dense<0.000000e+00> : vector<16xf32>
    %99 = vector.multi_reduction <add>, %96, %cst_31 [1] : vector<16x128xf32> to vector<16xf32>
    %100 = vector.shape_cast %99 : vector<16xf32> to vector<16x1xf32>
    %cst_32 = arith.constant 1.280000e+02 : f32
    %101 = vector.broadcast %cst_32 : f32 to vector<16x1xf32>
    %102 = arith.divf %100, %101 : vector<16x1xf32>
    %103 = vector.broadcast %102 : vector<16x1xf32> to vector<16x128xf32>
    %104 = arith.subf %96, %103 : vector<16x128xf32>
    %105 = arith.mulf %104, %104 : vector<16x128xf32>
    %cst_33 = arith.constant dense<0.000000e+00> : vector<16xf32>
    %106 = vector.multi_reduction <add>, %105, %cst_33 [1] : vector<16x128xf32> to vector<16xf32>
    %107 = vector.shape_cast %106 : vector<16xf32> to vector<16x1xf32>
    %cst_34 = arith.constant 1.280000e+02 : f32
    %108 = vector.broadcast %cst_34 : f32 to vector<16x1xf32>
    %109 = arith.divf %107, %108 : vector<16x1xf32>
    %110 = vector.broadcast %102 : vector<16x1xf32> to vector<16x128xf32>
    %111 = arith.subf %96, %110 : vector<16x128xf32>
    %cst_35 = arith.constant 9.99999974E-6 : f32
    %112 = vector.broadcast %cst_35 : f32 to vector<16x1xf32>
    %113 = arith.addf %109, %112 : vector<16x1xf32>
    %114 = math.rsqrt %113 : vector<16x1xf32>
    %115 = vector.broadcast %114 : vector<16x1xf32> to vector<16x128xf32>
    %116 = arith.mulf %111, %115 : vector<16x128xf32>
    %117 = vector.broadcast %97 : vector<1x128xf32> to vector<16x128xf32>
    %118 = arith.mulf %116, %117 : vector<16x128xf32>
    %119 = vector.broadcast %98 : vector<1x128xf32> to vector<16x128xf32>
    %120 = arith.addf %118, %119 : vector<16x128xf32>
    %121 = arith.truncf %120 : vector<16x128xf32> to vector<16x128xbf16>
    %c0_36 = arith.constant 0 : index
    %c0_37 = arith.constant 0 : index
    %122 = vector.load %arg8[%c0_36, %c0_37] : memref<128x256xbf16, #tpu.memory_space<vmem>>, vector<128x256xbf16>
    %cst_38 = arith.constant dense<0.000000e+00> : vector<16x256xf32>
    %123 = tpu.matmul %121, %122, %cst_38 {dimension_numbers = #tpu.dot_dimension_numbers<[1], [0], [0], [1], [0, 0, 1, 1], [], []>} : vector<16x128xbf16>, vector<128x256xbf16>, vector<16x256xf32> -> vector<16x256xf32>
    %c0_39 = arith.constant 0 : index
    %c0_40 = arith.constant 0 : index
    %124 = vector.load %arg9[%c0_39, %c0_40] : memref<1x256xf32, #tpu.memory_space<vmem>>, vector<1x256xf32>
    %125 = vector.broadcast %124 : vector<1x256xf32> to vector<16x256xf32>
    %126 = arith.addf %123, %125 : vector<16x256xf32>
    %cst_41 = arith.constant 0.000000e+00 : f32
    %127 = vector.broadcast %cst_41 : f32 to vector<16x256xf32>
    %128 = arith.maximumf %126, %127 : vector<16x256xf32>
    %129 = arith.truncf %128 : vector<16x256xf32> to vector<16x256xbf16>
    %c0_42 = arith.constant 0 : index
    %c0_43 = arith.constant 0 : index
    %130 = vector.load %arg10[%c0_42, %c0_43] : memref<256x128xbf16, #tpu.memory_space<vmem>>, vector<256x128xbf16>
    %cst_44 = arith.constant dense<0.000000e+00> : vector<16x128xf32>
    %131 = tpu.matmul %129, %130, %cst_44 {dimension_numbers = #tpu.dot_dimension_numbers<[1], [0], [0], [1], [0, 0, 1, 1], [], []>} : vector<16x256xbf16>, vector<256x128xbf16>, vector<16x128xf32> -> vector<16x128xf32>
    %c0_45 = arith.constant 0 : index
    %c0_46 = arith.constant 0 : index
    %132 = vector.load %arg11[%c0_45, %c0_46] : memref<1x128xf32, #tpu.memory_space<vmem>>, vector<1x128xf32>
    %133 = vector.broadcast %132 : vector<1x128xf32> to vector<16x128xf32>
    %134 = arith.addf %131, %133 : vector<16x128xf32>
    %135 = arith.addf %96, %134 : vector<16x128xf32>
    %c0_47 = arith.constant 0 : index
    %c0_48 = arith.constant 0 : index
    %136 = vector.load %arg12[%c0_47, %c0_48] : memref<1x128xf32, #tpu.memory_space<vmem>>, vector<1x128xf32>
    %c0_49 = arith.constant 0 : index
    %c0_50 = arith.constant 0 : index
    %137 = vector.load %arg13[%c0_49, %c0_50] : memref<1x128xf32, #tpu.memory_space<vmem>>, vector<1x128xf32>
    %cst_51 = arith.constant dense<0.000000e+00> : vector<16xf32>
    %138 = vector.multi_reduction <add>, %135, %cst_51 [1] : vector<16x128xf32> to vector<16xf32>
    %139 = vector.shape_cast %138 : vector<16xf32> to vector<16x1xf32>
    %cst_52 = arith.constant 1.280000e+02 : f32
    %140 = vector.broadcast %cst_52 : f32 to vector<16x1xf32>
    %141 = arith.divf %139, %140 : vector<16x1xf32>
    %142 = vector.broadcast %141 : vector<16x1xf32> to vector<16x128xf32>
    %143 = arith.subf %135, %142 : vector<16x128xf32>
    %144 = arith.mulf %143, %143 : vector<16x128xf32>
    %cst_53 = arith.constant dense<0.000000e+00> : vector<16xf32>
    %145 = vector.multi_reduction <add>, %144, %cst_53 [1] : vector<16x128xf32> to vector<16xf32>
    %146 = vector.shape_cast %145 : vector<16xf32> to vector<16x1xf32>
    %cst_54 = arith.constant 1.280000e+02 : f32
    %147 = vector.broadcast %cst_54 : f32 to vector<16x1xf32>
    %148 = arith.divf %146, %147 : vector<16x1xf32>
    %149 = vector.broadcast %141 : vector<16x1xf32> to vector<16x128xf32>
    %150 = arith.subf %135, %149 : vector<16x128xf32>
    %cst_55 = arith.constant 9.99999974E-6 : f32
    %151 = vector.broadcast %cst_55 : f32 to vector<16x1xf32>
    %152 = arith.addf %148, %151 : vector<16x1xf32>
    %153 = math.rsqrt %152 : vector<16x1xf32>
    %154 = vector.broadcast %153 : vector<16x1xf32> to vector<16x128xf32>
    %155 = arith.mulf %150, %154 : vector<16x128xf32>
    %156 = vector.broadcast %136 : vector<1x128xf32> to vector<16x128xf32>
    %157 = arith.mulf %155, %156 : vector<16x128xf32>
    %158 = vector.broadcast %137 : vector<1x128xf32> to vector<16x128xf32>
    %159 = arith.addf %157, %158 : vector<16x128xf32>
    %160 = vector.shape_cast %159 : vector<16x128xf32> to vector<2x8x128xf32>
    %c0_56 = arith.constant 0 : index
    %c0_57 = arith.constant 0 : index
    %c0_58 = arith.constant 0 : index
    %161 = vector.load %arg14[%c0_56, %c0_57, %c0_58] : memref<2x8x128xf32, #tpu.memory_space<vmem>>, vector<2x8x128xf32>
    tpu.vector_store %arg14[%c0_56, %c0_57, %c0_58], %160 {strides = array<i32>} : memref<2x8x128xf32, #tpu.memory_space<vmem>>, vector<2x8x128xf32>,
    return
  }
  func.func @transform_0(%arg0: i32) -> (i32, i32, i32) {
    %c0_i32 = arith.constant 0 : i32
    %c0_i32_0 = arith.constant 0 : i32
    %c0_i32_1 = arith.constant 0 : i32
    return %arg0, %c0_i32, %c0_i32_0 : i32, i32, i32
  }
  func.func @transform_1(%arg0: i32) -> (i32, i32) {
    %c0_i32 = arith.constant 0 : i32
    %c0_i32_0 = arith.constant 0 : i32
    %c0_i32_1 = arith.constant 0 : i32
    return %c0_i32, %c0_i32_0 : i32, i32
  }
  func.func @transform_2(%arg0: i32) -> (i32, i32) {
    %c0_i32 = arith.constant 0 : i32
    %c0_i32_0 = arith.constant 0 : i32
    %c0_i32_1 = arith.constant 0 : i32
    return %c0_i32, %c0_i32_0 : i32, i32
  }
  func.func @transform_3(%arg0: i32) -> (i32, i32) {
    %c0_i32 = arith.constant 0 : i32
    %c0_i32_0 = arith.constant 0 : i32
    %c0_i32_1 = arith.constant 0 : i32
    return %c0_i32, %c0_i32_0 : i32, i32
  }
  func.func @transform_4(%arg0: i32) -> (i32, i32) {
    %c0_i32 = arith.constant 0 : i32
    %c0_i32_0 = arith.constant 0 : i32
    %c0_i32_1 = arith.constant 0 : i32
    return %c0_i32, %c0_i32_0 : i32, i32
  }
  func.func @transform_5(%arg0: i32) -> (i32, i32) {
    %c0_i32 = arith.constant 0 : i32
    %c0_i32_0 = arith.constant 0 : i32
    %c0_i32_1 = arith.constant 0 : i32
    return %c0_i32, %c0_i32_0 : i32, i32
  }
  func.func @transform_6(%arg0: i32) -> (i32, i32) {
    %c0_i32 = arith.constant 0 : i32
    %c0_i32_0 = arith.constant 0 : i32
    %c0_i32_1 = arith.constant 0 : i32
    return %c0_i32, %c0_i32_0 : i32, i32
  }
  func.func @transform_7(%arg0: i32) -> (i32, i32) {
    %c0_i32 = arith.constant 0 : i32
    %c0_i32_0 = arith.constant 0 : i32
    %c0_i32_1 = arith.constant 0 : i32
    return %c0_i32, %c0_i32_0 : i32, i32
  }
  func.func @transform_8(%arg0: i32) -> (i32, i32) {
    %c0_i32 = arith.constant 0 : i32
    %c0_i32_0 = arith.constant 0 : i32
    %c0_i32_1 = arith.constant 0 : i32
    return %c0_i32, %c0_i32_0 : i32, i32
  }
  func.func @transform_9(%arg0: i32) -> (i32, i32) {
    %c0_i32 = arith.constant 0 : i32
    %c0_i32_0 = arith.constant 0 : i32
    %c0_i32_1 = arith.constant 0 : i32
    return %c0_i32, %c0_i32_0 : i32, i32
  }
  func.func @transform_10(%arg0: i32) -> (i32, i32) {
    %c0_i32 = arith.constant 0 : i32
    %c0_i32_0 = arith.constant 0 : i32
    %c0_i32_1 = arith.constant 0 : i32
    return %c0_i32, %c0_i32_0 : i32, i32
  }
  func.func @transform_11(%arg0: i32) -> (i32, i32) {
    %c0_i32 = arith.constant 0 : i32
    %c0_i32_0 = arith.constant 0 : i32
    %c0_i32_1 = arith.constant 0 : i32
    return %c0_i32, %c0_i32_0 : i32, i32
  }
  func.func @transform_12(%arg0: i32) -> (i32, i32) {
    %c0_i32 = arith.constant 0 : i32
    %c0_i32_0 = arith.constant 0 : i32
    %c0_i32_1 = arith.constant 0 : i32
    return %c0_i32, %c0_i32_0 : i32, i32
  }
  func.func @transform_13(%arg0: i32) -> (i32, i32, i32) {
    %c0_i32 = arith.constant 0 : i32
    %c0_i32_0 = arith.constant 0 : i32
    %c0_i32_1 = arith.constant 0 : i32
    return %arg0, %c0_i32, %c0_i32_0 : i32, i32, i32
  }
}

</mosaic_0001>

<bundles_post_ra>
// kernel: _lambda_.3
= control target key start
LH: loop header
LB: loop body
LE: loop exit
PB: predicated region body
PF: predicated region fallthrough
CT: control target
= control target key end

     0   :  { %s3433_s0 = inlined_call_operand.vmem [shape: f32[8,8,128], index: 0, kind: input, shape index: {}]   ;;  %s3434_s1 = inlined_call_operand.vmem [shape: bf16[128,384], index: 1, kind: input, shape index: {}]   ;;  %s3435_s2 = inlined_call_operand.vmem [shape: f32[1,384], index: 2, kind: input, shape index: {}]   ;;  %s3436_s3 = inlined_call_operand.vmem [shape: bf16[128,128], index: 3, kind: input, shape index: {}]   ;;  %s3437_s4 = inlined_call_operand.vmem [shape: f32[1,128], index: 4, kind: input, shape index: {}]   ;;  %s3438_s5 = inlined_call_operand.vmem [shape: f32[1,128], index: 5, kind: input, shape index: {}]   ;;  %s3439_s6 = inlined_call_operand.vmem [shape: f32[1,128], index: 6, kind: input, shape index: {}]   ;;  %s3440_s7 = inlined_call_operand.vmem [shape: bf16[128,256], index: 7, kind: input, shape index: {}]   ;;  %s3441_s8 = inlined_call_operand.vmem [shape: f32[1,256], index: 8, kind: input, shape index: {}]   ;;  %s3442_s9 = inlined_call_operand.vmem [shape: bf16[256,128], index: 9, kind: input, shape index: {}]   ;;  %s3443_s10 = inlined_call_operand.vmem [shape: f32[1,128], index: 10, kind: input, shape index: {}]   ;;  %s3444_s11 = inlined_call_operand.vmem [shape: f32[1,128], index: 11, kind: input, shape index: {}]   ;;  %s3445_s12 = inlined_call_operand.vmem [shape: f32[1,128], index: 12, kind: input, shape index: {}]   ;;  %s3446_s13 = inlined_call_operand.hbm [shape: f32[8,8,128], index: 13, kind: output, shape index: {}]  }
   0x1   :  { %3450 = sst [smem:[#allocation8_spill]] %s3433_s0 }
   0x2   :  { %18 = vsyncpa [#allocation3], 0 }
   0x3   :  { %20 = vsyncpa [#allocation3 + $0x1], 0  ;;  %s2883_s25 = smov 0   ;;  %s2885_s26 = smov 0  }
   0x4   :  { %s2887_s27 = smov 0   ;;  %s2889_s28 = smov 0  }
   0x5 LB: > { %3451 = sst [smem:[#allocation5_spill]] %s2798_s27  ;;  %s2904_s29 = sadd.s32 4294967295, %s2802_s28   ;;  %s2802_s28 = sphi %s2889_s28, %s3457_s28   ;;  %s2798_s27 = sphi %s2887_s27, %s3459_s27   ;;  %s2794_s26 = sphi %s2885_s26, %s3461_s26   ;;  %s2790_s25 = sphi %s2883_s25, %s3460_s25  }
   0x6   : > { %s2253_s30 = sadd.s32 4294967294, %s2802_s28   ;;  %s2908_s14 = sadd.s32 1, %s2802_s28  }
   0x7   : > { %3452 = sst [smem:[#allocation6_spill]] %s2908_s14  ;;  %s311_s15 = sadd.s32 1, %s2798_s27 }
   0x8   : > { %s308_s16 = ssub.s32 %s2802_s28, %s2908_s14  ;;  %p321_p0 = scmp.ne.s32.totalorder %s2798_s27, %s2794_s26 }
   0x9   : > { %p309_p1 = scmp.eq.s32.totalorder %s308_s16, 0  ;;  %p322_p2 = scmp.eq.s32.totalorder %s2904_s29, 3 }
   0xa   : > { %p327_p3 = scmp.ne.s32.totalorder %s2794_s26, %s2790_s25  ;;  %p328_p4 = scmp.eq.s32.totalorder %s2253_s30, 3 }
   0xb   : > { %s2919_s17 = scalar_select %p309_p1, %s2798_s27, %s311_s15  }
   0xc   : > { %p2921_p5 = por %p322_p2, %p321_p0  ;;  %p2925_p6 = por %p328_p4, %p327_p3 }
   0xd   : > { %3453 = sst [smem:[#allocation7_spill]] %s2919_s17  ;;  %p2256_p7 = scmp.ge.s32.totalorder %s2802_s28, 1 }
   0xe   : > { %p391_p8 = scmp.lt.s32.totalorder %s2802_s28, 5 }
  0x10   : > { %p392_p9 = pnand %p2256_p7, %p391_p8 }
  0x11   : > { %v2620_v0 = vld [vmem:[%s3434_s1 + $0x4] ss:$12 sps:$4 sm:$0xff] (!%p392_p9)   ;;  %v2622_v1 = vld [vmem:[%s3434_s1] ss:$12 sps:$4 sm:$0xff] (!%p392_p9)   ;;  %v2804_v2 = vmov (!%p392_p9), 0   ;;  %v2805_v4 = vmov (!%p392_p9), 0.0   ;;  %v480_v29 = vlaneseq (!%p392_p9) }
  0x12   : > { %395 = sbr.rel (%p392_p9) target bundleno = 4102 (0x1006), region = 72  ;;  %655 = vmatprep.mubr.bf16.mxu0 (!%p392_p9), %v2804_v2  ;;  %623 = vmatprep.subr.bf16.mxu0 (!%p392_p9), %v2620_v0  ;;  %v2623_v3 = vld [vmem:[%s3434_s1 + $0x1c] ss:$12 sps:$4 sm:$0xff] (!%p392_p9)   ;;  %v2625_v5 = vld [vmem:[%s3434_s1 + $0x18] ss:$12 sps:$4 sm:$0xff] (!%p392_p9)   ;;  %s2258_s22 = sshll.u32 (!%p392_p9), %s2904_s29, 1 }
  0x13   : > { %2437 = vmatprep.subr.bf16.mxu1 (!%p392_p9), %v2805_v4  ;;  %624 = vmatpush1.bf16.msra.mxu0 (!%p392_p9), %v2622_v1  ;;  %v2626_v6 = vld [vmem:[%s3434_s1 + $0x34] ss:$12 sps:$4 sm:$0xff] (!%p392_p9)   ;;  %v2628_v7 = vld [vmem:[%s3434_s1 + $0x30] ss:$12 sps:$4 sm:$0xff] (!%p392_p9)   ;;  %v2629_v8 = vld [vmem:[%s3434_s1 + $0x4c] ss:$12 sps:$4 sm:$0xff] (!%p392_p9)  }
  0x14   : > { %625 = vmatprep.subr.bf16.mxu0 (!%p392_p9), %v2623_v3  ;;  %p436_p10 = scmp.lt.s32.totalorder (!%p392_p9), %s2258_s22, 7  ;;  %v2631_v9 = vld [vmem:[%s3434_s1 + $0x48] ss:$12 sps:$4 sm:$0xff] (!%p392_p9)   ;;  %v2632_v10 = vld [vmem:[%s3434_s1 + $0x64] ss:$12 sps:$4 sm:$0xff] (!%p392_p9)   ;;  %s3456_s0 = sld [smem:[#allocation8_spill]] (!%p392_p9) }
  0x15   : > { %v2644_v11 = vld [vmem:[%s3434_s1 + $0x8] ss:$12 sps:$4 sm:$0xff] (!%p392_p9)   ;;  %v2645_v12 = vld [vmem:[%s3434_s1 + $0x20] ss:$12 sps:$4 sm:$0xff] (!%p392_p9)   ;;  %v2646_v15 = vld [vmem:[%s3434_s1 + $0x38] ss:$12 sps:$4 sm:$0xff] (!%p392_p9)  }
  0x16   : > { %2438 = vmatpush3.bf16.msra.mxu1 (!%p392_p9), %v2644_v11  ;;  %v2634_v13 = vld [vmem:[%s3434_s1 + $0x60] ss:$12 sps:$4 sm:$0xff] (!%p392_p9)   ;;  %v2635_v14 = vld [vmem:[%s3434_s1 + $0x7c] ss:$12 sps:$4 sm:$0xff] (!%p392_p9)   ;;  %v2637_v16 = vld [vmem:[%s3434_s1 + $0x78] ss:$12 sps:$4 sm:$0xff] (!%p392_p9)  }
  0x17   : > { %626 = vmatpush1.bf16.msra.mxu0 (!%p392_p9), %v2625_v5  ;;  %2439 = vmatprep.subr.bf16.mxu1 (!%p392_p9), %v2805_v4  ;;  %v2638_v17 = vld [vmem:[%s3434_s1 + $0x94] ss:$12 sps:$4 sm:$0xff] (!%p392_p9)   ;;  %v2647_v18 = vld [vmem:[%s3434_s1 + $0x50] ss:$12 sps:$4 sm:$0xff] (!%p392_p9)   ;;  %v2641_v20 = vld [vmem:[%s3434_s1 + $0xac] ss:$12 sps:$4 sm:$0xff] (!%p392_p9)  }
  0x18   : > { %627 = vmatprep.subr.bf16.mxu0 (!%p392_p9), %v2626_v6  ;;  %v2640_v19 = vld [vmem:[%s3434_s1 + $0x90] ss:$12 sps:$4 sm:$0xff] (!%p392_p9)   ;;  %v2648_v21 = vld [vmem:[%s3434_s1 + $0x68] ss:$12 sps:$4 sm:$0xff] (!%p392_p9)   ;;  %v2649_v25 = vld [vmem:[%s3434_s1 + $0x80] ss:$12 sps:$4 sm:$0xff] (!%p392_p9)  }
  0x19   : > { %s3463_s22 = smov (!%p436_p10, %s2258_s22), 7  ;;  %v2643_v22 = vld [vmem:[%s3434_s1 + $0xa8] ss:$12 sps:$4 sm:$0xff]   ;;  %v2650_v27 = vld [vmem:[%s3434_s1 + $0x98] ss:$12 sps:$4 sm:$0xff]   ;;  %vm2806_vm0 = vmmov 0  }
  0x1a   : > { %s2259_s14 = sshll.u32 %s3463_s22, 3  ;;  %2440 = vmatpush3.bf16.msra.mxu1 %v2645_v12  ;;  %v2651_v28 = vld [vmem:[%s3434_s1 + $0xb0] ss:$12 sps:$4 sm:$0xff]   ;;  %2453 = vmatprep.mubr.msk.bf16.mxu1 %vm2806_vm0, %v2805_v4  ;;  %v3030_v30 = vshrl.u32 %v480_v29, 7  ;;  %v478_v32 = vld [vmem:[%s3435_s2] sm:$0x7] }
  0x1b   : > { %628 = vmatpush1.bf16.msra.mxu0 %v2628_v7  ;;  %2441 = vmatprep.subr.bf16.mxu1 %v2805_v4  ;;  %s439_s23 = scalar_lea.vmem %s3456_s0, %s2259_s14  ;;  %vm725_vm1 = vcmask 261120   ;;  %vm846_vm2 = vcmask 1043456   ;;  %vm818_vm3 = vcmask 64512   ;;  %s2807_s27 = smov 96   ;;  %vm1628_vm4 = vcmask 523264  }
  0x1c   : > { %629 = vmatprep.subr.bf16.mxu0 %v2629_v8  ;;  %v3003_v23 = vld [vmem:[%s439_s23] sm:$0xff]  ;;  %v3005_v24 = vld [vmem:[%s439_s23 + $0x8] sm:$0xff]  ;;  %v486_v31 = vsub.s32 1, %v3030_v30  ;;  %v482_v34 = vsub.s32 0, %v3030_v30  ;;  %v490_v50 = vsub.s32 2, %v3030_v30  ;;  %s2808_s30 = smov 64  }
  0x1d   : > { %v445_v26 = vpack.c.bf16 %v3005_v24, %v3003_v23  ;;  %s2809_s22 = smov 32   ;;  %vm1633_vm5 = vcmask 785408   ;;  %v2334_v30 = vld [vmem:[%s3443_s10] ss:$0 sm:$0xff]  ;;  %s432_s20 = sand.u32 1, %s2794_s26  }
  0x1e   : > { %2442 = vmatpush3.bf16.msra.mxu1 %v2646_v15  ;;  %v487_v33 = vrot.slane %v478_v32, %v486_v31  ;;  %v483_v40 = vrot.slane %v478_v32, %v482_v34  ;;  %v491_v51 = vrot.slane %v478_v32, %v490_v50  ;;  %s2257_s21 = sshll.u32 %s432_s20, 4  ;;  %s3392_s17 = scalar_lea.sflag [#allocation3], %s432_s20 }
  0x1f   : > { %630 = vmatpush1.bf16.msra.mxu0 %v2631_v9  ;;  %2443 = vmatprep.subr.bf16.mxu1 %v2805_v4 }
  0x20   : > { %631 = vmatprep.subr.bf16.mxu0 %v2632_v10 }
  0x22   : > { %2444 = vmatpush3.bf16.msra.mxu1 %v2647_v18 }
  0x23   : > { %632 = vmatpush1.bf16.msra.mxu0 %v2634_v13  ;;  %2445 = vmatprep.subr.bf16.mxu1 %v2805_v4 }
  0x24   : > { %633 = vmatprep.subr.bf16.mxu0 %v2635_v14 }
  0x26   : > { %2446 = vmatpush3.bf16.msra.mxu1 %v2648_v21 }
  0x27   : > { %634 = vmatpush1.bf16.msra.mxu0 %v2637_v16  ;;  %2447 = vmatprep.subr.bf16.mxu1 %v2805_v4 }
  0x28   : > { %635 = vmatprep.subr.bf16.mxu0 %v2638_v17 }
  0x2a   : > { %2448 = vmatpush3.bf16.msra.mxu1 %v2649_v25 }
  0x2b   : > { %636 = vmatpush1.bf16.msra.mxu0 %v2640_v19  ;;  %2449 = vmatprep.subr.bf16.mxu1 %v2805_v4 }
  0x2c   : > { %637 = vmatprep.subr.bf16.mxu0 %v2641_v20 }
  0x2e   : > { %2450 = vmatpush3.bf16.msra.mxu1 %v2650_v27 }
  0x2f   : > { %638 = vmatpush1.bf16.msra.mxu0 %v2643_v22  ;;  %2451 = vmatprep.subr.bf16.mxu1 %v2805_v4 }
  0x30   : > { %2481 = vmatprep.subr.bf16.mxu0 %v2805_v4 }
  0x32   : > { %656 = vmatmul.mubr.bf16.vlgmr.msra.gmra.mrb[0].mxu0 %v445_v26  ;;  %2452 = vmatpush3.bf16.msra.mxu1 %v2651_v28 }
  0x33   : > { %2457 = vmatprep.subr.bf16.mxu1 %v2805_v4  ;;  %2483 = vmatprep.mubr.msk.bf16.mxu0 %vm2806_vm0, %v2805_v4 }
  0x35   : > { %2454 = vmatmul.mubr.bf16.vlgmr.msra.gmra.mrb[0].mxu1 %v445_v26 }
  0x36   : > { %2459 = vmatprep.mubr.msk.bf16.mxu1 %vm2806_vm0, %v2805_v4 }
 0x105   : > { %v657_v35 = vpop.f32.mrb[0].mxu0 }
 0x106   : > { %v659_v36 = vpop.f32.mrb[1].mxu0  ;;  %v658_v44 = vadd.f32 %v657_v35, %v483_v40 }
 0x107   : > { %v660_v37 = vadd.f32 %v659_v36, %v487_v33  ;;  %v661_v38 = vpop.f32.mrb[2].mxu0 }
 0x108   : > { %v663_v39 = vpop.f32.mrb[3].mxu0  ;;  %v3048_v46 = vpack.c.bf16 %v658_v44, %v658_v44  ;;  %v662_v48 = vadd.f32 %v661_v38, %v483_v40  ;;  %v700_v52 = vpop.f32.mrb[0].mxu1 }
 0x109   : > { %v3041_v41 = vpack.c.bf16 %v660_v37, %v660_v37  ;;  %v664_v42 = vadd.f32 %v663_v39, %v487_v33  ;;  %v701_v53 = vadd.f32 %v700_v52, %v491_v51  ;;  %v2455_v54 = vpop.f32.mrb[1].mxu1 }
 0x10a   : > { %v3057_v49 = vpack.c.bf16 %v662_v48, %v662_v48  ;;  %v703_v55 = vpop.f32.mrb[2].mxu1 }
 0x10b   : > { %v730_v43 = vsel %vm725_vm1, %v3041_v41, 0  ;;  %v3046_v45 = vpack.c.bf16 %v664_v42, %v664_v42  ;;  %v3064_v56 = vpack.c.bf16 %v701_v53, %v701_v53  ;;  %v704_v57 = vadd.f32 %v703_v55, %v491_v51  ;;  %v2456_v58 = vpop.f32.mrb[3].mxu1 }
 0x10c   : > { %2458 = vmatpush3.bf16.xpose.msra.mxu1 %v730_v43 }
 0x10d   : > { %2463 = vmatprep.subr.bf16.mxu1 %v2805_v4  ;;  %v776_v47 = vsel %vm725_vm1, %v3046_v45, 0  ;;  %v848_v59 = vsel %vm846_vm2, %v3064_v56, 0  ;;  %v3083_v22 = vpack.c.bf16 %v704_v57, %v704_v57 }
 0x10f   : > { %v894_v27 = vsel %vm846_vm2, %v3083_v22, 0 }
 0x113   : > { %2460 = vmatmul.mubr.msk.bf16.vlgmr.msra.gmra.mrb[4].mxu1 %vm725_vm1, %v3048_v46 }
 0x114   : > { %2464 = vmatpush3.bf16.xpose.msra.mxu1 %v776_v47  ;;  %2465 = vmatprep.mubr.msk.bf16.mxu1 %vm2806_vm0, %v2805_v4 }
 0x115   : > { %2469 = vmatprep.subr.bf16.mxu1 %v2805_v4 }
 0x11b   : > { %2466 = vmatmul.mubr.msk.bf16.vlgmr.msra.gmra.mrb[8].mxu1 %vm725_vm1, %v3057_v49 }
 0x11c   : > { %2471 = vmatprep.mubr.msk.bf16.mxu1 %vm2806_vm0, %v2805_v4  ;;  %2470 = vmatpush3.bf16.msra.mxu1 %v848_v59 }
 0x11d   : > { %2475 = vmatprep.subr.bf16.mxu1 %v2805_v4 }
 0x1e6   : > { %v766_v60 = vpop.f32.mrb[4].mxu1 }
 0x1e7   : > { %v2461_v61 = vpop.f32.mrb[5].mxu1  ;;  %v819_v62 = vsel %vm818_vm3, %v766_v60, -inf }
 0x1e8   : > { %820 = vmax.xlane.f32.xlu0 %v819_v62  ;;  %v769_v63 = vpop.f32.mrb[6].mxu1 }
 0x1e9   : > { %v2462_v0 = vpop.f32.mrb[7].mxu1 }
 0x1ee   : > { %v812_v1 = vpop.f32.mrb[8].mxu1 }
 0x1ef   : > { %v2467_v3 = vpop.f32.mrb[9].mxu1  ;;  %v822_v5 = vsel %vm818_vm3, %v812_v1, -inf }
 0x1f0   : > { %823 = vmax.xlane.f32.xlu0 %v822_v5  ;;  %v815_v6 = vpop.f32.mrb[10].mxu1 }
 0x1f1   : > { %v2468_v7 = vpop.f32.mrb[11].mxu1 }
 0x206   : > { %940 = vrot.lane.b32.xlu0 %v3041_v41, %s2807_s27 }
 0x275   : > { %v821_v8 = vpop.xlane.xlu0 %820 }
 0x276   : > { %v825_v9 = vsub.f32 %v766_v60, %v821_v8 }
 0x278   : > { %v827_v10 = vmul.f32 1.442695, %v825_v9 }
 0x27a   : > { %2700 = vpow2.f32 %v827_v10 }
 0x27d   : > { %v824_v11 = vpop.xlane.xlu0 %823 }
 0x27e   : > { %v826_v16 = vsub.f32 %v812_v1, %v824_v11 }
 0x280   : > { %v829_v17 = vmul.f32 1.442695, %v826_v16 }
 0x281   : > { %v941_v12 = vpop.permute.xlu0 %940 }
 0x282   : > { %v946_v13 = vsel %vm725_vm1, %v941_v12, 0  ;;  %2702 = vpow2.f32 %v829_v17 }
 0x283   : > { %2482 = vmatpush3.bf16.xpose.msra.mxu0 %v946_v13 }
 0x284   : > { %v2701_v14 = vpop.eup %2700  ;;  %2493 = vmatprep.subr.bf16.mxu0 %v2805_v4 }
 0x285   : > { %v831_v15 = vsel %vm818_vm3, %v2701_v14, 0.0 }
 0x286   : > { %832 = vadd.xlane.f32.xlu1 %v831_v15 }
 0x28c   : > { %v2703_v18 = vpop.eup %2702 }
 0x28d   : > { %v834_v19 = vsel %vm818_vm3, %v2703_v18, 0.0 }
 0x297   : > { %990 = vrot.lane.b32.xlu1 %v3046_v45, %s2807_s27 }
 0x2bb   : > { %835 = vadd.xlane.f32.xlu1 %v834_v19 }
 0x2cc   : > { %938 = vrot.lane.b32.xlu1 %v3048_v46, %s2807_s27 }
 0x2d0   : > { %988 = vrot.lane.b32.xlu1 %v3057_v49, %s2807_s27 }
 0x313   : > { %v833_v20 = vpop.xlane.xlu1 %832 }
 0x314   : > { %2704 = vrcp.f32 %v833_v20 }
 0x317   : > { %v991_v28 = vpop.permute.xlu1 %990 }
 0x318   : > { %v996_v37 = vsel %vm725_vm1, %v991_v28, 0 }
 0x31e   : > { %v2705_v21 = vpop.eup %2704 }
 0x31f   : > { %v839_v25 = vmul.f32 %v2705_v21, %v2701_v14 }
 0x321   : > { %v841_v26 = vpack.c.bf16 %v839_v25, %v839_v25 }
 0x323   : > { %2472 = vmatmul.mubr.msk.bf16.vlgmr.msra.gmra.mrb[12].mxu1 %vm818_vm3, %v841_v26 }
 0x324   : > { %2476 = vmatpush3.bf16.msra.mxu1 %v894_v27  ;;  %2477 = vmatprep.mubr.msk.bf16.mxu1 %vm2806_vm0, %v2805_v4 }
 0x325   : > { %2487 = vmatprep.subr.bf16.mxu1 %v2805_v4 }
 0x348   : > { %v836_v29 = vpop.xlane.xlu1 %835 }
 0x349   : > { %2706 = vrcp.f32 %v836_v29 }
 0x34c   : > { %v939_v32 = vpop.permute.xlu1 %938 }
 0x34d   : > { %2484 = vmatmul.mubr.msk.bf16.vlgmr.msra.gmra.mrb[4].mxu0 %vm725_vm1, %v939_v32 }
 0x34e   : > { %2495 = vmatprep.mubr.msk.bf16.mxu0 %vm2806_vm0, %v2805_v4 }
 0x350   : > { %v989_v38 = vpop.permute.xlu1 %988 }
 0x353   : > { %v2707_v33 = vpop.eup %2706 }
 0x354   : > { %v840_v35 = vmul.f32 %v2707_v33, %v2703_v18 }
 0x356   : > { %v842_v36 = vpack.c.bf16 %v840_v35, %v840_v35 }
 0x358   : > { %2478 = vmatmul.mubr.msk.bf16.vlgmr.msra.gmra.mrb[16].mxu1 %vm818_vm3, %v842_v36 }
 0x359   : > { %2488 = vmatpush3.bf16.xpose.msra.mxu1 %v996_v37  ;;  %2489 = vmatprep.mubr.msk.bf16.mxu1 %vm2806_vm0, %v2805_v4 }
 0x35a   : > { %2499 = vmatprep.subr.bf16.mxu1 %v2805_v4 }
 0x360   : > { %2490 = vmatmul.mubr.msk.bf16.vlgmr.msra.gmra.mrb[20].mxu1 %vm725_vm1, %v989_v38 }
 0x361   : > { %2501 = vmatprep.mubr.msk.bf16.mxu1 %vm2806_vm0, %v2805_v4 }
 0x3f6   : > { %v3102_v39 = vpop.f32.mrb[12].mxu1 }
 0x3f7   : > { %v2473_v40 = vpop.f32.mrb[13].mxu1 }
 0x3f8   : > { %v887_v42 = vpop.f32.mrb[14].mxu1 }
 0x3f9   : > { %v2474_v43 = vpop.f32.mrb[15].mxu1 }
 0x420   : > { %v982_v44 = vpop.f32.mrb[4].mxu0 }
 0x421   : > { %v2485_v47 = vpop.f32.mrb[5].mxu0  ;;  %v1038_v48 = vsel %vm818_vm3, %v982_v44, -inf }
 0x422   : > { %1039 = vmax.xlane.f32.xlu0 %v1038_v48  ;;  %v985_v50 = vpop.f32.mrb[6].mxu0 }
 0x423   : > { %v2486_v51 = vpop.f32.mrb[7].mxu0 }
 0x42b   : > { %v3105_v52 = vpop.f32.mrb[16].mxu1 }
 0x42c   : > { %v2479_v53 = vpop.f32.mrb[17].mxu1 }
 0x42d   : > { %v933_v54 = vpop.f32.mrb[18].mxu1 }
 0x42e   : > { %v2480_v55 = vpop.f32.mrb[19].mxu1 }
 0x433   : > { %v1032_v57 = vpop.f32.mrb[20].mxu1 }
 0x434   : > { %v2491_v58 = vpop.f32.mrb[21].mxu1  ;;  %v1041_v59 = vsel %vm818_vm3, %v1032_v57, -inf }
 0x435   : > { %1042 = vmax.xlane.f32.xlu1 %v1041_v59  ;;  %v1035_v60 = vpop.f32.mrb[22].mxu1 }
 0x436   : > { %v2492_v61 = vpop.f32.mrb[23].mxu1 }
 0x446   : > { %1110 = vrot.lane.b32.xlu1 %v3083_v22, %s2807_s27 }
 0x44a   : > { %1162 = vrot.lane.b32.xlu1 %v3041_v41, %s2808_s30 }
 0x44e   : > { %1212 = vrot.lane.b32.xlu1 %v3046_v45, %s2808_s30 }
 0x452   : > { %1210 = vrot.lane.b32.xlu1 %v3057_v49, %s2808_s30 }
 0x4af   : > { %v1040_v62 = vpop.xlane.xlu0 %1039 }
 0x4b0   : > { %v1044_v63 = vsub.f32 %v982_v44, %v1040_v62 }
 0x4b2   : > { %v1046_v0 = vmul.f32 1.442695, %v1044_v63 }
 0x4b4   : > { %2708 = vpow2.f32 %v1046_v0 }
 0x4be   : > { %v2709_v1 = vpop.eup %2708 }
 0x4bf   : > { %v1050_v3 = vsel %vm818_vm3, %v2709_v1, 0.0 }
 0x4c0   : > { %1051 = vadd.xlane.f32.xlu0 %v1050_v3 }
 0x4c2   : > { %v1043_v5 = vpop.xlane.xlu1 %1042 }
 0x4c3   : > { %v1045_v6 = vsub.f32 %v1032_v57, %v1043_v5 }
 0x4c5   : > { %v1048_v7 = vmul.f32 1.442695, %v1045_v6 }
 0x4c6   : > { %v1111_v8 = vpop.permute.xlu1 %1110 }
 0x4c7   : > { %2710 = vpow2.f32 %v1048_v7  ;;  %v1116_v9 = vsel %vm846_vm2, %v1111_v8, 0 }
 0x4c8   : > { %2500 = vmatpush3.bf16.msra.mxu1 %v1116_v9 }
 0x4c9   : > { %2511 = vmatprep.subr.bf16.mxu1 %v2805_v4 }
 0x4ca   : > { %v1163_v18 = vpop.permute.xlu1 %1162 }
 0x4cb   : > { %v1168_v26 = vsel %vm725_vm1, %v1163_v18, 0 }
 0x4ce   : > { %v1213_v25 = vpop.permute.xlu1 %1212 }
 0x4cf   : > { %v1218_v28 = vsel %vm725_vm1, %v1213_v25, 0 }
 0x4d1   : > { %v2711_v10 = vpop.eup %2710 }
 0x4d2   : > { %v1053_v11 = vsel %vm818_vm3, %v2711_v10, 0.0  ;;  %v1211_v32 = vpop.permute.xlu1 %1210 }
 0x4d3   : > { %1054 = vadd.xlane.f32.xlu0 %v1053_v11 }
 0x4e9   : > { %1062 = vrot.lane.b32.xlu0 %v3064_v56, %s2807_s27 }
 0x4ed   : > { %1160 = vrot.lane.b32.xlu0 %v3048_v46, %s2808_s30 }
 0x54d   : > { %v1052_v12 = vpop.xlane.xlu0 %1051 }
 0x54e   : > { %2712 = vrcp.f32 %v1052_v12 }
 0x558   : > { %v2713_v13 = vpop.eup %2712 }
 0x559   : > { %v1058_v15 = vmul.f32 %v2713_v13, %v2709_v1 }
 0x55b   : > { %v1060_v19 = vpack.c.bf16 %v1058_v15, %v1058_v15 }
 0x560   : > { %v1055_v14 = vpop.xlane.xlu0 %1054 }
 0x561   : > { %2714 = vrcp.f32 %v1055_v14 }
 0x564   : > { %v1063_v16 = vpop.permute.xlu0 %1062 }
 0x565   : > { %v1068_v17 = vsel %vm846_vm2, %v1063_v16, 0 }
 0x566   : > { %2494 = vmatpush3.bf16.msra.mxu0 %v1068_v17 }
 0x567   : > { %2505 = vmatprep.subr.bf16.mxu0 %v2805_v4 }
 0x568   : > { %v1161_v29 = vpop.permute.xlu0 %1160 }
 0x569   : > { %2496 = vmatmul.mubr.msk.bf16.vlgmr.msra.gmra.mrb[8].mxu0 %vm818_vm3, %v1060_v19 }
 0x56a   : > { %2507 = vmatprep.mubr.msk.bf16.mxu0 %vm2806_vm0, %v2805_v4 }
 0x56b   : > { %v2715_v20 = vpop.eup %2714 }
 0x56c   : > { %v1059_v21 = vmul.f32 %v2715_v20, %v2711_v10 }
 0x56e   : > { %v1061_v27 = vpack.c.bf16 %v1059_v21, %v1059_v21 }
 0x56f   : > { %2506 = vmatpush3.bf16.xpose.msra.mxu0 %v1168_v26 }
 0x570   : > { %2502 = vmatmul.mubr.msk.bf16.vlgmr.msra.gmra.mrb[24].mxu1 %vm818_vm3, %v1061_v27  ;;  %2517 = vmatprep.subr.bf16.mxu0 %v2805_v4 }
 0x571   : > { %2512 = vmatpush3.bf16.xpose.msra.mxu1 %v1218_v28  ;;  %2513 = vmatprep.mubr.msk.bf16.mxu1 %vm2806_vm0, %v2805_v4 }
 0x572   : > { %2523 = vmatprep.subr.bf16.mxu1 %v2805_v4 }
 0x576   : > { %2508 = vmatmul.mubr.msk.bf16.vlgmr.msra.gmra.mrb[12].mxu0 %vm725_vm1, %v1161_v29 }
 0x577   : > { %2519 = vmatprep.mubr.msk.bf16.mxu0 %vm2806_vm0, %v2805_v4 }
 0x578   : > { %2514 = vmatmul.mubr.msk.bf16.vlgmr.msra.gmra.mrb[28].mxu1 %vm725_vm1, %v1211_v32 }
 0x579   : > { %2525 = vmatprep.mubr.msk.bf16.mxu1 %vm2806_vm0, %v2805_v4 }
 0x63c   : > { %v3142_v33 = vpop.f32.mrb[8].mxu0 }
 0x63d   : > { %v2497_v35 = vpop.f32.mrb[9].mxu0 }
 0x63e   : > { %v1107_v36 = vpop.f32.mrb[10].mxu0 }
 0x63f   : > { %v2498_v37 = vpop.f32.mrb[11].mxu0 }
 0x643   : > { %v3144_v38 = vpop.f32.mrb[24].mxu1 }
 0x644   : > { %v2503_v40 = vpop.f32.mrb[25].mxu1 }
 0x645   : > { %v1155_v42 = vpop.f32.mrb[26].mxu1 }
 0x646   : > { %v2504_v43 = vpop.f32.mrb[27].mxu1 }
 0x649   : > { %v1204_v44 = vpop.f32.mrb[12].mxu0 }
 0x64a   : > { %v2509_v47 = vpop.f32.mrb[13].mxu0  ;;  %v1260_v48 = vsel %vm818_vm3, %v1204_v44, -inf }
 0x64b   : > { %1261 = vmax.xlane.f32.xlu0 %v1260_v48  ;;  %v1207_v50 = vpop.f32.mrb[14].mxu0  ;;  %v1254_v51 = vpop.f32.mrb[28].mxu1 }
 0x64c   : > { %v2510_v53 = vpop.f32.mrb[15].mxu0  ;;  %v2515_v54 = vpop.f32.mrb[29].mxu1  ;;  %v1263_v55 = vsel %vm818_vm3, %v1254_v51, -inf }
 0x64d   : > { %1264 = vmax.xlane.f32.xlu1 %v1263_v55  ;;  %v1257_v57 = vpop.f32.mrb[30].mxu1  ;;  %v1158_v53 = vpack.c.bf16 %v3142_v33, %v3142_v33  ;;  %v1159_v54 = vpack.c.bf16 %v3144_v38, %v3144_v38 }
 0x64e   : > { %v2516_v58 = vpop.f32.mrb[31].mxu1 }
 0x65e   : > { %1332 = vrot.lane.b32.xlu1 %v3083_v22, %s2808_s30 }
 0x662   : > { %1384 = vrot.lane.b32.xlu1 %v3041_v41, %s2809_s22 }
 0x666   : > { %1434 = vrot.lane.b32.xlu1 %v3046_v45, %s2809_s22 }
 0x66a   : > { %1432 = vrot.lane.b32.xlu1 %v3057_v49, %s2809_s22 }
 0x6d8   : > { %v1262_v59 = vpop.xlane.xlu0 %1261 }
 0x6d9   : > { %v1266_v60 = vsub.f32 %v1204_v44, %v1262_v59 }
 0x6da   : > { %v1265_v61 = vpop.xlane.xlu1 %1264 }
 0x6db   : > { %v1268_v62 = vmul.f32 1.442695, %v1266_v60  ;;  %v1267_v63 = vsub.f32 %v1254_v51, %v1265_v61 }
 0x6dd   : > { %2716 = vpow2.f32 %v1268_v62  ;;  %v1270_v0 = vmul.f32 1.442695, %v1267_v63 }
 0x6de   : > { %v1333_v1 = vpop.permute.xlu1 %1332 }
 0x6df   : > { %2718 = vpow2.f32 %v1270_v0  ;;  %v1338_v3 = vsel %vm846_vm2, %v1333_v1, 0 }
 0x6e0   : > { %2524 = vmatpush3.bf16.msra.mxu1 %v1338_v3 }
 0x6e1   : > { %2535 = vmatprep.subr.bf16.mxu1 %v2805_v4 }
 0x6e2   : > { %v1385_v11 = vpop.permute.xlu1 %1384 }
 0x6e6   : > { %v1435_v16 = vpop.permute.xlu1 %1434 }
 0x6e7   : > { %v2717_v41 = vpop.eup %2716  ;;  %v1440_v18 = vsel %vm725_vm1, %v1435_v16, 0  ;;  %v2658_v16 = vld [vmem:[%s3436_s3 + $0x30] sm:$0xff]  }
 0x6e8   : > { %v1272_v45 = vsel %vm818_vm3, %v2717_v41, 0.0 }
 0x6e9   : > { %v2719_v5 = vpop.eup %2718  ;;  %1273 = vadd.xlane.f32.xlu0 %v1272_v45 }
 0x6ea   : > { %v1275_v49 = vsel %vm818_vm3, %v2719_v5, 0.0  ;;  %v1433_v20 = vpop.permute.xlu1 %1432 }
 0x6ed   : > { %1276 = vadd.xlane.f32.xlu0 %v1275_v49 }
 0x703   : > { %1284 = vrot.lane.b32.xlu0 %v3064_v56, %s2808_s30 }
 0x707   : > { %1382 = vrot.lane.b32.xlu0 %v3048_v46, %s2809_s22  ;;  %v1390_v46 = vsel %vm725_vm1, %v1385_v11, 0  ;;  %v2652_v11 = vld [vmem:[%s3436_s3] sm:$0xff]  }
 0x776   : > { %v1274_v6 = vpop.xlane.xlu0 %1273 }
 0x777   : > { %2720 = vrcp.f32 %v1274_v6 }
 0x77a   : > { %v1277_v7 = vpop.xlane.xlu0 %1276 }
 0x77b   : > { %2722 = vrcp.f32 %v1277_v7 }
 0x77e   : > { %v1285_v8 = vpop.permute.xlu0 %1284 }
 0x77f   : > { %v1290_v9 = vsel %vm846_vm2, %v1285_v8, 0 }
 0x780   : > { %2518 = vmatpush3.bf16.msra.mxu0 %v1290_v9 }
 0x781   : > { %v2721_v10 = vpop.eup %2720  ;;  %2529 = vmatprep.subr.bf16.mxu0 %v2805_v4 }
 0x782   : > { %v1280_v12 = vmul.f32 %v2721_v10, %v2717_v41  ;;  %v1383_v19 = vpop.permute.xlu0 %1382 }
 0x784   : > { %v1282_v13 = vpack.c.bf16 %v1280_v12, %v1280_v12  ;;  %v2653_v12 = vld [vmem:[%s3436_s3 + $0x8] sm:$0xff]  }
 0x785   : > { %v2723_v14 = vpop.eup %2722 }
 0x786   : > { %v1281_v15 = vmul.f32 %v2723_v14, %v2719_v5  ;;  %2520 = vmatmul.mubr.msk.bf16.vlgmr.msra.gmra.mrb[16].mxu0 %vm818_vm3, %v1282_v13  ;;  %v2654_v13 = vld [vmem:[%s3436_s3 + $0x10] sm:$0xff]   ;;  %v2656_v14 = vld [vmem:[%s3436_s3 + $0x20] sm:$0xff]  }
 0x787   : > { %2531 = vmatprep.mubr.msk.bf16.mxu0 %vm2806_vm0, %v2805_v4 }
 0x788   : > { %v1283_v17 = vpack.c.bf16 %v1281_v15, %v1281_v15  ;;  %v2657_v15 = vld [vmem:[%s3436_s3 + $0x28] sm:$0xff]  }
 0x789   : > { %2530 = vmatpush3.bf16.xpose.msra.mxu0 %v1390_v46  ;;  %v2659_v46 = vld [vmem:[%s3436_s3 + $0x38] sm:$0xff]  }
 0x78a   : > { %2526 = vmatmul.mubr.msk.bf16.vlgmr.msra.gmra.mrb[32].mxu1 %vm818_vm3, %v1283_v17  ;;  %2541 = vmatprep.subr.bf16.mxu0 %v2805_v4 }
 0x78b   : > { %2536 = vmatpush3.bf16.xpose.msra.mxu1 %v1440_v18  ;;  %2537 = vmatprep.mubr.msk.bf16.mxu1 %vm2806_vm0, %v2805_v4 }
 0x78c   : > { %2547 = vmatprep.subr.bf16.mxu1 %v2805_v4 }
 0x790   : > { %2532 = vmatmul.mubr.msk.bf16.vlgmr.msra.gmra.mrb[20].mxu0 %vm725_vm1, %v1383_v19 }
 0x791   : > { %2543 = vmatprep.mubr.msk.bf16.mxu0 %vm2806_vm0, %v2805_v4 }
 0x792   : > { %2538 = vmatmul.mubr.msk.bf16.vlgmr.msra.gmra.mrb[36].mxu1 %vm725_vm1, %v1433_v20 }
 0x793   : > { %2549 = vmatprep.mubr.msk.bf16.mxu1 %vm2806_vm0, %v2805_v4 }
 0x859   : > { %v1326_v21 = vpop.f32.mrb[16].mxu0 }
 0x85a   : > { %v2521_v25 = vpop.f32.mrb[17].mxu0  ;;  %v1380_v3 = vpack.c.bf16 %v1326_v21, %v1326_v21 }
 0x85b   : > { %v1329_v26 = vpop.f32.mrb[18].mxu0 }
 0x85c   : > { %v2522_v27 = vpop.f32.mrb[19].mxu0 }
 0x85d   : > { %v1374_v28 = vpop.f32.mrb[32].mxu1 }
 0x85e   : > { %v2527_v29 = vpop.f32.mrb[33].mxu1  ;;  %v1381_v55 = vpack.c.bf16 %v1374_v28, %v1374_v28 }
 0x85f   : > { %v1377_v32 = vpop.f32.mrb[34].mxu1 }
 0x860   : > { %v2528_v35 = vpop.f32.mrb[35].mxu1 }
 0x863   : > { %v1426_v36 = vpop.f32.mrb[20].mxu0 }
 0x864   : > { %v2533_v37 = vpop.f32.mrb[21].mxu0  ;;  %v1482_v40 = vsel %vm818_vm3, %v1426_v36, -inf }
 0x865   : > { %1483 = vmax.xlane.f32.xlu0 %v1482_v40  ;;  %v1429_v42 = vpop.f32.mrb[22].mxu0  ;;  %v1476_v43 = vpop.f32.mrb[36].mxu1  ;;  %v936_v37 = vpack.c.bf16 %v3102_v39, %v3102_v39  ;;  %v937_v40 = vpack.c.bf16 %v3105_v52, %v3105_v52  ;;  %v2306_v39 = vld [vmem:[%s3437_s4] ss:$0 sm:$0xff] }
 0x866   : > { %v2534_v44 = vpop.f32.mrb[23].mxu0  ;;  %v2539_v47 = vpop.f32.mrb[37].mxu1  ;;  %v1485_v48 = vsel %vm818_vm3, %v1476_v43, -inf }
 0x867   : > { %1486 = vmax.xlane.f32.xlu1 %v1485_v48  ;;  %v1479_v50 = vpop.f32.mrb[38].mxu1 }
 0x868   : > { %v2540_v51 = vpop.f32.mrb[39].mxu1 }
 0x878   : > { %1554 = vrot.lane.b32.xlu1 %v3083_v22, %s2809_s22 }
 0x87c   : > { %1606 = vrot.lane.b32.xlu1 %v1158_v53, %s2809_s22 }
 0x880   : > { %1608 = vrot.lane.b32.xlu1 %v1159_v54, %s2809_s22 }
 0x884   : > { %1614 = vrot.lane.b32.xlu1 %v1381_v55, %s2808_s30 }
 0x8f2   : > { %v1484_v57 = vpop.xlane.xlu0 %1483 }
 0x8f3   : > { %v1488_v58 = vsub.f32 %v1426_v36, %v1484_v57 }
 0x8f4   : > { %v1487_v59 = vpop.xlane.xlu1 %1486 }
 0x8f5   : > { %v1490_v60 = vmul.f32 1.442695, %v1488_v58  ;;  %v1489_v61 = vsub.f32 %v1476_v43, %v1487_v59 }
 0x8f7   : > { %2724 = vpow2.f32 %v1490_v60  ;;  %v1492_v22 = vmul.f32 1.442695, %v1489_v61 }
 0x8f8   : > { %v1555_v62 = vpop.permute.xlu1 %1554 }
 0x8f9   : > { %2726 = vpow2.f32 %v1492_v22  ;;  %v1560_v33 = vsel %vm846_vm2, %v1555_v62, 0  ;;  %v2660_v62 = vld [vmem:[%s3440_s7] ss:$8 sps:$4 sm:$0xff]  }
 0x8fa   : > { %2548 = vmatpush3.bf16.msra.mxu1 %v1560_v33  ;;  %v2662_v33 = vld [vmem:[%s3440_s7 + $0x4] ss:$8 sps:$4 sm:$0xff]  }
 0x8fb   : > { %1908 = vmatprep.subr.bf16.mxu1 %v2662_v33 }
 0x901   : > { %v2725_v63 = vpop.eup %2724 }
 0x902   : > { %v1494_v38 = vsel %vm818_vm3, %v2725_v63, 0.0 }
 0x903   : > { %v2727_v0 = vpop.eup %2726  ;;  %1495 = vadd.xlane.f32.xlu0 %v1494_v38 }
 0x904   : > { %v1497_v1 = vsel %vm818_vm3, %v2727_v0, 0.0 }
 0x907   : > { %1498 = vadd.xlane.f32.xlu0 %v1497_v1 }
 0x91d   : > { %1506 = vrot.lane.b32.xlu0 %v3064_v56, %s2809_s22  ;;  %s434_s22 = scalar_lea.vmem [#allocation2], %s2257_s21  ;;  %s2810_s21 = smov [#allocation2]  }
 0x91e   : > { %s2191_s14 = sshll.u32 %s434_s22, 4  ;;  %s3390_s14 = int_to_ptr.vmem [resolvable:$true] %s2191_s14 }
 0x921   : > { %1612 = vrot.lane.b32.xlu0 %v1380_v3, %s2808_s30  ;;  %s2364_s30 = sshll.u32 %s2904_s29, 8  ;;  %s2740_s29 = scalar_lea.vmem %s3390_s14, 256 }
 0x922   : > { %s3388_s0 = scalar_lea.hbm %s3446_s13, %s2364_s30  ;;  %p2741_p11 = scmp.ne.s32.totalorder %s3390_s14, %s2740_s29 }
 0x924   : > { %p2742_p12 = pnand %p2741_p11, %p2921_p5 }
 0x926   : > { %p2743_p13 = pneg %p2742_p12 }
 0x990   : > { %v1496_v41 = vpop.xlane.xlu0 %1495 }
 0x991   : > { %2728 = vrcp.f32 %v1496_v41 }
 0x994   : > { %v1499_v45 = vpop.xlane.xlu0 %1498 }
 0x995   : > { %2730 = vrcp.f32 %v1499_v45 }
 0x998   : > { %v1507_v5 = vpop.permute.xlu0 %1506 }
 0x999   : > { %v1512_v49 = vsel %vm846_vm2, %v1507_v5, 0 }
 0x99a   : > { %2542 = vmatpush3.bf16.msra.mxu0 %v1512_v49  ;;  %v2668_v49 = vld [vmem:[%s3440_s7 + $0x24] ss:$8 sps:$4 sm:$0xff]  }
 0x99b   : > { %v2729_v6 = vpop.eup %2728  ;;  %2553 = vmatprep.subr.bf16.mxu0 %v2805_v4 }
 0x99c   : > { %v1502_v7 = vmul.f32 %v2729_v6, %v2725_v63  ;;  %v1613_v35 = vpop.permute.xlu0 %1612  ;;  %v2666_v6 = vld [vmem:[%s3440_s7 + $0x20] ss:$8 sps:$4 sm:$0xff]  }
 0x99e   : > { %v1504_v8 = vpack.c.bf16 %v1502_v7, %v1502_v7  ;;  %v2671_v7 = vld [vmem:[%s3440_s7 + $0x34] ss:$8 sps:$4 sm:$0xff]  }
 0x99f   : > { %v2731_v9 = vpop.eup %2730 }
 0x9a0   : > { %v1503_v10 = vmul.f32 %v2731_v9, %v2727_v0  ;;  %2544 = vmatmul.mubr.msk.bf16.vlgmr.msra.gmra.mrb[24].mxu0 %vm818_vm3, %v1504_v8  ;;  %v2669_v8 = vld [vmem:[%s3440_s7 + $0x30] ss:$8 sps:$4 sm:$0xff]   ;;  %v2674_v9 = vld [vmem:[%s3440_s7 + $0x44] ss:$8 sps:$4 sm:$0xff]  }
 0x9a1   : > { %2569 = vmatprep.mubr.msk.bf16.mxu0 %vm2806_vm0, %v2805_v4  ;;  %2554 = vmatpush3.bf16.msra.mxu0 %v2652_v11  ;;  %v2675_v11 = vld [vmem:[%s3440_s7 + $0x50] ss:$8 sps:$4 sm:$0xff]  }
 0x9a2   : > { %v1505_v56 = vpack.c.bf16 %v1503_v10, %v1503_v10  ;;  %2555 = vmatprep.subr.bf16.mxu0 %v2805_v4  ;;  %v2672_v10 = vld [vmem:[%s3440_s7 + $0x40] ss:$8 sps:$4 sm:$0xff]  }
 0x9a4   : > { %2550 = vmatmul.mubr.msk.bf16.vlgmr.msra.gmra.mrb[40].mxu1 %vm818_vm3, %v1505_v56  ;;  %v2677_v56 = vld [vmem:[%s3440_s7 + $0x54] ss:$8 sps:$4 sm:$0xff]  }
 0x9a5   : > { %1940 = vmatprep.mubr.bf16.mxu1 %v2804_v2  ;;  %2556 = vmatpush3.bf16.msra.mxu0 %v2653_v12  ;;  %v2655_v2 = vld [vmem:[%s3436_s3 + $0x18] sm:$0xff]   ;;  %v2680_v12 = vld [vmem:[%s3440_s7 + $0x64] ss:$8 sps:$4 sm:$0xff]  }
 0x9a6   : > { %2557 = vmatprep.subr.bf16.mxu0 %v2805_v4  ;;  %1909 = vmatpush1.bf16.msra.mxu1 %v2660_v62 }
 0x9a9   : > { %2558 = vmatpush3.bf16.msra.mxu0 %v2654_v13  ;;  %v2678_v13 = vld [vmem:[%s3440_s7 + $0x60] ss:$8 sps:$4 sm:$0xff]  }
 0x9aa   : > { %2559 = vmatprep.subr.bf16.mxu0 %v2805_v4 }
 0x9ad   : > { %2560 = vmatpush3.bf16.msra.mxu0 %v2655_v2  ;;  %v2683_v2 = vld [vmem:[%s3440_s7 + $0x74] ss:$8 sps:$4 sm:$0xff]  }
 0x9ae   : > { %2561 = vmatprep.subr.bf16.mxu0 %v2805_v4 }
 0x9b1   : > { %2562 = vmatpush3.bf16.msra.mxu0 %v2656_v14  ;;  %v2681_v14 = vld [vmem:[%s3440_s7 + $0x70] ss:$8 sps:$4 sm:$0xff]  }
 0x9b2   : > { %2563 = vmatprep.subr.bf16.mxu0 %v2805_v4 }
 0x9b5   : > { %2564 = vmatpush3.bf16.msra.mxu0 %v2657_v15  ;;  %v2684_v15 = vld [vmem:[%s3442_s9 + $0x40] sm:$0xff]  }
 0x9b6   : > { %2565 = vmatprep.subr.bf16.mxu0 %v2805_v4 }
 0x9b9   : > { %2566 = vmatpush3.bf16.msra.mxu0 %v2658_v16  ;;  %v2685_v16 = vld [vmem:[%s3442_s9] sm:$0xff]  }
 0x9ba   : > { %2567 = vmatprep.subr.bf16.mxu0 %v2805_v4  ;;  %v1607_v4 = vpop.permute.xlu1 %1606 }
 0x9bb   : > { %v1624_v43 = vsel %vm725_vm1, %v936_v37, %v1607_v4 }
 0x9bc   : > { %v1630_v48 = vsel %vm1628_vm4, %v1624_v43, %v1613_v35 }
 0x9bd   : > { %2568 = vmatpush3.bf16.msra.mxu0 %v2659_v46  ;;  %v2686_v46 = vld [vmem:[%s3442_s9 + $0x48] sm:$0xff]  }
 0x9be   : > { %v1609_v32 = vpop.permute.xlu1 %1608  ;;  %2415 = vmatprep.subr.bf16.mxu0 %v2684_v15 }
 0x9bf   : > { %v1627_v44 = vsel %vm725_vm1, %v937_v40, %v1609_v32 }
 0x9c2   : > { %v1615_v36 = vpop.permute.xlu1 %1614 }
 0x9c3   : > { %v1632_v47 = vsel %vm1628_vm4, %v1627_v44, %v1615_v36 }
 0xa73   : > { %v1548_v17 = vpop.f32.mrb[24].mxu0 }
 0xa74   : > { %v1602_v18 = vpack.c.bf16 %v1548_v17, %v1548_v17  ;;  %v2545_v19 = vpop.f32.mrb[25].mxu0  ;;  %v2687_v17 = vld [vmem:[%s3442_s9 + $0x8] sm:$0xff]  }
 0xa75   : > { %v1551_v20 = vpop.f32.mrb[26].mxu0  ;;  %v2689_v19 = vld [vmem:[%s3442_s9 + $0x10] sm:$0xff]  }
 0xa76   : > { %1618 = vrot.lane.b32.xlu0 %v1602_v18, %s2807_s27  ;;  %v2546_v21 = vpop.f32.mrb[27].mxu0  ;;  %v2688_v18 = vld [vmem:[%s3442_s9 + $0x50] sm:$0xff]   ;;  %v2690_v20 = vld [vmem:[%s3442_s9 + $0x58] sm:$0xff]  }
 0xa77   : > { %v1596_v25 = vpop.f32.mrb[40].mxu1  ;;  %v2691_v21 = vld [vmem:[%s3442_s9 + $0x18] sm:$0xff]  }
 0xa78   : > { %v1603_v26 = vpack.c.bf16 %v1596_v25, %v1596_v25  ;;  %v2551_v27 = vpop.f32.mrb[41].mxu1  ;;  %v2692_v25 = vld [vmem:[%s3442_s9 + $0x60] sm:$0xff]  }
 0xa79   : > { %v1599_v28 = vpop.f32.mrb[42].mxu1  ;;  %v2694_v27 = vld [vmem:[%s3442_s9 + $0x68] sm:$0xff]  }
 0xa7a   : > { %1620 = vrot.lane.b32.xlu1 %v1603_v26, %s2807_s27  ;;  %v2552_v29 = vpop.f32.mrb[43].mxu1  ;;  %v2693_v26 = vld [vmem:[%s3442_s9 + $0x20] sm:$0xff]   ;;  %s2744_s27 = sshll.u32 %s2810_s21, 4  ;;  %s2745_s27 = int_to_ptr.vmem [resolvable:$false] %s2744_s27 }
 0xa7b   : > { %s2746_s23 = scalar_lea.vmem %s2745_s27, 512  ;;  %p2747_p0 = scmp.lt.s32.totalorder %s3390_s14, %s2745_s27 }
 0xa7c   : > { %p2748_p1 = scmp.lt.s32.totalorder %s2746_s23, %s2740_s29 }
 0xa7e   : > { %p2749_p2 = por %p2748_p1, %p2747_p0 }
 0xa80   : > { %p2750_p3 = pnand %p2749_p2, %p2743_p13 }
 0xae8   : > { %v1619_v42 = vpop.permute.xlu0 %1618 }
 0xae9   : > { %v1635_v51 = vsel %vm1633_vm5, %v1630_v48, %v1619_v42  ;;  %v2316_v42 = vld [vmem:[%s3438_s5] ss:$0 sm:$0xff] }
 0xaea   : > { %v2317_v48 = vld [vmem:[%s3439_s6] ss:$0 sm:$0xff] }
 0xaec   : > { %v1621_v50 = vpop.permute.xlu1 %1620 }
 0xaed   : > { %v1637_v53 = vsel %vm1633_vm5, %v1632_v47, %v1621_v50 }
 0xaee   : > { %v2307_v54 = vcombine.low %v1635_v51, %v1637_v53 }
 0xaf0   : > { %2570 = vmatmul.mubr.bf16.vlgmr.msra.gmra.mrb[28].mxu0 %v2307_v54 }
 0xaf1   : > { %2416 = vmatpush3.bf16.msra.mxu0 %v2685_v16 }
 0xaf2   : > { %2417 = vmatprep.subr.bf16.mxu0 %v2686_v46 }
 0xaf5   : > { %2418 = vmatpush3.bf16.msra.mxu0 %v2687_v17 }
 0xaf6   : > { %2419 = vmatprep.subr.bf16.mxu0 %v2688_v18 }
 0xaf9   : > { %2420 = vmatpush3.bf16.msra.mxu0 %v2689_v19 }
 0xafa   : > { %2421 = vmatprep.subr.bf16.mxu0 %v2690_v20 }
 0xafd   : > { %2422 = vmatpush3.bf16.msra.mxu0 %v2691_v21 }
 0xafe   : > { %2423 = vmatprep.subr.bf16.mxu0 %v2692_v25 }
 0xb01   : > { %2424 = vmatpush3.bf16.msra.mxu0 %v2693_v26 }
 0xb02   : > { %2425 = vmatprep.subr.bf16.mxu0 %v2694_v27 }
 0xbc3   : > { %v1749_v55 = vpop.f32.mrb[28].mxu0 }
 0xbc4   : > { %v1750_v52 = vadd.f32 %v2306_v39, %v1749_v55  ;;  %v2571_v57 = vpop.f32.mrb[29].mxu0  ;;  %v2696_v55 = vld [vmem:[%s3442_s9 + $0x70] sm:$0xff]  }
 0xbc5   : > { %v1752_v58 = vpop.f32.mrb[30].mxu0  ;;  %v2698_v57 = vld [vmem:[%s3442_s9 + $0x78] sm:$0xff]  }
 0xbc6   : > { %v3249_v59 = vadd.f32 %v1750_v52, %v3003_v23  ;;  %v1753_v60 = vadd.f32 %v2306_v39, %v1752_v58  ;;  %v2572_v61 = vpop.f32.mrb[31].mxu0  ;;  %v2665_v23 = vld [vmem:[%s3440_s7 + $0x14] ss:$8 sps:$4 sm:$0xff]   ;;  %v2695_v39 = vld [vmem:[%s3442_s9 + $0x28] sm:$0xff]  }
 0xbc7   : > { %1910 = vmatprep.subr.bf16.mxu1 %v2665_v23  ;;  %2426 = vmatpush3.bf16.msra.mxu0 %v2695_v39  ;;  %v2697_v52 = vld [vmem:[%s3442_s9 + $0x30] sm:$0xff]   ;;  %v2699_v58 = vld [vmem:[%s3442_s9 + $0x38] sm:$0xff]  }
 0xbc8   : > { %v3252_v22 = vadd.f32 %v1753_v60, %v3005_v24  ;;  %1760 = vadd.xlane.f32.xlu0 %v3249_v59  ;;  %v2663_v24 = vld [vmem:[%s3440_s7 + $0x10] ss:$8 sps:$4 sm:$0xff]   ;;  %2427 = vmatprep.subr.bf16.mxu0 %v2696_v55  ;;  %v1816_v60 = vld [vmem:[%s3441_s8] sm:$0x3] }
 0xbc9   : > { %1911 = vmatpush1.bf16.msra.mxu1 %v2663_v24  ;;  %v1821_v61 = vrot.slane %v1816_v60, %v482_v34  ;;  %v1825_v62 = vrot.slane %v1816_v60, %v486_v31 }
 0xbca   : > { %1762 = vadd.xlane.f32.xlu1 %v3252_v22  ;;  %1912 = vmatprep.subr.bf16.mxu1 %v2668_v49 }
 0xbcb   : > { %2428 = vmatpush3.bf16.msra.mxu0 %v2697_v52 }
 0xbcc   : > { %2429 = vmatprep.subr.bf16.mxu0 %v2698_v57 }
 0xbcd   : > { %1913 = vmatpush1.bf16.msra.mxu1 %v2666_v6 }
 0xbce   : > { %1914 = vmatprep.subr.bf16.mxu1 %v2671_v7 }
 0xbcf   : > { %2430 = vmatpush3.bf16.msra.mxu0 %v2699_v58 }
 0xbd1   : > { %1915 = vmatpush1.bf16.msra.mxu1 %v2669_v8 }
 0xbd2   : > { %1916 = vmatprep.subr.bf16.mxu1 %v2674_v9 }
 0xbd5   : > { %1917 = vmatpush1.bf16.msra.mxu1 %v2672_v10 }
 0xbd6   : > { %1918 = vmatprep.subr.bf16.mxu1 %v2677_v56 }
 0xbd9   : > { %1919 = vmatpush1.bf16.msra.mxu1 %v2675_v11 }
 0xbda   : > { %1920 = vmatprep.subr.bf16.mxu1 %v2680_v12 }
 0xbdd   : > { %1921 = vmatpush1.bf16.msra.mxu1 %v2678_v13 }
 0xbde   : > { %1922 = vmatprep.subr.bf16.mxu1 %v2683_v2 }
 0xbe1   : > { %1923 = vmatpush1.bf16.msra.mxu1 %v2681_v14 }
 0xc55   : > { %v1761_v63 = vpop.xlane.xlu0 %1760 }
 0xc56   : > { %v1765_v38 = vmul.f32 0.0078125, %v1761_v63 }
 0xc57   : > { %v1763_v0 = vpop.xlane.xlu1 %1762 }
 0xc58   : > { %v1767_v1 = vsub.f32 %v3249_v59, %v1765_v38  ;;  %v1766_v3 = vmul.f32 0.0078125, %v1763_v0 }
 0xc5a   : > { %v3270_v41 = vsub.f32 %v3252_v22, %v1766_v3  ;;  %v1769_v45 = vmul.f32 %v1767_v1, %v1767_v1 }
 0xc5c   : > { %1771 = vadd.xlane.f32.xlu0 %v1769_v45  ;;  %v1770_v5 = vmul.f32 %v3270_v41, %v3270_v41 }
 0xc60   : > { %1773 = vadd.xlane.f32.xlu0 %v1770_v5 }
 0xce9   : > { %v1772_v28 = vpop.xlane.xlu0 %1771 }
 0xcea   : > { %v1775_v29 = vmul.f32 0.0078125, %v1772_v28 }
 0xcec   : > { %v1777_v4 = vadd.f32 1e-05, %v1775_v29  ;;  %v2351_v29 = vld [vmem:[%s3444_s11] ss:$0 sm:$0xff] }
 0xced   : > { %v1774_v32 = vpop.xlane.xlu0 %1773 }
 0xcee   : > { %2732 = vrsqrt.f32 %v1777_v4  ;;  %v1776_v35 = vmul.f32 0.0078125, %v1774_v32 }
 0xcf0   : > { %v1778_v36 = vadd.f32 1e-05, %v1776_v35  ;;  %v2352_v35 = vld [vmem:[%s3445_s12] ss:$0 sm:$0xff] }
 0xcf2   : > { %2734 = vrsqrt.f32 %v1778_v36 }
 0xcf8   : > { %v2733_v37 = vpop.eup %2732 }
 0xcf9   : > { %v1781_v40 = vmul.f32 %v2733_v37, %v1767_v1 }
 0xcfb   : > { %v1789_v47 = vmul.f32 %v2316_v42, %v1781_v40 }
 0xcfc   : > { %v2735_v43 = vpop.eup %2734 }
 0xcfd   : > { %v1782_v44 = vmul.f32 %v2735_v43, %v3270_v41  ;;  %v1797_v51 = vadd.f32 %v2317_v48, %v1789_v47 }
 0xcff   : > { %v1790_v50 = vmul.f32 %v2316_v42, %v1782_v44 }
 0xd01   : > { %v1798_v53 = vadd.f32 %v2317_v48, %v1790_v50 }
 0xd03   : > { %v1799_v54 = vpack.c.bf16 %v1798_v53, %v1797_v51 }
 0xd05   : > { %1941 = vmatmul.mubr.bf16.vlgmr.msra.gmra.mrb[44].mxu1 %v1799_v54 }
 0xdd8   : > { %v1942_v33 = vpop.f32.mrb[44].mxu1 }
 0xdd9   : > { %v1943_v23 = vadd.f32 %v1942_v33, %v1821_v61  ;;  %v1944_v24 = vpop.f32.mrb[45].mxu1 }
 0xdda   : > { %v1945_v63 = vadd.f32 %v1944_v24, %v1825_v62  ;;  %v1946_v38 = vpop.f32.mrb[46].mxu1 }
 0xddb   : > { %v1947_v0 = vadd.f32 %v1946_v38, %v1821_v61  ;;  %v1948_v1 = vpop.f32.mrb[47].mxu1  ;;  %v1951_v41 = vmax.f32 %v1943_v23, 0.0 }
 0xddc   : > { %v1949_v3 = vadd.f32 %v1948_v1, %v1825_v62  ;;  %v1952_v5 = vmax.f32 %v1945_v63, 0.0 }
 0xddd   : > { %v1953_v45 = vmax.f32 %v1947_v0, 0.0 }
 0xdde   : > { %v1954_v49 = vmax.f32 %v1949_v3, 0.0 }
 0xddf   : > { %v1955_v6 = vpack.c.bf16 %v1953_v45, %v1951_v41 }
 0xde0   : > { %v1956_v7 = vpack.c.bf16 %v1954_v49, %v1952_v5 }
 0xde2   : > { %2124 = vmatprep.mubr.bf16.mxu0 %v1956_v7 }
 0xde3   : > { %2125 = vmatmul.mubr.bf16.vlgmr.msra.gmra.mrb[32].mxu0 %v1955_v6 }
 0xeb6   : > { %v2431_v34 = vpop.f32.mrb[32].mxu0 }
 0xeb7   : > { %v2432_v31 = vpop.f32.mrb[33].mxu0 }
 0xeb8   : > { %v2433_v8 = vadd.f32 %v2432_v31, %v2431_v34  ;;  %v2434_v9 = vpop.f32.mrb[34].mxu0 }
 0xeb9   : > { %v2435_v10 = vpop.f32.mrb[35].mxu0 }
 0xeba   : > { %v2127_v56 = vadd.f32 %v2433_v8, %v2334_v30  ;;  %v2436_v11 = vadd.f32 %v2435_v10, %v2434_v9 }
 0xebc   : > { %v2130_v12 = vadd.f32 %v2436_v11, %v2334_v30  ;;  %v2133_v13 = vadd.f32 %v2127_v56, %v3249_v59 }
 0xebe   : > { %2137 = vadd.xlane.f32.xlu0 %v2133_v13  ;;  %v2134_v2 = vadd.f32 %v2130_v12, %v3252_v22 }
 0xec0   : > { %2139 = vadd.xlane.f32.xlu1 %v2134_v2 }
 0xf4b   : > { %v2138_v14 = vpop.xlane.xlu0 %2137 }
 0xf4c   : > { %v2141_v15 = vmul.f32 0.0078125, %v2138_v14 }
 0xf4d   : > { %v2140_v16 = vpop.xlane.xlu1 %2139 }
 0xf4e   : > { %v2143_v46 = vsub.f32 %v2133_v13, %v2141_v15  ;;  %v2142_v17 = vmul.f32 0.0078125, %v2140_v16 }
 0xf50   : > { %v2144_v18 = vsub.f32 %v2134_v2, %v2142_v17  ;;  %v2145_v19 = vmul.f32 %v2143_v46, %v2143_v46 }
 0xf52   : > { %2147 = vadd.xlane.f32.xlu0 %v2145_v19  ;;  %v2146_v20 = vmul.f32 %v2144_v18, %v2144_v18 }
 0xf54   : > { %2149 = vadd.xlane.f32.xlu1 %v2146_v20 }
 0xfdf   : > { %v2148_v21 = vpop.xlane.xlu0 %2147 }
 0xfe0   : > { %v2151_v25 = vmul.f32 0.0078125, %v2148_v21 }
 0xfe1   : > { %v2150_v26 = vpop.xlane.xlu1 %2149 }
 0xfe2   : > { %v2153_v59 = vadd.f32 1e-05, %v2151_v25  ;;  %v2152_v27 = vmul.f32 0.0078125, %v2150_v26 }
 0xfe4   : > { %2736 = vrsqrt.f32 %v2153_v59  ;;  %v2154_v22 = vadd.f32 1e-05, %v2152_v27 }
 0xfe6   : > { %2738 = vrsqrt.f32 %v2154_v22 }
 0xfee   : > { %v2737_v28 = vpop.eup %2736 }
 0xfef   : > { %v2157_v4 = vmul.f32 %v2737_v28, %v2143_v46 }
 0xff0   : > { %v2739_v32 = vpop.eup %2738 }
 0xff1   : > { %v2165_v36 = vmul.f32 %v2351_v29, %v2157_v4  ;;  %v2158_v37 = vmul.f32 %v2739_v32, %v2144_v18 }
 0xff3   : > { %v2166_v40 = vmul.f32 %v2351_v29, %v2158_v37  ;;  %v2173_v42 = vadd.f32 %v2352_v35, %v2165_v36 }
 0xff5   : > { %v2174_v43 = vadd.f32 %v2352_v35, %v2166_v40  ;;  %2175 = vst [vmem:[%s434_s22] sm:$0xff] %v2173_v42 }
 0xff7   : > { %2176 = vst [vmem:[%s434_s22 + $0x8] sm:$0xff] %v2174_v43 }
 0xff8   : > { %2753 = shalt.err (!%p2750_p3)
}
 0xff9   : > { %s2754_s20 = scalar_lea.hbm %s3388_s0, 256  ;;  %s2758_s22 = scalar_lea.hbm %s3446_s13, 1024 }
 0xffa   : > { %p2755_p4 = scmp.ne.s32.totalorder %s3388_s0, %s2754_s20  ;;  %p2759_p9 = scmp.lt.u32.totalorder %s3388_s0, %s3446_s13 }
 0xffb   : > { %p2760_p10 = scmp.lt.u32.totalorder %s2758_s22, %s2754_s20  ;;  %p2762_p12 = scmp.lt.u32.totalorder %s2754_s20, %s3388_s0 }
 0xffc   : > { %p2756_p7 = pnand %p2755_p4, %p2921_p5 }
 0xffd   : > { %p2761_p11 = por %p2760_p10, %p2759_p9 }
 0xffe   : > { %p2757_p8 = pneg %p2756_p7 }
 0xfff   : > { %p2763_p13 = por %p2762_p12, %p2761_p11 }
0x1001   : > { %p2764_p0 = pnand %p2763_p13, %p2757_p8 }
0x1003   : > { %2767 = shalt.err (!%p2764_p0)
}
0x1004   : > { %s2811_s29 = smov 128   ;;  %s2812_s21 = smov 8  }
0x1005   : > { %2573 = dma.vmem_to_hbm [thread:$0]  (%p2921_p5), %s3390_s14, 256, %s3388_s0, %s3392_s17, %s2811_s29, %s2811_s29, %s2812_s21  }
0x1006 PF: > { %p2579_p1 = scmp.ge.s32.totalorder %s2802_s28, 2  ;;  %s2206_s27 = sand.u32 1, %s2790_s25  }
0x1007   : > { %s2207_s23 = scalar_lea.sflag [#allocation3], %s2206_s27 }
0x1008   : > { %p2576_p2 = pnand %p2579_p1, %p2925_p6 }
0x100a   : > { %2785 = dma.done.wait (!%p2576_p2), %s2207_s23, 256  }
0x100b   : > { %2787 = vsyncadd (!%p2576_p2), %s2207_s23, 4294967040  ;;  %s3457_s28 = sld [smem:[#allocation6_spill]]  ;;  %s3458_s20 = sld [smem:[#allocation5_spill]] }
0x100c   : > { %s3459_s27 = sld [smem:[#allocation7_spill]]  ;;  %s3460_s25 = smov %s2794_s26 }
0x1011   : > { %p23_p3 = scmp.ge.s32.totalorder %s3457_s28, 6   ;;  %s3461_s26 = smov %s3458_s20 }
0x1013   :  { %25 = sbr.rel (!%p23_p3) target bundleno = 5 (0x5), region = 107 }
0x101a   :  { %2212 = vsyncpa [#allocation3], 1 }
0x101b   :  { %2214 = vsyncpa [#allocation3 + $0x1], 1 }

// kernel: _lambda_.2
= control target key start
LH: loop header
LB: loop body
LE: loop exit
PB: predicated region body
PF: predicated region fallthrough
CT: control target
= control target key end

     0   :  { %s3762_s0 = inlined_call_operand.hbm [shape: f32[8,8,128], index: 0, kind: input, shape index: {}]   ;;  %s3763_s1 = inlined_call_operand.hbm [shape: bf16[128,384], index: 1, kind: input, shape index: {}]   ;;  %s3764_s2 = inlined_call_operand.vmem [shape: f32[1,384], index: 2, kind: input, shape index: {}]   ;;  %s3765_s3 = inlined_call_operand.hbm [shape: bf16[128,128], index: 3, kind: input, shape index: {}]   ;;  %s3766_s4 = inlined_call_operand.vmem [shape: f32[1,128], index: 4, kind: input, shape index: {}]   ;;  %s3767_s5 = inlined_call_operand.vmem [shape: f32[1,128], index: 5, kind: input, shape index: {}]   ;;  %s3768_s6 = inlined_call_operand.vmem [shape: f32[1,128], index: 6, kind: input, shape index: {}]   ;;  %s3769_s7 = inlined_call_operand.hbm [shape: bf16[128,256], index: 7, kind: input, shape index: {}]   ;;  %s3770_s8 = inlined_call_operand.vmem [shape: f32[1,256], index: 8, kind: input, shape index: {}]   ;;  %s3771_s9 = inlined_call_operand.hbm [shape: bf16[256,128], index: 9, kind: input, shape index: {}]   ;;  %s3772_s10 = inlined_call_operand.hbm [shape: f32[1,128], index: 10, kind: input, shape index: {}]   ;;  %s3773_s11 = inlined_call_operand.vmem [shape: f32[1,128], index: 11, kind: input, shape index: {}]   ;;  %s3774_s12 = inlined_call_operand.vmem [shape: f32[1,128], index: 12, kind: input, shape index: {}]   ;;  %s3775_s13 = inlined_call_operand.vmem [shape: f32[8,8,128], index: 13, kind: output, shape index: {}]  }
   0x1   :  { %3782 = sst [smem:[#allocation16_spill]] %s3763_s1 }
   0x2   :  { %3783 = sst [smem:[#allocation17_spill]] %s3768_s6 }
   0x3   :  { %3784 = sst [smem:[#allocation18_spill]] %s3769_s7 }
   0x4   :  { %3785 = sst [smem:[#allocation19_spill]] %s3770_s8 }
   0x5   :  { %3786 = sst [smem:[#allocation20_spill]] %s3773_s11 }
   0x6   :  { %3787 = sst [smem:[#allocation21_spill]] %s3774_s12 }
   0x7   :  { %3788 = sst [smem:[#allocation22_spill]] %s3775_s13 }
   0x8   :  { %18 = vsyncpa [#allocation3], 0 }
   0x9   :  { %20 = vsyncpa [#allocation3 + $0x1], 0 }
   0xa   :  { %21 = vsyncpa [#allocation5], 0 }
   0xb   :  { %22 = vsyncpa [#allocation8], 0 }
   0xc   :  { %23 = vsyncpa [#allocation11], 0  ;;  %s3243_s25 = smov 0   ;;  %s3245_s26 = smov 0  }
   0xd   :  { %s3247_s27 = smov 0   ;;  %s3249_s28 = smov 0  }
   0xe LB: > { %s3155_s29 = smov [#allocation4]   ;;  %s3776_s14 = sadd.s32 4294967295, %s3153_s28   ;;  %s3153_s28 = sphi %s3249_s28, %s3811_s28   ;;  %s3149_s27 = sphi %s3247_s27, %s3810_s27   ;;  %s3145_s26 = sphi %s3245_s26, %s3809_s26   ;;  %s3141_s25 = sphi %s3243_s25, %s3808_s25  }
   0xf   : > { %s350_s30 = sshll.u32 %s3155_s29, 4  ;;  %p2386_p0 = scmp.ge.s32.totalorder %s3153_s28, 1  ;;  %s3272_s30 = int_to_ptr.vmem [resolvable:$true] %s350_s30 }
  0x10   : > { %p3267_p1 = scmp.eq.s32.totalorder %s3776_s14, 0  ;;  %p338_p2 = scmp.lt.s32.totalorder %s3153_s28, 5 }
  0x11   : > { %s3156_s17 = smov [#allocation7]   ;;  %s3157_s20 = smov [#allocation6]  }
  0x12   : > { %s3789_s15 = scalar_select %p3267_p1, 1, 0 }
  0x13   : > { %p3274_p3 = pnand %p2386_p0, %p338_p2  ;;  %s388_s18 = sshll.u32 %s3156_s17, 4  ;;  %s3286_s18 = int_to_ptr.vmem [resolvable:$true] %s388_s18 }
  0x14   : > { %s3288_s21 = sshll.u32 %s3157_s20, 4  ;;  %s3792_s1 = sld [smem:[#allocation16_spill]]  ;;  %s367_s21 = int_to_ptr.vmem [resolvable:$true] %s3288_s21 }
  0x15   : > { %s3790_s16 = scalar_select %p3274_p3, 1, 0 }
  0x16   : > { %p2737_p4 = pneg %p3274_p3 }
  0x18   : > { %p3282_p5 = pnand %p2737_p4, %p3267_p1 }
  0x1a   : > { %s2937_s24 = scalar_lea.hbm %s3792_s1, 3072  ;;  %p3298_p7 = pneg %p3282_p5 }
  0x1b   : > { %p2938_p6 = scmp.ne.s32.totalorder %s3792_s1, %s2937_s24  ;;  %p2944_p10 = scmp.lt.u32.totalorder %s2937_s24, %s3792_s1 }
  0x1d   : > { %p2940_p8 = pnand %p3298_p7, %p2938_p6 }
  0x1f   : > { %p2941_p9 = pneg %p2940_p8 }
  0x21   : > { %p2946_p11 = pnand %p2944_p10, %p2941_p9 }
  0x23   : > { %2949 = shalt.err (!%p2946_p11)
}
  0x24   : > { %s2950_s14 = scalar_lea.vmem %s3272_s30, 3072  ;;  %p2958_p2 = scmp.lt.s32.totalorder %s3272_s30, %s3272_s30 }
  0x25   : > { %p2951_p12 = scmp.ne.s32.totalorder %s3272_s30, %s2950_s14  ;;  %p2959_p4 = scmp.lt.s32.totalorder %s2950_s14, %s2950_s14 }
  0x27   : > { %p2953_p13 = pnand %p2951_p12, %p3298_p7  ;;  %p2960_p6 = por %p2959_p4, %p2958_p2 }
  0x29   : > { %p2954_p0 = pneg %p2953_p13 }
  0x2b   : > { %p2961_p8 = pnand %p2960_p6, %p2954_p0 }
  0x2d   : > { %2964 = shalt.err (!%p2961_p8)
}
  0x2e   : > { %s3158_s22 = smov 192   ;;  %s3159_s13 = smov 12  }
  0x2f   : > { %2740 = dma.hbm_to_vmem [thread:$0]  (!%p3282_p5), %s3792_s1, 3072, %s3272_s30, [#allocation5], %s3158_s22, %s3158_s22, %s3159_s13  }
  0x30   : > { %s3794_s7 = sld [smem:[#allocation18_spill]] }
  0x36   : > { %s2965_s12 = scalar_lea.hbm %s3794_s7, 2048 }
  0x37   : > { %p2966_p9 = scmp.ne.s32.totalorder %s3794_s7, %s2965_s12  ;;  %p2972_p12 = scmp.lt.u32.totalorder %s2965_s12, %s3794_s7 }
  0x39   : > { %p2968_p10 = pnand %p2966_p9, %p3298_p7 }
  0x3b   : > { %p2969_p11 = pneg %p2968_p10 }
  0x3d   : > { %p2974_p13 = pnand %p2972_p12, %p2969_p11 }
  0x3f   : > { %2977 = shalt.err (!%p2974_p13)
}
  0x40   : > { %s2978_s30 = scalar_lea.vmem %s3286_s18, 2048  ;;  %p2986_p6 = scmp.lt.s32.totalorder %s3286_s18, %s3286_s18 }
  0x41   : > { %p2979_p0 = scmp.ne.s32.totalorder %s3286_s18, %s2978_s30  ;;  %p2987_p8 = scmp.lt.s32.totalorder %s2978_s30, %s2978_s30 }
  0x43   : > { %p2981_p2 = pnand %p2979_p0, %p3298_p7  ;;  %p2988_p9 = por %p2987_p8, %p2986_p6 }
  0x45   : > { %p2982_p4 = pneg %p2981_p2 }
  0x47   : > { %p2989_p10 = pnand %p2988_p9, %p2982_p4 }
  0x49   : > { %2992 = shalt.err (!%p2989_p10)
}
  0x4a   : > { %s3780_s8 = smov 128   ;;  %s3781_s6 = smov 8  }
  0x4b   : > { %2746 = dma.hbm_to_vmem [thread:$0]  (!%p3282_p5), %s3794_s7, 2048, %s3286_s18, [#allocation8], %s3780_s8, %s3780_s8, %s3781_s6  }
  0x4c   : > { %s2993_s23 = scalar_lea.hbm %s3765_s3, 1024 }
  0x4d   : > { %p2994_p11 = scmp.ne.s32.totalorder %s3765_s3, %s2993_s23  ;;  %p3000_p0 = scmp.lt.u32.totalorder %s2993_s23, %s3765_s3 }
  0x4f   : > { %p2996_p12 = pnand %p2994_p11, %p3298_p7 }
  0x51   : > { %p2997_p13 = pneg %p2996_p12 }
  0x53   : > { %p3002_p2 = pnand %p3000_p0, %p2997_p13 }
  0x55   : > { %3005 = shalt.err (!%p3002_p2)
}
  0x56   : > { %s3006_s30 = scalar_lea.vmem %s367_s21, 1024  ;;  %p3014_p9 = scmp.lt.s32.totalorder %s367_s21, %s367_s21 }
  0x57   : > { %p3007_p4 = scmp.ne.s32.totalorder %s367_s21, %s3006_s30  ;;  %p3015_p10 = scmp.lt.s32.totalorder %s3006_s30, %s3006_s30 }
  0x59   : > { %p3009_p6 = pnand %p3007_p4, %p3298_p7  ;;  %p3016_p3 = por %p3015_p10, %p3014_p9 }
  0x5b   : > { %p3010_p8 = pneg %p3009_p6 }
  0x5d   : > { %p3017_p1 = pnand %p3016_p3, %p3010_p8 }
  0x5f   : > { %3020 = shalt.err (!%p3017_p1)
}
  0x60   : > { %s3162_s18 = smov 64   ;;  %s3163_s11 = smov 4  }
  0x61   : > { %2743 = dma.hbm_to_vmem [thread:$0]  (!%p3282_p5), %s3765_s3, 1024, %s367_s21, [#allocation5], %s3162_s18, %s3162_s18, %s3163_s11  }
  0x62   : > { %s3164_s13 = smov [#allocation9]   ;;  %s3165_s24 = smov [#allocation10]  }
  0x63   : > { %s404_s23 = sshll.u32 %s3164_s13, 4  ;;  %s418_s29 = sshll.u32 %s3165_s24, 4  ;;  %s405_s23 = int_to_ptr.vmem [resolvable:$true] %s404_s23  ;;  %s419_s29 = int_to_ptr.vmem [resolvable:$true] %s418_s29 }
  0x64   : > { %s3021_s30 = scalar_lea.hbm %s3771_s9, 2048 }
  0x65   : > { %p3022_p1 = scmp.ne.s32.totalorder %s3771_s9, %s3021_s30  ;;  %p3028_p12 = scmp.lt.u32.totalorder %s3021_s30, %s3771_s9 }
  0x67   : > { %p3024_p3 = pnand %p3022_p1, %p3298_p7 }
  0x69   : > { %p3025_p11 = pneg %p3024_p3 }
  0x6b   : > { %p3030_p13 = pnand %p3028_p12, %p3025_p11 }
  0x6d   : > { %3033 = shalt.err (!%p3030_p13)
}
  0x6e   : > { %s3034_s21 = scalar_lea.vmem %s405_s23, 2048  ;;  %p3042_p6 = scmp.lt.s32.totalorder %s405_s23, %s405_s23 }
  0x6f   : > { %p3035_p0 = scmp.ne.s32.totalorder %s405_s23, %s3034_s21  ;;  %p3043_p8 = scmp.lt.s32.totalorder %s3034_s21, %s3034_s21 }
  0x71   : > { %p3037_p2 = pnand %p3035_p0, %p3298_p7  ;;  %p3044_p9 = por %p3043_p8, %p3042_p6 }
  0x73   : > { %p3038_p4 = pneg %p3037_p2 }
  0x75   : > { %p3045_p10 = pnand %p3044_p9, %p3038_p4 }
  0x77   : > { %3048 = shalt.err (!%p3045_p10)
}
  0x78   : > { %2749 = dma.hbm_to_vmem [thread:$0]  (!%p3282_p5), %s3771_s9, 2048, %s405_s23, [#allocation8], %s3162_s18, %s3162_s18, %s3163_s11  }
  0x79   : > { %s3049_s12 = scalar_lea.hbm %s3772_s10, 16 }
  0x7a   : > { %p3050_p1 = scmp.ne.s32.totalorder %s3772_s10, %s3049_s12  ;;  %p3056_p12 = scmp.lt.u32.totalorder %s3049_s12, %s3772_s10 }
  0x7c   : > { %p3052_p3 = pnand %p3050_p1, %p3298_p7 }
  0x7e   : > { %p3053_p11 = pneg %p3052_p3 }
  0x80   : > { %p3058_p13 = pnand %p3056_p12, %p3053_p11 }
  0x82   : > { %3061 = shalt.err (!%p3058_p13)
}
  0x83   : > { %s3062_s14 = scalar_lea.vmem %s419_s29, 16  ;;  %s3069_s18 = scalar_lea.vmem %s419_s29, 32 }
  0x84   : > { %p3063_p0 = scmp.ne.s32.totalorder %s419_s29, %s3062_s14  ;;  %p3070_p6 = scmp.lt.s32.totalorder %s419_s29, %s419_s29 }
  0x85   : > { %p3071_p8 = scmp.lt.s32.totalorder %s3069_s18, %s3062_s14 }
  0x86   : > { %p3065_p2 = pnand %p3063_p0, %p3298_p7 }
  0x87   : > { %p3072_p9 = por %p3071_p8, %p3070_p6 }
  0x88   : > { %p3066_p4 = pneg %p3065_p2 }
  0x8a   : > { %p3073_p10 = pnand %p3072_p9, %p3066_p4 }
  0x8c   : > { %3076 = shalt.err (!%p3073_p10)
}
  0x8d   : > { %2752 = dma.hbm_to_vmem [thread:$0]  (!%p3282_p5), %s3772_s10, 16, %s419_s29, [#allocation11]  }
  0x8e   : > { %s3401_s17 = sadd.s32 1, %s3153_s28   ;;  %s36_s30 = sadd.s32 1, %s3149_s27 }
  0x8f   : > { %s33_s19 = ssub.s32 %s3153_s28, %s3401_s17  ;;  %p43_p1 = scmp.ne.s32.totalorder %s3149_s27, %s3145_s26 }
  0x90   : > { %p34_p7 = scmp.eq.s32.totalorder %s33_s19, 0  ;;  %p44_p3 = scmp.eq.s32.totalorder %s3153_s28, 0 }
  0x91   : > { %p49_p11 = scmp.ne.s32.totalorder %s3145_s26, %s3141_s25  ;;  %p3795_p13 = scmp.ne.s32.totalorder %s3789_s15, 0 }
  0x92   : > { %s3412_s21 = scalar_select %p34_p7, %s3149_s27, %s36_s30  }
  0x93   : > { %p45_p12 = por %p44_p3, %p43_p1  ;;  %p3416_p0 = por %p3795_p13, %p49_p11 }
  0x94   : > { %p2762_p2 = scmp.lt.s32.totalorder %s3153_s28, 4  ;;  %s435_s6 = sand.u32 1, %s3149_s27  }
  0x95   : > { %s2393_s29 = sshll.u32 %s435_s6, 4  ;;  %s2500_s1 = sshll.u32 %s3153_s28, 8 }
  0x96   : > { %s3426_s22 = scalar_lea.hbm %s3762_s0, %s2500_s1  ;;  %s439_s25 = scalar_lea.vmem [#allocation2], %s2393_s29 }
  0x97   : > { %s446_s13 = sshll.u32 %s439_s25, 4  ;;  %p3430_p5 = pnand %p2762_p2, %p45_p12  ;;  %s3428_s13 = int_to_ptr.vmem [resolvable:$true] %s446_s13 }
  0x98   : > { %s3434_s20 = scalar_lea.sflag [#allocation3], %s435_s6  ;;  %s3077_s14 = scalar_lea.hbm %s3426_s22, 256 }
  0x99   : > { %p3078_p4 = scmp.ne.s32.totalorder %s3426_s22, %s3077_s14  ;;  %p3079_p6 = pneg %p3430_p5 }
  0x9a   : > { %s3082_s23 = scalar_lea.hbm %s3762_s0, 1024  ;;  %p3083_p10 = scmp.lt.u32.totalorder %s3426_s22, %s3762_s0 }
  0x9b   : > { %p3080_p8 = pnand %p3079_p6, %p3078_p4  ;;  %p3084_p7 = scmp.lt.u32.totalorder %s3082_s23, %s3077_s14 }
  0x9c   : > { %p3086_p3 = scmp.lt.u32.totalorder %s3077_s14, %s3426_s22 }
  0x9d   : > { %p3081_p9 = pneg %p3080_p8  ;;  %p3085_p1 = por %p3084_p7, %p3083_p10 }
  0x9f   : > { %p3087_p11 = por %p3086_p3, %p3085_p1 }
  0xa1   : > { %p3088_p12 = pnand %p3087_p11, %p3081_p9 }
  0xa3   : > { %3091 = shalt.err (!%p3088_p12)
}
  0xa4   : > { %s3092_s6 = scalar_lea.vmem %s3428_s13, 256  ;;  %s3166_s29 = smov [#allocation2]  }
  0xa5   : > { %p3093_p13 = scmp.ne.s32.totalorder %s3428_s13, %s3092_s6  ;;  %s3097_s1 = sshll.u32 %s3166_s29, 4  ;;  %s3098_s1 = int_to_ptr.vmem [resolvable:$false] %s3097_s1 }
  0xa6   : > { %s3099_s7 = scalar_lea.vmem %s3098_s1, 512  ;;  %p3100_p8 = scmp.lt.s32.totalorder %s3428_s13, %s3098_s1 }
  0xa7   : > { %p3095_p2 = pnand %p3093_p13, %p3079_p6  ;;  %p3101_p10 = scmp.lt.s32.totalorder %s3099_s7, %s3092_s6 }
  0xa9   : > { %p3096_p4 = pneg %p3095_p2  ;;  %p3102_p7 = por %p3101_p10, %p3100_p8 }
  0xab   : > { %p3103_p1 = pnand %p3102_p7, %p3096_p4 }
  0xad   : > { %3106 = shalt.err (!%p3103_p1)
}
  0xae   : > { %s3798_s12 = smov 8   ;;  %s3799_s25 = smov 128  }
  0xaf   : > { %2756 = dma.hbm_to_vmem [thread:$0]  (!%p3430_p5), %s3426_s22, 256, %s3428_s13, %s3434_s20, %s3799_s25, %s3799_s25, %s3798_s12  }
  0xb0   : > { %p3800_p6 = scmp.ne.s32.totalorder %s3790_s16, 0 }
  0xb1   : > { %s460_s14 = sand.u32 (!%p3800_p6), 1, %s3145_s26  }
  0xb2   : > { %458 = sbr.rel (%p3800_p6) target bundleno = 4265 (0x10a9), region = 72  ;;  %s3468_s18 = sshll.u32 (!%p3800_p6), %s460_s14, 4 }
  0xb3   : > { %s461_s11 = scalar_lea.sflag (!%p3800_p6), [#allocation3], %s460_s14  ;;  %s464_s23 = scalar_lea.vmem (!%p3800_p6), [#allocation2], %s3468_s18 }
  0xb9   : > { %3124 = dma.done.wait (%p3416_p0), %s461_s11, 256  }
  0xba   : > { %3126 = vsyncadd (%p3416_p0), %s461_s11, 4294967040  ;;  %p3801_p9 = scmp.ne.s32.totalorder %s3789_s15, 0 }
  0xbc   : > { %3128 = dma.done.wait (%p3801_p9), [#allocation5], 4096  }
  0xbd   : > { %3130 = vsyncadd (%p3801_p9), [#allocation5], 4294963200 }
  0xbe   : > { %3132 = dma.done.wait (%p3801_p9), [#allocation8], 4096  }
  0xbf   : > { %3134 = vsyncadd (%p3801_p9), [#allocation8], 4294963200 }
  0xc0   : > { %3136 = dma.done.wait (%p3801_p9), [#allocation11], 16  }
  0xc1   : > { %3138 = vsyncadd (%p3801_p9), [#allocation11], 4294967280  ;;  %v3167_v0 = vmov 0   ;;  %v3168_v1 = vmov 0.0   ;;  %v2817_v2 = vld [vmem:[#allocation4 + $0x4] ss:$12 sps:$4 sm:$0xff]   ;;  %v572_v29 = vlaneseq }
  0xc2   : > { %747 = vmatprep.mubr.bf16.mxu0 %v3167_v0  ;;  %2579 = vmatprep.subr.bf16.mxu1 %v3168_v1  ;;  %v2819_v3 = vld [vmem:[#allocation4] ss:$12 sps:$4 sm:$0xff]   ;;  %v2820_v4 = vld [vmem:[#allocation4 + $0x1c] ss:$12 sps:$4 sm:$0xff]   ;;  %v2822_v5 = vld [vmem:[#allocation4 + $0x18] ss:$12 sps:$4 sm:$0xff]  }
  0xc3   : > { %715 = vmatprep.subr.bf16.mxu0 %v2817_v2  ;;  %v2823_v6 = vld [vmem:[#allocation4 + $0x34] ss:$12 sps:$4 sm:$0xff]   ;;  %v2825_v7 = vld [vmem:[#allocation4 + $0x30] ss:$12 sps:$4 sm:$0xff]   ;;  %v2826_v8 = vld [vmem:[#allocation4 + $0x4c] ss:$12 sps:$4 sm:$0xff]  }
  0xc4   : > { %716 = vmatpush1.bf16.msra.mxu0 %v2819_v3  ;;  %v2828_v9 = vld [vmem:[#allocation4 + $0x48] ss:$12 sps:$4 sm:$0xff]   ;;  %v2829_v10 = vld [vmem:[#allocation4 + $0x64] ss:$12 sps:$4 sm:$0xff]   ;;  %v2842_v12 = vld [vmem:[#allocation4 + $0x20] ss:$12 sps:$4 sm:$0xff]  }
  0xc5   : > { %717 = vmatprep.subr.bf16.mxu0 %v2820_v4  ;;  %v2841_v11 = vld [vmem:[#allocation4 + $0x8] ss:$12 sps:$4 sm:$0xff]   ;;  %v2831_v13 = vld [vmem:[#allocation4 + $0x60] ss:$12 sps:$4 sm:$0xff]   ;;  %v2843_v15 = vld [vmem:[#allocation4 + $0x38] ss:$12 sps:$4 sm:$0xff]  }
  0xc6   : > { %2580 = vmatpush3.bf16.msra.mxu1 %v2841_v11  ;;  %v2832_v14 = vld [vmem:[#allocation4 + $0x7c] ss:$12 sps:$4 sm:$0xff]   ;;  %v2834_v16 = vld [vmem:[#allocation4 + $0x78] ss:$12 sps:$4 sm:$0xff]   ;;  %v2835_v17 = vld [vmem:[#allocation4 + $0x94] ss:$12 sps:$4 sm:$0xff]  }
  0xc7   : > { %2581 = vmatprep.subr.bf16.mxu1 %v3168_v1  ;;  %v2844_v18 = vld [vmem:[#allocation4 + $0x50] ss:$12 sps:$4 sm:$0xff]   ;;  %v2838_v20 = vld [vmem:[#allocation4 + $0xac] ss:$12 sps:$4 sm:$0xff]   ;;  %v2845_v21 = vld [vmem:[#allocation4 + $0x68] ss:$12 sps:$4 sm:$0xff]  }
  0xc8   : > { %718 = vmatpush1.bf16.msra.mxu0 %v2822_v5  ;;  %v2837_v19 = vld [vmem:[#allocation4 + $0x90] ss:$12 sps:$4 sm:$0xff]   ;;  %v2840_v22 = vld [vmem:[#allocation4 + $0xa8] ss:$12 sps:$4 sm:$0xff]   ;;  %v2846_v25 = vld [vmem:[#allocation4 + $0x80] ss:$12 sps:$4 sm:$0xff]  }
  0xc9   : > { %719 = vmatprep.subr.bf16.mxu0 %v2823_v6  ;;  %v3494_v23 = vld [vmem:[%s464_s23] sm:$0xff]  ;;  %v3498_v24 = vld [vmem:[%s464_s23 + $0x8] sm:$0xff]  ;;  %vm3169_vm0 = vmmov 0   ;;  %v3514_v30 = vshrl.u32 %v572_v29, 7  ;;  %vm817_vm1 = vcmask 261120   ;;  %vm938_vm2 = vcmask 1043456  }
  0xca   : > { %2582 = vmatpush3.bf16.msra.mxu1 %v2842_v12  ;;  %v537_v26 = vpack.c.bf16 %v3498_v24, %v3494_v23  ;;  %v2847_v27 = vld [vmem:[#allocation4 + $0x98] ss:$12 sps:$4 sm:$0xff]   ;;  %v2848_v28 = vld [vmem:[#allocation4 + $0xb0] ss:$12 sps:$4 sm:$0xff]   ;;  %2595 = vmatprep.mubr.msk.bf16.mxu1 %vm3169_vm0, %v3168_v1  ;;  %v570_v32 = vld [vmem:[%s3764_s2] sm:$0x7] }
  0xcb   : > { %2583 = vmatprep.subr.bf16.mxu1 %v3168_v1  ;;  %v578_v31 = vsub.s32 1, %v3514_v30  ;;  %v574_v34 = vsub.s32 0, %v3514_v30  ;;  %v582_v50 = vsub.s32 2, %v3514_v30  ;;  %vm910_vm3 = vcmask 64512   ;;  %s3170_s8 = smov 96   ;;  %s3171_s22 = smov 64  }
  0xcc   : > { %720 = vmatpush1.bf16.msra.mxu0 %v2825_v7  ;;  %s3172_s13 = smov 32   ;;  %vm1720_vm4 = vcmask 523264   ;;  %vm1725_vm5 = vcmask 785408   ;;  %s3802_s1 = sld [smem:[#allocation17_spill]] }
  0xcd   : > { %721 = vmatprep.subr.bf16.mxu0 %v2826_v8  ;;  %v579_v33 = vrot.slane %v570_v32, %v578_v31  ;;  %v575_v40 = vrot.slane %v570_v32, %v574_v34  ;;  %v583_v51 = vrot.slane %v570_v32, %v582_v50  ;;  %s3803_s25 = sld [smem:[#allocation19_spill]]  ;;  %s3804_s14 = sadd.s32 4294967295, %s3153_s28  }
  0xce   : > { %2584 = vmatpush3.bf16.msra.mxu1 %v2843_v15  ;;  %s2403_s18 = sshll.u32 %s3804_s14, 1  ;;  %s3805_s15 = sld [smem:[#allocation20_spill]] }
  0xcf   : > { %2585 = vmatprep.subr.bf16.mxu1 %v3168_v1  ;;  %p529_p0 = scmp.lt.s32.totalorder %s2403_s18, 7  ;;  %s3807_s20 = sld [smem:[#allocation22_spill]] }
  0xd0   : > { %722 = vmatpush1.bf16.msra.mxu0 %v2828_v9 }
  0xd1   : > { %723 = vmatprep.subr.bf16.mxu0 %v2829_v10  ;;  %s3813_s18 = smov (!%p529_p0, %s2403_s18), 7 }
  0xd2   : > { %2586 = vmatpush3.bf16.msra.mxu1 %v2844_v18  ;;  %s2404_s16 = sshll.u32 %s3813_s18, 3 }
  0xd3   : > { %2587 = vmatprep.subr.bf16.mxu1 %v3168_v1 }
  0xd4   : > { %724 = vmatpush1.bf16.msra.mxu0 %v2831_v13 }
  0xd5   : > { %725 = vmatprep.subr.bf16.mxu0 %v2832_v14  ;;  %s532_s19 = scalar_lea.vmem %s3807_s20, %s2404_s16 }
  0xd6   : > { %2588 = vmatpush3.bf16.msra.mxu1 %v2845_v21 }
  0xd7   : > { %2589 = vmatprep.subr.bf16.mxu1 %v3168_v1 }
  0xd8   : > { %726 = vmatpush1.bf16.msra.mxu0 %v2834_v16 }
  0xd9   : > { %727 = vmatprep.subr.bf16.mxu0 %v2835_v17 }
  0xda   : > { %2590 = vmatpush3.bf16.msra.mxu1 %v2846_v25 }
  0xdb   : > { %2591 = vmatprep.subr.bf16.mxu1 %v3168_v1 }
  0xdc   : > { %728 = vmatpush1.bf16.msra.mxu0 %v2837_v19 }
  0xdd   : > { %729 = vmatprep.subr.bf16.mxu0 %v2838_v20 }
  0xde   : > { %2592 = vmatpush3.bf16.msra.mxu1 %v2847_v27 }
  0xdf   : > { %2593 = vmatprep.subr.bf16.mxu1 %v3168_v1 }
  0xe0   : > { %730 = vmatpush1.bf16.msra.mxu0 %v2840_v22 }
  0xe1   : > { %2623 = vmatprep.subr.bf16.mxu0 %v3168_v1 }
  0xe2   : > { %2594 = vmatpush3.bf16.msra.mxu1 %v2848_v28 }
  0xe3   : > { %748 = vmatmul.mubr.bf16.vlgmr.msra.gmra.mrb[0].mxu0 %v537_v26  ;;  %2599 = vmatprep.subr.bf16.mxu1 %v3168_v1 }
  0xe4   : > { %2625 = vmatprep.mubr.msk.bf16.mxu0 %vm3169_vm0, %v3168_v1 }
  0xe5   : > { %2596 = vmatmul.mubr.bf16.vlgmr.msra.gmra.mrb[0].mxu1 %v537_v26 }
  0xe6   : > { %2601 = vmatprep.mubr.msk.bf16.mxu1 %vm3169_vm0, %v3168_v1 }
 0x1b6   : > { %v749_v35 = vpop.f32.mrb[0].mxu0 }
 0x1b7   : > { %v751_v36 = vpop.f32.mrb[1].mxu0  ;;  %v750_v44 = vadd.f32 %v749_v35, %v575_v40 }
 0x1b8   : > { %v752_v37 = vadd.f32 %v751_v36, %v579_v33  ;;  %v753_v38 = vpop.f32.mrb[2].mxu0  ;;  %v792_v52 = vpop.f32.mrb[0].mxu1 }
 0x1b9   : > { %v755_v39 = vpop.f32.mrb[3].mxu0  ;;  %v3532_v46 = vpack.c.bf16 %v750_v44, %v750_v44  ;;  %v754_v48 = vadd.f32 %v753_v38, %v575_v40  ;;  %v793_v53 = vadd.f32 %v792_v52, %v583_v51  ;;  %v2597_v54 = vpop.f32.mrb[1].mxu1 }
 0x1ba   : > { %v3525_v41 = vpack.c.bf16 %v752_v37, %v752_v37  ;;  %v756_v42 = vadd.f32 %v755_v39, %v579_v33  ;;  %v795_v55 = vpop.f32.mrb[2].mxu1 }
 0x1bb   : > { %v3541_v49 = vpack.c.bf16 %v754_v48, %v754_v48  ;;  %v3548_v56 = vpack.c.bf16 %v793_v53, %v793_v53  ;;  %v796_v57 = vadd.f32 %v795_v55, %v583_v51  ;;  %v2598_v58 = vpop.f32.mrb[3].mxu1 }
 0x1bc   : > { %v822_v43 = vsel %vm817_vm1, %v3525_v41, 0  ;;  %v3530_v45 = vpack.c.bf16 %v756_v42, %v756_v42 }
 0x1bd   : > { %2600 = vmatpush3.bf16.xpose.msra.mxu1 %v822_v43  ;;  %v940_v59 = vsel %vm938_vm2, %v3548_v56, 0  ;;  %v3567_v22 = vpack.c.bf16 %v796_v57, %v796_v57 }
 0x1be   : > { %2605 = vmatprep.subr.bf16.mxu1 %v3168_v1  ;;  %v868_v47 = vsel %vm817_vm1, %v3530_v45, 0 }
 0x1bf   : > { %v986_v27 = vsel %vm938_vm2, %v3567_v22, 0 }
 0x1c4   : > { %2602 = vmatmul.mubr.msk.bf16.vlgmr.msra.gmra.mrb[4].mxu1 %vm817_vm1, %v3532_v46 }
 0x1c5   : > { %2606 = vmatpush3.bf16.xpose.msra.mxu1 %v868_v47  ;;  %2607 = vmatprep.mubr.msk.bf16.mxu1 %vm3169_vm0, %v3168_v1 }
 0x1c6   : > { %2611 = vmatprep.subr.bf16.mxu1 %v3168_v1 }
 0x1cc   : > { %2608 = vmatmul.mubr.msk.bf16.vlgmr.msra.gmra.mrb[8].mxu1 %vm817_vm1, %v3541_v49 }
 0x1cd   : > { %2613 = vmatprep.mubr.msk.bf16.mxu1 %vm3169_vm0, %v3168_v1  ;;  %2612 = vmatpush3.bf16.msra.mxu1 %v940_v59 }
 0x1ce   : > { %2617 = vmatprep.subr.bf16.mxu1 %v3168_v1 }
 0x297   : > { %v858_v60 = vpop.f32.mrb[4].mxu1 }
 0x298   : > { %v2603_v61 = vpop.f32.mrb[5].mxu1  ;;  %v911_v62 = vsel %vm910_vm3, %v858_v60, -inf }
 0x299   : > { %912 = vmax.xlane.f32.xlu0 %v911_v62  ;;  %v861_v63 = vpop.f32.mrb[6].mxu1 }
 0x29a   : > { %v2604_v2 = vpop.f32.mrb[7].mxu1 }
 0x29f   : > { %v904_v3 = vpop.f32.mrb[8].mxu1 }
 0x2a0   : > { %v2609_v4 = vpop.f32.mrb[9].mxu1  ;;  %v914_v5 = vsel %vm910_vm3, %v904_v3, -inf }
 0x2a1   : > { %915 = vmax.xlane.f32.xlu0 %v914_v5  ;;  %v907_v6 = vpop.f32.mrb[10].mxu1 }
 0x2a2   : > { %v2610_v7 = vpop.f32.mrb[11].mxu1 }
 0x2b7   : > { %1032 = vrot.lane.b32.xlu0 %v3525_v41, %s3170_s8 }
 0x326   : > { %v913_v8 = vpop.xlane.xlu0 %912 }
 0x327   : > { %v917_v9 = vsub.f32 %v858_v60, %v913_v8 }
 0x329   : > { %v919_v10 = vmul.f32 1.442695, %v917_v9 }
 0x32b   : > { %2897 = vpow2.f32 %v919_v10 }
 0x32e   : > { %v916_v11 = vpop.xlane.xlu0 %915 }
 0x32f   : > { %v918_v16 = vsub.f32 %v904_v3, %v916_v11 }
 0x331   : > { %v921_v17 = vmul.f32 1.442695, %v918_v16 }
 0x332   : > { %v1033_v12 = vpop.permute.xlu0 %1032 }
 0x333   : > { %v1038_v13 = vsel %vm817_vm1, %v1033_v12, 0  ;;  %2899 = vpow2.f32 %v921_v17 }
 0x334   : > { %2624 = vmatpush3.bf16.xpose.msra.mxu0 %v1038_v13 }
 0x335   : > { %v2898_v14 = vpop.eup %2897  ;;  %2635 = vmatprep.subr.bf16.mxu0 %v3168_v1 }
 0x336   : > { %v923_v15 = vsel %vm910_vm3, %v2898_v14, 0.0 }
 0x337   : > { %924 = vadd.xlane.f32.xlu1 %v923_v15 }
 0x33d   : > { %v2900_v18 = vpop.eup %2899 }
 0x33e   : > { %v926_v19 = vsel %vm910_vm3, %v2900_v18, 0.0 }
 0x348   : > { %1082 = vrot.lane.b32.xlu1 %v3530_v45, %s3170_s8 }
 0x36c   : > { %927 = vadd.xlane.f32.xlu1 %v926_v19 }
 0x37d   : > { %1030 = vrot.lane.b32.xlu1 %v3532_v46, %s3170_s8 }
 0x381   : > { %1080 = vrot.lane.b32.xlu1 %v3541_v49, %s3170_s8 }
 0x3c4   : > { %v925_v20 = vpop.xlane.xlu1 %924 }
 0x3c5   : > { %2901 = vrcp.f32 %v925_v20 }
 0x3c8   : > { %v1083_v28 = vpop.permute.xlu1 %1082 }
 0x3c9   : > { %v1088_v37 = vsel %vm817_vm1, %v1083_v28, 0 }
 0x3cf   : > { %v2902_v21 = vpop.eup %2901 }
 0x3d0   : > { %v931_v25 = vmul.f32 %v2902_v21, %v2898_v14 }
 0x3d2   : > { %v933_v26 = vpack.c.bf16 %v931_v25, %v931_v25 }
 0x3d4   : > { %2614 = vmatmul.mubr.msk.bf16.vlgmr.msra.gmra.mrb[12].mxu1 %vm910_vm3, %v933_v26 }
 0x3d5   : > { %2618 = vmatpush3.bf16.msra.mxu1 %v986_v27  ;;  %2619 = vmatprep.mubr.msk.bf16.mxu1 %vm3169_vm0, %v3168_v1 }
 0x3d6   : > { %2629 = vmatprep.subr.bf16.mxu1 %v3168_v1 }
 0x3f9   : > { %v928_v29 = vpop.xlane.xlu1 %927 }
 0x3fa   : > { %2903 = vrcp.f32 %v928_v29 }
 0x3fd   : > { %v1031_v32 = vpop.permute.xlu1 %1030 }
 0x3fe   : > { %2626 = vmatmul.mubr.msk.bf16.vlgmr.msra.gmra.mrb[4].mxu0 %vm817_vm1, %v1031_v32 }
 0x3ff   : > { %2637 = vmatprep.mubr.msk.bf16.mxu0 %vm3169_vm0, %v3168_v1 }
 0x401   : > { %v1081_v38 = vpop.permute.xlu1 %1080 }
 0x404   : > { %v2904_v33 = vpop.eup %2903 }
 0x405   : > { %v932_v35 = vmul.f32 %v2904_v33, %v2900_v18 }
 0x407   : > { %v934_v36 = vpack.c.bf16 %v932_v35, %v932_v35 }
 0x409   : > { %2620 = vmatmul.mubr.msk.bf16.vlgmr.msra.gmra.mrb[16].mxu1 %vm910_vm3, %v934_v36 }
 0x40a   : > { %2630 = vmatpush3.bf16.xpose.msra.mxu1 %v1088_v37  ;;  %2631 = vmatprep.mubr.msk.bf16.mxu1 %vm3169_vm0, %v3168_v1 }
 0x40b   : > { %2641 = vmatprep.subr.bf16.mxu1 %v3168_v1 }
 0x411   : > { %2632 = vmatmul.mubr.msk.bf16.vlgmr.msra.gmra.mrb[20].mxu1 %vm817_vm1, %v1081_v38 }
 0x412   : > { %2643 = vmatprep.mubr.msk.bf16.mxu1 %vm3169_vm0, %v3168_v1 }
 0x4a7   : > { %v3586_v39 = vpop.f32.mrb[12].mxu1 }
 0x4a8   : > { %v2615_v40 = vpop.f32.mrb[13].mxu1 }
 0x4a9   : > { %v979_v42 = vpop.f32.mrb[14].mxu1 }
 0x4aa   : > { %v2616_v43 = vpop.f32.mrb[15].mxu1 }
 0x4d1   : > { %v1074_v44 = vpop.f32.mrb[4].mxu0 }
 0x4d2   : > { %v2627_v47 = vpop.f32.mrb[5].mxu0  ;;  %v1130_v48 = vsel %vm910_vm3, %v1074_v44, -inf }
 0x4d3   : > { %1131 = vmax.xlane.f32.xlu0 %v1130_v48  ;;  %v1077_v50 = vpop.f32.mrb[6].mxu0 }
 0x4d4   : > { %v2628_v51 = vpop.f32.mrb[7].mxu0 }
 0x4dc   : > { %v3589_v52 = vpop.f32.mrb[16].mxu1 }
 0x4dd   : > { %v2621_v53 = vpop.f32.mrb[17].mxu1 }
 0x4de   : > { %v1025_v54 = vpop.f32.mrb[18].mxu1 }
 0x4df   : > { %v2622_v55 = vpop.f32.mrb[19].mxu1 }
 0x4e4   : > { %v1124_v57 = vpop.f32.mrb[20].mxu1 }
 0x4e5   : > { %v2633_v58 = vpop.f32.mrb[21].mxu1  ;;  %v1133_v59 = vsel %vm910_vm3, %v1124_v57, -inf }
 0x4e6   : > { %1134 = vmax.xlane.f32.xlu1 %v1133_v59  ;;  %v1127_v60 = vpop.f32.mrb[22].mxu1 }
 0x4e7   : > { %v2634_v61 = vpop.f32.mrb[23].mxu1 }
 0x4f7   : > { %1202 = vrot.lane.b32.xlu1 %v3567_v22, %s3170_s8 }
 0x4fb   : > { %1254 = vrot.lane.b32.xlu1 %v3525_v41, %s3171_s22 }
 0x4ff   : > { %1304 = vrot.lane.b32.xlu1 %v3530_v45, %s3171_s22 }
 0x503   : > { %1302 = vrot.lane.b32.xlu1 %v3541_v49, %s3171_s22 }
 0x560   : > { %v1132_v62 = vpop.xlane.xlu0 %1131 }
 0x561   : > { %v1136_v63 = vsub.f32 %v1074_v44, %v1132_v62 }
 0x563   : > { %v1138_v2 = vmul.f32 1.442695, %v1136_v63 }
 0x565   : > { %2905 = vpow2.f32 %v1138_v2 }
 0x56f   : > { %v2906_v3 = vpop.eup %2905 }
 0x570   : > { %v1142_v4 = vsel %vm910_vm3, %v2906_v3, 0.0 }
 0x571   : > { %1143 = vadd.xlane.f32.xlu0 %v1142_v4 }
 0x573   : > { %v1135_v5 = vpop.xlane.xlu1 %1134 }
 0x574   : > { %v1137_v6 = vsub.f32 %v1124_v57, %v1135_v5 }
 0x576   : > { %v1140_v7 = vmul.f32 1.442695, %v1137_v6 }
 0x577   : > { %v1203_v8 = vpop.permute.xlu1 %1202 }
 0x578   : > { %2907 = vpow2.f32 %v1140_v7  ;;  %v1208_v9 = vsel %vm938_vm2, %v1203_v8, 0 }
 0x579   : > { %2642 = vmatpush3.bf16.msra.mxu1 %v1208_v9 }
 0x57a   : > { %2653 = vmatprep.subr.bf16.mxu1 %v3168_v1 }
 0x57b   : > { %v1255_v18 = vpop.permute.xlu1 %1254 }
 0x57c   : > { %v1260_v26 = vsel %vm817_vm1, %v1255_v18, 0 }
 0x57f   : > { %v1305_v25 = vpop.permute.xlu1 %1304 }
 0x580   : > { %v1310_v28 = vsel %vm817_vm1, %v1305_v25, 0 }
 0x582   : > { %v2908_v10 = vpop.eup %2907 }
 0x583   : > { %v1145_v11 = vsel %vm910_vm3, %v2908_v10, 0.0  ;;  %v1303_v32 = vpop.permute.xlu1 %1302 }
 0x584   : > { %1146 = vadd.xlane.f32.xlu0 %v1145_v11 }
 0x59a   : > { %1154 = vrot.lane.b32.xlu0 %v3548_v56, %s3170_s8 }
 0x59e   : > { %1252 = vrot.lane.b32.xlu0 %v3532_v46, %s3171_s22 }
 0x5fe   : > { %v1144_v12 = vpop.xlane.xlu0 %1143 }
 0x5ff   : > { %2909 = vrcp.f32 %v1144_v12 }
 0x609   : > { %v2910_v13 = vpop.eup %2909 }
 0x60a   : > { %v1150_v15 = vmul.f32 %v2910_v13, %v2906_v3 }
 0x60c   : > { %v1152_v19 = vpack.c.bf16 %v1150_v15, %v1150_v15 }
 0x611   : > { %v1147_v14 = vpop.xlane.xlu0 %1146 }
 0x612   : > { %2911 = vrcp.f32 %v1147_v14 }
 0x615   : > { %v1155_v16 = vpop.permute.xlu0 %1154 }
 0x616   : > { %v1160_v17 = vsel %vm938_vm2, %v1155_v16, 0 }
 0x617   : > { %2636 = vmatpush3.bf16.msra.mxu0 %v1160_v17 }
 0x618   : > { %2647 = vmatprep.subr.bf16.mxu0 %v3168_v1 }
 0x619   : > { %v1253_v29 = vpop.permute.xlu0 %1252 }
 0x61a   : > { %2638 = vmatmul.mubr.msk.bf16.vlgmr.msra.gmra.mrb[8].mxu0 %vm910_vm3, %v1152_v19 }
 0x61b   : > { %2649 = vmatprep.mubr.msk.bf16.mxu0 %vm3169_vm0, %v3168_v1 }
 0x61c   : > { %v2912_v20 = vpop.eup %2911 }
 0x61d   : > { %v1151_v21 = vmul.f32 %v2912_v20, %v2908_v10 }
 0x61f   : > { %v1153_v27 = vpack.c.bf16 %v1151_v21, %v1151_v21 }
 0x620   : > { %2648 = vmatpush3.bf16.xpose.msra.mxu0 %v1260_v26 }
 0x621   : > { %2644 = vmatmul.mubr.msk.bf16.vlgmr.msra.gmra.mrb[24].mxu1 %vm910_vm3, %v1153_v27  ;;  %2659 = vmatprep.subr.bf16.mxu0 %v3168_v1 }
 0x622   : > { %2654 = vmatpush3.bf16.xpose.msra.mxu1 %v1310_v28  ;;  %2655 = vmatprep.mubr.msk.bf16.mxu1 %vm3169_vm0, %v3168_v1 }
 0x623   : > { %2665 = vmatprep.subr.bf16.mxu1 %v3168_v1 }
 0x627   : > { %2650 = vmatmul.mubr.msk.bf16.vlgmr.msra.gmra.mrb[12].mxu0 %vm817_vm1, %v1253_v29 }
 0x628   : > { %2661 = vmatprep.mubr.msk.bf16.mxu0 %vm3169_vm0, %v3168_v1 }
 0x629   : > { %2656 = vmatmul.mubr.msk.bf16.vlgmr.msra.gmra.mrb[28].mxu1 %vm817_vm1, %v1303_v32 }
 0x62a   : > { %2667 = vmatprep.mubr.msk.bf16.mxu1 %vm3169_vm0, %v3168_v1 }
 0x6ed   : > { %v3626_v33 = vpop.f32.mrb[8].mxu0 }
 0x6ee   : > { %v2639_v35 = vpop.f32.mrb[9].mxu0 }
 0x6ef   : > { %v1199_v36 = vpop.f32.mrb[10].mxu0 }
 0x6f0   : > { %v2640_v37 = vpop.f32.mrb[11].mxu0 }
 0x6f4   : > { %v3628_v38 = vpop.f32.mrb[24].mxu1 }
 0x6f5   : > { %v2645_v40 = vpop.f32.mrb[25].mxu1 }
 0x6f6   : > { %v1247_v42 = vpop.f32.mrb[26].mxu1 }
 0x6f7   : > { %v2646_v43 = vpop.f32.mrb[27].mxu1 }
 0x6fa   : > { %v1296_v44 = vpop.f32.mrb[12].mxu0 }
 0x6fb   : > { %v2651_v47 = vpop.f32.mrb[13].mxu0  ;;  %v1352_v48 = vsel %vm910_vm3, %v1296_v44, -inf }
 0x6fc   : > { %1353 = vmax.xlane.f32.xlu0 %v1352_v48  ;;  %v1299_v50 = vpop.f32.mrb[14].mxu0  ;;  %v1346_v51 = vpop.f32.mrb[28].mxu1 }
 0x6fd   : > { %v2652_v53 = vpop.f32.mrb[15].mxu0  ;;  %v2657_v54 = vpop.f32.mrb[29].mxu1  ;;  %v1355_v55 = vsel %vm910_vm3, %v1346_v51, -inf }
 0x6fe   : > { %1356 = vmax.xlane.f32.xlu1 %v1355_v55  ;;  %v1349_v57 = vpop.f32.mrb[30].mxu1  ;;  %v1250_v53 = vpack.c.bf16 %v3626_v33, %v3626_v33  ;;  %v1251_v54 = vpack.c.bf16 %v3628_v38, %v3628_v38 }
 0x6ff   : > { %v2658_v58 = vpop.f32.mrb[31].mxu1 }
 0x70f   : > { %1424 = vrot.lane.b32.xlu1 %v3567_v22, %s3171_s22 }
 0x713   : > { %1476 = vrot.lane.b32.xlu1 %v3525_v41, %s3172_s13 }
 0x717   : > { %1526 = vrot.lane.b32.xlu1 %v3530_v45, %s3172_s13 }
 0x71b   : > { %1524 = vrot.lane.b32.xlu1 %v3541_v49, %s3172_s13 }
 0x789   : > { %v1354_v59 = vpop.xlane.xlu0 %1353 }
 0x78a   : > { %v1358_v60 = vsub.f32 %v1296_v44, %v1354_v59 }
 0x78b   : > { %v1357_v61 = vpop.xlane.xlu1 %1356 }
 0x78c   : > { %v1360_v62 = vmul.f32 1.442695, %v1358_v60  ;;  %v1359_v63 = vsub.f32 %v1346_v51, %v1357_v61 }
 0x78e   : > { %2913 = vpow2.f32 %v1360_v62  ;;  %v1362_v2 = vmul.f32 1.442695, %v1359_v63 }
 0x78f   : > { %v1425_v3 = vpop.permute.xlu1 %1424 }
 0x790   : > { %2915 = vpow2.f32 %v1362_v2  ;;  %v1430_v4 = vsel %vm938_vm2, %v1425_v3, 0 }
 0x791   : > { %2666 = vmatpush3.bf16.msra.mxu1 %v1430_v4 }
 0x792   : > { %2677 = vmatprep.subr.bf16.mxu1 %v3168_v1 }
 0x793   : > { %v1477_v11 = vpop.permute.xlu1 %1476 }
 0x797   : > { %v1527_v16 = vpop.permute.xlu1 %1526 }
 0x798   : > { %v2914_v41 = vpop.eup %2913  ;;  %v1532_v18 = vsel %vm817_vm1, %v1527_v16, 0  ;;  %v2854_v16 = vld [vmem:[#allocation6 + $0x28] sm:$0xff]  }
 0x799   : > { %v1364_v45 = vsel %vm910_vm3, %v2914_v41, 0.0 }
 0x79a   : > { %v2916_v5 = vpop.eup %2915  ;;  %1365 = vadd.xlane.f32.xlu0 %v1364_v45 }
 0x79b   : > { %v1367_v49 = vsel %vm910_vm3, %v2916_v5, 0.0  ;;  %v1525_v20 = vpop.permute.xlu1 %1524 }
 0x79e   : > { %1368 = vadd.xlane.f32.xlu0 %v1367_v49 }
 0x7b4   : > { %1376 = vrot.lane.b32.xlu0 %v3548_v56, %s3171_s22 }
 0x7b8   : > { %1474 = vrot.lane.b32.xlu0 %v3532_v46, %s3172_s13  ;;  %v1482_v46 = vsel %vm817_vm1, %v1477_v11, 0  ;;  %v2849_v11 = vld [vmem:[#allocation6] sm:$0xff]  }
 0x827   : > { %v1366_v6 = vpop.xlane.xlu0 %1365 }
 0x828   : > { %2917 = vrcp.f32 %v1366_v6 }
 0x82b   : > { %v1369_v7 = vpop.xlane.xlu0 %1368 }
 0x82c   : > { %2919 = vrcp.f32 %v1369_v7 }
 0x82f   : > { %v1377_v8 = vpop.permute.xlu0 %1376 }
 0x830   : > { %v1382_v9 = vsel %vm938_vm2, %v1377_v8, 0 }
 0x831   : > { %2660 = vmatpush3.bf16.msra.mxu0 %v1382_v9 }
 0x832   : > { %v2918_v10 = vpop.eup %2917  ;;  %2671 = vmatprep.subr.bf16.mxu0 %v3168_v1 }
 0x833   : > { %v1372_v12 = vmul.f32 %v2918_v10, %v2914_v41  ;;  %v1475_v19 = vpop.permute.xlu0 %1474 }
 0x835   : > { %v1374_v13 = vpack.c.bf16 %v1372_v12, %v1372_v12  ;;  %v2850_v12 = vld [vmem:[#allocation6 + $0x8] sm:$0xff]  }
 0x836   : > { %v2920_v14 = vpop.eup %2919 }
 0x837   : > { %v1373_v15 = vmul.f32 %v2920_v14, %v2916_v5  ;;  %2662 = vmatmul.mubr.msk.bf16.vlgmr.msra.gmra.mrb[16].mxu0 %vm910_vm3, %v1374_v13  ;;  %v2851_v13 = vld [vmem:[#allocation6 + $0x10] sm:$0xff]   ;;  %v2852_v14 = vld [vmem:[#allocation6 + $0x18] sm:$0xff]  }
 0x838   : > { %2673 = vmatprep.mubr.msk.bf16.mxu0 %vm3169_vm0, %v3168_v1 }
 0x839   : > { %v1375_v17 = vpack.c.bf16 %v1373_v15, %v1373_v15  ;;  %v2853_v15 = vld [vmem:[#allocation6 + $0x20] sm:$0xff]  }
 0x83a   : > { %2672 = vmatpush3.bf16.xpose.msra.mxu0 %v1482_v46  ;;  %v2856_v46 = vld [vmem:[#allocation6 + $0x38] sm:$0xff]  }
 0x83b   : > { %2668 = vmatmul.mubr.msk.bf16.vlgmr.msra.gmra.mrb[32].mxu1 %vm910_vm3, %v1375_v17  ;;  %2683 = vmatprep.subr.bf16.mxu0 %v3168_v1 }
 0x83c   : > { %2678 = vmatpush3.bf16.xpose.msra.mxu1 %v1532_v18  ;;  %2679 = vmatprep.mubr.msk.bf16.mxu1 %vm3169_vm0, %v3168_v1 }
 0x83d   : > { %2689 = vmatprep.subr.bf16.mxu1 %v3168_v1 }
 0x841   : > { %2674 = vmatmul.mubr.msk.bf16.vlgmr.msra.gmra.mrb[20].mxu0 %vm817_vm1, %v1475_v19 }
 0x842   : > { %2685 = vmatprep.mubr.msk.bf16.mxu0 %vm3169_vm0, %v3168_v1 }
 0x843   : > { %2680 = vmatmul.mubr.msk.bf16.vlgmr.msra.gmra.mrb[36].mxu1 %vm817_vm1, %v1525_v20 }
 0x844   : > { %2691 = vmatprep.mubr.msk.bf16.mxu1 %vm3169_vm0, %v3168_v1 }
 0x90a   : > { %v1418_v21 = vpop.f32.mrb[16].mxu0 }
 0x90b   : > { %v2663_v25 = vpop.f32.mrb[17].mxu0  ;;  %v1472_v4 = vpack.c.bf16 %v1418_v21, %v1418_v21 }
 0x90c   : > { %v1421_v26 = vpop.f32.mrb[18].mxu0 }
 0x90d   : > { %v2664_v27 = vpop.f32.mrb[19].mxu0 }
 0x90e   : > { %v1466_v28 = vpop.f32.mrb[32].mxu1 }
 0x90f   : > { %v2669_v29 = vpop.f32.mrb[33].mxu1  ;;  %v1473_v55 = vpack.c.bf16 %v1466_v28, %v1466_v28 }
 0x910   : > { %v1469_v32 = vpop.f32.mrb[34].mxu1 }
 0x911   : > { %v2670_v35 = vpop.f32.mrb[35].mxu1 }
 0x914   : > { %v1518_v36 = vpop.f32.mrb[20].mxu0 }
 0x915   : > { %v2675_v37 = vpop.f32.mrb[21].mxu0  ;;  %v1574_v40 = vsel %vm910_vm3, %v1518_v36, -inf }
 0x916   : > { %1575 = vmax.xlane.f32.xlu0 %v1574_v40  ;;  %v1521_v42 = vpop.f32.mrb[22].mxu0  ;;  %v1568_v43 = vpop.f32.mrb[36].mxu1  ;;  %v1028_v37 = vpack.c.bf16 %v3586_v39, %v3586_v39  ;;  %v1029_v40 = vpack.c.bf16 %v3589_v52, %v3589_v52  ;;  %v2451_v39 = vld [vmem:[%s3766_s4] ss:$0 sm:$0xff] }
 0x917   : > { %v2676_v44 = vpop.f32.mrb[23].mxu0  ;;  %v2681_v47 = vpop.f32.mrb[37].mxu1  ;;  %v1577_v48 = vsel %vm910_vm3, %v1568_v43, -inf }
 0x918   : > { %1578 = vmax.xlane.f32.xlu1 %v1577_v48  ;;  %v1571_v50 = vpop.f32.mrb[38].mxu1 }
 0x919   : > { %v2682_v51 = vpop.f32.mrb[39].mxu1 }
 0x929   : > { %1646 = vrot.lane.b32.xlu1 %v3567_v22, %s3172_s13 }
 0x92d   : > { %1698 = vrot.lane.b32.xlu1 %v1250_v53, %s3172_s13 }
 0x931   : > { %1700 = vrot.lane.b32.xlu1 %v1251_v54, %s3172_s13 }
 0x935   : > { %1706 = vrot.lane.b32.xlu1 %v1473_v55, %s3171_s22 }
 0x9a3   : > { %v1576_v57 = vpop.xlane.xlu0 %1575 }
 0x9a4   : > { %v1580_v58 = vsub.f32 %v1518_v36, %v1576_v57 }
 0x9a5   : > { %v1579_v59 = vpop.xlane.xlu1 %1578 }
 0x9a6   : > { %v1582_v60 = vmul.f32 1.442695, %v1580_v58  ;;  %v1581_v61 = vsub.f32 %v1568_v43, %v1579_v59 }
 0x9a8   : > { %2921 = vpow2.f32 %v1582_v60  ;;  %v1584_v22 = vmul.f32 1.442695, %v1581_v61 }
 0x9a9   : > { %v1647_v62 = vpop.permute.xlu1 %1646 }
 0x9aa   : > { %2923 = vpow2.f32 %v1584_v22  ;;  %v1652_v33 = vsel %vm938_vm2, %v1647_v62, 0  ;;  %v2857_v62 = vld [vmem:[#allocation7] ss:$8 sps:$4 sm:$0xff]  }
 0x9ab   : > { %2690 = vmatpush3.bf16.msra.mxu1 %v1652_v33  ;;  %v2859_v33 = vld [vmem:[#allocation7 + $0x4] ss:$8 sps:$4 sm:$0xff]  }
 0x9ac   : > { %2000 = vmatprep.subr.bf16.mxu1 %v2859_v33 }
 0x9ad   : > { %v1699_v32 = vpop.permute.xlu1 %1698 }
 0x9ae   : > { %v1716_v43 = vsel %vm817_vm1, %v1028_v37, %v1699_v32 }
 0x9b1   : > { %v1701_v35 = vpop.permute.xlu1 %1700 }
 0x9b2   : > { %v2922_v63 = vpop.eup %2921  ;;  %v1719_v44 = vsel %vm817_vm1, %v1029_v40, %v1701_v35 }
 0x9b3   : > { %v1586_v38 = vsel %vm910_vm3, %v2922_v63, 0.0 }
 0x9b4   : > { %v2924_v2 = vpop.eup %2923  ;;  %1587 = vadd.xlane.f32.xlu0 %v1586_v38  ;;  %v2860_v38 = vld [vmem:[#allocation7 + $0x10] ss:$8 sps:$4 sm:$0xff]  }
 0x9b5   : > { %v1589_v3 = vsel %vm910_vm3, %v2924_v2, 0.0 }
 0x9b8   : > { %1590 = vadd.xlane.f32.xlu0 %v1589_v3 }
 0x9ce   : > { %1598 = vrot.lane.b32.xlu0 %v3548_v56, %s3172_s13  ;;  %s3806_s13 = sld [smem:[#allocation21_spill]] }
 0x9d2   : > { %1704 = vrot.lane.b32.xlu0 %v1472_v4, %s3171_s22 }
 0xa41   : > { %v1588_v41 = vpop.xlane.xlu0 %1587 }
 0xa42   : > { %2925 = vrcp.f32 %v1588_v41 }
 0xa45   : > { %v1591_v45 = vpop.xlane.xlu0 %1590 }
 0xa46   : > { %2927 = vrcp.f32 %v1591_v45 }
 0xa49   : > { %v1599_v5 = vpop.permute.xlu0 %1598 }
 0xa4a   : > { %v1604_v49 = vsel %vm938_vm2, %v1599_v5, 0 }
 0xa4b   : > { %2684 = vmatpush3.bf16.msra.mxu0 %v1604_v49  ;;  %v2865_v49 = vld [vmem:[#allocation7 + $0x24] ss:$8 sps:$4 sm:$0xff]  }
 0xa4c   : > { %v2926_v6 = vpop.eup %2925  ;;  %2695 = vmatprep.subr.bf16.mxu0 %v3168_v1 }
 0xa4d   : > { %v1594_v7 = vmul.f32 %v2926_v6, %v2922_v63  ;;  %v1705_v36 = vpop.permute.xlu0 %1704  ;;  %v2862_v63 = vld [vmem:[#allocation7 + $0x14] ss:$8 sps:$4 sm:$0xff]   ;;  %v2863_v6 = vld [vmem:[#allocation7 + $0x20] ss:$8 sps:$4 sm:$0xff]  }
 0xa4e   : > { %v1722_v48 = vsel %vm1720_vm4, %v1716_v43, %v1705_v36 }
 0xa4f   : > { %v1596_v8 = vpack.c.bf16 %v1594_v7, %v1594_v7  ;;  %v2868_v7 = vld [vmem:[#allocation7 + $0x34] ss:$8 sps:$4 sm:$0xff]  }
 0xa50   : > { %v2928_v9 = vpop.eup %2927 }
 0xa51   : > { %v1595_v10 = vmul.f32 %v2928_v9, %v2924_v2  ;;  %2686 = vmatmul.mubr.msk.bf16.vlgmr.msra.gmra.mrb[24].mxu0 %vm910_vm3, %v1596_v8  ;;  %v2866_v8 = vld [vmem:[#allocation7 + $0x30] ss:$8 sps:$4 sm:$0xff]   ;;  %v2871_v9 = vld [vmem:[#allocation7 + $0x44] ss:$8 sps:$4 sm:$0xff]  }
 0xa52   : > { %2711 = vmatprep.mubr.msk.bf16.mxu0 %vm3169_vm0, %v3168_v1  ;;  %2696 = vmatpush3.bf16.msra.mxu0 %v2849_v11  ;;  %v2872_v11 = vld [vmem:[#allocation7 + $0x50] ss:$8 sps:$4 sm:$0xff]  }
 0xa53   : > { %v1597_v56 = vpack.c.bf16 %v1595_v10, %v1595_v10  ;;  %2697 = vmatprep.subr.bf16.mxu0 %v3168_v1  ;;  %v2869_v10 = vld [vmem:[#allocation7 + $0x40] ss:$8 sps:$4 sm:$0xff]  }
 0xa55   : > { %2692 = vmatmul.mubr.msk.bf16.vlgmr.msra.gmra.mrb[40].mxu1 %vm910_vm3, %v1597_v56  ;;  %v2874_v56 = vld [vmem:[#allocation7 + $0x54] ss:$8 sps:$4 sm:$0xff]  }
 0xa56   : > { %2032 = vmatprep.mubr.bf16.mxu1 %v3167_v0  ;;  %2698 = vmatpush3.bf16.msra.mxu0 %v2850_v12  ;;  %v2855_v0 = vld [vmem:[#allocation6 + $0x30] sm:$0xff]   ;;  %v2877_v12 = vld [vmem:[#allocation7 + $0x64] ss:$8 sps:$4 sm:$0xff]  }
 0xa57   : > { %2699 = vmatprep.subr.bf16.mxu0 %v3168_v1  ;;  %2001 = vmatpush1.bf16.msra.mxu1 %v2857_v62 }
 0xa58   : > { %2002 = vmatprep.subr.bf16.mxu1 %v2862_v63 }
 0xa5a   : > { %2700 = vmatpush3.bf16.msra.mxu0 %v2851_v13  ;;  %v2875_v13 = vld [vmem:[#allocation7 + $0x60] ss:$8 sps:$4 sm:$0xff]  }
 0xa5b   : > { %2701 = vmatprep.subr.bf16.mxu0 %v3168_v1  ;;  %2003 = vmatpush1.bf16.msra.mxu1 %v2860_v38 }
 0xa5c   : > { %2004 = vmatprep.subr.bf16.mxu1 %v2865_v49 }
 0xa5e   : > { %2702 = vmatpush3.bf16.msra.mxu0 %v2852_v14  ;;  %v2880_v14 = vld [vmem:[#allocation7 + $0x74] ss:$8 sps:$4 sm:$0xff]  }
 0xa5f   : > { %2703 = vmatprep.subr.bf16.mxu0 %v3168_v1  ;;  %2005 = vmatpush1.bf16.msra.mxu1 %v2863_v6 }
 0xa60   : > { %2006 = vmatprep.subr.bf16.mxu1 %v2868_v7 }
 0xa62   : > { %2704 = vmatpush3.bf16.msra.mxu0 %v2853_v15  ;;  %v2878_v15 = vld [vmem:[#allocation7 + $0x70] ss:$8 sps:$4 sm:$0xff]  }
 0xa63   : > { %2705 = vmatprep.subr.bf16.mxu0 %v3168_v1  ;;  %2007 = vmatpush1.bf16.msra.mxu1 %v2866_v8  ;;  %v2479_v8 = vld [vmem:[#allocation10] ss:$0 sm:$0xff] }
 0xa64   : > { %2008 = vmatprep.subr.bf16.mxu1 %v2871_v9 }
 0xa66   : > { %2706 = vmatpush3.bf16.msra.mxu0 %v2854_v16  ;;  %v2881_v16 = vld [vmem:[#allocation9 + $0x40] sm:$0xff]  }
 0xa67   : > { %2707 = vmatprep.subr.bf16.mxu0 %v3168_v1  ;;  %2009 = vmatpush1.bf16.msra.mxu1 %v2869_v10 }
 0xa68   : > { %2010 = vmatprep.subr.bf16.mxu1 %v2874_v56 }
 0xa6a   : > { %2708 = vmatpush3.bf16.msra.mxu0 %v2855_v0  ;;  %v2882_v0 = vld [vmem:[#allocation9] sm:$0xff]  }
 0xa6b   : > { %2709 = vmatprep.subr.bf16.mxu0 %v3168_v1  ;;  %v1707_v1 = vpop.permute.xlu1 %1706  ;;  %2011 = vmatpush1.bf16.msra.mxu1 %v2872_v11 }
 0xa6c   : > { %v1724_v47 = vsel %vm1720_vm4, %v1719_v44, %v1707_v1  ;;  %2012 = vmatprep.subr.bf16.mxu1 %v2877_v12 }
 0xa6e   : > { %2710 = vmatpush3.bf16.msra.mxu0 %v2856_v46  ;;  %v2883_v46 = vld [vmem:[#allocation9 + $0x48] sm:$0xff]  }
 0xa6f   : > { %2013 = vmatpush1.bf16.msra.mxu1 %v2875_v13  ;;  %2557 = vmatprep.subr.bf16.mxu0 %v2881_v16 }
 0xa70   : > { %2014 = vmatprep.subr.bf16.mxu1 %v2880_v14 }
 0xa73   : > { %2015 = vmatpush1.bf16.msra.mxu1 %v2878_v15 }
 0xb24   : > { %v1640_v17 = vpop.f32.mrb[24].mxu0 }
 0xb25   : > { %v1694_v18 = vpack.c.bf16 %v1640_v17, %v1640_v17  ;;  %v2687_v19 = vpop.f32.mrb[25].mxu0  ;;  %v2884_v17 = vld [vmem:[#allocation9 + $0x8] sm:$0xff]  }
 0xb26   : > { %v1643_v20 = vpop.f32.mrb[26].mxu0  ;;  %v2886_v19 = vld [vmem:[#allocation9 + $0x10] sm:$0xff]  }
 0xb27   : > { %1710 = vrot.lane.b32.xlu0 %v1694_v18, %s3170_s8  ;;  %v2688_v21 = vpop.f32.mrb[27].mxu0  ;;  %v2885_v18 = vld [vmem:[#allocation9 + $0x50] sm:$0xff]   ;;  %v2887_v20 = vld [vmem:[#allocation9 + $0x58] sm:$0xff]  }
 0xb28   : > { %v1688_v25 = vpop.f32.mrb[40].mxu1  ;;  %v2888_v21 = vld [vmem:[#allocation9 + $0x18] sm:$0xff]  }
 0xb29   : > { %v1695_v26 = vpack.c.bf16 %v1688_v25, %v1688_v25  ;;  %v2693_v27 = vpop.f32.mrb[41].mxu1  ;;  %v2889_v25 = vld [vmem:[#allocation9 + $0x60] sm:$0xff]  }
 0xb2a   : > { %v1691_v28 = vpop.f32.mrb[42].mxu1  ;;  %v2891_v27 = vld [vmem:[#allocation9 + $0x68] sm:$0xff]  }
 0xb2b   : > { %1712 = vrot.lane.b32.xlu1 %v1695_v26, %s3170_s8  ;;  %v2694_v29 = vpop.f32.mrb[43].mxu1  ;;  %v2890_v26 = vld [vmem:[#allocation9 + $0x20] sm:$0xff]  }
 0xb99   : > { %v1711_v42 = vpop.permute.xlu0 %1710 }
 0xb9a   : > { %v1727_v51 = vsel %vm1725_vm5, %v1722_v48, %v1711_v42  ;;  %v2461_v42 = vld [vmem:[%s3767_s5] ss:$0 sm:$0xff] }
 0xb9b   : > { %v2462_v48 = vld [vmem:[%s3802_s1] ss:$0 sm:$0xff] }
 0xb9d   : > { %v1713_v50 = vpop.permute.xlu1 %1712 }
 0xb9e   : > { %v1729_v53 = vsel %vm1725_vm5, %v1724_v47, %v1713_v50 }
 0xb9f   : > { %v2452_v54 = vcombine.low %v1727_v51, %v1729_v53 }
 0xba1   : > { %2712 = vmatmul.mubr.bf16.vlgmr.msra.gmra.mrb[28].mxu0 %v2452_v54 }
 0xba2   : > { %2558 = vmatpush3.bf16.msra.mxu0 %v2882_v0 }
 0xba3   : > { %2559 = vmatprep.subr.bf16.mxu0 %v2883_v46 }
 0xba6   : > { %2560 = vmatpush3.bf16.msra.mxu0 %v2884_v17 }
 0xba7   : > { %2561 = vmatprep.subr.bf16.mxu0 %v2885_v18 }
 0xbaa   : > { %2562 = vmatpush3.bf16.msra.mxu0 %v2886_v19 }
 0xbab   : > { %2563 = vmatprep.subr.bf16.mxu0 %v2887_v20 }
 0xbae   : > { %2564 = vmatpush3.bf16.msra.mxu0 %v2888_v21 }
 0xbaf   : > { %2565 = vmatprep.subr.bf16.mxu0 %v2889_v25 }
 0xbb2   : > { %2566 = vmatpush3.bf16.msra.mxu0 %v2890_v26 }
 0xbb3   : > { %2567 = vmatprep.subr.bf16.mxu0 %v2891_v27 }
 0xc74   : > { %v1841_v55 = vpop.f32.mrb[28].mxu0 }
 0xc75   : > { %v1842_v52 = vadd.f32 %v2451_v39, %v1841_v55  ;;  %v2713_v57 = vpop.f32.mrb[29].mxu0  ;;  %v2893_v55 = vld [vmem:[#allocation9 + $0x70] sm:$0xff]  }
 0xc76   : > { %v1844_v58 = vpop.f32.mrb[30].mxu0  ;;  %v2895_v57 = vld [vmem:[#allocation9 + $0x78] sm:$0xff]  }
 0xc77   : > { %v3709_v59 = vadd.f32 %v1842_v52, %v3494_v23  ;;  %v1845_v60 = vadd.f32 %v2451_v39, %v1844_v58  ;;  %v2714_v61 = vpop.f32.mrb[31].mxu0  ;;  %v2892_v39 = vld [vmem:[#allocation9 + $0x28] sm:$0xff]   ;;  %v2894_v52 = vld [vmem:[#allocation9 + $0x30] sm:$0xff]   ;;  %v2896_v58 = vld [vmem:[#allocation9 + $0x38] sm:$0xff]  }
 0xc78   : > { %2568 = vmatpush3.bf16.msra.mxu0 %v2892_v39 }
 0xc79   : > { %v3712_v22 = vadd.f32 %v1845_v60, %v3498_v24  ;;  %1852 = vadd.xlane.f32.xlu0 %v3709_v59  ;;  %2569 = vmatprep.subr.bf16.mxu0 %v2893_v55  ;;  %v1908_v60 = vld [vmem:[%s3803_s25] sm:$0x3] }
 0xc7a   : > { %v1913_v61 = vrot.slane %v1908_v60, %v574_v34  ;;  %v1917_v62 = vrot.slane %v1908_v60, %v578_v31 }
 0xc7b   : > { %1854 = vadd.xlane.f32.xlu1 %v3712_v22 }
 0xc7c   : > { %2570 = vmatpush3.bf16.msra.mxu0 %v2894_v52 }
 0xc7d   : > { %2571 = vmatprep.subr.bf16.mxu0 %v2895_v57 }
 0xc80   : > { %2572 = vmatpush3.bf16.msra.mxu0 %v2896_v58 }
 0xd06   : > { %v1853_v2 = vpop.xlane.xlu0 %1852 }
 0xd07   : > { %v1857_v23 = vmul.f32 0.0078125, %v1853_v2 }
 0xd08   : > { %v1855_v3 = vpop.xlane.xlu1 %1854 }
 0xd09   : > { %v1859_v4 = vsub.f32 %v3709_v59, %v1857_v23  ;;  %v1858_v41 = vmul.f32 0.0078125, %v1855_v3 }
 0xd0b   : > { %v3718_v24 = vsub.f32 %v3712_v22, %v1858_v41  ;;  %v1861_v45 = vmul.f32 %v1859_v4, %v1859_v4 }
 0xd0d   : > { %1863 = vadd.xlane.f32.xlu0 %v1861_v45  ;;  %v1862_v5 = vmul.f32 %v3718_v24, %v3718_v24 }
 0xd11   : > { %1865 = vadd.xlane.f32.xlu0 %v1862_v5 }
 0xd9a   : > { %v1864_v28 = vpop.xlane.xlu0 %1863 }
 0xd9b   : > { %v1867_v29 = vmul.f32 0.0078125, %v1864_v28 }
 0xd9d   : > { %v1869_v32 = vadd.f32 1e-05, %v1867_v29  ;;  %v2496_v29 = vld [vmem:[%s3805_s15] ss:$0 sm:$0xff] }
 0xd9e   : > { %v1866_v35 = vpop.xlane.xlu0 %1865 }
 0xd9f   : > { %2929 = vrsqrt.f32 %v1869_v32  ;;  %v1868_v36 = vmul.f32 0.0078125, %v1866_v35 }
 0xda1   : > { %v1870_v1 = vadd.f32 1e-05, %v1868_v36  ;;  %v2497_v36 = vld [vmem:[%s3806_s13] ss:$0 sm:$0xff] }
 0xda3   : > { %2931 = vrsqrt.f32 %v1870_v1 }
 0xda9   : > { %v2930_v37 = vpop.eup %2929 }
 0xdaa   : > { %v1873_v40 = vmul.f32 %v2930_v37, %v1859_v4 }
 0xdac   : > { %v1881_v47 = vmul.f32 %v2461_v42, %v1873_v40 }
 0xdad   : > { %v2932_v43 = vpop.eup %2931 }
 0xdae   : > { %v1874_v44 = vmul.f32 %v2932_v43, %v3718_v24  ;;  %v1889_v51 = vadd.f32 %v2462_v48, %v1881_v47 }
 0xdb0   : > { %v1882_v50 = vmul.f32 %v2461_v42, %v1874_v44 }
 0xdb2   : > { %v1890_v53 = vadd.f32 %v2462_v48, %v1882_v50 }
 0xdb4   : > { %v1891_v54 = vpack.c.bf16 %v1890_v53, %v1889_v51 }
 0xdb6   : > { %2033 = vmatmul.mubr.bf16.vlgmr.msra.gmra.mrb[44].mxu1 %v1891_v54 }
 0xe89   : > { %v2034_v33 = vpop.f32.mrb[44].mxu1 }
 0xe8a   : > { %v2035_v63 = vadd.f32 %v2034_v33, %v1913_v61  ;;  %v2036_v38 = vpop.f32.mrb[45].mxu1 }
 0xe8b   : > { %v2037_v2 = vadd.f32 %v2036_v38, %v1917_v62  ;;  %v2038_v23 = vpop.f32.mrb[46].mxu1 }
 0xe8c   : > { %v2039_v3 = vadd.f32 %v2038_v23, %v1913_v61  ;;  %v2040_v4 = vpop.f32.mrb[47].mxu1  ;;  %v2043_v24 = vmax.f32 %v2035_v63, 0.0 }
 0xe8d   : > { %v2041_v41 = vadd.f32 %v2040_v4, %v1917_v62  ;;  %v2044_v5 = vmax.f32 %v2037_v2, 0.0 }
 0xe8e   : > { %v2045_v45 = vmax.f32 %v2039_v3, 0.0 }
 0xe8f   : > { %v2046_v49 = vmax.f32 %v2041_v41, 0.0 }
 0xe90   : > { %v2047_v6 = vpack.c.bf16 %v2045_v45, %v2043_v24 }
 0xe91   : > { %v2048_v7 = vpack.c.bf16 %v2046_v49, %v2044_v5 }
 0xe93   : > { %2216 = vmatprep.mubr.bf16.mxu0 %v2048_v7 }
 0xe94   : > { %2217 = vmatmul.mubr.bf16.vlgmr.msra.gmra.mrb[32].mxu0 %v2047_v6 }
 0xf67   : > { %v2573_v34 = vpop.f32.mrb[32].mxu0 }
 0xf68   : > { %v2574_v30 = vpop.f32.mrb[33].mxu0 }
 0xf69   : > { %v2575_v31 = vadd.f32 %v2574_v30, %v2573_v34  ;;  %v2576_v9 = vpop.f32.mrb[34].mxu0 }
 0xf6a   : > { %v2577_v10 = vpop.f32.mrb[35].mxu0 }
 0xf6b   : > { %v2219_v56 = vadd.f32 %v2575_v31, %v2479_v8  ;;  %v2578_v11 = vadd.f32 %v2577_v10, %v2576_v9 }
 0xf6d   : > { %v2222_v12 = vadd.f32 %v2578_v11, %v2479_v8  ;;  %v2225_v13 = vadd.f32 %v2219_v56, %v3709_v59 }
 0xf6f   : > { %2229 = vadd.xlane.f32.xlu0 %v2225_v13  ;;  %v2226_v14 = vadd.f32 %v2222_v12, %v3712_v22 }
 0xf71   : > { %2231 = vadd.xlane.f32.xlu1 %v2226_v14 }
 0xffc   : > { %v2230_v15 = vpop.xlane.xlu0 %2229 }
 0xffd   : > { %v2233_v16 = vmul.f32 0.0078125, %v2230_v15 }
 0xffe   : > { %v2232_v0 = vpop.xlane.xlu1 %2231 }
 0xfff   : > { %v2235_v46 = vsub.f32 %v2225_v13, %v2233_v16  ;;  %v2234_v17 = vmul.f32 0.0078125, %v2232_v0 }
0x1001   : > { %v2236_v18 = vsub.f32 %v2226_v14, %v2234_v17  ;;  %v2237_v19 = vmul.f32 %v2235_v46, %v2235_v46 }
0x1003   : > { %2239 = vadd.xlane.f32.xlu0 %v2237_v19  ;;  %v2238_v20 = vmul.f32 %v2236_v18, %v2236_v18 }
0x1005   : > { %2241 = vadd.xlane.f32.xlu1 %v2238_v20 }
0x1090   : > { %v2240_v21 = vpop.xlane.xlu0 %2239 }
0x1091   : > { %v2243_v25 = vmul.f32 0.0078125, %v2240_v21 }
0x1092   : > { %v2242_v26 = vpop.xlane.xlu1 %2241 }
0x1093   : > { %v2245_v27 = vadd.f32 1e-05, %v2243_v25  ;;  %v2244_v59 = vmul.f32 0.0078125, %v2242_v26 }
0x1095   : > { %2933 = vrsqrt.f32 %v2245_v27  ;;  %v2246_v22 = vadd.f32 1e-05, %v2244_v59 }
0x1097   : > { %2935 = vrsqrt.f32 %v2246_v22 }
0x109f   : > { %v2934_v28 = vpop.eup %2933 }
0x10a0   : > { %v2249_v32 = vmul.f32 %v2934_v28, %v2235_v46 }
0x10a1   : > { %v2936_v35 = vpop.eup %2935 }
0x10a2   : > { %v2257_v1 = vmul.f32 %v2496_v29, %v2249_v32  ;;  %v2250_v37 = vmul.f32 %v2936_v35, %v2236_v18 }
0x10a4   : > { %v2265_v40 = vadd.f32 %v2497_v36, %v2257_v1  ;;  %v2258_v42 = vmul.f32 %v2496_v29, %v2250_v37 }
0x10a6   : > { %2267 = vst [vmem:[%s532_s19] sm:$0xff] %v2265_v40  ;;  %v2266_v43 = vadd.f32 %v2497_v36, %v2258_v42 }
0x10a8   : > { %2268 = vst [vmem:[%s532_s19 + $0x8] sm:$0xff] %v2266_v43 }
0x10a9 PF: > { %p26_p5 = scmp.ge.s32.totalorder %s3401_s17, 6   ;;  %s3808_s25 = smov %s3145_s26 }
0x10aa   : > { %s3809_s26 = smov %s3149_s27  ;;  %s3810_s27 = smov %s3412_s21 }
0x10ab   : > { %s3811_s28 = smov %s3401_s17  ;;  %28 = sbr.rel (!%p26_p5) target bundleno = 14 (0xe), region = 132 }
0x10b2   :  { %2291 = vsyncpa [#allocation3], 1 }
0x10b3   :  { %2293 = vsyncpa [#allocation3 + $0x1], 1 }
0x10b4   :  { %2294 = vsyncpa [#allocation5], 1 }
0x10b5   :  { %2295 = vsyncpa [#allocation8], 1 }
0x10b6   :  { %2296 = vsyncpa [#allocation11], 1 }

// kernel: _lambda_.2
= control target key start
LH: loop header
LB: loop body
LE: loop exit
PB: predicated region body
PF: predicated region fallthrough
CT: control target
= control target key end

     0   :  { %s3762_s0 = inlined_call_operand.hbm [shape: f32[8,8,128], index: 0, kind: input, shape index: {}]   ;;  %s3763_s1 = inlined_call_operand.hbm [shape: bf16[128,384], index: 1, kind: input, shape index: {}]   ;;  %s3764_s2 = inlined_call_operand.vmem [shape: f32[1,384], index: 2, kind: input, shape index: {}]   ;;  %s3765_s3 = inlined_call_operand.hbm [shape: bf16[128,128], index: 3, kind: input, shape index: {}]   ;;  %s3766_s4 = inlined_call_operand.vmem [shape: f32[1,128], index: 4, kind: input, shape index: {}]   ;;  %s3767_s5 = inlined_call_operand.vmem [shape: f32[1,128], index: 5, kind: input, shape index: {}]   ;;  %s3768_s6 = inlined_call_operand.vmem [shape: f32[1,128], index: 6, kind: input, shape index: {}]   ;;  %s3769_s7 = inlined_call_operand.hbm [shape: bf16[128,256], index: 7, kind: input, shape index: {}]   ;;  %s3770_s8 = inlined_call_operand.vmem [shape: f32[1,256], index: 8, kind: input, shape index: {}]   ;;  %s3771_s9 = inlined_call_operand.hbm [shape: bf16[256,128], index: 9, kind: input, shape index: {}]   ;;  %s3772_s10 = inlined_call_operand.hbm [shape: f32[1,128], index: 10, kind: input, shape index: {}]   ;;  %s3773_s11 = inlined_call_operand.vmem [shape: f32[1,128], index: 11, kind: input, shape index: {}]   ;;  %s3774_s12 = inlined_call_operand.vmem [shape: f32[1,128], index: 12, kind: input, shape index: {}]   ;;  %s3775_s13 = inlined_call_operand.vmem [shape: f32[8,8,128], index: 13, kind: output, shape index: {}]  }
   0x1   :  { %3782 = sst [smem:[#allocation16_spill]] %s3763_s1 }
   0x2   :  { %3783 = sst [smem:[#allocation17_spill]] %s3768_s6 }
   0x3   :  { %3784 = sst [smem:[#allocation18_spill]] %s3769_s7 }
   0x4   :  { %3785 = sst [smem:[#allocation19_spill]] %s3770_s8 }
   0x5   :  { %3786 = sst [smem:[#allocation20_spill]] %s3773_s11 }
   0x6   :  { %3787 = sst [smem:[#allocation21_spill]] %s3774_s12 }
   0x7   :  { %3788 = sst [smem:[#allocation22_spill]] %s3775_s13 }
   0x8   :  { %18 = vsyncpa [#allocation3], 0 }
   0x9   :  { %20 = vsyncpa [#allocation3 + $0x1], 0 }
   0xa   :  { %21 = vsyncpa [#allocation5], 0 }
   0xb   :  { %22 = vsyncpa [#allocation8], 0 }
   0xc   :  { %23 = vsyncpa [#allocation11], 0  ;;  %s3243_s25 = smov 0   ;;  %s3245_s26 = smov 0  }
   0xd   :  { %s3247_s27 = smov 0   ;;  %s3249_s28 = smov 0  }
   0xe LB: > { %s3155_s29 = smov [#allocation4]   ;;  %s3776_s14 = sadd.s32 4294967295, %s3153_s28   ;;  %s3153_s28 = sphi %s3249_s28, %s3811_s28   ;;  %s3149_s27 = sphi %s3247_s27, %s3810_s27   ;;  %s3145_s26 = sphi %s3245_s26, %s3809_s26   ;;  %s3141_s25 = sphi %s3243_s25, %s3808_s25  }
   0xf   : > { %s350_s30 = sshll.u32 %s3155_s29, 4  ;;  %p2386_p0 = scmp.ge.s32.totalorder %s3153_s28, 1  ;;  %s3272_s30 = int_to_ptr.vmem [resolvable:$true] %s350_s30 }
  0x10   : > { %p3267_p1 = scmp.eq.s32.totalorder %s3776_s14, 0  ;;  %p338_p2 = scmp.lt.s32.totalorder %s3153_s28, 5 }
  0x11   : > { %s3156_s17 = smov [#allocation7]   ;;  %s3157_s20 = smov [#allocation6]  }
  0x12   : > { %s3789_s15 = scalar_select %p3267_p1, 1, 0 }
  0x13   : > { %p3274_p3 = pnand %p2386_p0, %p338_p2  ;;  %s388_s18 = sshll.u32 %s3156_s17, 4  ;;  %s3286_s18 = int_to_ptr.vmem [resolvable:$true] %s388_s18 }
  0x14   : > { %s3288_s21 = sshll.u32 %s3157_s20, 4  ;;  %s3792_s1 = sld [smem:[#allocation16_spill]]  ;;  %s367_s21 = int_to_ptr.vmem [resolvable:$true] %s3288_s21 }
  0x15   : > { %s3790_s16 = scalar_select %p3274_p3, 1, 0 }
  0x16   : > { %p2737_p4 = pneg %p3274_p3 }
  0x18   : > { %p3282_p5 = pnand %p2737_p4, %p3267_p1 }
  0x1a   : > { %s2937_s24 = scalar_lea.hbm %s3792_s1, 3072  ;;  %p3298_p7 = pneg %p3282_p5 }
  0x1b   : > { %p2938_p6 = scmp.ne.s32.totalorder %s3792_s1, %s2937_s24  ;;  %p2944_p10 = scmp.lt.u32.totalorder %s2937_s24, %s3792_s1 }
  0x1d   : > { %p2940_p8 = pnand %p3298_p7, %p2938_p6 }
  0x1f   : > { %p2941_p9 = pneg %p2940_p8 }
  0x21   : > { %p2946_p11 = pnand %p2944_p10, %p2941_p9 }
  0x23   : > { %2949 = shalt.err (!%p2946_p11)
}
  0x24   : > { %s2950_s14 = scalar_lea.vmem %s3272_s30, 3072  ;;  %p2958_p2 = scmp.lt.s32.totalorder %s3272_s30, %s3272_s30 }
  0x25   : > { %p2951_p12 = scmp.ne.s32.totalorder %s3272_s30, %s2950_s14  ;;  %p2959_p4 = scmp.lt.s32.totalorder %s2950_s14, %s2950_s14 }
  0x27   : > { %p2953_p13 = pnand %p2951_p12, %p3298_p7  ;;  %p2960_p6 = por %p2959_p4, %p2958_p2 }
  0x29   : > { %p2954_p0 = pneg %p2953_p13 }
  0x2b   : > { %p2961_p8 = pnand %p2960_p6, %p2954_p0 }
  0x2d   : > { %2964 = shalt.err (!%p2961_p8)
}
  0x2e   : > { %s3158_s22 = smov 192   ;;  %s3159_s13 = smov 12  }
  0x2f   : > { %2740 = dma.hbm_to_vmem [thread:$0]  (!%p3282_p5), %s3792_s1, 3072, %s3272_s30, [#allocation5], %s3158_s22, %s3158_s22, %s3159_s13  }
  0x30   : > { %s3794_s7 = sld [smem:[#allocation18_spill]] }
  0x36   : > { %s2965_s12 = scalar_lea.hbm %s3794_s7, 2048 }
  0x37   : > { %p2966_p9 = scmp.ne.s32.totalorder %s3794_s7, %s2965_s12  ;;  %p2972_p12 = scmp.lt.u32.totalorder %s2965_s12, %s3794_s7 }
  0x39   : > { %p2968_p10 = pnand %p2966_p9, %p3298_p7 }
  0x3b   : > { %p2969_p11 = pneg %p2968_p10 }
  0x3d   : > { %p2974_p13 = pnand %p2972_p12, %p2969_p11 }
  0x3f   : > { %2977 = shalt.err (!%p2974_p13)
}
  0x40   : > { %s2978_s30 = scalar_lea.vmem %s3286_s18, 2048  ;;  %p2986_p6 = scmp.lt.s32.totalorder %s3286_s18, %s3286_s18 }
  0x41   : > { %p2979_p0 = scmp.ne.s32.totalorder %s3286_s18, %s2978_s30  ;;  %p2987_p8 = scmp.lt.s32.totalorder %s2978_s30, %s2978_s30 }
  0x43   : > { %p2981_p2 = pnand %p2979_p0, %p3298_p7  ;;  %p2988_p9 = por %p2987_p8, %p2986_p6 }
  0x45   : > { %p2982_p4 = pneg %p2981_p2 }
  0x47   : > { %p2989_p10 = pnand %p2988_p9, %p2982_p4 }
  0x49   : > { %2992 = shalt.err (!%p2989_p10)
}
  0x4a   : > { %s3780_s8 = smov 128   ;;  %s3781_s6 = smov 8  }
  0x4b   : > { %2746 = dma.hbm_to_vmem [thread:$0]  (!%p3282_p5), %s3794_s7, 2048, %s3286_s18, [#allocation8], %s3780_s8, %s3780_s8, %s3781_s6  }
  0x4c   : > { %s2993_s23 = scalar_lea.hbm %s3765_s3, 1024 }
  0x4d   : > { %p2994_p11 = scmp.ne.s32.totalorder %s3765_s3, %s2993_s23  ;;  %p3000_p0 = scmp.lt.u32.totalorder %s2993_s23, %s3765_s3 }
  0x4f   : > { %p2996_p12 = pnand %p2994_p11, %p3298_p7 }
  0x51   : > { %p2997_p13 = pneg %p2996_p12 }
  0x53   : > { %p3002_p2 = pnand %p3000_p0, %p2997_p13 }
  0x55   : > { %3005 = shalt.err (!%p3002_p2)
}
  0x56   : > { %s3006_s30 = scalar_lea.vmem %s367_s21, 1024  ;;  %p3014_p9 = scmp.lt.s32.totalorder %s367_s21, %s367_s21 }
  0x57   : > { %p3007_p4 = scmp.ne.s32.totalorder %s367_s21, %s3006_s30  ;;  %p3015_p10 = scmp.lt.s32.totalorder %s3006_s30, %s3006_s30 }
  0x59   : > { %p3009_p6 = pnand %p3007_p4, %p3298_p7  ;;  %p3016_p3 = por %p3015_p10, %p3014_p9 }
  0x5b   : > { %p3010_p8 = pneg %p3009_p6 }
  0x5d   : > { %p3017_p1 = pnand %p3016_p3, %p3010_p8 }
  0x5f   : > { %3020 = shalt.err (!%p3017_p1)
}
  0x60   : > { %s3162_s18 = smov 64   ;;  %s3163_s11 = smov 4  }
  0x61   : > { %2743 = dma.hbm_to_vmem [thread:$0]  (!%p3282_p5), %s3765_s3, 1024, %s367_s21, [#allocation5], %s3162_s18, %s3162_s18, %s3163_s11  }
  0x62   : > { %s3164_s13 = smov [#allocation9]   ;;  %s3165_s24 = smov [#allocation10]  }
  0x63   : > { %s404_s23 = sshll.u32 %s3164_s13, 4  ;;  %s418_s29 = sshll.u32 %s3165_s24, 4  ;;  %s405_s23 = int_to_ptr.vmem [resolvable:$true] %s404_s23  ;;  %s419_s29 = int_to_ptr.vmem [resolvable:$true] %s418_s29 }
  0x64   : > { %s3021_s30 = scalar_lea.hbm %s3771_s9, 2048 }
  0x65   : > { %p3022_p1 = scmp.ne.s32.totalorder %s3771_s9, %s3021_s30  ;;  %p3028_p12 = scmp.lt.u32.totalorder %s3021_s30, %s3771_s9 }
  0x67   : > { %p3024_p3 = pnand %p3022_p1, %p3298_p7 }
  0x69   : > { %p3025_p11 = pneg %p3024_p3 }
  0x6b   : > { %p3030_p13 = pnand %p3028_p12, %p3025_p11 }
  0x6d   : > { %3033 = shalt.err (!%p3030_p13)
}
  0x6e   : > { %s3034_s21 = scalar_lea.vmem %s405_s23, 2048  ;;  %p3042_p6 = scmp.lt.s32.totalorder %s405_s23, %s405_s23 }
  0x6f   : > { %p3035_p0 = scmp.ne.s32.totalorder %s405_s23, %s3034_s21  ;;  %p3043_p8 = scmp.lt.s32.totalorder %s3034_s21, %s3034_s21 }
  0x71   : > { %p3037_p2 = pnand %p3035_p0, %p3298_p7  ;;  %p3044_p9 = por %p3043_p8, %p3042_p6 }
  0x73   : > { %p3038_p4 = pneg %p3037_p2 }
  0x75   : > { %p3045_p10 = pnand %p3044_p9, %p3038_p4 }
  0x77   : > { %3048 = shalt.err (!%p3045_p10)
}
  0x78   : > { %2749 = dma.hbm_to_vmem [thread:$0]  (!%p3282_p5), %s3771_s9, 2048, %s405_s23, [#allocation8], %s3162_s18, %s3162_s18, %s3163_s11  }
  0x79   : > { %s3049_s12 = scalar_lea.hbm %s3772_s10, 16 }
  0x7a   : > { %p3050_p1 = scmp.ne.s32.totalorder %s3772_s10, %s3049_s12  ;;  %p3056_p12 = scmp.lt.u32.totalorder %s3049_s12, %s3772_s10 }
  0x7c   : > { %p3052_p3 = pnand %p3050_p1, %p3298_p7 }
  0x7e   : > { %p3053_p11 = pneg %p3052_p3 }
  0x80   : > { %p3058_p13 = pnand %p3056_p12, %p3053_p11 }
  0x82   : > { %3061 = shalt.err (!%p3058_p13)
}
  0x83   : > { %s3062_s14 = scalar_lea.vmem %s419_s29, 16  ;;  %s3069_s18 = scalar_lea.vmem %s419_s29, 32 }
  0x84   : > { %p3063_p0 = scmp.ne.s32.totalorder %s419_s29, %s3062_s14  ;;  %p3070_p6 = scmp.lt.s32.totalorder %s419_s29, %s419_s29 }
  0x85   : > { %p3071_p8 = scmp.lt.s32.totalorder %s3069_s18, %s3062_s14 }
  0x86   : > { %p3065_p2 = pnand %p3063_p0, %p3298_p7 }
  0x87   : > { %p3072_p9 = por %p3071_p8, %p3070_p6 }
  0x88   : > { %p3066_p4 = pneg %p3065_p2 }
  0x8a   : > { %p3073_p10 = pnand %p3072_p9, %p3066_p4 }
  0x8c   : > { %3076 = shalt.err (!%p3073_p10)
}
  0x8d   : > { %2752 = dma.hbm_to_vmem [thread:$0]  (!%p3282_p5), %s3772_s10, 16, %s419_s29, [#allocation11]  }
  0x8e   : > { %s3401_s17 = sadd.s32 1, %s3153_s28   ;;  %s36_s30 = sadd.s32 1, %s3149_s27 }
  0x8f   : > { %s33_s19 = ssub.s32 %s3153_s28, %s3401_s17  ;;  %p43_p1 = scmp.ne.s32.totalorder %s3149_s27, %s3145_s26 }
  0x90   : > { %p34_p7 = scmp.eq.s32.totalorder %s33_s19, 0  ;;  %p44_p3 = scmp.eq.s32.totalorder %s3153_s28, 0 }
  0x91   : > { %p49_p11 = scmp.ne.s32.totalorder %s3145_s26, %s3141_s25  ;;  %p3795_p13 = scmp.ne.s32.totalorder %s3789_s15, 0 }
  0x92   : > { %s3412_s21 = scalar_select %p34_p7, %s3149_s27, %s36_s30  }
  0x93   : > { %p45_p12 = por %p44_p3, %p43_p1  ;;  %p3416_p0 = por %p3795_p13, %p49_p11 }
  0x94   : > { %p2762_p2 = scmp.lt.s32.totalorder %s3153_s28, 4  ;;  %s435_s6 = sand.u32 1, %s3149_s27  }
  0x95   : > { %s2393_s29 = sshll.u32 %s435_s6, 4  ;;  %s2500_s1 = sshll.u32 %s3153_s28, 8 }
  0x96   : > { %s3426_s22 = scalar_lea.hbm %s3762_s0, %s2500_s1  ;;  %s439_s25 = scalar_lea.vmem [#allocation2], %s2393_s29 }
  0x97   : > { %s446_s13 = sshll.u32 %s439_s25, 4  ;;  %p3430_p5 = pnand %p2762_p2, %p45_p12  ;;  %s3428_s13 = int_to_ptr.vmem [resolvable:$true] %s446_s13 }
  0x98   : > { %s3434_s20 = scalar_lea.sflag [#allocation3], %s435_s6  ;;  %s3077_s14 = scalar_lea.hbm %s3426_s22, 256 }
  0x99   : > { %p3078_p4 = scmp.ne.s32.totalorder %s3426_s22, %s3077_s14  ;;  %p3079_p6 = pneg %p3430_p5 }
  0x9a   : > { %s3082_s23 = scalar_lea.hbm %s3762_s0, 1024  ;;  %p3083_p10 = scmp.lt.u32.totalorder %s3426_s22, %s3762_s0 }
  0x9b   : > { %p3080_p8 = pnand %p3079_p6, %p3078_p4  ;;  %p3084_p7 = scmp.lt.u32.totalorder %s3082_s23, %s3077_s14 }
  0x9c   : > { %p3086_p3 = scmp.lt.u32.totalorder %s3077_s14, %s3426_s22 }
  0x9d   : > { %p3081_p9 = pneg %p3080_p8  ;;  %p3085_p1 = por %p3084_p7, %p3083_p10 }
  0x9f   : > { %p3087_p11 = por %p3086_p3, %p3085_p1 }
  0xa1   : > { %p3088_p12 = pnand %p3087_p11, %p3081_p9 }
  0xa3   : > { %3091 = shalt.err (!%p3088_p12)
}
  0xa4   : > { %s3092_s6 = scalar_lea.vmem %s3428_s13, 256  ;;  %s3166_s29 = smov [#allocation2]  }
  0xa5   : > { %p3093_p13 = scmp.ne.s32.totalorder %s3428_s13, %s3092_s6  ;;  %s3097_s1 = sshll.u32 %s3166_s29, 4  ;;  %s3098_s1 = int_to_ptr.vmem [resolvable:$false] %s3097_s1 }
  0xa6   : > { %s3099_s7 = scalar_lea.vmem %s3098_s1, 512  ;;  %p3100_p8 = scmp.lt.s32.totalorder %s3428_s13, %s3098_s1 }
  0xa7   : > { %p3095_p2 = pnand %p3093_p13, %p3079_p6  ;;  %p3101_p10 = scmp.lt.s32.totalorder %s3099_s7, %s3092_s6 }
  0xa9   : > { %p3096_p4 = pneg %p3095_p2  ;;  %p3102_p7 = por %p3101_p10, %p3100_p8 }
  0xab   : > { %p3103_p1 = pnand %p3102_p7, %p3096_p4 }
  0xad   : > { %3106 = shalt.err (!%p3103_p1)
}
  0xae   : > { %s3798_s12 = smov 8   ;;  %s3799_s25 = smov 128  }
  0xaf   : > { %2756 = dma.hbm_to_vmem [thread:$0]  (!%p3430_p5), %s3426_s22, 256, %s3428_s13, %s3434_s20, %s3799_s25, %s3799_s25, %s3798_s12  }
  0xb0   : > { %p3800_p6 = scmp.ne.s32.totalorder %s3790_s16, 0 }
  0xb1   : > { %s460_s14 = sand.u32 (!%p3800_p6), 1, %s3145_s26  }
  0xb2   : > { %458 = sbr.rel (%p3800_p6) target bundleno = 4265 (0x10a9), region = 72  ;;  %s3468_s18 = sshll.u32 (!%p3800_p6), %s460_s14, 4 }
  0xb3   : > { %s461_s11 = scalar_lea.sflag (!%p3800_p6), [#allocation3], %s460_s14  ;;  %s464_s23 = scalar_lea.vmem (!%p3800_p6), [#allocation2], %s3468_s18 }
  0xb9   : > { %3124 = dma.done.wait (%p3416_p0), %s461_s11, 256  }
  0xba   : > { %3126 = vsyncadd (%p3416_p0), %s461_s11, 4294967040  ;;  %p3801_p9 = scmp.ne.s32.totalorder %s3789_s15, 0 }
  0xbc   : > { %3128 = dma.done.wait (%p3801_p9), [#allocation5], 4096  }
  0xbd   : > { %3130 = vsyncadd (%p3801_p9), [#allocation5], 4294963200 }
  0xbe   : > { %3132 = dma.done.wait (%p3801_p9), [#allocation8], 4096  }
  0xbf   : > { %3134 = vsyncadd (%p3801_p9), [#allocation8], 4294963200 }
  0xc0   : > { %3136 = dma.done.wait (%p3801_p9), [#allocation11], 16  }
  0xc1   : > { %3138 = vsyncadd (%p3801_p9), [#allocation11], 4294967280  ;;  %v3167_v0 = vmov 0   ;;  %v3168_v1 = vmov 0.0   ;;  %v2817_v2 = vld [vmem:[#allocation4 + $0x4] ss:$12 sps:$4 sm:$0xff]   ;;  %v572_v29 = vlaneseq }
  0xc2   : > { %747 = vmatprep.mubr.bf16.mxu0 %v3167_v0  ;;  %2579 = vmatprep.subr.bf16.mxu1 %v3168_v1  ;;  %v2819_v3 = vld [vmem:[#allocation4] ss:$12 sps:$4 sm:$0xff]   ;;  %v2820_v4 = vld [vmem:[#allocation4 + $0x1c] ss:$12 sps:$4 sm:$0xff]   ;;  %v2822_v5 = vld [vmem:[#allocation4 + $0x18] ss:$12 sps:$4 sm:$0xff]  }
  0xc3   : > { %715 = vmatprep.subr.bf16.mxu0 %v2817_v2  ;;  %v2823_v6 = vld [vmem:[#allocation4 + $0x34] ss:$12 sps:$4 sm:$0xff]   ;;  %v2825_v7 = vld [vmem:[#allocation4 + $0x30] ss:$12 sps:$4 sm:$0xff]   ;;  %v2826_v8 = vld [vmem:[#allocation4 + $0x4c] ss:$12 sps:$4 sm:$0xff]  }
  0xc4   : > { %716 = vmatpush1.bf16.msra.mxu0 %v2819_v3  ;;  %v2828_v9 = vld [vmem:[#allocation4 + $0x48] ss:$12 sps:$4 sm:$0xff]   ;;  %v2829_v10 = vld [vmem:[#allocation4 + $0x64] ss:$12 sps:$4 sm:$0xff]   ;;  %v2842_v12 = vld [vmem:[#allocation4 + $0x20] ss:$12 sps:$4 sm:$0xff]  }
  0xc5   : > { %717 = vmatprep.subr.bf16.mxu0 %v2820_v4  ;;  %v2841_v11 = vld [vmem:[#allocation4 + $0x8] ss:$12 sps:$4 sm:$0xff]   ;;  %v2831_v13 = vld [vmem:[#allocation4 + $0x60] ss:$12 sps:$4 sm:$0xff]   ;;  %v2843_v15 = vld [vmem:[#allocation4 + $0x38] ss:$12 sps:$4 sm:$0xff]  }
  0xc6   : > { %2580 = vmatpush3.bf16.msra.mxu1 %v2841_v11  ;;  %v2832_v14 = vld [vmem:[#allocation4 + $0x7c] ss:$12 sps:$4 sm:$0xff]   ;;  %v2834_v16 = vld [vmem:[#allocation4 + $0x78] ss:$12 sps:$4 sm:$0xff]   ;;  %v2835_v17 = vld [vmem:[#allocation4 + $0x94] ss:$12 sps:$4 sm:$0xff]  }
  0xc7   : > { %2581 = vmatprep.subr.bf16.mxu1 %v3168_v1  ;;  %v2844_v18 = vld [vmem:[#allocation4 + $0x50] ss:$12 sps:$4 sm:$0xff]   ;;  %v2838_v20 = vld [vmem:[#allocation4 + $0xac] ss:$12 sps:$4 sm:$0xff]   ;;  %v2845_v21 = vld [vmem:[#allocation4 + $0x68] ss:$12 sps:$4 sm:$0xff]  }
  0xc8   : > { %718 = vmatpush1.bf16.msra.mxu0 %v2822_v5  ;;  %v2837_v19 = vld [vmem:[#allocation4 + $0x90] ss:$12 sps:$4 sm:$0xff]   ;;  %v2840_v22 = vld [vmem:[#allocation4 + $0xa8] ss:$12 sps:$4 sm:$0xff]   ;;  %v2846_v25 = vld [vmem:[#allocation4 + $0x80] ss:$12 sps:$4 sm:$0xff]  }
  0xc9   : > { %719 = vmatprep.subr.bf16.mxu0 %v2823_v6  ;;  %v3494_v23 = vld [vmem:[%s464_s23] sm:$0xff]  ;;  %v3498_v24 = vld [vmem:[%s464_s23 + $0x8] sm:$0xff]  ;;  %vm3169_vm0 = vmmov 0   ;;  %v3514_v30 = vshrl.u32 %v572_v29, 7  ;;  %vm817_vm1 = vcmask 261120   ;;  %vm938_vm2 = vcmask 1043456  }
  0xca   : > { %2582 = vmatpush3.bf16.msra.mxu1 %v2842_v12  ;;  %v537_v26 = vpack.c.bf16 %v3498_v24, %v3494_v23  ;;  %v2847_v27 = vld [vmem:[#allocation4 + $0x98] ss:$12 sps:$4 sm:$0xff]   ;;  %v2848_v28 = vld [vmem:[#allocation4 + $0xb0] ss:$12 sps:$4 sm:$0xff]   ;;  %2595 = vmatprep.mubr.msk.bf16.mxu1 %vm3169_vm0, %v3168_v1  ;;  %v570_v32 = vld [vmem:[%s3764_s2] sm:$0x7] }
  0xcb   : > { %2583 = vmatprep.subr.bf16.mxu1 %v3168_v1  ;;  %v578_v31 = vsub.s32 1, %v3514_v30  ;;  %v574_v34 = vsub.s32 0, %v3514_v30  ;;  %v582_v50 = vsub.s32 2, %v3514_v30  ;;  %vm910_vm3 = vcmask 64512   ;;  %s3170_s8 = smov 96   ;;  %s3171_s22 = smov 64  }
  0xcc   : > { %720 = vmatpush1.bf16.msra.mxu0 %v2825_v7  ;;  %s3172_s13 = smov 32   ;;  %vm1720_vm4 = vcmask 523264   ;;  %vm1725_vm5 = vcmask 785408   ;;  %s3802_s1 = sld [smem:[#allocation17_spill]] }
  0xcd   : > { %721 = vmatprep.subr.bf16.mxu0 %v2826_v8  ;;  %v579_v33 = vrot.slane %v570_v32, %v578_v31  ;;  %v575_v40 = vrot.slane %v570_v32, %v574_v34  ;;  %v583_v51 = vrot.slane %v570_v32, %v582_v50  ;;  %s3803_s25 = sld [smem:[#allocation19_spill]]  ;;  %s3804_s14 = sadd.s32 4294967295, %s3153_s28  }
  0xce   : > { %2584 = vmatpush3.bf16.msra.mxu1 %v2843_v15  ;;  %s2403_s18 = sshll.u32 %s3804_s14, 1  ;;  %s3805_s15 = sld [smem:[#allocation20_spill]] }
  0xcf   : > { %2585 = vmatprep.subr.bf16.mxu1 %v3168_v1  ;;  %p529_p0 = scmp.lt.s32.totalorder %s2403_s18, 7  ;;  %s3807_s20 = sld [smem:[#allocation22_spill]] }
  0xd0   : > { %722 = vmatpush1.bf16.msra.mxu0 %v2828_v9 }
  0xd1   : > { %723 = vmatprep.subr.bf16.mxu0 %v2829_v10  ;;  %s3813_s18 = smov (!%p529_p0, %s2403_s18), 7 }
  0xd2   : > { %2586 = vmatpush3.bf16.msra.mxu1 %v2844_v18  ;;  %s2404_s16 = sshll.u32 %s3813_s18, 3 }
  0xd3   : > { %2587 = vmatprep.subr.bf16.mxu1 %v3168_v1 }
  0xd4   : > { %724 = vmatpush1.bf16.msra.mxu0 %v2831_v13 }
  0xd5   : > { %725 = vmatprep.subr.bf16.mxu0 %v2832_v14  ;;  %s532_s19 = scalar_lea.vmem %s3807_s20, %s2404_s16 }
  0xd6   : > { %2588 = vmatpush3.bf16.msra.mxu1 %v2845_v21 }
  0xd7   : > { %2589 = vmatprep.subr.bf16.mxu1 %v3168_v1 }
  0xd8   : > { %726 = vmatpush1.bf16.msra.mxu0 %v2834_v16 }
  0xd9   : > { %727 = vmatprep.subr.bf16.mxu0 %v2835_v17 }
  0xda   : > { %2590 = vmatpush3.bf16.msra.mxu1 %v2846_v25 }
  0xdb   : > { %2591 = vmatprep.subr.bf16.mxu1 %v3168_v1 }
  0xdc   : > { %728 = vmatpush1.bf16.msra.mxu0 %v2837_v19 }
  0xdd   : > { %729 = vmatprep.subr.bf16.mxu0 %v2838_v20 }
  0xde   : > { %2592 = vmatpush3.bf16.msra.mxu1 %v2847_v27 }
  0xdf   : > { %2593 = vmatprep.subr.bf16.mxu1 %v3168_v1 }
  0xe0   : > { %730 = vmatpush1.bf16.msra.mxu0 %v2840_v22 }
  0xe1   : > { %2623 = vmatprep.subr.bf16.mxu0 %v3168_v1 }
  0xe2   : > { %2594 = vmatpush3.bf16.msra.mxu1 %v2848_v28 }
  0xe3   : > { %748 = vmatmul.mubr.bf16.vlgmr.msra.gmra.mrb[0].mxu0 %v537_v26  ;;  %2599 = vmatprep.subr.bf16.mxu1 %v3168_v1 }
  0xe4   : > { %2625 = vmatprep.mubr.msk.bf16.mxu0 %vm3169_vm0, %v3168_v1 }
  0xe5   : > { %2596 = vmatmul.mubr.bf16.vlgmr.msra.gmra.mrb[0].mxu1 %v537_v26 }
  0xe6   : > { %2601 = vmatprep.mubr.msk.bf16.mxu1 %vm3169_vm0, %v3168_v1 }
 0x1b6   : > { %v749_v35 = vpop.f32.mrb[0].mxu0 }
 0x1b7   : > { %v751_v36 = vpop.f32.mrb[1].mxu0  ;;  %v750_v44 = vadd.f32 %v749_v35, %v575_v40 }
 0x1b8   : > { %v752_v37 = vadd.f32 %v751_v36, %v579_v33  ;;  %v753_v38 = vpop.f32.mrb[2].mxu0  ;;  %v792_v52 = vpop.f32.mrb[0].mxu1 }
 0x1b9   : > { %v755_v39 = vpop.f32.mrb[3].mxu0  ;;  %v3532_v46 = vpack.c.bf16 %v750_v44, %v750_v44  ;;  %v754_v48 = vadd.f32 %v753_v38, %v575_v40  ;;  %v793_v53 = vadd.f32 %v792_v52, %v583_v51  ;;  %v2597_v54 = vpop.f32.mrb[1].mxu1 }
 0x1ba   : > { %v3525_v41 = vpack.c.bf16 %v752_v37, %v752_v37  ;;  %v756_v42 = vadd.f32 %v755_v39, %v579_v33  ;;  %v795_v55 = vpop.f32.mrb[2].mxu1 }
 0x1bb   : > { %v3541_v49 = vpack.c.bf16 %v754_v48, %v754_v48  ;;  %v3548_v56 = vpack.c.bf16 %v793_v53, %v793_v53  ;;  %v796_v57 = vadd.f32 %v795_v55, %v583_v51  ;;  %v2598_v58 = vpop.f32.mrb[3].mxu1 }
 0x1bc   : > { %v822_v43 = vsel %vm817_vm1, %v3525_v41, 0  ;;  %v3530_v45 = vpack.c.bf16 %v756_v42, %v756_v42 }
 0x1bd   : > { %2600 = vmatpush3.bf16.xpose.msra.mxu1 %v822_v43  ;;  %v940_v59 = vsel %vm938_vm2, %v3548_v56, 0  ;;  %v3567_v22 = vpack.c.bf16 %v796_v57, %v796_v57 }
 0x1be   : > { %2605 = vmatprep.subr.bf16.mxu1 %v3168_v1  ;;  %v868_v47 = vsel %vm817_vm1, %v3530_v45, 0 }
 0x1bf   : > { %v986_v27 = vsel %vm938_vm2, %v3567_v22, 0 }
 0x1c4   : > { %2602 = vmatmul.mubr.msk.bf16.vlgmr.msra.gmra.mrb[4].mxu1 %vm817_vm1, %v3532_v46 }
 0x1c5   : > { %2606 = vmatpush3.bf16.xpose.msra.mxu1 %v868_v47  ;;  %2607 = vmatprep.mubr.msk.bf16.mxu1 %vm3169_vm0, %v3168_v1 }
 0x1c6   : > { %2611 = vmatprep.subr.bf16.mxu1 %v3168_v1 }
 0x1cc   : > { %2608 = vmatmul.mubr.msk.bf16.vlgmr.msra.gmra.mrb[8].mxu1 %vm817_vm1, %v3541_v49 }
 0x1cd   : > { %2613 = vmatprep.mubr.msk.bf16.mxu1 %vm3169_vm0, %v3168_v1  ;;  %2612 = vmatpush3.bf16.msra.mxu1 %v940_v59 }
 0x1ce   : > { %2617 = vmatprep.subr.bf16.mxu1 %v3168_v1 }
 0x297   : > { %v858_v60 = vpop.f32.mrb[4].mxu1 }
 0x298   : > { %v2603_v61 = vpop.f32.mrb[5].mxu1  ;;  %v911_v62 = vsel %vm910_vm3, %v858_v60, -inf }
 0x299   : > { %912 = vmax.xlane.f32.xlu0 %v911_v62  ;;  %v861_v63 = vpop.f32.mrb[6].mxu1 }
 0x29a   : > { %v2604_v2 = vpop.f32.mrb[7].mxu1 }
 0x29f   : > { %v904_v3 = vpop.f32.mrb[8].mxu1 }
 0x2a0   : > { %v2609_v4 = vpop.f32.mrb[9].mxu1  ;;  %v914_v5 = vsel %vm910_vm3, %v904_v3, -inf }
 0x2a1   : > { %915 = vmax.xlane.f32.xlu0 %v914_v5  ;;  %v907_v6 = vpop.f32.mrb[10].mxu1 }
 0x2a2   : > { %v2610_v7 = vpop.f32.mrb[11].mxu1 }
 0x2b7   : > { %1032 = vrot.lane.b32.xlu0 %v3525_v41, %s3170_s8 }
 0x326   : > { %v913_v8 = vpop.xlane.xlu0 %912 }
 0x327   : > { %v917_v9 = vsub.f32 %v858_v60, %v913_v8 }
 0x329   : > { %v919_v10 = vmul.f32 1.442695, %v917_v9 }
 0x32b   : > { %2897 = vpow2.f32 %v919_v10 }
 0x32e   : > { %v916_v11 = vpop.xlane.xlu0 %915 }
 0x32f   : > { %v918_v16 = vsub.f32 %v904_v3, %v916_v11 }
 0x331   : > { %v921_v17 = vmul.f32 1.442695, %v918_v16 }
 0x332   : > { %v1033_v12 = vpop.permute.xlu0 %1032 }
 0x333   : > { %v1038_v13 = vsel %vm817_vm1, %v1033_v12, 0  ;;  %2899 = vpow2.f32 %v921_v17 }
 0x334   : > { %2624 = vmatpush3.bf16.xpose.msra.mxu0 %v1038_v13 }
 0x335   : > { %v2898_v14 = vpop.eup %2897  ;;  %2635 = vmatprep.subr.bf16.mxu0 %v3168_v1 }
 0x336   : > { %v923_v15 = vsel %vm910_vm3, %v2898_v14, 0.0 }
 0x337   : > { %924 = vadd.xlane.f32.xlu1 %v923_v15 }
 0x33d   : > { %v2900_v18 = vpop.eup %2899 }
 0x33e   : > { %v926_v19 = vsel %vm910_vm3, %v2900_v18, 0.0 }
 0x348   : > { %1082 = vrot.lane.b32.xlu1 %v3530_v45, %s3170_s8 }
 0x36c   : > { %927 = vadd.xlane.f32.xlu1 %v926_v19 }
 0x37d   : > { %1030 = vrot.lane.b32.xlu1 %v3532_v46, %s3170_s8 }
 0x381   : > { %1080 = vrot.lane.b32.xlu1 %v3541_v49, %s3170_s8 }
 0x3c4   : > { %v925_v20 = vpop.xlane.xlu1 %924 }
 0x3c5   : > { %2901 = vrcp.f32 %v925_v20 }
 0x3c8   : > { %v1083_v28 = vpop.permute.xlu1 %1082 }
 0x3c9   : > { %v1088_v37 = vsel %vm817_vm1, %v1083_v28, 0 }
 0x3cf   : > { %v2902_v21 = vpop.eup %2901 }
 0x3d0   : > { %v931_v25 = vmul.f32 %v2902_v21, %v2898_v14 }
 0x3d2   : > { %v933_v26 = vpack.c.bf16 %v931_v25, %v931_v25 }
 0x3d4   : > { %2614 = vmatmul.mubr.msk.bf16.vlgmr.msra.gmra.mrb[12].mxu1 %vm910_vm3, %v933_v26 }
 0x3d5   : > { %2618 = vmatpush3.bf16.msra.mxu1 %v986_v27  ;;  %2619 = vmatprep.mubr.msk.bf16.mxu1 %vm3169_vm0, %v3168_v1 }
 0x3d6   : > { %2629 = vmatprep.subr.bf16.mxu1 %v3168_v1 }
 0x3f9   : > { %v928_v29 = vpop.xlane.xlu1 %927 }
 0x3fa   : > { %2903 = vrcp.f32 %v928_v29 }
 0x3fd   : > { %v1031_v32 = vpop.permute.xlu1 %1030 }
 0x3fe   : > { %2626 = vmatmul.mubr.msk.bf16.vlgmr.msra.gmra.mrb[4].mxu0 %vm817_vm1, %v1031_v32 }
 0x3ff   : > { %2637 = vmatprep.mubr.msk.bf16.mxu0 %vm3169_vm0, %v3168_v1 }
 0x401   : > { %v1081_v38 = vpop.permute.xlu1 %1080 }
 0x404   : > { %v2904_v33 = vpop.eup %2903 }
 0x405   : > { %v932_v35 = vmul.f32 %v2904_v33, %v2900_v18 }
 0x407   : > { %v934_v36 = vpack.c.bf16 %v932_v35, %v932_v35 }
 0x409   : > { %2620 = vmatmul.mubr.msk.bf16.vlgmr.msra.gmra.mrb[16].mxu1 %vm910_vm3, %v934_v36 }
 0x40a   : > { %2630 = vmatpush3.bf16.xpose.msra.mxu1 %v1088_v37  ;;  %2631 = vmatprep.mubr.msk.bf16.mxu1 %vm3169_vm0, %v3168_v1 }
 0x40b   : > { %2641 = vmatprep.subr.bf16.mxu1 %v3168_v1 }
 0x411   : > { %2632 = vmatmul.mubr.msk.bf16.vlgmr.msra.gmra.mrb[20].mxu1 %vm817_vm1, %v1081_v38 }
 0x412   : > { %2643 = vmatprep.mubr.msk.bf16.mxu1 %vm3169_vm0, %v3168_v1 }
 0x4a7   : > { %v3586_v39 = vpop.f32.mrb[12].mxu1 }
 0x4a8   : > { %v2615_v40 = vpop.f32.mrb[13].mxu1 }
 0x4a9   : > { %v979_v42 = vpop.f32.mrb[14].mxu1 }
 0x4aa   : > { %v2616_v43 = vpop.f32.mrb[15].mxu1 }
 0x4d1   : > { %v1074_v44 = vpop.f32.mrb[4].mxu0 }
 0x4d2   : > { %v2627_v47 = vpop.f32.mrb[5].mxu0  ;;  %v1130_v48 = vsel %vm910_vm3, %v1074_v44, -inf }
 0x4d3   : > { %1131 = vmax.xlane.f32.xlu0 %v1130_v48  ;;  %v1077_v50 = vpop.f32.mrb[6].mxu0 }
 0x4d4   : > { %v2628_v51 = vpop.f32.mrb[7].mxu0 }
 0x4dc   : > { %v3589_v52 = vpop.f32.mrb[16].mxu1 }
 0x4dd   : > { %v2621_v53 = vpop.f32.mrb[17].mxu1 }
 0x4de   : > { %v1025_v54 = vpop.f32.mrb[18].mxu1 }
 0x4df   : > { %v2622_v55 = vpop.f32.mrb[19].mxu1 }
 0x4e4   : > { %v1124_v57 = vpop.f32.mrb[20].mxu1 }
 0x4e5   : > { %v2633_v58 = vpop.f32.mrb[21].mxu1  ;;  %v1133_v59 = vsel %vm910_vm3, %v1124_v57, -inf }
 0x4e6   : > { %1134 = vmax.xlane.f32.xlu1 %v1133_v59  ;;  %v1127_v60 = vpop.f32.mrb[22].mxu1 }
 0x4e7   : > { %v2634_v61 = vpop.f32.mrb[23].mxu1 }
 0x4f7   : > { %1202 = vrot.lane.b32.xlu1 %v3567_v22, %s3170_s8 }
 0x4fb   : > { %1254 = vrot.lane.b32.xlu1 %v3525_v41, %s3171_s22 }
 0x4ff   : > { %1304 = vrot.lane.b32.xlu1 %v3530_v45, %s3171_s22 }
 0x503   : > { %1302 = vrot.lane.b32.xlu1 %v3541_v49, %s3171_s22 }
 0x560   : > { %v1132_v62 = vpop.xlane.xlu0 %1131 }
 0x561   : > { %v1136_v63 = vsub.f32 %v1074_v44, %v1132_v62 }
 0x563   : > { %v1138_v2 = vmul.f32 1.442695, %v1136_v63 }
 0x565   : > { %2905 = vpow2.f32 %v1138_v2 }
 0x56f   : > { %v2906_v3 = vpop.eup %2905 }
 0x570   : > { %v1142_v4 = vsel %vm910_vm3, %v2906_v3, 0.0 }
 0x571   : > { %1143 = vadd.xlane.f32.xlu0 %v1142_v4 }
 0x573   : > { %v1135_v5 = vpop.xlane.xlu1 %1134 }
 0x574   : > { %v1137_v6 = vsub.f32 %v1124_v57, %v1135_v5 }
 0x576   : > { %v1140_v7 = vmul.f32 1.442695, %v1137_v6 }
 0x577   : > { %v1203_v8 = vpop.permute.xlu1 %1202 }
 0x578   : > { %2907 = vpow2.f32 %v1140_v7  ;;  %v1208_v9 = vsel %vm938_vm2, %v1203_v8, 0 }
 0x579   : > { %2642 = vmatpush3.bf16.msra.mxu1 %v1208_v9 }
 0x57a   : > { %2653 = vmatprep.subr.bf16.mxu1 %v3168_v1 }
 0x57b   : > { %v1255_v18 = vpop.permute.xlu1 %1254 }
 0x57c   : > { %v1260_v26 = vsel %vm817_vm1, %v1255_v18, 0 }
 0x57f   : > { %v1305_v25 = vpop.permute.xlu1 %1304 }
 0x580   : > { %v1310_v28 = vsel %vm817_vm1, %v1305_v25, 0 }
 0x582   : > { %v2908_v10 = vpop.eup %2907 }
 0x583   : > { %v1145_v11 = vsel %vm910_vm3, %v2908_v10, 0.0  ;;  %v1303_v32 = vpop.permute.xlu1 %1302 }
 0x584   : > { %1146 = vadd.xlane.f32.xlu0 %v1145_v11 }
 0x59a   : > { %1154 = vrot.lane.b32.xlu0 %v3548_v56, %s3170_s8 }
 0x59e   : > { %1252 = vrot.lane.b32.xlu0 %v3532_v46, %s3171_s22 }
 0x5fe   : > { %v1144_v12 = vpop.xlane.xlu0 %1143 }
 0x5ff   : > { %2909 = vrcp.f32 %v1144_v12 }
 0x609   : > { %v2910_v13 = vpop.eup %2909 }
 0x60a   : > { %v1150_v15 = vmul.f32 %v2910_v13, %v2906_v3 }
 0x60c   : > { %v1152_v19 = vpack.c.bf16 %v1150_v15, %v1150_v15 }
 0x611   : > { %v1147_v14 = vpop.xlane.xlu0 %1146 }
 0x612   : > { %2911 = vrcp.f32 %v1147_v14 }
 0x615   : > { %v1155_v16 = vpop.permute.xlu0 %1154 }
 0x616   : > { %v1160_v17 = vsel %vm938_vm2, %v1155_v16, 0 }
 0x617   : > { %2636 = vmatpush3.bf16.msra.mxu0 %v1160_v17 }
 0x618   : > { %2647 = vmatprep.subr.bf16.mxu0 %v3168_v1 }
 0x619   : > { %v1253_v29 = vpop.permute.xlu0 %1252 }
 0x61a   : > { %2638 = vmatmul.mubr.msk.bf16.vlgmr.msra.gmra.mrb[8].mxu0 %vm910_vm3, %v1152_v19 }
 0x61b   : > { %2649 = vmatprep.mubr.msk.bf16.mxu0 %vm3169_vm0, %v3168_v1 }
 0x61c   : > { %v2912_v20 = vpop.eup %2911 }
 0x61d   : > { %v1151_v21 = vmul.f32 %v2912_v20, %v2908_v10 }
 0x61f   : > { %v1153_v27 = vpack.c.bf16 %v1151_v21, %v1151_v21 }
 0x620   : > { %2648 = vmatpush3.bf16.xpose.msra.mxu0 %v1260_v26 }
 0x621   : > { %2644 = vmatmul.mubr.msk.bf16.vlgmr.msra.gmra.mrb[24].mxu1 %vm910_vm3, %v1153_v27  ;;  %2659 = vmatprep.subr.bf16.mxu0 %v3168_v1 }
 0x622   : > { %2654 = vmatpush3.bf16.xpose.msra.mxu1 %v1310_v28  ;;  %2655 = vmatprep.mubr.msk.bf16.mxu1 %vm3169_vm0, %v3168_v1 }
 0x623   : > { %2665 = vmatprep.subr.bf16.mxu1 %v3168_v1 }
 0x627   : > { %2650 = vmatmul.mubr.msk.bf16.vlgmr.msra.gmra.mrb[12].mxu0 %vm817_vm1, %v1253_v29 }
 0x628   : > { %2661 = vmatprep.mubr.msk.bf16.mxu0 %vm3169_vm0, %v3168_v1 }
 0x629   : > { %2656 = vmatmul.mubr.msk.bf16.vlgmr.msra.gmra.mrb[28].mxu1 %vm817_vm1, %v1303_v32 }
 0x62a   : > { %2667 = vmatprep.mubr.msk.bf16.mxu1 %vm3169_vm0, %v3168_v1 }
 0x6ed   : > { %v3626_v33 = vpop.f32.mrb[8].mxu0 }
 0x6ee   : > { %v2639_v35 = vpop.f32.mrb[9].mxu0 }
 0x6ef   : > { %v1199_v36 = vpop.f32.mrb[10].mxu0 }
 0x6f0   : > { %v2640_v37 = vpop.f32.mrb[11].mxu0 }
 0x6f4   : > { %v3628_v38 = vpop.f32.mrb[24].mxu1 }
 0x6f5   : > { %v2645_v40 = vpop.f32.mrb[25].mxu1 }
 0x6f6   : > { %v1247_v42 = vpop.f32.mrb[26].mxu1 }
 0x6f7   : > { %v2646_v43 = vpop.f32.mrb[27].mxu1 }
 0x6fa   : > { %v1296_v44 = vpop.f32.mrb[12].mxu0 }
 0x6fb   : > { %v2651_v47 = vpop.f32.mrb[13].mxu0  ;;  %v1352_v48 = vsel %vm910_vm3, %v1296_v44, -inf }
 0x6fc   : > { %1353 = vmax.xlane.f32.xlu0 %v1352_v48  ;;  %v1299_v50 = vpop.f32.mrb[14].mxu0  ;;  %v1346_v51 = vpop.f32.mrb[28].mxu1 }
 0x6fd   : > { %v2652_v53 = vpop.f32.mrb[15].mxu0  ;;  %v2657_v54 = vpop.f32.mrb[29].mxu1  ;;  %v1355_v55 = vsel %vm910_vm3, %v1346_v51, -inf }
 0x6fe   : > { %1356 = vmax.xlane.f32.xlu1 %v1355_v55  ;;  %v1349_v57 = vpop.f32.mrb[30].mxu1  ;;  %v1250_v53 = vpack.c.bf16 %v3626_v33, %v3626_v33  ;;  %v1251_v54 = vpack.c.bf16 %v3628_v38, %v3628_v38 }
 0x6ff   : > { %v2658_v58 = vpop.f32.mrb[31].mxu1 }
 0x70f   : > { %1424 = vrot.lane.b32.xlu1 %v3567_v22, %s3171_s22 }
 0x713   : > { %1476 = vrot.lane.b32.xlu1 %v3525_v41, %s3172_s13 }
 0x717   : > { %1526 = vrot.lane.b32.xlu1 %v3530_v45, %s3172_s13 }
 0x71b   : > { %1524 = vrot.lane.b32.xlu1 %v3541_v49, %s3172_s13 }
 0x789   : > { %v1354_v59 = vpop.xlane.xlu0 %1353 }
 0x78a   : > { %v1358_v60 = vsub.f32 %v1296_v44, %v1354_v59 }
 0x78b   : > { %v1357_v61 = vpop.xlane.xlu1 %1356 }
 0x78c   : > { %v1360_v62 = vmul.f32 1.442695, %v1358_v60  ;;  %v1359_v63 = vsub.f32 %v1346_v51, %v1357_v61 }
 0x78e   : > { %2913 = vpow2.f32 %v1360_v62  ;;  %v1362_v2 = vmul.f32 1.442695, %v1359_v63 }
 0x78f   : > { %v1425_v3 = vpop.permute.xlu1 %1424 }
 0x790   : > { %2915 = vpow2.f32 %v1362_v2  ;;  %v1430_v4 = vsel %vm938_vm2, %v1425_v3, 0 }
 0x791   : > { %2666 = vmatpush3.bf16.msra.mxu1 %v1430_v4 }
 0x792   : > { %2677 = vmatprep.subr.bf16.mxu1 %v3168_v1 }
 0x793   : > { %v1477_v11 = vpop.permute.xlu1 %1476 }
 0x797   : > { %v1527_v16 = vpop.permute.xlu1 %1526 }
 0x798   : > { %v2914_v41 = vpop.eup %2913  ;;  %v1532_v18 = vsel %vm817_vm1, %v1527_v16, 0  ;;  %v2854_v16 = vld [vmem:[#allocation6 + $0x28] sm:$0xff]  }
 0x799   : > { %v1364_v45 = vsel %vm910_vm3, %v2914_v41, 0.0 }
 0x79a   : > { %v2916_v5 = vpop.eup %2915  ;;  %1365 = vadd.xlane.f32.xlu0 %v1364_v45 }
 0x79b   : > { %v1367_v49 = vsel %vm910_vm3, %v2916_v5, 0.0  ;;  %v1525_v20 = vpop.permute.xlu1 %1524 }
 0x79e   : > { %1368 = vadd.xlane.f32.xlu0 %v1367_v49 }
 0x7b4   : > { %1376 = vrot.lane.b32.xlu0 %v3548_v56, %s3171_s22 }
 0x7b8   : > { %1474 = vrot.lane.b32.xlu0 %v3532_v46, %s3172_s13  ;;  %v1482_v46 = vsel %vm817_vm1, %v1477_v11, 0  ;;  %v2849_v11 = vld [vmem:[#allocation6] sm:$0xff]  }
 0x827   : > { %v1366_v6 = vpop.xlane.xlu0 %1365 }
 0x828   : > { %2917 = vrcp.f32 %v1366_v6 }
 0x82b   : > { %v1369_v7 = vpop.xlane.xlu0 %1368 }
 0x82c   : > { %2919 = vrcp.f32 %v1369_v7 }
 0x82f   : > { %v1377_v8 = vpop.permute.xlu0 %1376 }
 0x830   : > { %v1382_v9 = vsel %vm938_vm2, %v1377_v8, 0 }
 0x831   : > { %2660 = vmatpush3.bf16.msra.mxu0 %v1382_v9 }
 0x832   : > { %v2918_v10 = vpop.eup %2917  ;;  %2671 = vmatprep.subr.bf16.mxu0 %v3168_v1 }
 0x833   : > { %v1372_v12 = vmul.f32 %v2918_v10, %v2914_v41  ;;  %v1475_v19 = vpop.permute.xlu0 %1474 }
 0x835   : > { %v1374_v13 = vpack.c.bf16 %v1372_v12, %v1372_v12  ;;  %v2850_v12 = vld [vmem:[#allocation6 + $0x8] sm:$0xff]  }
 0x836   : > { %v2920_v14 = vpop.eup %2919 }
 0x837   : > { %v1373_v15 = vmul.f32 %v2920_v14, %v2916_v5  ;;  %2662 = vmatmul.mubr.msk.bf16.vlgmr.msra.gmra.mrb[16].mxu0 %vm910_vm3, %v1374_v13  ;;  %v2851_v13 = vld [vmem:[#allocation6 + $0x10] sm:$0xff]   ;;  %v2852_v14 = vld [vmem:[#allocation6 + $0x18] sm:$0xff]  }
 0x838   : > { %2673 = vmatprep.mubr.msk.bf16.mxu0 %vm3169_vm0, %v3168_v1 }
 0x839   : > { %v1375_v17 = vpack.c.bf16 %v1373_v15, %v1373_v15  ;;  %v2853_v15 = vld [vmem:[#allocation6 + $0x20] sm:$0xff]  }
 0x83a   : > { %2672 = vmatpush3.bf16.xpose.msra.mxu0 %v1482_v46  ;;  %v2856_v46 = vld [vmem:[#allocation6 + $0x38] sm:$0xff]  }
 0x83b   : > { %2668 = vmatmul.mubr.msk.bf16.vlgmr.msra.gmra.mrb[32].mxu1 %vm910_vm3, %v1375_v17  ;;  %2683 = vmatprep.subr.bf16.mxu0 %v3168_v1 }
 0x83c   : > { %2678 = vmatpush3.bf16.xpose.msra.mxu1 %v1532_v18  ;;  %2679 = vmatprep.mubr.msk.bf16.mxu1 %vm3169_vm0, %v3168_v1 }
 0x83d   : > { %2689 = vmatprep.subr.bf16.mxu1 %v3168_v1 }
 0x841   : > { %2674 = vmatmul.mubr.msk.bf16.vlgmr.msra.gmra.mrb[20].mxu0 %vm817_vm1, %v1475_v19 }
 0x842   : > { %2685 = vmatprep.mubr.msk.bf16.mxu0 %vm3169_vm0, %v3168_v1 }
 0x843   : > { %2680 = vmatmul.mubr.msk.bf16.vlgmr.msra.gmra.mrb[36].mxu1 %vm817_vm1, %v1525_v20 }
 0x844   : > { %2691 = vmatprep.mubr.msk.bf16.mxu1 %vm3169_vm0, %v3168_v1 }
 0x90a   : > { %v1418_v21 = vpop.f32.mrb[16].mxu0 }
 0x90b   : > { %v2663_v25 = vpop.f32.mrb[17].mxu0  ;;  %v1472_v4 = vpack.c.bf16 %v1418_v21, %v1418_v21 }
 0x90c   : > { %v1421_v26 = vpop.f32.mrb[18].mxu0 }
 0x90d   : > { %v2664_v27 = vpop.f32.mrb[19].mxu0 }
 0x90e   : > { %v1466_v28 = vpop.f32.mrb[32].mxu1 }
 0x90f   : > { %v2669_v29 = vpop.f32.mrb[33].mxu1  ;;  %v1473_v55 = vpack.c.bf16 %v1466_v28, %v1466_v28 }
 0x910   : > { %v1469_v32 = vpop.f32.mrb[34].mxu1 }
 0x911   : > { %v2670_v35 = vpop.f32.mrb[35].mxu1 }
 0x914   : > { %v1518_v36 = vpop.f32.mrb[20].mxu0 }
 0x915   : > { %v2675_v37 = vpop.f32.mrb[21].mxu0  ;;  %v1574_v40 = vsel %vm910_vm3, %v1518_v36, -inf }
 0x916   : > { %1575 = vmax.xlane.f32.xlu0 %v1574_v40  ;;  %v1521_v42 = vpop.f32.mrb[22].mxu0  ;;  %v1568_v43 = vpop.f32.mrb[36].mxu1  ;;  %v1028_v37 = vpack.c.bf16 %v3586_v39, %v3586_v39  ;;  %v1029_v40 = vpack.c.bf16 %v3589_v52, %v3589_v52  ;;  %v2451_v39 = vld [vmem:[%s3766_s4] ss:$0 sm:$0xff] }
 0x917   : > { %v2676_v44 = vpop.f32.mrb[23].mxu0  ;;  %v2681_v47 = vpop.f32.mrb[37].mxu1  ;;  %v1577_v48 = vsel %vm910_vm3, %v1568_v43, -inf }
 0x918   : > { %1578 = vmax.xlane.f32.xlu1 %v1577_v48  ;;  %v1571_v50 = vpop.f32.mrb[38].mxu1 }
 0x919   : > { %v2682_v51 = vpop.f32.mrb[39].mxu1 }
 0x929   : > { %1646 = vrot.lane.b32.xlu1 %v3567_v22, %s3172_s13 }
 0x92d   : > { %1698 = vrot.lane.b32.xlu1 %v1250_v53, %s3172_s13 }
 0x931   : > { %1700 = vrot.lane.b32.xlu1 %v1251_v54, %s3172_s13 }
 0x935   : > { %1706 = vrot.lane.b32.xlu1 %v1473_v55, %s3171_s22 }
 0x9a3   : > { %v1576_v57 = vpop.xlane.xlu0 %1575 }
 0x9a4   : > { %v1580_v58 = vsub.f32 %v1518_v36, %v1576_v57 }
 0x9a5   : > { %v1579_v59 = vpop.xlane.xlu1 %1578 }
 0x9a6   : > { %v1582_v60 = vmul.f32 1.442695, %v1580_v58  ;;  %v1581_v61 = vsub.f32 %v1568_v43, %v1579_v59 }
 0x9a8   : > { %2921 = vpow2.f32 %v1582_v60  ;;  %v1584_v22 = vmul.f32 1.442695, %v1581_v61 }
 0x9a9   : > { %v1647_v62 = vpop.permute.xlu1 %1646 }
 0x9aa   : > { %2923 = vpow2.f32 %v1584_v22  ;;  %v1652_v33 = vsel %vm938_vm2, %v1647_v62, 0  ;;  %v2857_v62 = vld [vmem:[#allocation7] ss:$8 sps:$4 sm:$0xff]  }
 0x9ab   : > { %2690 = vmatpush3.bf16.msra.mxu1 %v1652_v33  ;;  %v2859_v33 = vld [vmem:[#allocation7 + $0x4] ss:$8 sps:$4 sm:$0xff]  }
 0x9ac   : > { %2000 = vmatprep.subr.bf16.mxu1 %v2859_v33 }
 0x9ad   : > { %v1699_v32 = vpop.permute.xlu1 %1698 }
 0x9ae   : > { %v1716_v43 = vsel %vm817_vm1, %v1028_v37, %v1699_v32 }
 0x9b1   : > { %v1701_v35 = vpop.permute.xlu1 %1700 }
 0x9b2   : > { %v2922_v63 = vpop.eup %2921  ;;  %v1719_v44 = vsel %vm817_vm1, %v1029_v40, %v1701_v35 }
 0x9b3   : > { %v1586_v38 = vsel %vm910_vm3, %v2922_v63, 0.0 }
 0x9b4   : > { %v2924_v2 = vpop.eup %2923  ;;  %1587 = vadd.xlane.f32.xlu0 %v1586_v38  ;;  %v2860_v38 = vld [vmem:[#allocation7 + $0x10] ss:$8 sps:$4 sm:$0xff]  }
 0x9b5   : > { %v1589_v3 = vsel %vm910_vm3, %v2924_v2, 0.0 }
 0x9b8   : > { %1590 = vadd.xlane.f32.xlu0 %v1589_v3 }
 0x9ce   : > { %1598 = vrot.lane.b32.xlu0 %v3548_v56, %s3172_s13  ;;  %s3806_s13 = sld [smem:[#allocation21_spill]] }
 0x9d2   : > { %1704 = vrot.lane.b32.xlu0 %v1472_v4, %s3171_s22 }
 0xa41   : > { %v1588_v41 = vpop.xlane.xlu0 %1587 }
 0xa42   : > { %2925 = vrcp.f32 %v1588_v41 }
 0xa45   : > { %v1591_v45 = vpop.xlane.xlu0 %1590 }
 0xa46   : > { %2927 = vrcp.f32 %v1591_v45 }
 0xa49   : > { %v1599_v5 = vpop.permute.xlu0 %1598 }
 0xa4a   : > { %v1604_v49 = vsel %vm938_vm2, %v1599_v5, 0 }
 0xa4b   : > { %2684 = vmatpush3.bf16.msra.mxu0 %v1604_v49  ;;  %v2865_v49 = vld [vmem:[#allocation7 + $0x24] ss:$8 sps:$4 sm:$0xff]  }
 0xa4c   : > { %v2926_v6 = vpop.eup %2925  ;;  %2695 = vmatprep.subr.bf16.mxu0 %v3168_v1 }
 0xa4d   : > { %v1594_v7 = vmul.f32 %v2926_v6, %v2922_v63  ;;  %v1705_v36 = vpop.permute.xlu0 %1704  ;;  %v2862_v63 = vld [vmem:[#allocation7 + $0x14] ss:$8 sps:$4 sm:$0xff]   ;;  %v2863_v6 = vld [vmem:[#allocation7 + $0x20] ss:$8 sps:$4 sm:$0xff]  }
 0xa4e   : > { %v1722_v48 = vsel %vm1720_vm4, %v1716_v43, %v1705_v36 }
 0xa4f   : > { %v1596_v8 = vpack.c.bf16 %v1594_v7, %v1594_v7  ;;  %v2868_v7 = vld [vmem:[#allocation7 + $0x34] ss:$8 sps:$4 sm:$0xff]  }
 0xa50   : > { %v2928_v9 = vpop.eup %2927 }
 0xa51   : > { %v1595_v10 = vmul.f32 %v2928_v9, %v2924_v2  ;;  %2686 = vmatmul.mubr.msk.bf16.vlgmr.msra.gmra.mrb[24].mxu0 %vm910_vm3, %v1596_v8  ;;  %v2866_v8 = vld [vmem:[#allocation7 + $0x30] ss:$8 sps:$4 sm:$0xff]   ;;  %v2871_v9 = vld [vmem:[#allocation7 + $0x44] ss:$8 sps:$4 sm:$0xff]  }
 0xa52   : > { %2711 = vmatprep.mubr.msk.bf16.mxu0 %vm3169_vm0, %v3168_v1  ;;  %2696 = vmatpush3.bf16.msra.mxu0 %v2849_v11  ;;  %v2872_v11 = vld [vmem:[#allocation7 + $0x50] ss:$8 sps:$4 sm:$0xff]  }
 0xa53   : > { %v1597_v56 = vpack.c.bf16 %v1595_v10, %v1595_v10  ;;  %2697 = vmatprep.subr.bf16.mxu0 %v3168_v1  ;;  %v2869_v10 = vld [vmem:[#allocation7 + $0x40] ss:$8 sps:$4 sm:$0xff]  }
 0xa55   : > { %2692 = vmatmul.mubr.msk.bf16.vlgmr.msra.gmra.mrb[40].mxu1 %vm910_vm3, %v1597_v56  ;;  %v2874_v56 = vld [vmem:[#allocation7 + $0x54] ss:$8 sps:$4 sm:$0xff]  }
 0xa56   : > { %2032 = vmatprep.mubr.bf16.mxu1 %v3167_v0  ;;  %2698 = vmatpush3.bf16.msra.mxu0 %v2850_v12  ;;  %v2855_v0 = vld [vmem:[#allocation6 + $0x30] sm:$0xff]   ;;  %v2877_v12 = vld [vmem:[#allocation7 + $0x64] ss:$8 sps:$4 sm:$0xff]  }
 0xa57   : > { %2699 = vmatprep.subr.bf16.mxu0 %v3168_v1  ;;  %2001 = vmatpush1.bf16.msra.mxu1 %v2857_v62 }
 0xa58   : > { %2002 = vmatprep.subr.bf16.mxu1 %v2862_v63 }
 0xa5a   : > { %2700 = vmatpush3.bf16.msra.mxu0 %v2851_v13  ;;  %v2875_v13 = vld [vmem:[#allocation7 + $0x60] ss:$8 sps:$4 sm:$0xff]  }
 0xa5b   : > { %2701 = vmatprep.subr.bf16.mxu0 %v3168_v1  ;;  %2003 = vmatpush1.bf16.msra.mxu1 %v2860_v38 }
 0xa5c   : > { %2004 = vmatprep.subr.bf16.mxu1 %v2865_v49 }
 0xa5e   : > { %2702 = vmatpush3.bf16.msra.mxu0 %v2852_v14  ;;  %v2880_v14 = vld [vmem:[#allocation7 + $0x74] ss:$8 sps:$4 sm:$0xff]  }
 0xa5f   : > { %2703 = vmatprep.subr.bf16.mxu0 %v3168_v1  ;;  %2005 = vmatpush1.bf16.msra.mxu1 %v2863_v6 }
 0xa60   : > { %2006 = vmatprep.subr.bf16.mxu1 %v2868_v7 }
 0xa62   : > { %2704 = vmatpush3.bf16.msra.mxu0 %v2853_v15  ;;  %v2878_v15 = vld [vmem:[#allocation7 + $0x70] ss:$8 sps:$4 sm:$0xff]  }
 0xa63   : > { %2705 = vmatprep.subr.bf16.mxu0 %v3168_v1  ;;  %2007 = vmatpush1.bf16.msra.mxu1 %v2866_v8  ;;  %v2479_v8 = vld [vmem:[#allocation10] ss:$0 sm:$0xff] }
 0xa64   : > { %2008 = vmatprep.subr.bf16.mxu1 %v2871_v9 }
 0xa66   : > { %2706 = vmatpush3.bf16.msra.mxu0 %v2854_v16  ;;  %v2881_v16 = vld [vmem:[#allocation9 + $0x40] sm:$0xff]  }
 0xa67   : > { %2707 = vmatprep.subr.bf16.mxu0 %v3168_v1  ;;  %2009 = vmatpush1.bf16.msra.mxu1 %v2869_v10 }
 0xa68   : > { %2010 = vmatprep.subr.bf16.mxu1 %v2874_v56 }
 0xa6a   : > { %2708 = vmatpush3.bf16.msra.mxu0 %v2855_v0  ;;  %v2882_v0 = vld [vmem:[#allocation9] sm:$0xff]  }
 0xa6b   : > { %2709 = vmatprep.subr.bf16.mxu0 %v3168_v1  ;;  %v1707_v1 = vpop.permute.xlu1 %1706  ;;  %2011 = vmatpush1.bf16.msra.mxu1 %v2872_v11 }
 0xa6c   : > { %v1724_v47 = vsel %vm1720_vm4, %v1719_v44, %v1707_v1  ;;  %2012 = vmatprep.subr.bf16.mxu1 %v2877_v12 }
 0xa6e   : > { %2710 = vmatpush3.bf16.msra.mxu0 %v2856_v46  ;;  %v2883_v46 = vld [vmem:[#allocation9 + $0x48] sm:$0xff]  }
 0xa6f   : > { %2013 = vmatpush1.bf16.msra.mxu1 %v2875_v13  ;;  %2557 = vmatprep.subr.bf16.mxu0 %v2881_v16 }
 0xa70   : > { %2014 = vmatprep.subr.bf16.mxu1 %v2880_v14 }
 0xa73   : > { %2015 = vmatpush1.bf16.msra.mxu1 %v2878_v15 }
 0xb24   : > { %v1640_v17 = vpop.f32.mrb[24].mxu0 }
 0xb25   : > { %v1694_v18 = vpack.c.bf16 %v1640_v17, %v1640_v17  ;;  %v2687_v19 = vpop.f32.mrb[25].mxu0  ;;  %v2884_v17 = vld [vmem:[#allocation9 + $0x8] sm:$0xff]  }
 0xb26   : > { %v1643_v20 = vpop.f32.mrb[26].mxu0  ;;  %v2886_v19 = vld [vmem:[#allocation9 + $0x10] sm:$0xff]  }
 0xb27   : > { %1710 = vrot.lane.b32.xlu0 %v1694_v18, %s3170_s8  ;;  %v2688_v21 = vpop.f32.mrb[27].mxu0  ;;  %v2885_v18 = vld [vmem:[#allocation9 + $0x50] sm:$0xff]   ;;  %v2887_v20 = vld [vmem:[#allocation9 + $0x58] sm:$0xff]  }
 0xb28   : > { %v1688_v25 = vpop.f32.mrb[40].mxu1  ;;  %v2888_v21 = vld [vmem:[#allocation9 + $0x18] sm:$0xff]  }
 0xb29   : > { %v1695_v26 = vpack.c.bf16 %v1688_v25, %v1688_v25  ;;  %v2693_v27 = vpop.f32.mrb[41].mxu1  ;;  %v2889_v25 = vld [vmem:[#allocation9 + $0x60] sm:$0xff]  }
 0xb2a   : > { %v1691_v28 = vpop.f32.mrb[42].mxu1  ;;  %v2891_v27 = vld [vmem:[#allocation9 + $0x68] sm:$0xff]  }
 0xb2b   : > { %1712 = vrot.lane.b32.xlu1 %v1695_v26, %s3170_s8  ;;  %v2694_v29 = vpop.f32.mrb[43].mxu1  ;;  %v2890_v26 = vld [vmem:[#allocation9 + $0x20] sm:$0xff]  }
 0xb99   : > { %v1711_v42 = vpop.permute.xlu0 %1710 }
 0xb9a   : > { %v1727_v51 = vsel %vm1725_vm5, %v1722_v48, %v1711_v42  ;;  %v2461_v42 = vld [vmem:[%s3767_s5] ss:$0 sm:$0xff] }
 0xb9b   : > { %v2462_v48 = vld [vmem:[%s3802_s1] ss:$0 sm:$0xff] }
 0xb9d   : > { %v1713_v50 = vpop.permute.xlu1 %1712 }
 0xb9e   : > { %v1729_v53 = vsel %vm1725_vm5, %v1724_v47, %v1713_v50 }
 0xb9f   : > { %v2452_v54 = vcombine.low %v1727_v51, %v1729_v53 }
 0xba1   : > { %2712 = vmatmul.mubr.bf16.vlgmr.msra.gmra.mrb[28].mxu0 %v2452_v54 }
 0xba2   : > { %2558 = vmatpush3.bf16.msra.mxu0 %v2882_v0 }
 0xba3   : > { %2559 = vmatprep.subr.bf16.mxu0 %v2883_v46 }
 0xba6   : > { %2560 = vmatpush3.bf16.msra.mxu0 %v2884_v17 }
 0xba7   : > { %2561 = vmatprep.subr.bf16.mxu0 %v2885_v18 }
 0xbaa   : > { %2562 = vmatpush3.bf16.msra.mxu0 %v2886_v19 }
 0xbab   : > { %2563 = vmatprep.subr.bf16.mxu0 %v2887_v20 }
 0xbae   : > { %2564 = vmatpush3.bf16.msra.mxu0 %v2888_v21 }
 0xbaf   : > { %2565 = vmatprep.subr.bf16.mxu0 %v2889_v25 }
 0xbb2   : > { %2566 = vmatpush3.bf16.msra.mxu0 %v2890_v26 }
 0xbb3   : > { %2567 = vmatprep.subr.bf16.mxu0 %v2891_v27 }
 0xc74   : > { %v1841_v55 = vpop.f32.mrb[28].mxu0 }
 0xc75   : > { %v1842_v52 = vadd.f32 %v2451_v39, %v1841_v55  ;;  %v2713_v57 = vpop.f32.mrb[29].mxu0  ;;  %v2893_v55 = vld [vmem:[#allocation9 + $0x70] sm:$0xff]  }
 0xc76   : > { %v1844_v58 = vpop.f32.mrb[30].mxu0  ;;  %v2895_v57 = vld [vmem:[#allocation9 + $0x78] sm:$0xff]  }
 0xc77   : > { %v3709_v59 = vadd.f32 %v1842_v52, %v3494_v23  ;;  %v1845_v60 = vadd.f32 %v2451_v39, %v1844_v58  ;;  %v2714_v61 = vpop.f32.mrb[31].mxu0  ;;  %v2892_v39 = vld [vmem:[#allocation9 + $0x28] sm:$0xff]   ;;  %v2894_v52 = vld [vmem:[#allocation9 + $0x30] sm:$0xff]   ;;  %v2896_v58 = vld [vmem:[#allocation9 + $0x38] sm:$0xff]  }
 0xc78   : > { %2568 = vmatpush3.bf16.msra.mxu0 %v2892_v39 }
 0xc79   : > { %v3712_v22 = vadd.f32 %v1845_v60, %v3498_v24  ;;  %1852 = vadd.xlane.f32.xlu0 %v3709_v59  ;;  %2569 = vmatprep.subr.bf16.mxu0 %v2893_v55  ;;  %v1908_v60 = vld [vmem:[%s3803_s25] sm:$0x3] }
 0xc7a   : > { %v1913_v61 = vrot.slane %v1908_v60, %v574_v34  ;;  %v1917_v62 = vrot.slane %v1908_v60, %v578_v31 }
 0xc7b   : > { %1854 = vadd.xlane.f32.xlu1 %v3712_v22 }
 0xc7c   : > { %2570 = vmatpush3.bf16.msra.mxu0 %v2894_v52 }
 0xc7d   : > { %2571 = vmatprep.subr.bf16.mxu0 %v2895_v57 }
 0xc80   : > { %2572 = vmatpush3.bf16.msra.mxu0 %v2896_v58 }
 0xd06   : > { %v1853_v2 = vpop.xlane.xlu0 %1852 }
 0xd07   : > { %v1857_v23 = vmul.f32 0.0078125, %v1853_v2 }
 0xd08   : > { %v1855_v3 = vpop.xlane.xlu1 %1854 }
 0xd09   : > { %v1859_v4 = vsub.f32 %v3709_v59, %v1857_v23  ;;  %v1858_v41 = vmul.f32 0.0078125, %v1855_v3 }
 0xd0b   : > { %v3718_v24 = vsub.f32 %v3712_v22, %v1858_v41  ;;  %v1861_v45 = vmul.f32 %v1859_v4, %v1859_v4 }
 0xd0d   : > { %1863 = vadd.xlane.f32.xlu0 %v1861_v45  ;;  %v1862_v5 = vmul.f32 %v3718_v24, %v3718_v24 }
 0xd11   : > { %1865 = vadd.xlane.f32.xlu0 %v1862_v5 }
 0xd9a   : > { %v1864_v28 = vpop.xlane.xlu0 %1863 }
 0xd9b   : > { %v1867_v29 = vmul.f32 0.0078125, %v1864_v28 }
 0xd9d   : > { %v1869_v32 = vadd.f32 1e-05, %v1867_v29  ;;  %v2496_v29 = vld [vmem:[%s3805_s15] ss:$0 sm:$0xff] }
 0xd9e   : > { %v1866_v35 = vpop.xlane.xlu0 %1865 }
 0xd9f   : > { %2929 = vrsqrt.f32 %v1869_v32  ;;  %v1868_v36 = vmul.f32 0.0078125, %v1866_v35 }
 0xda1   : > { %v1870_v1 = vadd.f32 1e-05, %v1868_v36  ;;  %v2497_v36 = vld [vmem:[%s3806_s13] ss:$0 sm:$0xff] }
 0xda3   : > { %2931 = vrsqrt.f32 %v1870_v1 }
 0xda9   : > { %v2930_v37 = vpop.eup %2929 }
 0xdaa   : > { %v1873_v40 = vmul.f32 %v2930_v37, %v1859_v4 }
 0xdac   : > { %v1881_v47 = vmul.f32 %v2461_v42, %v1873_v40 }
 0xdad   : > { %v2932_v43 = vpop.eup %2931 }
 0xdae   : > { %v1874_v44 = vmul.f32 %v2932_v43, %v3718_v24  ;;  %v1889_v51 = vadd.f32 %v2462_v48, %v1881_v47 }
 0xdb0   : > { %v1882_v50 = vmul.f32 %v2461_v42, %v1874_v44 }
 0xdb2   : > { %v1890_v53 = vadd.f32 %v2462_v48, %v1882_v50 }
 0xdb4   : > { %v1891_v54 = vpack.c.bf16 %v1890_v53, %v1889_v51 }
 0xdb6   : > { %2033 = vmatmul.mubr.bf16.vlgmr.msra.gmra.mrb[44].mxu1 %v1891_v54 }
 0xe89   : > { %v2034_v33 = vpop.f32.mrb[44].mxu1 }
 0xe8a   : > { %v2035_v63 = vadd.f32 %v2034_v33, %v1913_v61  ;;  %v2036_v38 = vpop.f32.mrb[45].mxu1 }
 0xe8b   : > { %v2037_v2 = vadd.f32 %v2036_v38, %v1917_v62  ;;  %v2038_v23 = vpop.f32.mrb[46].mxu1 }
 0xe8c   : > { %v2039_v3 = vadd.f32 %v2038_v23, %v1913_v61  ;;  %v2040_v4 = vpop.f32.mrb[47].mxu1  ;;  %v2043_v24 = vmax.f32 %v2035_v63, 0.0 }
 0xe8d   : > { %v2041_v41 = vadd.f32 %v2040_v4, %v1917_v62  ;;  %v2044_v5 = vmax.f32 %v2037_v2, 0.0 }
 0xe8e   : > { %v2045_v45 = vmax.f32 %v2039_v3, 0.0 }
 0xe8f   : > { %v2046_v49 = vmax.f32 %v2041_v41, 0.0 }
 0xe90   : > { %v2047_v6 = vpack.c.bf16 %v2045_v45, %v2043_v24 }
 0xe91   : > { %v2048_v7 = vpack.c.bf16 %v2046_v49, %v2044_v5 }
 0xe93   : > { %2216 = vmatprep.mubr.bf16.mxu0 %v2048_v7 }
 0xe94   : > { %2217 = vmatmul.mubr.bf16.vlgmr.msra.gmra.mrb[32].mxu0 %v2047_v6 }
 0xf67   : > { %v2573_v34 = vpop.f32.mrb[32].mxu0 }
 0xf68   : > { %v2574_v30 = vpop.f32.mrb[33].mxu0 }
 0xf69   : > { %v2575_v31 = vadd.f32 %v2574_v30, %v2573_v34  ;;  %v2576_v9 = vpop.f32.mrb[34].mxu0 }
 0xf6a   : > { %v2577_v10 = vpop.f32.mrb[35].mxu0 }
 0xf6b   : > { %v2219_v56 = vadd.f32 %v2575_v31, %v2479_v8  ;;  %v2578_v11 = vadd.f32 %v2577_v10, %v2576_v9 }
 0xf6d   : > { %v2222_v12 = vadd.f32 %v2578_v11, %v2479_v8  ;;  %v2225_v13 = vadd.f32 %v2219_v56, %v3709_v59 }
 0xf6f   : > { %2229 = vadd.xlane.f32.xlu0 %v2225_v13  ;;  %v2226_v14 = vadd.f32 %v2222_v12, %v3712_v22 }
 0xf71   : > { %2231 = vadd.xlane.f32.xlu1 %v2226_v14 }
 0xffc   : > { %v2230_v15 = vpop.xlane.xlu0 %2229 }
 0xffd   : > { %v2233_v16 = vmul.f32 0.0078125, %v2230_v15 }
 0xffe   : > { %v2232_v0 = vpop.xlane.xlu1 %2231 }
 0xfff   : > { %v2235_v46 = vsub.f32 %v2225_v13, %v2233_v16  ;;  %v2234_v17 = vmul.f32 0.0078125, %v2232_v0 }
0x1001   : > { %v2236_v18 = vsub.f32 %v2226_v14, %v2234_v17  ;;  %v2237_v19 = vmul.f32 %v2235_v46, %v2235_v46 }
0x1003   : > { %2239 = vadd.xlane.f32.xlu0 %v2237_v19  ;;  %v2238_v20 = vmul.f32 %v2236_v18, %v2236_v18 }
0x1005   : > { %2241 = vadd.xlane.f32.xlu1 %v2238_v20 }
0x1090   : > { %v2240_v21 = vpop.xlane.xlu0 %2239 }
0x1091   : > { %v2243_v25 = vmul.f32 0.0078125, %v2240_v21 }
0x1092   : > { %v2242_v26 = vpop.xlane.xlu1 %2241 }
0x1093   : > { %v2245_v27 = vadd.f32 1e-05, %v2243_v25  ;;  %v2244_v59 = vmul.f32 0.0078125, %v2242_v26 }
0x1095   : > { %2933 = vrsqrt.f32 %v2245_v27  ;;  %v2246_v22 = vadd.f32 1e-05, %v2244_v59 }
0x1097   : > { %2935 = vrsqrt.f32 %v2246_v22 }
0x109f   : > { %v2934_v28 = vpop.eup %2933 }
0x10a0   : > { %v2249_v32 = vmul.f32 %v2934_v28, %v2235_v46 }
0x10a1   : > { %v2936_v35 = vpop.eup %2935 }
0x10a2   : > { %v2257_v1 = vmul.f32 %v2496_v29, %v2249_v32  ;;  %v2250_v37 = vmul.f32 %v2936_v35, %v2236_v18 }
0x10a4   : > { %v2265_v40 = vadd.f32 %v2497_v36, %v2257_v1  ;;  %v2258_v42 = vmul.f32 %v2496_v29, %v2250_v37 }
0x10a6   : > { %2267 = vst [vmem:[%s532_s19] sm:$0xff] %v2265_v40  ;;  %v2266_v43 = vadd.f32 %v2497_v36, %v2258_v42 }
0x10a8   : > { %2268 = vst [vmem:[%s532_s19 + $0x8] sm:$0xff] %v2266_v43 }
0x10a9 PF: > { %p26_p5 = scmp.ge.s32.totalorder %s3401_s17, 6   ;;  %s3808_s25 = smov %s3145_s26 }
0x10aa   : > { %s3809_s26 = smov %s3149_s27  ;;  %s3810_s27 = smov %s3412_s21 }
0x10ab   : > { %s3811_s28 = smov %s3401_s17  ;;  %28 = sbr.rel (!%p26_p5) target bundleno = 14 (0xe), region = 132 }
0x10b2   :  { %2291 = vsyncpa [#allocation3], 1 }
0x10b3   :  { %2293 = vsyncpa [#allocation3 + $0x1], 1 }
0x10b4   :  { %2294 = vsyncpa [#allocation5], 1 }
0x10b5   :  { %2295 = vsyncpa [#allocation8], 1 }
0x10b6   :  { %2296 = vsyncpa [#allocation11], 1 }

// kernel: _lambda_.3
= control target key start
LH: loop header
LB: loop body
LE: loop exit
PB: predicated region body
PF: predicated region fallthrough
CT: control target
= control target key end

     0   :  { %s3433_s0 = inlined_call_operand.vmem [shape: f32[8,8,128], index: 0, kind: input, shape index: {}]   ;;  %s3434_s1 = inlined_call_operand.vmem [shape: bf16[128,384], index: 1, kind: input, shape index: {}]   ;;  %s3435_s2 = inlined_call_operand.vmem [shape: f32[1,384], index: 2, kind: input, shape index: {}]   ;;  %s3436_s3 = inlined_call_operand.vmem [shape: bf16[128,128], index: 3, kind: input, shape index: {}]   ;;  %s3437_s4 = inlined_call_operand.vmem [shape: f32[1,128], index: 4, kind: input, shape index: {}]   ;;  %s3438_s5 = inlined_call_operand.vmem [shape: f32[1,128], index: 5, kind: input, shape index: {}]   ;;  %s3439_s6 = inlined_call_operand.vmem [shape: f32[1,128], index: 6, kind: input, shape index: {}]   ;;  %s3440_s7 = inlined_call_operand.vmem [shape: bf16[128,256], index: 7, kind: input, shape index: {}]   ;;  %s3441_s8 = inlined_call_operand.vmem [shape: f32[1,256], index: 8, kind: input, shape index: {}]   ;;  %s3442_s9 = inlined_call_operand.vmem [shape: bf16[256,128], index: 9, kind: input, shape index: {}]   ;;  %s3443_s10 = inlined_call_operand.vmem [shape: f32[1,128], index: 10, kind: input, shape index: {}]   ;;  %s3444_s11 = inlined_call_operand.vmem [shape: f32[1,128], index: 11, kind: input, shape index: {}]   ;;  %s3445_s12 = inlined_call_operand.vmem [shape: f32[1,128], index: 12, kind: input, shape index: {}]   ;;  %s3446_s13 = inlined_call_operand.hbm [shape: f32[8,8,128], index: 13, kind: output, shape index: {}]  }
   0x1   :  { %3450 = sst [smem:[#allocation8_spill]] %s3433_s0 }
   0x2   :  { %18 = vsyncpa [#allocation3], 0 }
   0x3   :  { %20 = vsyncpa [#allocation3 + $0x1], 0  ;;  %s2883_s25 = smov 0   ;;  %s2885_s26 = smov 0  }
   0x4   :  { %s2887_s27 = smov 0   ;;  %s2889_s28 = smov 0  }
   0x5 LB: > { %3451 = sst [smem:[#allocation5_spill]] %s2798_s27  ;;  %s2904_s29 = sadd.s32 4294967295, %s2802_s28   ;;  %s2802_s28 = sphi %s2889_s28, %s3457_s28   ;;  %s2798_s27 = sphi %s2887_s27, %s3459_s27   ;;  %s2794_s26 = sphi %s2885_s26, %s3461_s26   ;;  %s2790_s25 = sphi %s2883_s25, %s3460_s25  }
   0x6   : > { %s2253_s30 = sadd.s32 4294967294, %s2802_s28   ;;  %s2908_s14 = sadd.s32 1, %s2802_s28  }
   0x7   : > { %3452 = sst [smem:[#allocation6_spill]] %s2908_s14  ;;  %s311_s15 = sadd.s32 1, %s2798_s27 }
   0x8   : > { %s308_s16 = ssub.s32 %s2802_s28, %s2908_s14  ;;  %p321_p0 = scmp.ne.s32.totalorder %s2798_s27, %s2794_s26 }
   0x9   : > { %p309_p1 = scmp.eq.s32.totalorder %s308_s16, 0  ;;  %p322_p2 = scmp.eq.s32.totalorder %s2904_s29, 3 }
   0xa   : > { %p327_p3 = scmp.ne.s32.totalorder %s2794_s26, %s2790_s25  ;;  %p328_p4 = scmp.eq.s32.totalorder %s2253_s30, 3 }
   0xb   : > { %s2919_s17 = scalar_select %p309_p1, %s2798_s27, %s311_s15  }
   0xc   : > { %p2921_p5 = por %p322_p2, %p321_p0  ;;  %p2925_p6 = por %p328_p4, %p327_p3 }
   0xd   : > { %3453 = sst [smem:[#allocation7_spill]] %s2919_s17  ;;  %p2256_p7 = scmp.ge.s32.totalorder %s2802_s28, 1 }
   0xe   : > { %p391_p8 = scmp.lt.s32.totalorder %s2802_s28, 5 }
  0x10   : > { %p392_p9 = pnand %p2256_p7, %p391_p8 }
  0x11   : > { %v2620_v0 = vld [vmem:[%s3434_s1 + $0x4] ss:$12 sps:$4 sm:$0xff] (!%p392_p9)   ;;  %v2622_v1 = vld [vmem:[%s3434_s1] ss:$12 sps:$4 sm:$0xff] (!%p392_p9)   ;;  %v2804_v2 = vmov (!%p392_p9), 0   ;;  %v2805_v4 = vmov (!%p392_p9), 0.0   ;;  %v480_v29 = vlaneseq (!%p392_p9) }
  0x12   : > { %395 = sbr.rel (%p392_p9) target bundleno = 4102 (0x1006), region = 72  ;;  %655 = vmatprep.mubr.bf16.mxu0 (!%p392_p9), %v2804_v2  ;;  %623 = vmatprep.subr.bf16.mxu0 (!%p392_p9), %v2620_v0  ;;  %v2623_v3 = vld [vmem:[%s3434_s1 + $0x1c] ss:$12 sps:$4 sm:$0xff] (!%p392_p9)   ;;  %v2625_v5 = vld [vmem:[%s3434_s1 + $0x18] ss:$12 sps:$4 sm:$0xff] (!%p392_p9)   ;;  %s2258_s22 = sshll.u32 (!%p392_p9), %s2904_s29, 1 }
  0x13   : > { %2437 = vmatprep.subr.bf16.mxu1 (!%p392_p9), %v2805_v4  ;;  %624 = vmatpush1.bf16.msra.mxu0 (!%p392_p9), %v2622_v1  ;;  %v2626_v6 = vld [vmem:[%s3434_s1 + $0x34] ss:$12 sps:$4 sm:$0xff] (!%p392_p9)   ;;  %v2628_v7 = vld [vmem:[%s3434_s1 + $0x30] ss:$12 sps:$4 sm:$0xff] (!%p392_p9)   ;;  %v2629_v8 = vld [vmem:[%s3434_s1 + $0x4c] ss:$12 sps:$4 sm:$0xff] (!%p392_p9)  }
  0x14   : > { %625 = vmatprep.subr.bf16.mxu0 (!%p392_p9), %v2623_v3  ;;  %p436_p10 = scmp.lt.s32.totalorder (!%p392_p9), %s2258_s22, 7  ;;  %v2631_v9 = vld [vmem:[%s3434_s1 + $0x48] ss:$12 sps:$4 sm:$0xff] (!%p392_p9)   ;;  %v2632_v10 = vld [vmem:[%s3434_s1 + $0x64] ss:$12 sps:$4 sm:$0xff] (!%p392_p9)   ;;  %s3456_s0 = sld [smem:[#allocation8_spill]] (!%p392_p9) }
  0x15   : > { %v2644_v11 = vld [vmem:[%s3434_s1 + $0x8] ss:$12 sps:$4 sm:$0xff] (!%p392_p9)   ;;  %v2645_v12 = vld [vmem:[%s3434_s1 + $0x20] ss:$12 sps:$4 sm:$0xff] (!%p392_p9)   ;;  %v2646_v15 = vld [vmem:[%s3434_s1 + $0x38] ss:$12 sps:$4 sm:$0xff] (!%p392_p9)  }
  0x16   : > { %2438 = vmatpush3.bf16.msra.mxu1 (!%p392_p9), %v2644_v11  ;;  %v2634_v13 = vld [vmem:[%s3434_s1 + $0x60] ss:$12 sps:$4 sm:$0xff] (!%p392_p9)   ;;  %v2635_v14 = vld [vmem:[%s3434_s1 + $0x7c] ss:$12 sps:$4 sm:$0xff] (!%p392_p9)   ;;  %v2637_v16 = vld [vmem:[%s3434_s1 + $0x78] ss:$12 sps:$4 sm:$0xff] (!%p392_p9)  }
  0x17   : > { %626 = vmatpush1.bf16.msra.mxu0 (!%p392_p9), %v2625_v5  ;;  %2439 = vmatprep.subr.bf16.mxu1 (!%p392_p9), %v2805_v4  ;;  %v2638_v17 = vld [vmem:[%s3434_s1 + $0x94] ss:$12 sps:$4 sm:$0xff] (!%p392_p9)   ;;  %v2647_v18 = vld [vmem:[%s3434_s1 + $0x50] ss:$12 sps:$4 sm:$0xff] (!%p392_p9)   ;;  %v2641_v20 = vld [vmem:[%s3434_s1 + $0xac] ss:$12 sps:$4 sm:$0xff] (!%p392_p9)  }
  0x18   : > { %627 = vmatprep.subr.bf16.mxu0 (!%p392_p9), %v2626_v6  ;;  %v2640_v19 = vld [vmem:[%s3434_s1 + $0x90] ss:$12 sps:$4 sm:$0xff] (!%p392_p9)   ;;  %v2648_v21 = vld [vmem:[%s3434_s1 + $0x68] ss:$12 sps:$4 sm:$0xff] (!%p392_p9)   ;;  %v2649_v25 = vld [vmem:[%s3434_s1 + $0x80] ss:$12 sps:$4 sm:$0xff] (!%p392_p9)  }
  0x19   : > { %s3463_s22 = smov (!%p436_p10, %s2258_s22), 7  ;;  %v2643_v22 = vld [vmem:[%s3434_s1 + $0xa8] ss:$12 sps:$4 sm:$0xff]   ;;  %v2650_v27 = vld [vmem:[%s3434_s1 + $0x98] ss:$12 sps:$4 sm:$0xff]   ;;  %vm2806_vm0 = vmmov 0  }
  0x1a   : > { %s2259_s14 = sshll.u32 %s3463_s22, 3  ;;  %2440 = vmatpush3.bf16.msra.mxu1 %v2645_v12  ;;  %v2651_v28 = vld [vmem:[%s3434_s1 + $0xb0] ss:$12 sps:$4 sm:$0xff]   ;;  %2453 = vmatprep.mubr.msk.bf16.mxu1 %vm2806_vm0, %v2805_v4  ;;  %v3030_v30 = vshrl.u32 %v480_v29, 7  ;;  %v478_v32 = vld [vmem:[%s3435_s2] sm:$0x7] }
  0x1b   : > { %628 = vmatpush1.bf16.msra.mxu0 %v2628_v7  ;;  %2441 = vmatprep.subr.bf16.mxu1 %v2805_v4  ;;  %s439_s23 = scalar_lea.vmem %s3456_s0, %s2259_s14  ;;  %vm725_vm1 = vcmask 261120   ;;  %vm846_vm2 = vcmask 1043456   ;;  %vm818_vm3 = vcmask 64512   ;;  %s2807_s27 = smov 96   ;;  %vm1628_vm4 = vcmask 523264  }
  0x1c   : > { %629 = vmatprep.subr.bf16.mxu0 %v2629_v8  ;;  %v3003_v23 = vld [vmem:[%s439_s23] sm:$0xff]  ;;  %v3005_v24 = vld [vmem:[%s439_s23 + $0x8] sm:$0xff]  ;;  %v486_v31 = vsub.s32 1, %v3030_v30  ;;  %v482_v34 = vsub.s32 0, %v3030_v30  ;;  %v490_v50 = vsub.s32 2, %v3030_v30  ;;  %s2808_s30 = smov 64  }
  0x1d   : > { %v445_v26 = vpack.c.bf16 %v3005_v24, %v3003_v23  ;;  %s2809_s22 = smov 32   ;;  %vm1633_vm5 = vcmask 785408   ;;  %v2334_v30 = vld [vmem:[%s3443_s10] ss:$0 sm:$0xff]  ;;  %s432_s20 = sand.u32 1, %s2794_s26  }
  0x1e   : > { %2442 = vmatpush3.bf16.msra.mxu1 %v2646_v15  ;;  %v487_v33 = vrot.slane %v478_v32, %v486_v31  ;;  %v483_v40 = vrot.slane %v478_v32, %v482_v34  ;;  %v491_v51 = vrot.slane %v478_v32, %v490_v50  ;;  %s2257_s21 = sshll.u32 %s432_s20, 4  ;;  %s3392_s17 = scalar_lea.sflag [#allocation3], %s432_s20 }
  0x1f   : > { %630 = vmatpush1.bf16.msra.mxu0 %v2631_v9  ;;  %2443 = vmatprep.subr.bf16.mxu1 %v2805_v4 }
  0x20   : > { %631 = vmatprep.subr.bf16.mxu0 %v2632_v10 }
  0x22   : > { %2444 = vmatpush3.bf16.msra.mxu1 %v2647_v18 }
  0x23   : > { %632 = vmatpush1.bf16.msra.mxu0 %v2634_v13  ;;  %2445 = vmatprep.subr.bf16.mxu1 %v2805_v4 }
  0x24   : > { %633 = vmatprep.subr.bf16.mxu0 %v2635_v14 }
  0x26   : > { %2446 = vmatpush3.bf16.msra.mxu1 %v2648_v21 }
  0x27   : > { %634 = vmatpush1.bf16.msra.mxu0 %v2637_v16  ;;  %2447 = vmatprep.subr.bf16.mxu1 %v2805_v4 }
  0x28   : > { %635 = vmatprep.subr.bf16.mxu0 %v2638_v17 }
  0x2a   : > { %2448 = vmatpush3.bf16.msra.mxu1 %v2649_v25 }
  0x2b   : > { %636 = vmatpush1.bf16.msra.mxu0 %v2640_v19  ;;  %2449 = vmatprep.subr.bf16.mxu1 %v2805_v4 }
  0x2c   : > { %637 = vmatprep.subr.bf16.mxu0 %v2641_v20 }
  0x2e   : > { %2450 = vmatpush3.bf16.msra.mxu1 %v2650_v27 }
  0x2f   : > { %638 = vmatpush1.bf16.msra.mxu0 %v2643_v22  ;;  %2451 = vmatprep.subr.bf16.mxu1 %v2805_v4 }
  0x30   : > { %2481 = vmatprep.subr.bf16.mxu0 %v2805_v4 }
  0x32   : > { %656 = vmatmul.mubr.bf16.vlgmr.msra.gmra.mrb[0].mxu0 %v445_v26  ;;  %2452 = vmatpush3.bf16.msra.mxu1 %v2651_v28 }
  0x33   : > { %2457 = vmatprep.subr.bf16.mxu1 %v2805_v4  ;;  %2483 = vmatprep.mubr.msk.bf16.mxu0 %vm2806_vm0, %v2805_v4 }
  0x35   : > { %2454 = vmatmul.mubr.bf16.vlgmr.msra.gmra.mrb[0].mxu1 %v445_v26 }
  0x36   : > { %2459 = vmatprep.mubr.msk.bf16.mxu1 %vm2806_vm0, %v2805_v4 }
 0x105   : > { %v657_v35 = vpop.f32.mrb[0].mxu0 }
 0x106   : > { %v659_v36 = vpop.f32.mrb[1].mxu0  ;;  %v658_v44 = vadd.f32 %v657_v35, %v483_v40 }
 0x107   : > { %v660_v37 = vadd.f32 %v659_v36, %v487_v33  ;;  %v661_v38 = vpop.f32.mrb[2].mxu0 }
 0x108   : > { %v663_v39 = vpop.f32.mrb[3].mxu0  ;;  %v3048_v46 = vpack.c.bf16 %v658_v44, %v658_v44  ;;  %v662_v48 = vadd.f32 %v661_v38, %v483_v40  ;;  %v700_v52 = vpop.f32.mrb[0].mxu1 }
 0x109   : > { %v3041_v41 = vpack.c.bf16 %v660_v37, %v660_v37  ;;  %v664_v42 = vadd.f32 %v663_v39, %v487_v33  ;;  %v701_v53 = vadd.f32 %v700_v52, %v491_v51  ;;  %v2455_v54 = vpop.f32.mrb[1].mxu1 }
 0x10a   : > { %v3057_v49 = vpack.c.bf16 %v662_v48, %v662_v48  ;;  %v703_v55 = vpop.f32.mrb[2].mxu1 }
 0x10b   : > { %v730_v43 = vsel %vm725_vm1, %v3041_v41, 0  ;;  %v3046_v45 = vpack.c.bf16 %v664_v42, %v664_v42  ;;  %v3064_v56 = vpack.c.bf16 %v701_v53, %v701_v53  ;;  %v704_v57 = vadd.f32 %v703_v55, %v491_v51  ;;  %v2456_v58 = vpop.f32.mrb[3].mxu1 }
 0x10c   : > { %2458 = vmatpush3.bf16.xpose.msra.mxu1 %v730_v43 }
 0x10d   : > { %2463 = vmatprep.subr.bf16.mxu1 %v2805_v4  ;;  %v776_v47 = vsel %vm725_vm1, %v3046_v45, 0  ;;  %v848_v59 = vsel %vm846_vm2, %v3064_v56, 0  ;;  %v3083_v22 = vpack.c.bf16 %v704_v57, %v704_v57 }
 0x10f   : > { %v894_v27 = vsel %vm846_vm2, %v3083_v22, 0 }
 0x113   : > { %2460 = vmatmul.mubr.msk.bf16.vlgmr.msra.gmra.mrb[4].mxu1 %vm725_vm1, %v3048_v46 }
 0x114   : > { %2464 = vmatpush3.bf16.xpose.msra.mxu1 %v776_v47  ;;  %2465 = vmatprep.mubr.msk.bf16.mxu1 %vm2806_vm0, %v2805_v4 }
 0x115   : > { %2469 = vmatprep.subr.bf16.mxu1 %v2805_v4 }
 0x11b   : > { %2466 = vmatmul.mubr.msk.bf16.vlgmr.msra.gmra.mrb[8].mxu1 %vm725_vm1, %v3057_v49 }
 0x11c   : > { %2471 = vmatprep.mubr.msk.bf16.mxu1 %vm2806_vm0, %v2805_v4  ;;  %2470 = vmatpush3.bf16.msra.mxu1 %v848_v59 }
 0x11d   : > { %2475 = vmatprep.subr.bf16.mxu1 %v2805_v4 }
 0x1e6   : > { %v766_v60 = vpop.f32.mrb[4].mxu1 }
 0x1e7   : > { %v2461_v61 = vpop.f32.mrb[5].mxu1  ;;  %v819_v62 = vsel %vm818_vm3, %v766_v60, -inf }
 0x1e8   : > { %820 = vmax.xlane.f32.xlu0 %v819_v62  ;;  %v769_v63 = vpop.f32.mrb[6].mxu1 }
 0x1e9   : > { %v2462_v0 = vpop.f32.mrb[7].mxu1 }
 0x1ee   : > { %v812_v1 = vpop.f32.mrb[8].mxu1 }
 0x1ef   : > { %v2467_v3 = vpop.f32.mrb[9].mxu1  ;;  %v822_v5 = vsel %vm818_vm3, %v812_v1, -inf }
 0x1f0   : > { %823 = vmax.xlane.f32.xlu0 %v822_v5  ;;  %v815_v6 = vpop.f32.mrb[10].mxu1 }
 0x1f1   : > { %v2468_v7 = vpop.f32.mrb[11].mxu1 }
 0x206   : > { %940 = vrot.lane.b32.xlu0 %v3041_v41, %s2807_s27 }
 0x275   : > { %v821_v8 = vpop.xlane.xlu0 %820 }
 0x276   : > { %v825_v9 = vsub.f32 %v766_v60, %v821_v8 }
 0x278   : > { %v827_v10 = vmul.f32 1.442695, %v825_v9 }
 0x27a   : > { %2700 = vpow2.f32 %v827_v10 }
 0x27d   : > { %v824_v11 = vpop.xlane.xlu0 %823 }
 0x27e   : > { %v826_v16 = vsub.f32 %v812_v1, %v824_v11 }
 0x280   : > { %v829_v17 = vmul.f32 1.442695, %v826_v16 }
 0x281   : > { %v941_v12 = vpop.permute.xlu0 %940 }
 0x282   : > { %v946_v13 = vsel %vm725_vm1, %v941_v12, 0  ;;  %2702 = vpow2.f32 %v829_v17 }
 0x283   : > { %2482 = vmatpush3.bf16.xpose.msra.mxu0 %v946_v13 }
 0x284   : > { %v2701_v14 = vpop.eup %2700  ;;  %2493 = vmatprep.subr.bf16.mxu0 %v2805_v4 }
 0x285   : > { %v831_v15 = vsel %vm818_vm3, %v2701_v14, 0.0 }
 0x286   : > { %832 = vadd.xlane.f32.xlu1 %v831_v15 }
 0x28c   : > { %v2703_v18 = vpop.eup %2702 }
 0x28d   : > { %v834_v19 = vsel %vm818_vm3, %v2703_v18, 0.0 }
 0x297   : > { %990 = vrot.lane.b32.xlu1 %v3046_v45, %s2807_s27 }
 0x2bb   : > { %835 = vadd.xlane.f32.xlu1 %v834_v19 }
 0x2cc   : > { %938 = vrot.lane.b32.xlu1 %v3048_v46, %s2807_s27 }
 0x2d0   : > { %988 = vrot.lane.b32.xlu1 %v3057_v49, %s2807_s27 }
 0x313   : > { %v833_v20 = vpop.xlane.xlu1 %832 }
 0x314   : > { %2704 = vrcp.f32 %v833_v20 }
 0x317   : > { %v991_v28 = vpop.permute.xlu1 %990 }
 0x318   : > { %v996_v37 = vsel %vm725_vm1, %v991_v28, 0 }
 0x31e   : > { %v2705_v21 = vpop.eup %2704 }
 0x31f   : > { %v839_v25 = vmul.f32 %v2705_v21, %v2701_v14 }
 0x321   : > { %v841_v26 = vpack.c.bf16 %v839_v25, %v839_v25 }
 0x323   : > { %2472 = vmatmul.mubr.msk.bf16.vlgmr.msra.gmra.mrb[12].mxu1 %vm818_vm3, %v841_v26 }
 0x324   : > { %2476 = vmatpush3.bf16.msra.mxu1 %v894_v27  ;;  %2477 = vmatprep.mubr.msk.bf16.mxu1 %vm2806_vm0, %v2805_v4 }
 0x325   : > { %2487 = vmatprep.subr.bf16.mxu1 %v2805_v4 }
 0x348   : > { %v836_v29 = vpop.xlane.xlu1 %835 }
 0x349   : > { %2706 = vrcp.f32 %v836_v29 }
 0x34c   : > { %v939_v32 = vpop.permute.xlu1 %938 }
 0x34d   : > { %2484 = vmatmul.mubr.msk.bf16.vlgmr.msra.gmra.mrb[4].mxu0 %vm725_vm1, %v939_v32 }
 0x34e   : > { %2495 = vmatprep.mubr.msk.bf16.mxu0 %vm2806_vm0, %v2805_v4 }
 0x350   : > { %v989_v38 = vpop.permute.xlu1 %988 }
 0x353   : > { %v2707_v33 = vpop.eup %2706 }
 0x354   : > { %v840_v35 = vmul.f32 %v2707_v33, %v2703_v18 }
 0x356   : > { %v842_v36 = vpack.c.bf16 %v840_v35, %v840_v35 }
 0x358   : > { %2478 = vmatmul.mubr.msk.bf16.vlgmr.msra.gmra.mrb[16].mxu1 %vm818_vm3, %v842_v36 }
 0x359   : > { %2488 = vmatpush3.bf16.xpose.msra.mxu1 %v996_v37  ;;  %2489 = vmatprep.mubr.msk.bf16.mxu1 %vm2806_vm0, %v2805_v4 }
 0x35a   : > { %2499 = vmatprep.subr.bf16.mxu1 %v2805_v4 }
 0x360   : > { %2490 = vmatmul.mubr.msk.bf16.vlgmr.msra.gmra.mrb[20].mxu1 %vm725_vm1, %v989_v38 }
 0x361   : > { %2501 = vmatprep.mubr.msk.bf16.mxu1 %vm2806_vm0, %v2805_v4 }
 0x3f6   : > { %v3102_v39 = vpop.f32.mrb[12].mxu1 }
 0x3f7   : > { %v2473_v40 = vpop.f32.mrb[13].mxu1 }
 0x3f8   : > { %v887_v42 = vpop.f32.mrb[14].mxu1 }
 0x3f9   : > { %v2474_v43 = vpop.f32.mrb[15].mxu1 }
 0x420   : > { %v982_v44 = vpop.f32.mrb[4].mxu0 }
 0x421   : > { %v2485_v47 = vpop.f32.mrb[5].mxu0  ;;  %v1038_v48 = vsel %vm818_vm3, %v982_v44, -inf }
 0x422   : > { %1039 = vmax.xlane.f32.xlu0 %v1038_v48  ;;  %v985_v50 = vpop.f32.mrb[6].mxu0 }
 0x423   : > { %v2486_v51 = vpop.f32.mrb[7].mxu0 }
 0x42b   : > { %v3105_v52 = vpop.f32.mrb[16].mxu1 }
 0x42c   : > { %v2479_v53 = vpop.f32.mrb[17].mxu1 }
 0x42d   : > { %v933_v54 = vpop.f32.mrb[18].mxu1 }
 0x42e   : > { %v2480_v55 = vpop.f32.mrb[19].mxu1 }
 0x433   : > { %v1032_v57 = vpop.f32.mrb[20].mxu1 }
 0x434   : > { %v2491_v58 = vpop.f32.mrb[21].mxu1  ;;  %v1041_v59 = vsel %vm818_vm3, %v1032_v57, -inf }
 0x435   : > { %1042 = vmax.xlane.f32.xlu1 %v1041_v59  ;;  %v1035_v60 = vpop.f32.mrb[22].mxu1 }
 0x436   : > { %v2492_v61 = vpop.f32.mrb[23].mxu1 }
 0x446   : > { %1110 = vrot.lane.b32.xlu1 %v3083_v22, %s2807_s27 }
 0x44a   : > { %1162 = vrot.lane.b32.xlu1 %v3041_v41, %s2808_s30 }
 0x44e   : > { %1212 = vrot.lane.b32.xlu1 %v3046_v45, %s2808_s30 }
 0x452   : > { %1210 = vrot.lane.b32.xlu1 %v3057_v49, %s2808_s30 }
 0x4af   : > { %v1040_v62 = vpop.xlane.xlu0 %1039 }
 0x4b0   : > { %v1044_v63 = vsub.f32 %v982_v44, %v1040_v62 }
 0x4b2   : > { %v1046_v0 = vmul.f32 1.442695, %v1044_v63 }
 0x4b4   : > { %2708 = vpow2.f32 %v1046_v0 }
 0x4be   : > { %v2709_v1 = vpop.eup %2708 }
 0x4bf   : > { %v1050_v3 = vsel %vm818_vm3, %v2709_v1, 0.0 }
 0x4c0   : > { %1051 = vadd.xlane.f32.xlu0 %v1050_v3 }
 0x4c2   : > { %v1043_v5 = vpop.xlane.xlu1 %1042 }
 0x4c3   : > { %v1045_v6 = vsub.f32 %v1032_v57, %v1043_v5 }
 0x4c5   : > { %v1048_v7 = vmul.f32 1.442695, %v1045_v6 }
 0x4c6   : > { %v1111_v8 = vpop.permute.xlu1 %1110 }
 0x4c7   : > { %2710 = vpow2.f32 %v1048_v7  ;;  %v1116_v9 = vsel %vm846_vm2, %v1111_v8, 0 }
 0x4c8   : > { %2500 = vmatpush3.bf16.msra.mxu1 %v1116_v9 }
 0x4c9   : > { %2511 = vmatprep.subr.bf16.mxu1 %v2805_v4 }
 0x4ca   : > { %v1163_v18 = vpop.permute.xlu1 %1162 }
 0x4cb   : > { %v1168_v26 = vsel %vm725_vm1, %v1163_v18, 0 }
 0x4ce   : > { %v1213_v25 = vpop.permute.xlu1 %1212 }
 0x4cf   : > { %v1218_v28 = vsel %vm725_vm1, %v1213_v25, 0 }
 0x4d1   : > { %v2711_v10 = vpop.eup %2710 }
 0x4d2   : > { %v1053_v11 = vsel %vm818_vm3, %v2711_v10, 0.0  ;;  %v1211_v32 = vpop.permute.xlu1 %1210 }
 0x4d3   : > { %1054 = vadd.xlane.f32.xlu0 %v1053_v11 }
 0x4e9   : > { %1062 = vrot.lane.b32.xlu0 %v3064_v56, %s2807_s27 }
 0x4ed   : > { %1160 = vrot.lane.b32.xlu0 %v3048_v46, %s2808_s30 }
 0x54d   : > { %v1052_v12 = vpop.xlane.xlu0 %1051 }
 0x54e   : > { %2712 = vrcp.f32 %v1052_v12 }
 0x558   : > { %v2713_v13 = vpop.eup %2712 }
 0x559   : > { %v1058_v15 = vmul.f32 %v2713_v13, %v2709_v1 }
 0x55b   : > { %v1060_v19 = vpack.c.bf16 %v1058_v15, %v1058_v15 }
 0x560   : > { %v1055_v14 = vpop.xlane.xlu0 %1054 }
 0x561   : > { %2714 = vrcp.f32 %v1055_v14 }
 0x564   : > { %v1063_v16 = vpop.permute.xlu0 %1062 }
 0x565   : > { %v1068_v17 = vsel %vm846_vm2, %v1063_v16, 0 }
 0x566   : > { %2494 = vmatpush3.bf16.msra.mxu0 %v1068_v17 }
 0x567   : > { %2505 = vmatprep.subr.bf16.mxu0 %v2805_v4 }
 0x568   : > { %v1161_v29 = vpop.permute.xlu0 %1160 }
 0x569   : > { %2496 = vmatmul.mubr.msk.bf16.vlgmr.msra.gmra.mrb[8].mxu0 %vm818_vm3, %v1060_v19 }
 0x56a   : > { %2507 = vmatprep.mubr.msk.bf16.mxu0 %vm2806_vm0, %v2805_v4 }
 0x56b   : > { %v2715_v20 = vpop.eup %2714 }
 0x56c   : > { %v1059_v21 = vmul.f32 %v2715_v20, %v2711_v10 }
 0x56e   : > { %v1061_v27 = vpack.c.bf16 %v1059_v21, %v1059_v21 }
 0x56f   : > { %2506 = vmatpush3.bf16.xpose.msra.mxu0 %v1168_v26 }
 0x570   : > { %2502 = vmatmul.mubr.msk.bf16.vlgmr.msra.gmra.mrb[24].mxu1 %vm818_vm3, %v1061_v27  ;;  %2517 = vmatprep.subr.bf16.mxu0 %v2805_v4 }
 0x571   : > { %2512 = vmatpush3.bf16.xpose.msra.mxu1 %v1218_v28  ;;  %2513 = vmatprep.mubr.msk.bf16.mxu1 %vm2806_vm0, %v2805_v4 }
 0x572   : > { %2523 = vmatprep.subr.bf16.mxu1 %v2805_v4 }
 0x576   : > { %2508 = vmatmul.mubr.msk.bf16.vlgmr.msra.gmra.mrb[12].mxu0 %vm725_vm1, %v1161_v29 }
 0x577   : > { %2519 = vmatprep.mubr.msk.bf16.mxu0 %vm2806_vm0, %v2805_v4 }
 0x578   : > { %2514 = vmatmul.mubr.msk.bf16.vlgmr.msra.gmra.mrb[28].mxu1 %vm725_vm1, %v1211_v32 }
 0x579   : > { %2525 = vmatprep.mubr.msk.bf16.mxu1 %vm2806_vm0, %v2805_v4 }
 0x63c   : > { %v3142_v33 = vpop.f32.mrb[8].mxu0 }
 0x63d   : > { %v2497_v35 = vpop.f32.mrb[9].mxu0 }
 0x63e   : > { %v1107_v36 = vpop.f32.mrb[10].mxu0 }
 0x63f   : > { %v2498_v37 = vpop.f32.mrb[11].mxu0 }
 0x643   : > { %v3144_v38 = vpop.f32.mrb[24].mxu1 }
 0x644   : > { %v2503_v40 = vpop.f32.mrb[25].mxu1 }
 0x645   : > { %v1155_v42 = vpop.f32.mrb[26].mxu1 }
 0x646   : > { %v2504_v43 = vpop.f32.mrb[27].mxu1 }
 0x649   : > { %v1204_v44 = vpop.f32.mrb[12].mxu0 }
 0x64a   : > { %v2509_v47 = vpop.f32.mrb[13].mxu0  ;;  %v1260_v48 = vsel %vm818_vm3, %v1204_v44, -inf }
 0x64b   : > { %1261 = vmax.xlane.f32.xlu0 %v1260_v48  ;;  %v1207_v50 = vpop.f32.mrb[14].mxu0  ;;  %v1254_v51 = vpop.f32.mrb[28].mxu1 }
 0x64c   : > { %v2510_v53 = vpop.f32.mrb[15].mxu0  ;;  %v2515_v54 = vpop.f32.mrb[29].mxu1  ;;  %v1263_v55 = vsel %vm818_vm3, %v1254_v51, -inf }
 0x64d   : > { %1264 = vmax.xlane.f32.xlu1 %v1263_v55  ;;  %v1257_v57 = vpop.f32.mrb[30].mxu1  ;;  %v1158_v53 = vpack.c.bf16 %v3142_v33, %v3142_v33  ;;  %v1159_v54 = vpack.c.bf16 %v3144_v38, %v3144_v38 }
 0x64e   : > { %v2516_v58 = vpop.f32.mrb[31].mxu1 }
 0x65e   : > { %1332 = vrot.lane.b32.xlu1 %v3083_v22, %s2808_s30 }
 0x662   : > { %1384 = vrot.lane.b32.xlu1 %v3041_v41, %s2809_s22 }
 0x666   : > { %1434 = vrot.lane.b32.xlu1 %v3046_v45, %s2809_s22 }
 0x66a   : > { %1432 = vrot.lane.b32.xlu1 %v3057_v49, %s2809_s22 }
 0x6d8   : > { %v1262_v59 = vpop.xlane.xlu0 %1261 }
 0x6d9   : > { %v1266_v60 = vsub.f32 %v1204_v44, %v1262_v59 }
 0x6da   : > { %v1265_v61 = vpop.xlane.xlu1 %1264 }
 0x6db   : > { %v1268_v62 = vmul.f32 1.442695, %v1266_v60  ;;  %v1267_v63 = vsub.f32 %v1254_v51, %v1265_v61 }
 0x6dd   : > { %2716 = vpow2.f32 %v1268_v62  ;;  %v1270_v0 = vmul.f32 1.442695, %v1267_v63 }
 0x6de   : > { %v1333_v1 = vpop.permute.xlu1 %1332 }
 0x6df   : > { %2718 = vpow2.f32 %v1270_v0  ;;  %v1338_v3 = vsel %vm846_vm2, %v1333_v1, 0 }
 0x6e0   : > { %2524 = vmatpush3.bf16.msra.mxu1 %v1338_v3 }
 0x6e1   : > { %2535 = vmatprep.subr.bf16.mxu1 %v2805_v4 }
 0x6e2   : > { %v1385_v11 = vpop.permute.xlu1 %1384 }
 0x6e6   : > { %v1435_v16 = vpop.permute.xlu1 %1434 }
 0x6e7   : > { %v2717_v41 = vpop.eup %2716  ;;  %v1440_v18 = vsel %vm725_vm1, %v1435_v16, 0  ;;  %v2658_v16 = vld [vmem:[%s3436_s3 + $0x30] sm:$0xff]  }
 0x6e8   : > { %v1272_v45 = vsel %vm818_vm3, %v2717_v41, 0.0 }
 0x6e9   : > { %v2719_v5 = vpop.eup %2718  ;;  %1273 = vadd.xlane.f32.xlu0 %v1272_v45 }
 0x6ea   : > { %v1275_v49 = vsel %vm818_vm3, %v2719_v5, 0.0  ;;  %v1433_v20 = vpop.permute.xlu1 %1432 }
 0x6ed   : > { %1276 = vadd.xlane.f32.xlu0 %v1275_v49 }
 0x703   : > { %1284 = vrot.lane.b32.xlu0 %v3064_v56, %s2808_s30 }
 0x707   : > { %1382 = vrot.lane.b32.xlu0 %v3048_v46, %s2809_s22  ;;  %v1390_v46 = vsel %vm725_vm1, %v1385_v11, 0  ;;  %v2652_v11 = vld [vmem:[%s3436_s3] sm:$0xff]  }
 0x776   : > { %v1274_v6 = vpop.xlane.xlu0 %1273 }
 0x777   : > { %2720 = vrcp.f32 %v1274_v6 }
 0x77a   : > { %v1277_v7 = vpop.xlane.xlu0 %1276 }
 0x77b   : > { %2722 = vrcp.f32 %v1277_v7 }
 0x77e   : > { %v1285_v8 = vpop.permute.xlu0 %1284 }
 0x77f   : > { %v1290_v9 = vsel %vm846_vm2, %v1285_v8, 0 }
 0x780   : > { %2518 = vmatpush3.bf16.msra.mxu0 %v1290_v9 }
 0x781   : > { %v2721_v10 = vpop.eup %2720  ;;  %2529 = vmatprep.subr.bf16.mxu0 %v2805_v4 }
 0x782   : > { %v1280_v12 = vmul.f32 %v2721_v10, %v2717_v41  ;;  %v1383_v19 = vpop.permute.xlu0 %1382 }
 0x784   : > { %v1282_v13 = vpack.c.bf16 %v1280_v12, %v1280_v12  ;;  %v2653_v12 = vld [vmem:[%s3436_s3 + $0x8] sm:$0xff]  }
 0x785   : > { %v2723_v14 = vpop.eup %2722 }
 0x786   : > { %v1281_v15 = vmul.f32 %v2723_v14, %v2719_v5  ;;  %2520 = vmatmul.mubr.msk.bf16.vlgmr.msra.gmra.mrb[16].mxu0 %vm818_vm3, %v1282_v13  ;;  %v2654_v13 = vld [vmem:[%s3436_s3 + $0x10] sm:$0xff]   ;;  %v2656_v14 = vld [vmem:[%s3436_s3 + $0x20] sm:$0xff]  }
 0x787   : > { %2531 = vmatprep.mubr.msk.bf16.mxu0 %vm2806_vm0, %v2805_v4 }
 0x788   : > { %v1283_v17 = vpack.c.bf16 %v1281_v15, %v1281_v15  ;;  %v2657_v15 = vld [vmem:[%s3436_s3 + $0x28] sm:$0xff]  }
 0x789   : > { %2530 = vmatpush3.bf16.xpose.msra.mxu0 %v1390_v46  ;;  %v2659_v46 = vld [vmem:[%s3436_s3 + $0x38] sm:$0xff]  }
 0x78a   : > { %2526 = vmatmul.mubr.msk.bf16.vlgmr.msra.gmra.mrb[32].mxu1 %vm818_vm3, %v1283_v17  ;;  %2541 = vmatprep.subr.bf16.mxu0 %v2805_v4 }
 0x78b   : > { %2536 = vmatpush3.bf16.xpose.msra.mxu1 %v1440_v18  ;;  %2537 = vmatprep.mubr.msk.bf16.mxu1 %vm2806_vm0, %v2805_v4 }
 0x78c   : > { %2547 = vmatprep.subr.bf16.mxu1 %v2805_v4 }
 0x790   : > { %2532 = vmatmul.mubr.msk.bf16.vlgmr.msra.gmra.mrb[20].mxu0 %vm725_vm1, %v1383_v19 }
 0x791   : > { %2543 = vmatprep.mubr.msk.bf16.mxu0 %vm2806_vm0, %v2805_v4 }
 0x792   : > { %2538 = vmatmul.mubr.msk.bf16.vlgmr.msra.gmra.mrb[36].mxu1 %vm725_vm1, %v1433_v20 }
 0x793   : > { %2549 = vmatprep.mubr.msk.bf16.mxu1 %vm2806_vm0, %v2805_v4 }
 0x859   : > { %v1326_v21 = vpop.f32.mrb[16].mxu0 }
 0x85a   : > { %v2521_v25 = vpop.f32.mrb[17].mxu0  ;;  %v1380_v3 = vpack.c.bf16 %v1326_v21, %v1326_v21 }
 0x85b   : > { %v1329_v26 = vpop.f32.mrb[18].mxu0 }
 0x85c   : > { %v2522_v27 = vpop.f32.mrb[19].mxu0 }
 0x85d   : > { %v1374_v28 = vpop.f32.mrb[32].mxu1 }
 0x85e   : > { %v2527_v29 = vpop.f32.mrb[33].mxu1  ;;  %v1381_v55 = vpack.c.bf16 %v1374_v28, %v1374_v28 }
 0x85f   : > { %v1377_v32 = vpop.f32.mrb[34].mxu1 }
 0x860   : > { %v2528_v35 = vpop.f32.mrb[35].mxu1 }
 0x863   : > { %v1426_v36 = vpop.f32.mrb[20].mxu0 }
 0x864   : > { %v2533_v37 = vpop.f32.mrb[21].mxu0  ;;  %v1482_v40 = vsel %vm818_vm3, %v1426_v36, -inf }
 0x865   : > { %1483 = vmax.xlane.f32.xlu0 %v1482_v40  ;;  %v1429_v42 = vpop.f32.mrb[22].mxu0  ;;  %v1476_v43 = vpop.f32.mrb[36].mxu1  ;;  %v936_v37 = vpack.c.bf16 %v3102_v39, %v3102_v39  ;;  %v937_v40 = vpack.c.bf16 %v3105_v52, %v3105_v52  ;;  %v2306_v39 = vld [vmem:[%s3437_s4] ss:$0 sm:$0xff] }
 0x866   : > { %v2534_v44 = vpop.f32.mrb[23].mxu0  ;;  %v2539_v47 = vpop.f32.mrb[37].mxu1  ;;  %v1485_v48 = vsel %vm818_vm3, %v1476_v43, -inf }
 0x867   : > { %1486 = vmax.xlane.f32.xlu1 %v1485_v48  ;;  %v1479_v50 = vpop.f32.mrb[38].mxu1 }
 0x868   : > { %v2540_v51 = vpop.f32.mrb[39].mxu1 }
 0x878   : > { %1554 = vrot.lane.b32.xlu1 %v3083_v22, %s2809_s22 }
 0x87c   : > { %1606 = vrot.lane.b32.xlu1 %v1158_v53, %s2809_s22 }
 0x880   : > { %1608 = vrot.lane.b32.xlu1 %v1159_v54, %s2809_s22 }
 0x884   : > { %1614 = vrot.lane.b32.xlu1 %v1381_v55, %s2808_s30 }
 0x8f2   : > { %v1484_v57 = vpop.xlane.xlu0 %1483 }
 0x8f3   : > { %v1488_v58 = vsub.f32 %v1426_v36, %v1484_v57 }
 0x8f4   : > { %v1487_v59 = vpop.xlane.xlu1 %1486 }
 0x8f5   : > { %v1490_v60 = vmul.f32 1.442695, %v1488_v58  ;;  %v1489_v61 = vsub.f32 %v1476_v43, %v1487_v59 }
 0x8f7   : > { %2724 = vpow2.f32 %v1490_v60  ;;  %v1492_v22 = vmul.f32 1.442695, %v1489_v61 }
 0x8f8   : > { %v1555_v62 = vpop.permute.xlu1 %1554 }
 0x8f9   : > { %2726 = vpow2.f32 %v1492_v22  ;;  %v1560_v33 = vsel %vm846_vm2, %v1555_v62, 0  ;;  %v2660_v62 = vld [vmem:[%s3440_s7] ss:$8 sps:$4 sm:$0xff]  }
 0x8fa   : > { %2548 = vmatpush3.bf16.msra.mxu1 %v1560_v33  ;;  %v2662_v33 = vld [vmem:[%s3440_s7 + $0x4] ss:$8 sps:$4 sm:$0xff]  }
 0x8fb   : > { %1908 = vmatprep.subr.bf16.mxu1 %v2662_v33 }
 0x901   : > { %v2725_v63 = vpop.eup %2724 }
 0x902   : > { %v1494_v38 = vsel %vm818_vm3, %v2725_v63, 0.0 }
 0x903   : > { %v2727_v0 = vpop.eup %2726  ;;  %1495 = vadd.xlane.f32.xlu0 %v1494_v38 }
 0x904   : > { %v1497_v1 = vsel %vm818_vm3, %v2727_v0, 0.0 }
 0x907   : > { %1498 = vadd.xlane.f32.xlu0 %v1497_v1 }
 0x91d   : > { %1506 = vrot.lane.b32.xlu0 %v3064_v56, %s2809_s22  ;;  %s434_s22 = scalar_lea.vmem [#allocation2], %s2257_s21  ;;  %s2810_s21 = smov [#allocation2]  }
 0x91e   : > { %s2191_s14 = sshll.u32 %s434_s22, 4  ;;  %s3390_s14 = int_to_ptr.vmem [resolvable:$true] %s2191_s14 }
 0x921   : > { %1612 = vrot.lane.b32.xlu0 %v1380_v3, %s2808_s30  ;;  %s2364_s30 = sshll.u32 %s2904_s29, 8  ;;  %s2740_s29 = scalar_lea.vmem %s3390_s14, 256 }
 0x922   : > { %s3388_s0 = scalar_lea.hbm %s3446_s13, %s2364_s30  ;;  %p2741_p11 = scmp.ne.s32.totalorder %s3390_s14, %s2740_s29 }
 0x924   : > { %p2742_p12 = pnand %p2741_p11, %p2921_p5 }
 0x926   : > { %p2743_p13 = pneg %p2742_p12 }
 0x990   : > { %v1496_v41 = vpop.xlane.xlu0 %1495 }
 0x991   : > { %2728 = vrcp.f32 %v1496_v41 }
 0x994   : > { %v1499_v45 = vpop.xlane.xlu0 %1498 }
 0x995   : > { %2730 = vrcp.f32 %v1499_v45 }
 0x998   : > { %v1507_v5 = vpop.permute.xlu0 %1506 }
 0x999   : > { %v1512_v49 = vsel %vm846_vm2, %v1507_v5, 0 }
 0x99a   : > { %2542 = vmatpush3.bf16.msra.mxu0 %v1512_v49  ;;  %v2668_v49 = vld [vmem:[%s3440_s7 + $0x24] ss:$8 sps:$4 sm:$0xff]  }
 0x99b   : > { %v2729_v6 = vpop.eup %2728  ;;  %2553 = vmatprep.subr.bf16.mxu0 %v2805_v4 }
 0x99c   : > { %v1502_v7 = vmul.f32 %v2729_v6, %v2725_v63  ;;  %v1613_v35 = vpop.permute.xlu0 %1612  ;;  %v2666_v6 = vld [vmem:[%s3440_s7 + $0x20] ss:$8 sps:$4 sm:$0xff]  }
 0x99e   : > { %v1504_v8 = vpack.c.bf16 %v1502_v7, %v1502_v7  ;;  %v2671_v7 = vld [vmem:[%s3440_s7 + $0x34] ss:$8 sps:$4 sm:$0xff]  }
 0x99f   : > { %v2731_v9 = vpop.eup %2730 }
 0x9a0   : > { %v1503_v10 = vmul.f32 %v2731_v9, %v2727_v0  ;;  %2544 = vmatmul.mubr.msk.bf16.vlgmr.msra.gmra.mrb[24].mxu0 %vm818_vm3, %v1504_v8  ;;  %v2669_v8 = vld [vmem:[%s3440_s7 + $0x30] ss:$8 sps:$4 sm:$0xff]   ;;  %v2674_v9 = vld [vmem:[%s3440_s7 + $0x44] ss:$8 sps:$4 sm:$0xff]  }
 0x9a1   : > { %2569 = vmatprep.mubr.msk.bf16.mxu0 %vm2806_vm0, %v2805_v4  ;;  %2554 = vmatpush3.bf16.msra.mxu0 %v2652_v11  ;;  %v2675_v11 = vld [vmem:[%s3440_s7 + $0x50] ss:$8 sps:$4 sm:$0xff]  }
 0x9a2   : > { %v1505_v56 = vpack.c.bf16 %v1503_v10, %v1503_v10  ;;  %2555 = vmatprep.subr.bf16.mxu0 %v2805_v4  ;;  %v2672_v10 = vld [vmem:[%s3440_s7 + $0x40] ss:$8 sps:$4 sm:$0xff]  }
 0x9a4   : > { %2550 = vmatmul.mubr.msk.bf16.vlgmr.msra.gmra.mrb[40].mxu1 %vm818_vm3, %v1505_v56  ;;  %v2677_v56 = vld [vmem:[%s3440_s7 + $0x54] ss:$8 sps:$4 sm:$0xff]  }
 0x9a5   : > { %1940 = vmatprep.mubr.bf16.mxu1 %v2804_v2  ;;  %2556 = vmatpush3.bf16.msra.mxu0 %v2653_v12  ;;  %v2655_v2 = vld [vmem:[%s3436_s3 + $0x18] sm:$0xff]   ;;  %v2680_v12 = vld [vmem:[%s3440_s7 + $0x64] ss:$8 sps:$4 sm:$0xff]  }
 0x9a6   : > { %2557 = vmatprep.subr.bf16.mxu0 %v2805_v4  ;;  %1909 = vmatpush1.bf16.msra.mxu1 %v2660_v62 }
 0x9a9   : > { %2558 = vmatpush3.bf16.msra.mxu0 %v2654_v13  ;;  %v2678_v13 = vld [vmem:[%s3440_s7 + $0x60] ss:$8 sps:$4 sm:$0xff]  }
 0x9aa   : > { %2559 = vmatprep.subr.bf16.mxu0 %v2805_v4 }
 0x9ad   : > { %2560 = vmatpush3.bf16.msra.mxu0 %v2655_v2  ;;  %v2683_v2 = vld [vmem:[%s3440_s7 + $0x74] ss:$8 sps:$4 sm:$0xff]  }
 0x9ae   : > { %2561 = vmatprep.subr.bf16.mxu0 %v2805_v4 }
 0x9b1   : > { %2562 = vmatpush3.bf16.msra.mxu0 %v2656_v14  ;;  %v2681_v14 = vld [vmem:[%s3440_s7 + $0x70] ss:$8 sps:$4 sm:$0xff]  }
 0x9b2   : > { %2563 = vmatprep.subr.bf16.mxu0 %v2805_v4 }
 0x9b5   : > { %2564 = vmatpush3.bf16.msra.mxu0 %v2657_v15  ;;  %v2684_v15 = vld [vmem:[%s3442_s9 + $0x40] sm:$0xff]  }
 0x9b6   : > { %2565 = vmatprep.subr.bf16.mxu0 %v2805_v4 }
 0x9b9   : > { %2566 = vmatpush3.bf16.msra.mxu0 %v2658_v16  ;;  %v2685_v16 = vld [vmem:[%s3442_s9] sm:$0xff]  }
 0x9ba   : > { %2567 = vmatprep.subr.bf16.mxu0 %v2805_v4  ;;  %v1607_v4 = vpop.permute.xlu1 %1606 }
 0x9bb   : > { %v1624_v43 = vsel %vm725_vm1, %v936_v37, %v1607_v4 }
 0x9bc   : > { %v1630_v48 = vsel %vm1628_vm4, %v1624_v43, %v1613_v35 }
 0x9bd   : > { %2568 = vmatpush3.bf16.msra.mxu0 %v2659_v46  ;;  %v2686_v46 = vld [vmem:[%s3442_s9 + $0x48] sm:$0xff]  }
 0x9be   : > { %v1609_v32 = vpop.permute.xlu1 %1608  ;;  %2415 = vmatprep.subr.bf16.mxu0 %v2684_v15 }
 0x9bf   : > { %v1627_v44 = vsel %vm725_vm1, %v937_v40, %v1609_v32 }
 0x9c2   : > { %v1615_v36 = vpop.permute.xlu1 %1614 }
 0x9c3   : > { %v1632_v47 = vsel %vm1628_vm4, %v1627_v44, %v1615_v36 }
 0xa73   : > { %v1548_v17 = vpop.f32.mrb[24].mxu0 }
 0xa74   : > { %v1602_v18 = vpack.c.bf16 %v1548_v17, %v1548_v17  ;;  %v2545_v19 = vpop.f32.mrb[25].mxu0  ;;  %v2687_v17 = vld [vmem:[%s3442_s9 + $0x8] sm:$0xff]  }
 0xa75   : > { %v1551_v20 = vpop.f32.mrb[26].mxu0  ;;  %v2689_v19 = vld [vmem:[%s3442_s9 + $0x10] sm:$0xff]  }
 0xa76   : > { %1618 = vrot.lane.b32.xlu0 %v1602_v18, %s2807_s27  ;;  %v2546_v21 = vpop.f32.mrb[27].mxu0  ;;  %v2688_v18 = vld [vmem:[%s3442_s9 + $0x50] sm:$0xff]   ;;  %v2690_v20 = vld [vmem:[%s3442_s9 + $0x58] sm:$0xff]  }
 0xa77   : > { %v1596_v25 = vpop.f32.mrb[40].mxu1  ;;  %v2691_v21 = vld [vmem:[%s3442_s9 + $0x18] sm:$0xff]  }
 0xa78   : > { %v1603_v26 = vpack.c.bf16 %v1596_v25, %v1596_v25  ;;  %v2551_v27 = vpop.f32.mrb[41].mxu1  ;;  %v2692_v25 = vld [vmem:[%s3442_s9 + $0x60] sm:$0xff]  }
 0xa79   : > { %v1599_v28 = vpop.f32.mrb[42].mxu1  ;;  %v2694_v27 = vld [vmem:[%s3442_s9 + $0x68] sm:$0xff]  }
 0xa7a   : > { %1620 = vrot.lane.b32.xlu1 %v1603_v26, %s2807_s27  ;;  %v2552_v29 = vpop.f32.mrb[43].mxu1  ;;  %v2693_v26 = vld [vmem:[%s3442_s9 + $0x20] sm:$0xff]   ;;  %s2744_s27 = sshll.u32 %s2810_s21, 4  ;;  %s2745_s27 = int_to_ptr.vmem [resolvable:$false] %s2744_s27 }
 0xa7b   : > { %s2746_s23 = scalar_lea.vmem %s2745_s27, 512  ;;  %p2747_p0 = scmp.lt.s32.totalorder %s3390_s14, %s2745_s27 }
 0xa7c   : > { %p2748_p1 = scmp.lt.s32.totalorder %s2746_s23, %s2740_s29 }
 0xa7e   : > { %p2749_p2 = por %p2748_p1, %p2747_p0 }
 0xa80   : > { %p2750_p3 = pnand %p2749_p2, %p2743_p13 }
 0xae8   : > { %v1619_v42 = vpop.permute.xlu0 %1618 }
 0xae9   : > { %v1635_v51 = vsel %vm1633_vm5, %v1630_v48, %v1619_v42  ;;  %v2316_v42 = vld [vmem:[%s3438_s5] ss:$0 sm:$0xff] }
 0xaea   : > { %v2317_v48 = vld [vmem:[%s3439_s6] ss:$0 sm:$0xff] }
 0xaec   : > { %v1621_v50 = vpop.permute.xlu1 %1620 }
 0xaed   : > { %v1637_v53 = vsel %vm1633_vm5, %v1632_v47, %v1621_v50 }
 0xaee   : > { %v2307_v54 = vcombine.low %v1635_v51, %v1637_v53 }
 0xaf0   : > { %2570 = vmatmul.mubr.bf16.vlgmr.msra.gmra.mrb[28].mxu0 %v2307_v54 }
 0xaf1   : > { %2416 = vmatpush3.bf16.msra.mxu0 %v2685_v16 }
 0xaf2   : > { %2417 = vmatprep.subr.bf16.mxu0 %v2686_v46 }
 0xaf5   : > { %2418 = vmatpush3.bf16.msra.mxu0 %v2687_v17 }
 0xaf6   : > { %2419 = vmatprep.subr.bf16.mxu0 %v2688_v18 }
 0xaf9   : > { %2420 = vmatpush3.bf16.msra.mxu0 %v2689_v19 }
 0xafa   : > { %2421 = vmatprep.subr.bf16.mxu0 %v2690_v20 }
 0xafd   : > { %2422 = vmatpush3.bf16.msra.mxu0 %v2691_v21 }
 0xafe   : > { %2423 = vmatprep.subr.bf16.mxu0 %v2692_v25 }
 0xb01   : > { %2424 = vmatpush3.bf16.msra.mxu0 %v2693_v26 }
 0xb02   : > { %2425 = vmatprep.subr.bf16.mxu0 %v2694_v27 }
 0xbc3   : > { %v1749_v55 = vpop.f32.mrb[28].mxu0 }
 0xbc4   : > { %v1750_v52 = vadd.f32 %v2306_v39, %v1749_v55  ;;  %v2571_v57 = vpop.f32.mrb[29].mxu0  ;;  %v2696_v55 = vld [vmem:[%s3442_s9 + $0x70] sm:$0xff]  }
 0xbc5   : > { %v1752_v58 = vpop.f32.mrb[30].mxu0  ;;  %v2698_v57 = vld [vmem:[%s3442_s9 + $0x78] sm:$0xff]  }
 0xbc6   : > { %v3249_v59 = vadd.f32 %v1750_v52, %v3003_v23  ;;  %v1753_v60 = vadd.f32 %v2306_v39, %v1752_v58  ;;  %v2572_v61 = vpop.f32.mrb[31].mxu0  ;;  %v2665_v23 = vld [vmem:[%s3440_s7 + $0x14] ss:$8 sps:$4 sm:$0xff]   ;;  %v2695_v39 = vld [vmem:[%s3442_s9 + $0x28] sm:$0xff]  }
 0xbc7   : > { %1910 = vmatprep.subr.bf16.mxu1 %v2665_v23  ;;  %2426 = vmatpush3.bf16.msra.mxu0 %v2695_v39  ;;  %v2697_v52 = vld [vmem:[%s3442_s9 + $0x30] sm:$0xff]   ;;  %v2699_v58 = vld [vmem:[%s3442_s9 + $0x38] sm:$0xff]  }
 0xbc8   : > { %v3252_v22 = vadd.f32 %v1753_v60, %v3005_v24  ;;  %1760 = vadd.xlane.f32.xlu0 %v3249_v59  ;;  %v2663_v24 = vld [vmem:[%s3440_s7 + $0x10] ss:$8 sps:$4 sm:$0xff]   ;;  %2427 = vmatprep.subr.bf16.mxu0 %v2696_v55  ;;  %v1816_v60 = vld [vmem:[%s3441_s8] sm:$0x3] }
 0xbc9   : > { %1911 = vmatpush1.bf16.msra.mxu1 %v2663_v24  ;;  %v1821_v61 = vrot.slane %v1816_v60, %v482_v34  ;;  %v1825_v62 = vrot.slane %v1816_v60, %v486_v31 }
 0xbca   : > { %1762 = vadd.xlane.f32.xlu1 %v3252_v22  ;;  %1912 = vmatprep.subr.bf16.mxu1 %v2668_v49 }
 0xbcb   : > { %2428 = vmatpush3.bf16.msra.mxu0 %v2697_v52 }
 0xbcc   : > { %2429 = vmatprep.subr.bf16.mxu0 %v2698_v57 }
 0xbcd   : > { %1913 = vmatpush1.bf16.msra.mxu1 %v2666_v6 }
 0xbce   : > { %1914 = vmatprep.subr.bf16.mxu1 %v2671_v7 }
 0xbcf   : > { %2430 = vmatpush3.bf16.msra.mxu0 %v2699_v58 }
 0xbd1   : > { %1915 = vmatpush1.bf16.msra.mxu1 %v2669_v8 }
 0xbd2   : > { %1916 = vmatprep.subr.bf16.mxu1 %v2674_v9 }
 0xbd5   : > { %1917 = vmatpush1.bf16.msra.mxu1 %v2672_v10 }
 0xbd6   : > { %1918 = vmatprep.subr.bf16.mxu1 %v2677_v56 }
 0xbd9   : > { %1919 = vmatpush1.bf16.msra.mxu1 %v2675_v11 }
 0xbda   : > { %1920 = vmatprep.subr.bf16.mxu1 %v2680_v12 }
 0xbdd   : > { %1921 = vmatpush1.bf16.msra.mxu1 %v2678_v13 }
 0xbde   : > { %1922 = vmatprep.subr.bf16.mxu1 %v2683_v2 }
 0xbe1   : > { %1923 = vmatpush1.bf16.msra.mxu1 %v2681_v14 }
 0xc55   : > { %v1761_v63 = vpop.xlane.xlu0 %1760 }
 0xc56   : > { %v1765_v38 = vmul.f32 0.0078125, %v1761_v63 }
 0xc57   : > { %v1763_v0 = vpop.xlane.xlu1 %1762 }
 0xc58   : > { %v1767_v1 = vsub.f32 %v3249_v59, %v1765_v38  ;;  %v1766_v3 = vmul.f32 0.0078125, %v1763_v0 }
 0xc5a   : > { %v3270_v41 = vsub.f32 %v3252_v22, %v1766_v3  ;;  %v1769_v45 = vmul.f32 %v1767_v1, %v1767_v1 }
 0xc5c   : > { %1771 = vadd.xlane.f32.xlu0 %v1769_v45  ;;  %v1770_v5 = vmul.f32 %v3270_v41, %v3270_v41 }
 0xc60   : > { %1773 = vadd.xlane.f32.xlu0 %v1770_v5 }
 0xce9   : > { %v1772_v28 = vpop.xlane.xlu0 %1771 }
 0xcea   : > { %v1775_v29 = vmul.f32 0.0078125, %v1772_v28 }
 0xcec   : > { %v1777_v4 = vadd.f32 1e-05, %v1775_v29  ;;  %v2351_v29 = vld [vmem:[%s3444_s11] ss:$0 sm:$0xff] }
 0xced   : > { %v1774_v32 = vpop.xlane.xlu0 %1773 }
 0xcee   : > { %2732 = vrsqrt.f32 %v1777_v4  ;;  %v1776_v35 = vmul.f32 0.0078125, %v1774_v32 }
 0xcf0   : > { %v1778_v36 = vadd.f32 1e-05, %v1776_v35  ;;  %v2352_v35 = vld [vmem:[%s3445_s12] ss:$0 sm:$0xff] }
 0xcf2   : > { %2734 = vrsqrt.f32 %v1778_v36 }
 0xcf8   : > { %v2733_v37 = vpop.eup %2732 }
 0xcf9   : > { %v1781_v40 = vmul.f32 %v2733_v37, %v1767_v1 }
 0xcfb   : > { %v1789_v47 = vmul.f32 %v2316_v42, %v1781_v40 }
 0xcfc   : > { %v2735_v43 = vpop.eup %2734 }
 0xcfd   : > { %v1782_v44 = vmul.f32 %v2735_v43, %v3270_v41  ;;  %v1797_v51 = vadd.f32 %v2317_v48, %v1789_v47 }
 0xcff   : > { %v1790_v50 = vmul.f32 %v2316_v42, %v1782_v44 }
 0xd01   : > { %v1798_v53 = vadd.f32 %v2317_v48, %v1790_v50 }
 0xd03   : > { %v1799_v54 = vpack.c.bf16 %v1798_v53, %v1797_v51 }
 0xd05   : > { %1941 = vmatmul.mubr.bf16.vlgmr.msra.gmra.mrb[44].mxu1 %v1799_v54 }
 0xdd8   : > { %v1942_v33 = vpop.f32.mrb[44].mxu1 }
 0xdd9   : > { %v1943_v23 = vadd.f32 %v1942_v33, %v1821_v61  ;;  %v1944_v24 = vpop.f32.mrb[45].mxu1 }
 0xdda   : > { %v1945_v63 = vadd.f32 %v1944_v24, %v1825_v62  ;;  %v1946_v38 = vpop.f32.mrb[46].mxu1 }
 0xddb   : > { %v1947_v0 = vadd.f32 %v1946_v38, %v1821_v61  ;;  %v1948_v1 = vpop.f32.mrb[47].mxu1  ;;  %v1951_v41 = vmax.f32 %v1943_v23, 0.0 }
 0xddc   : > { %v1949_v3 = vadd.f32 %v1948_v1, %v1825_v62  ;;  %v1952_v5 = vmax.f32 %v1945_v63, 0.0 }
 0xddd   : > { %v1953_v45 = vmax.f32 %v1947_v0, 0.0 }
 0xdde   : > { %v1954_v49 = vmax.f32 %v1949_v3, 0.0 }
 0xddf   : > { %v1955_v6 = vpack.c.bf16 %v1953_v45, %v1951_v41 }
 0xde0   : > { %v1956_v7 = vpack.c.bf16 %v1954_v49, %v1952_v5 }
 0xde2   : > { %2124 = vmatprep.mubr.bf16.mxu0 %v1956_v7 }
 0xde3   : > { %2125 = vmatmul.mubr.bf16.vlgmr.msra.gmra.mrb[32].mxu0 %v1955_v6 }
 0xeb6   : > { %v2431_v34 = vpop.f32.mrb[32].mxu0 }
 0xeb7   : > { %v2432_v31 = vpop.f32.mrb[33].mxu0 }
 0xeb8   : > { %v2433_v8 = vadd.f32 %v2432_v31, %v2431_v34  ;;  %v2434_v9 = vpop.f32.mrb[34].mxu0 }
 0xeb9   : > { %v2435_v10 = vpop.f32.mrb[35].mxu0 }
 0xeba   : > { %v2127_v56 = vadd.f32 %v2433_v8, %v2334_v30  ;;  %v2436_v11 = vadd.f32 %v2435_v10, %v2434_v9 }
 0xebc   : > { %v2130_v12 = vadd.f32 %v2436_v11, %v2334_v30  ;;  %v2133_v13 = vadd.f32 %v2127_v56, %v3249_v59 }
 0xebe   : > { %2137 = vadd.xlane.f32.xlu0 %v2133_v13  ;;  %v2134_v2 = vadd.f32 %v2130_v12, %v3252_v22 }
 0xec0   : > { %2139 = vadd.xlane.f32.xlu1 %v2134_v2 }
 0xf4b   : > { %v2138_v14 = vpop.xlane.xlu0 %2137 }
 0xf4c   : > { %v2141_v15 = vmul.f32 0.0078125, %v2138_v14 }
 0xf4d   : > { %v2140_v16 = vpop.xlane.xlu1 %2139 }
 0xf4e   : > { %v2143_v46 = vsub.f32 %v2133_v13, %v2141_v15  ;;  %v2142_v17 = vmul.f32 0.0078125, %v2140_v16 }
 0xf50   : > { %v2144_v18 = vsub.f32 %v2134_v2, %v2142_v17  ;;  %v2145_v19 = vmul.f32 %v2143_v46, %v2143_v46 }
 0xf52   : > { %2147 = vadd.xlane.f32.xlu0 %v2145_v19  ;;  %v2146_v20 = vmul.f32 %v2144_v18, %v2144_v18 }
 0xf54   : > { %2149 = vadd.xlane.f32.xlu1 %v2146_v20 }
 0xfdf   : > { %v2148_v21 = vpop.xlane.xlu0 %2147 }
 0xfe0   : > { %v2151_v25 = vmul.f32 0.0078125, %v2148_v21 }
 0xfe1   : > { %v2150_v26 = vpop.xlane.xlu1 %2149 }
 0xfe2   : > { %v2153_v59 = vadd.f32 1e-05, %v2151_v25  ;;  %v2152_v27 = vmul.f32 0.0078125, %v2150_v26 }
 0xfe4   : > { %2736 = vrsqrt.f32 %v2153_v59  ;;  %v2154_v22 = vadd.f32 1e-05, %v2152_v27 }
 0xfe6   : > { %2738 = vrsqrt.f32 %v2154_v22 }
 0xfee   : > { %v2737_v28 = vpop.eup %2736 }
 0xfef   : > { %v2157_v4 = vmul.f32 %v2737_v28, %v2143_v46 }
 0xff0   : > { %v2739_v32 = vpop.eup %2738 }
 0xff1   : > { %v2165_v36 = vmul.f32 %v2351_v29, %v2157_v4  ;;  %v2158_v37 = vmul.f32 %v2739_v32, %v2144_v18 }
 0xff3   : > { %v2166_v40 = vmul.f32 %v2351_v29, %v2158_v37  ;;  %v2173_v42 = vadd.f32 %v2352_v35, %v2165_v36 }
 0xff5   : > { %v2174_v43 = vadd.f32 %v2352_v35, %v2166_v40  ;;  %2175 = vst [vmem:[%s434_s22] sm:$0xff] %v2173_v42 }
 0xff7   : > { %2176 = vst [vmem:[%s434_s22 + $0x8] sm:$0xff] %v2174_v43 }
 0xff8   : > { %2753 = shalt.err (!%p2750_p3)
}
 0xff9   : > { %s2754_s20 = scalar_lea.hbm %s3388_s0, 256  ;;  %s2758_s22 = scalar_lea.hbm %s3446_s13, 1024 }
 0xffa   : > { %p2755_p4 = scmp.ne.s32.totalorder %s3388_s0, %s2754_s20  ;;  %p2759_p9 = scmp.lt.u32.totalorder %s3388_s0, %s3446_s13 }
 0xffb   : > { %p2760_p10 = scmp.lt.u32.totalorder %s2758_s22, %s2754_s20  ;;  %p2762_p12 = scmp.lt.u32.totalorder %s2754_s20, %s3388_s0 }
 0xffc   : > { %p2756_p7 = pnand %p2755_p4, %p2921_p5 }
 0xffd   : > { %p2761_p11 = por %p2760_p10, %p2759_p9 }
 0xffe   : > { %p2757_p8 = pneg %p2756_p7 }
 0xfff   : > { %p2763_p13 = por %p2762_p12, %p2761_p11 }
0x1001   : > { %p2764_p0 = pnand %p2763_p13, %p2757_p8 }
0x1003   : > { %2767 = shalt.err (!%p2764_p0)
}
0x1004   : > { %s2811_s29 = smov 128   ;;  %s2812_s21 = smov 8  }
0x1005   : > { %2573 = dma.vmem_to_hbm [thread:$0]  (%p2921_p5), %s3390_s14, 256, %s3388_s0, %s3392_s17, %s2811_s29, %s2811_s29, %s2812_s21  }
0x1006 PF: > { %p2579_p1 = scmp.ge.s32.totalorder %s2802_s28, 2  ;;  %s2206_s27 = sand.u32 1, %s2790_s25  }
0x1007   : > { %s2207_s23 = scalar_lea.sflag [#allocation3], %s2206_s27 }
0x1008   : > { %p2576_p2 = pnand %p2579_p1, %p2925_p6 }
0x100a   : > { %2785 = dma.done.wait (!%p2576_p2), %s2207_s23, 256  }
0x100b   : > { %2787 = vsyncadd (!%p2576_p2), %s2207_s23, 4294967040  ;;  %s3457_s28 = sld [smem:[#allocation6_spill]]  ;;  %s3458_s20 = sld [smem:[#allocation5_spill]] }
0x100c   : > { %s3459_s27 = sld [smem:[#allocation7_spill]]  ;;  %s3460_s25 = smov %s2794_s26 }
0x1011   : > { %p23_p3 = scmp.ge.s32.totalorder %s3457_s28, 6   ;;  %s3461_s26 = smov %s3458_s20 }
0x1013   :  { %25 = sbr.rel (!%p23_p3) target bundleno = 5 (0x5), region = 107 }
0x101a   :  { %2212 = vsyncpa [#allocation3], 1 }
0x101b   :  { %2214 = vsyncpa [#allocation3 + $0x1], 1 }

</bundles_post_ra>
